<compile_context>
chip_gen: v7x
topology: tpu7x:2x2x1
jax: 0.10.0
libtpu: 0.0.40
codegen_flags: <defaults>
</compile_context>

<pallas_src>
import numpy as np

import jax
import jax.numpy as jnp
from jax.experimental import pallas as pl
from jax.experimental.pallas import tpu as pltpu


_PREC = jax.lax.Precision.HIGHEST


# ---------------------------------------------------------------------------
# The fused Pallas kernel (one grid step == one image)
# ---------------------------------------------------------------------------
def _lenet_kernel(x_ref, c1w_ref, c1b_ref, c2w_ref, c2b_ref,
                  w1s_ref, l1b_ref, l2w_ref, l2b_ref,
                  o_ref, p1_ref):
    f32 = jnp.float32

    # ---- conv1 + bias + ReLU: (28,28) -> (24, 144), lane = 6*x + c_out ----
    img = x_ref[0, 0]                                         # (28, 28)
    acc1 = jnp.zeros((24, 144), f32)
    for ki in range(5):                                       # 5 banded matmuls
        acc1 = acc1 + jnp.dot(img[ki:ki + 24, :], c1w_ref[ki],
                              preferred_element_type=f32, precision=_PREC)
    a1 = jnp.maximum(acc1 + c1b_ref[...], 0.0)                # (24, 144)

    # ---- maxpool1 2x2: row-pair max, then lane-shift max -------------------
    # p1_ref row r holds pooled row r; valid lanes are 12*x_pooled + c_in.
    for r in range(12):
        rm = jnp.maximum(a1[2 * r:2 * r + 1, :],
                         a1[2 * r + 1:2 * r + 2, :])          # (1, 144)
        p1_ref[r:r + 1, :] = jnp.maximum(rm[:, 0:138], rm[:, 6:144])

    # ---- conv2 + bias + ReLU: -> (8, 128), lane = 16*x + c_out -------------
    # Banded weights are zero on the "garbage" lanes of p1_ref, so those are
    # harmlessly multiplied away.
    acc2 = jnp.zeros((8, 128), f32)
    for ki in range(5):
        acc2 = acc2 + jnp.dot(p1_ref[pl.ds(ki, 8), :], c2w_ref[ki],
                              preferred_element_type=f32, precision=_PREC)
    a2 = jnp.maximum(acc2 + c2b_ref[...], 0.0)                # (8, 128)

    # ---- maxpool2 2x2 fused with flatten + Linear1 --------------------------
    # For each pooled row h: pooled lanes are 32*x_pooled + c (zeros elsewhere
    # in the per-row Linear1 slab), so one (1,112)x(112,256) dot per row.
    y1 = l1b_ref[...]                                         # (1, 256)
    for h in range(4):
        rm = jnp.maximum(a2[2 * h:2 * h + 1, :],
                         a2[2 * h + 1:2 * h + 2, :])          # (1, 128)
        pr = jnp.maximum(rm[:, 0:112], rm[:, 16:128])         # (1, 112)
        y1 = y1 + jnp.dot(pr, w1s_ref[h],
                          preferred_element_type=f32, precision=_PREC)
    h1 = jnp.maximum(y1, 0.0)                                 # (1, 256)

    # ---- Linear2 ------------------------------------------------------------
    out = jnp.dot(h1, l2w_ref[...], preferred_element_type=f32, precision=_PREC)
    o_ref[0] = out + l2b_ref[...]                             # (1, 10)


# ---------------------------------------------------------------------------
# One-time host-side weight re-layout (PyTorch layout -> kernel layout)
# ---------------------------------------------------------------------------
def prepare_params(params):
    w1 = np.asarray(params["conv1_w"], np.float32)   # (6, 1, 5, 5)
    b1 = np.asarray(params["conv1_b"], np.float32)   # (6,)
    w2 = np.asarray(params["conv2_w"], np.float32)   # (16, 6, 5, 5)
    b2 = np.asarray(params["conv2_b"], np.float32)   # (16,)
    l1w = np.asarray(params["w1"], np.float32)       # (256, 256)
    l1b = np.asarray(params["b1"], np.float32)       # (256,)
    l2w = np.asarray(params["w2"], np.float32)       # (10, 256)
    l2b = np.asarray(params["b2"], np.float32)       # (10,)

    # conv1 banded matrices:
    # acc1[y, 6*x+c] = sum_ki sum_W img[y+ki, W] * B1[ki, W, 6*x+c]
    B1 = np.zeros((5, 28, 24 * 6), np.float32)
    for ki in range(5):
        for x in range(24):
            for kj in range(5):
                B1[ki, x + kj, 6 * x:6 * x + 6] = w1[:, 0, ki, kj]
    c1b = np.tile(b1, 24).reshape(1, 144)

    # conv2 banded matrices over the pooled map (valid lanes = 12*x_in + c_in):
    # acc2[y, 16*x+c] = sum_ki sum_L p1[y+ki, L] * B2[ki, L, 16*x+c]
    B2 = np.zeros((5, 138, 8 * 16), np.float32)
    for ki in range(5):
        for x in range(8):
            for kj in range(5):
                for ci in range(6):
                    B2[ki, 12 * (x + kj) + ci, 16 * x:16 * x + 16] = w2[:, ci, ki, kj]
    c2b = np.tile(b2, 8).reshape(1, 128)

    # Linear1, regrouped per pooled row h of the conv2 map:
    # pooled lane layout after the in-kernel x-pool is 32*w + c (c = channel),
    # PyTorch flatten order of (16, 4, 4) is idx = c*16 + h*4 + w.
    W1s = np.zeros((4, 112, 256), np.float32)
    for h in range(4):
        for w in range(4):
            for c in range(16):
                W1s[h, 32 * w + c, :] = l1w[:, c * 16 + h * 4 + w]

    return {
        "c1w": jnp.asarray(B1), "c1b": jnp.asarray(c1b),
        "c2w": jnp.asarray(B2), "c2b": jnp.asarray(c2b),
        "w1s": jnp.asarray(W1s), "l1b": jnp.asarray(l1b.reshape(1, 256)),
        "l2w": jnp.asarray(l2w.T), "l2b": jnp.asarray(l2b.reshape(1, 10)),
    }


# ---------------------------------------------------------------------------
# Forward pass: a single pallas_call over the batch
# ---------------------------------------------------------------------------
def forward(x, prep):
    n = x.shape[0]
    out3 = pl.pallas_call(
        _lenet_kernel,
        out_shape=jax.ShapeDtypeStruct((n, 1, 10), jnp.float32),
        grid=(n,),
        in_specs=[
            pl.BlockSpec((1, 1, 28, 28), lambda i: (i, 0, 0, 0)),   # image i
            pl.BlockSpec((5, 28, 144), lambda i: (0, 0, 0)),        # conv1 banded
            pl.BlockSpec((1, 144), lambda i: (0, 0)),               # conv1 bias (lane-tiled)
            pl.BlockSpec((5, 138, 128), lambda i: (0, 0, 0)),       # conv2 banded
            pl.BlockSpec((1, 128), lambda i: (0, 0)),               # conv2 bias (lane-tiled)
            pl.BlockSpec((4, 112, 256), lambda i: (0, 0, 0)),       # Linear1 per-row slabs
            pl.BlockSpec((1, 256), lambda i: (0, 0)),               # Linear1 bias
            pl.BlockSpec((256, 10), lambda i: (0, 0)),              # Linear2 weight^T
            pl.BlockSpec((1, 10), lambda i: (0, 0)),                # Linear2 bias
        ],
        out_specs=pl.BlockSpec((1, 1, 10), lambda i: (i, 0, 0)),
        scratch_shapes=[pltpu.VMEM((12, 138), jnp.float32)],        # pooled conv1 map
        compiler_params=pltpu.CompilerParams(
            dimension_semantics=("parallel",)),
    )(x, prep["c1w"], prep["c1b"], prep["c2w"], prep["c2b"],
      prep["w1s"], prep["l1b"], prep["l2w"], prep["l2b"])
    return out3.reshape(n, 10)


# ---------------------------------------------------------------------------
# Pure-JAX reference (PyTorch semantics) for a correctness check
# ---------------------------------------------------------------------------
def reference_forward(x, params):
    dn = ("NCHW", "OIHW", "NCHW")
    y = jax.lax.conv_general_dilated(x, params["conv1_w"], (1, 1), "VALID",
                                     dimension_numbers=dn, precision=_PREC)
    y = jax.nn.relu(y + params["conv1_b"][None, :, None, None])
    y = jax.lax.reduce_window(y, -jnp.inf, jax.lax.max,
                              (1, 1, 2, 2), (1, 1, 2, 2), "VALID")
    y = jax.lax.conv_general_dilated(y, params["conv2_w"], (1, 1), "VALID",
                                     dimension_numbers=dn, precision=_PREC)
    y = jax.nn.relu(y + params["conv2_b"][None, :, None, None])
    y = jax.lax.reduce_window(y, -jnp.inf, jax.lax.max,
                              (1, 1, 2, 2), (1, 1, 2, 2), "VALID")
    y = y.reshape(y.shape[0], -1)
    y = jax.nn.relu(jnp.dot(y, params["w1"].T, precision=_PREC) + params["b1"])
    return jnp.dot(y, params["w2"].T, precision=_PREC) + params["b2"]


if __name__ == "__main__":
    key = jax.random.PRNGKey(0)
    kx, k1, k2, k3, k4, k5, k6, k7, k8 = jax.random.split(key, 9)

    # batch=2, single channel, 28x28 (the shape implied by Linear(16*4*4, 256))
    x = jax.random.normal(kx, (2, 1, 28, 28), dtype=jnp.float32)

    params = {
        "conv1_w": 0.10 * jax.random.normal(k1, (6, 1, 5, 5), jnp.float32),
        "conv1_b": 0.10 * jax.random.normal(k2, (6,), jnp.float32),
        "conv2_w": 0.10 * jax.random.normal(k3, (16, 6, 5, 5), jnp.float32),
        "conv2_b": 0.10 * jax.random.normal(k4, (16,), jnp.float32),
        "w1": 0.05 * jax.random.normal(k5, (256, 256), jnp.float32),
        "b1": 0.05 * jax.random.normal(k6, (256,), jnp.float32),
        "w2": 0.05 * jax.random.normal(k7, (10, 256), jnp.float32),
        "b2": 0.05 * jax.random.normal(k8, (10,), jnp.float32),
    }

    prep = prepare_params(params)            # one-time host-side weight re-layout
    out = jax.jit(forward)(x, prep)
    jax.block_until_ready(out)

    assert out.shape == (2, 10) and out.dtype == jnp.float32

    ref = reference_forward(x, params)
    assert bool(jnp.allclose(out, ref, atol=1e-3, rtol=1e-3)), (
        f"mismatch: max abs err {jnp.max(jnp.abs(out - ref))}")

    print("KERNEL_OK")
</pallas_src>

<mosaic_0001>
module attributes {stable_mosaic.version = 11 : i64} {
  func.func @_lenet_kernel(%arg0: i32, %arg1: memref<1x1x28x28xf32, #tpu.memory_space<vmem>>, %arg2: memref<5x28x144xf32, #tpu.memory_space<vmem>>, %arg3: memref<1x144xf32, #tpu.memory_space<vmem>>, %arg4: memref<5x138x128xf32, #tpu.memory_space<vmem>>, %arg5: memref<1x128xf32, #tpu.memory_space<vmem>>, %arg6: memref<4x112x256xf32, #tpu.memory_space<vmem>>, %arg7: memref<1x256xf32, #tpu.memory_space<vmem>>, %arg8: memref<256x10xf32, #tpu.memory_space<vmem>>, %arg9: memref<1x10xf32, #tpu.memory_space<vmem>>, %arg10: memref<1x1x10xf32, #tpu.memory_space<vmem>>, %arg11: memref<12x138xf32, #tpu.memory_space<vmem>>) attributes {dimension_semantics = [#tpu.dimension_semantics<parallel>], iteration_bounds = array<i64: 2>, scalar_prefetch = 0 : i64, scratch_operands = 1 : i64, tpu.core_type = #tpu.core_type<tc>, window_params = [{transform_indices = @transform_0, window_bounds = array<i64: 1, 1, 28, 28>}, {pipeline_mode = #tpu.pipeline_mode<synchronous>, transform_indices = @transform_1, window_bounds = array<i64: 5, 28, 144>}, {pipeline_mode = #tpu.pipeline_mode<synchronous>, transform_indices = @transform_2, window_bounds = array<i64: 1, 144>}, {pipeline_mode = #tpu.pipeline_mode<synchronous>, transform_indices = @transform_3, window_bounds = array<i64: 5, 138, 128>}, {pipeline_mode = #tpu.pipeline_mode<synchronous>, transform_indices = @transform_4, window_bounds = array<i64: 1, 128>}, {pipeline_mode = #tpu.pipeline_mode<synchronous>, transform_indices = @transform_5, window_bounds = array<i64: 4, 112, 256>}, {pipeline_mode = #tpu.pipeline_mode<synchronous>, transform_indices = @transform_6, window_bounds = array<i64: 1, 256>}, {pipeline_mode = #tpu.pipeline_mode<synchronous>, transform_indices = @transform_7, window_bounds = array<i64: 256, 10>}, {pipeline_mode = #tpu.pipeline_mode<synchronous>, transform_indices = @transform_8, window_bounds = array<i64: 1, 10>}, {transform_indices = @transform_9, window_bounds = array<i64: 1, 1, 10>}]} {
    %c0 = arith.constant 0 : index
    %c0_0 = arith.constant 0 : index
    %c0_1 = arith.constant 0 : index
    %c0_2 = arith.constant 0 : index
    %0 = vector.load %arg1[%c0, %c0_0, %c0_1, %c0_2] : memref<1x1x28x28xf32, #tpu.memory_space<vmem>>, vector<1x1x28x28xf32>
    %1 = vector.shape_cast %0 : vector<1x1x28x28xf32> to vector<28x28xf32>
    %cst = arith.constant 0.000000e+00 : f32
    %2 = vector.broadcast %cst : f32 to vector<24x144xf32>
    %3 = vector.extract_strided_slice %1 {offsets = [0, 0], sizes = [24, 28], strides = [1, 1]} : vector<28x28xf32> to vector<24x28xf32>
    %c0_3 = arith.constant 0 : index
    %c0_4 = arith.constant 0 : index
    %c0_5 = arith.constant 0 : index
    %4 = vector.load %arg2[%c0_3, %c0_4, %c0_5] : memref<5x28x144xf32, #tpu.memory_space<vmem>>, vector<1x28x144xf32>
    %5 = vector.shape_cast %4 : vector<1x28x144xf32> to vector<28x144xf32>
    %cst_6 = arith.constant dense<0.000000e+00> : vector<24x144xf32>
    %6 = tpu.matmul %3, %5, %cst_6 {dimension_numbers = #tpu.dot_dimension_numbers<[1], [0], [0], [1], [0, 0, 1, 1], [], []>, precision = #tpu.contract_precision<fp32>} : vector<24x28xf32>, vector<28x144xf32>, vector<24x144xf32> -> vector<24x144xf32>
    %7 = arith.addf %2, %6 : vector<24x144xf32>
    %8 = vector.extract_strided_slice %1 {offsets = [1, 0], sizes = [24, 28], strides = [1, 1]} : vector<28x28xf32> to vector<24x28xf32>
    %c1 = arith.constant 1 : index
    %c0_7 = arith.constant 0 : index
    %c0_8 = arith.constant 0 : index
    %9 = vector.load %arg2[%c1, %c0_7, %c0_8] : memref<5x28x144xf32, #tpu.memory_space<vmem>>, vector<1x28x144xf32>
    %10 = vector.shape_cast %9 : vector<1x28x144xf32> to vector<28x144xf32>
    %cst_9 = arith.constant dense<0.000000e+00> : vector<24x144xf32>
    %11 = tpu.matmul %8, %10, %cst_9 {dimension_numbers = #tpu.dot_dimension_numbers<[1], [0], [0], [1], [0, 0, 1, 1], [], []>, precision = #tpu.contract_precision<fp32>} : vector<24x28xf32>, vector<28x144xf32>, vector<24x144xf32> -> vector<24x144xf32>
    %12 = arith.addf %7, %11 : vector<24x144xf32>
    %13 = vector.extract_strided_slice %1 {offsets = [2, 0], sizes = [24, 28], strides = [1, 1]} : vector<28x28xf32> to vector<24x28xf32>
    %c2 = arith.constant 2 : index
    %c0_10 = arith.constant 0 : index
    %c0_11 = arith.constant 0 : index
    %14 = vector.load %arg2[%c2, %c0_10, %c0_11] : memref<5x28x144xf32, #tpu.memory_space<vmem>>, vector<1x28x144xf32>
    %15 = vector.shape_cast %14 : vector<1x28x144xf32> to vector<28x144xf32>
    %cst_12 = arith.constant dense<0.000000e+00> : vector<24x144xf32>
    %16 = tpu.matmul %13, %15, %cst_12 {dimension_numbers = #tpu.dot_dimension_numbers<[1], [0], [0], [1], [0, 0, 1, 1], [], []>, precision = #tpu.contract_precision<fp32>} : vector<24x28xf32>, vector<28x144xf32>, vector<24x144xf32> -> vector<24x144xf32>
    %17 = arith.addf %12, %16 : vector<24x144xf32>
    %18 = vector.extract_strided_slice %1 {offsets = [3, 0], sizes = [24, 28], strides = [1, 1]} : vector<28x28xf32> to vector<24x28xf32>
    %c3 = arith.constant 3 : index
    %c0_13 = arith.constant 0 : index
    %c0_14 = arith.constant 0 : index
    %19 = vector.load %arg2[%c3, %c0_13, %c0_14] : memref<5x28x144xf32, #tpu.memory_space<vmem>>, vector<1x28x144xf32>
    %20 = vector.shape_cast %19 : vector<1x28x144xf32> to vector<28x144xf32>
    %cst_15 = arith.constant dense<0.000000e+00> : vector<24x144xf32>
    %21 = tpu.matmul %18, %20, %cst_15 {dimension_numbers = #tpu.dot_dimension_numbers<[1], [0], [0], [1], [0, 0, 1, 1], [], []>, precision = #tpu.contract_precision<fp32>} : vector<24x28xf32>, vector<28x144xf32>, vector<24x144xf32> -> vector<24x144xf32>
    %22 = arith.addf %17, %21 : vector<24x144xf32>
    %23 = vector.extract_strided_slice %1 {offsets = [4, 0], sizes = [24, 28], strides = [1, 1]} : vector<28x28xf32> to vector<24x28xf32>
    %c4 = arith.constant 4 : index
    %c0_16 = arith.constant 0 : index
    %c0_17 = arith.constant 0 : index
    %24 = vector.load %arg2[%c4, %c0_16, %c0_17] : memref<5x28x144xf32, #tpu.memory_space<vmem>>, vector<1x28x144xf32>
    %25 = vector.shape_cast %24 : vector<1x28x144xf32> to vector<28x144xf32>
    %cst_18 = arith.constant dense<0.000000e+00> : vector<24x144xf32>
    %26 = tpu.matmul %23, %25, %cst_18 {dimension_numbers = #tpu.dot_dimension_numbers<[1], [0], [0], [1], [0, 0, 1, 1], [], []>, precision = #tpu.contract_precision<fp32>} : vector<24x28xf32>, vector<28x144xf32>, vector<24x144xf32> -> vector<24x144xf32>
    %27 = arith.addf %22, %26 : vector<24x144xf32>
    %c0_19 = arith.constant 0 : index
    %c0_20 = arith.constant 0 : index
    %28 = vector.load %arg3[%c0_19, %c0_20] : memref<1x144xf32, #tpu.memory_space<vmem>>, vector<1x144xf32>
    %29 = vector.broadcast %28 : vector<1x144xf32> to vector<24x144xf32>
    %30 = arith.addf %27, %29 : vector<24x144xf32>
    %cst_21 = arith.constant 0.000000e+00 : f32
    %31 = vector.broadcast %cst_21 : f32 to vector<24x144xf32>
    %32 = arith.maximumf %30, %31 : vector<24x144xf32>
    %33 = vector.extract_strided_slice %32 {offsets = [0, 0], sizes = [1, 144], strides = [1, 1]} : vector<24x144xf32> to vector<1x144xf32>
    %34 = vector.extract_strided_slice %32 {offsets = [1, 0], sizes = [1, 144], strides = [1, 1]} : vector<24x144xf32> to vector<1x144xf32>
    %35 = arith.maximumf %33, %34 : vector<1x144xf32>
    %36 = vector.extract_strided_slice %35 {offsets = [0, 0], sizes = [1, 138], strides = [1, 1]} : vector<1x144xf32> to vector<1x138xf32>
    %37 = vector.extract_strided_slice %35 {offsets = [0, 6], sizes = [1, 138], strides = [1, 1]} : vector<1x144xf32> to vector<1x138xf32>
    %38 = arith.maximumf %36, %37 : vector<1x138xf32>
    %c0_22 = arith.constant 0 : index
    %c0_23 = arith.constant 0 : index
    %39 = vector.load %arg11[%c0_22, %c0_23] : memref<12x138xf32, #tpu.memory_space<vmem>>, vector<1x138xf32>
    tpu.vector_store %arg11[%c0_22, %c0_23], %38 {strides = array<i32>} : memref<12x138xf32, #tpu.memory_space<vmem>>, vector<1x138xf32>,
    %40 = vector.extract_strided_slice %32 {offsets = [2, 0], sizes = [1, 144], strides = [1, 1]} : vector<24x144xf32> to vector<1x144xf32>
    %41 = vector.extract_strided_slice %32 {offsets = [3, 0], sizes = [1, 144], strides = [1, 1]} : vector<24x144xf32> to vector<1x144xf32>
    %42 = arith.maximumf %40, %41 : vector<1x144xf32>
    %43 = vector.extract_strided_slice %42 {offsets = [0, 0], sizes = [1, 138], strides = [1, 1]} : vector<1x144xf32> to vector<1x138xf32>
    %44 = vector.extract_strided_slice %42 {offsets = [0, 6], sizes = [1, 138], strides = [1, 1]} : vector<1x144xf32> to vector<1x138xf32>
    %45 = arith.maximumf %43, %44 : vector<1x138xf32>
    %c1_24 = arith.constant 1 : index
    %c0_25 = arith.constant 0 : index
    %46 = vector.load %arg11[%c1_24, %c0_25] : memref<12x138xf32, #tpu.memory_space<vmem>>, vector<1x138xf32>
    tpu.vector_store %arg11[%c1_24, %c0_25], %45 {strides = array<i32>} : memref<12x138xf32, #tpu.memory_space<vmem>>, vector<1x138xf32>,
    %47 = vector.extract_strided_slice %32 {offsets = [4, 0], sizes = [1, 144], strides = [1, 1]} : vector<24x144xf32> to vector<1x144xf32>
    %48 = vector.extract_strided_slice %32 {offsets = [5, 0], sizes = [1, 144], strides = [1, 1]} : vector<24x144xf32> to vector<1x144xf32>
    %49 = arith.maximumf %47, %48 : vector<1x144xf32>
    %50 = vector.extract_strided_slice %49 {offsets = [0, 0], sizes = [1, 138], strides = [1, 1]} : vector<1x144xf32> to vector<1x138xf32>
    %51 = vector.extract_strided_slice %49 {offsets = [0, 6], sizes = [1, 138], strides = [1, 1]} : vector<1x144xf32> to vector<1x138xf32>
    %52 = arith.maximumf %50, %51 : vector<1x138xf32>
    %c2_26 = arith.constant 2 : index
    %c0_27 = arith.constant 0 : index
    %53 = vector.load %arg11[%c2_26, %c0_27] : memref<12x138xf32, #tpu.memory_space<vmem>>, vector<1x138xf32>
    tpu.vector_store %arg11[%c2_26, %c0_27], %52 {strides = array<i32>} : memref<12x138xf32, #tpu.memory_space<vmem>>, vector<1x138xf32>,
    %54 = vector.extract_strided_slice %32 {offsets = [6, 0], sizes = [1, 144], strides = [1, 1]} : vector<24x144xf32> to vector<1x144xf32>
    %55 = vector.extract_strided_slice %32 {offsets = [7, 0], sizes = [1, 144], strides = [1, 1]} : vector<24x144xf32> to vector<1x144xf32>
    %56 = arith.maximumf %54, %55 : vector<1x144xf32>
    %57 = vector.extract_strided_slice %56 {offsets = [0, 0], sizes = [1, 138], strides = [1, 1]} : vector<1x144xf32> to vector<1x138xf32>
    %58 = vector.extract_strided_slice %56 {offsets = [0, 6], sizes = [1, 138], strides = [1, 1]} : vector<1x144xf32> to vector<1x138xf32>
    %59 = arith.maximumf %57, %58 : vector<1x138xf32>
    %c3_28 = arith.constant 3 : index
    %c0_29 = arith.constant 0 : index
    %60 = vector.load %arg11[%c3_28, %c0_29] : memref<12x138xf32, #tpu.memory_space<vmem>>, vector<1x138xf32>
    tpu.vector_store %arg11[%c3_28, %c0_29], %59 {strides = array<i32>} : memref<12x138xf32, #tpu.memory_space<vmem>>, vector<1x138xf32>,
    %61 = vector.extract_strided_slice %32 {offsets = [8, 0], sizes = [1, 144], strides = [1, 1]} : vector<24x144xf32> to vector<1x144xf32>
    %62 = vector.extract_strided_slice %32 {offsets = [9, 0], sizes = [1, 144], strides = [1, 1]} : vector<24x144xf32> to vector<1x144xf32>
    %63 = arith.maximumf %61, %62 : vector<1x144xf32>
    %64 = vector.extract_strided_slice %63 {offsets = [0, 0], sizes = [1, 138], strides = [1, 1]} : vector<1x144xf32> to vector<1x138xf32>
    %65 = vector.extract_strided_slice %63 {offsets = [0, 6], sizes = [1, 138], strides = [1, 1]} : vector<1x144xf32> to vector<1x138xf32>
    %66 = arith.maximumf %64, %65 : vector<1x138xf32>
    %c4_30 = arith.constant 4 : index
    %c0_31 = arith.constant 0 : index
    %67 = vector.load %arg11[%c4_30, %c0_31] : memref<12x138xf32, #tpu.memory_space<vmem>>, vector<1x138xf32>
    tpu.vector_store %arg11[%c4_30, %c0_31], %66 {strides = array<i32>} : memref<12x138xf32, #tpu.memory_space<vmem>>, vector<1x138xf32>,
    %68 = vector.extract_strided_slice %32 {offsets = [10, 0], sizes = [1, 144], strides = [1, 1]} : vector<24x144xf32> to vector<1x144xf32>
    %69 = vector.extract_strided_slice %32 {offsets = [11, 0], sizes = [1, 144], strides = [1, 1]} : vector<24x144xf32> to vector<1x144xf32>
    %70 = arith.maximumf %68, %69 : vector<1x144xf32>
    %71 = vector.extract_strided_slice %70 {offsets = [0, 0], sizes = [1, 138], strides = [1, 1]} : vector<1x144xf32> to vector<1x138xf32>
    %72 = vector.extract_strided_slice %70 {offsets = [0, 6], sizes = [1, 138], strides = [1, 1]} : vector<1x144xf32> to vector<1x138xf32>
    %73 = arith.maximumf %71, %72 : vector<1x138xf32>
    %c5 = arith.constant 5 : index
    %c0_32 = arith.constant 0 : index
    %74 = vector.load %arg11[%c5, %c0_32] : memref<12x138xf32, #tpu.memory_space<vmem>>, vector<1x138xf32>
    tpu.vector_store %arg11[%c5, %c0_32], %73 {strides = array<i32>} : memref<12x138xf32, #tpu.memory_space<vmem>>, vector<1x138xf32>,
    %75 = vector.extract_strided_slice %32 {offsets = [12, 0], sizes = [1, 144], strides = [1, 1]} : vector<24x144xf32> to vector<1x144xf32>
    %76 = vector.extract_strided_slice %32 {offsets = [13, 0], sizes = [1, 144], strides = [1, 1]} : vector<24x144xf32> to vector<1x144xf32>
    %77 = arith.maximumf %75, %76 : vector<1x144xf32>
    %78 = vector.extract_strided_slice %77 {offsets = [0, 0], sizes = [1, 138], strides = [1, 1]} : vector<1x144xf32> to vector<1x138xf32>
    %79 = vector.extract_strided_slice %77 {offsets = [0, 6], sizes = [1, 138], strides = [1, 1]} : vector<1x144xf32> to vector<1x138xf32>
    %80 = arith.maximumf %78, %79 : vector<1x138xf32>
    %c6 = arith.constant 6 : index
    %c0_33 = arith.constant 0 : index
    %81 = vector.load %arg11[%c6, %c0_33] : memref<12x138xf32, #tpu.memory_space<vmem>>, vector<1x138xf32>
    tpu.vector_store %arg11[%c6, %c0_33], %80 {strides = array<i32>} : memref<12x138xf32, #tpu.memory_space<vmem>>, vector<1x138xf32>,
    %82 = vector.extract_strided_slice %32 {offsets = [14, 0], sizes = [1, 144], strides = [1, 1]} : vector<24x144xf32> to vector<1x144xf32>
    %83 = vector.extract_strided_slice %32 {offsets = [15, 0], sizes = [1, 144], strides = [1, 1]} : vector<24x144xf32> to vector<1x144xf32>
    %84 = arith.maximumf %82, %83 : vector<1x144xf32>
    %85 = vector.extract_strided_slice %84 {offsets = [0, 0], sizes = [1, 138], strides = [1, 1]} : vector<1x144xf32> to vector<1x138xf32>
    %86 = vector.extract_strided_slice %84 {offsets = [0, 6], sizes = [1, 138], strides = [1, 1]} : vector<1x144xf32> to vector<1x138xf32>
    %87 = arith.maximumf %85, %86 : vector<1x138xf32>
    %c7 = arith.constant 7 : index
    %c0_34 = arith.constant 0 : index
    %88 = vector.load %arg11[%c7, %c0_34] : memref<12x138xf32, #tpu.memory_space<vmem>>, vector<1x138xf32>
    tpu.vector_store %arg11[%c7, %c0_34], %87 {strides = array<i32>} : memref<12x138xf32, #tpu.memory_space<vmem>>, vector<1x138xf32>,
    %89 = vector.extract_strided_slice %32 {offsets = [16, 0], sizes = [1, 144], strides = [1, 1]} : vector<24x144xf32> to vector<1x144xf32>
    %90 = vector.extract_strided_slice %32 {offsets = [17, 0], sizes = [1, 144], strides = [1, 1]} : vector<24x144xf32> to vector<1x144xf32>
    %91 = arith.maximumf %89, %90 : vector<1x144xf32>
    %92 = vector.extract_strided_slice %91 {offsets = [0, 0], sizes = [1, 138], strides = [1, 1]} : vector<1x144xf32> to vector<1x138xf32>
    %93 = vector.extract_strided_slice %91 {offsets = [0, 6], sizes = [1, 138], strides = [1, 1]} : vector<1x144xf32> to vector<1x138xf32>
    %94 = arith.maximumf %92, %93 : vector<1x138xf32>
    %c8 = arith.constant 8 : index
    %c0_35 = arith.constant 0 : index
    %95 = vector.load %arg11[%c8, %c0_35] : memref<12x138xf32, #tpu.memory_space<vmem>>, vector<1x138xf32>
    tpu.vector_store %arg11[%c8, %c0_35], %94 {strides = array<i32>} : memref<12x138xf32, #tpu.memory_space<vmem>>, vector<1x138xf32>,
    %96 = vector.extract_strided_slice %32 {offsets = [18, 0], sizes = [1, 144], strides = [1, 1]} : vector<24x144xf32> to vector<1x144xf32>
    %97 = vector.extract_strided_slice %32 {offsets = [19, 0], sizes = [1, 144], strides = [1, 1]} : vector<24x144xf32> to vector<1x144xf32>
    %98 = arith.maximumf %96, %97 : vector<1x144xf32>
    %99 = vector.extract_strided_slice %98 {offsets = [0, 0], sizes = [1, 138], strides = [1, 1]} : vector<1x144xf32> to vector<1x138xf32>
    %100 = vector.extract_strided_slice %98 {offsets = [0, 6], sizes = [1, 138], strides = [1, 1]} : vector<1x144xf32> to vector<1x138xf32>
    %101 = arith.maximumf %99, %100 : vector<1x138xf32>
    %c9 = arith.constant 9 : index
    %c0_36 = arith.constant 0 : index
    %102 = vector.load %arg11[%c9, %c0_36] : memref<12x138xf32, #tpu.memory_space<vmem>>, vector<1x138xf32>
    tpu.vector_store %arg11[%c9, %c0_36], %101 {strides = array<i32>} : memref<12x138xf32, #tpu.memory_space<vmem>>, vector<1x138xf32>,
    %103 = vector.extract_strided_slice %32 {offsets = [20, 0], sizes = [1, 144], strides = [1, 1]} : vector<24x144xf32> to vector<1x144xf32>
    %104 = vector.extract_strided_slice %32 {offsets = [21, 0], sizes = [1, 144], strides = [1, 1]} : vector<24x144xf32> to vector<1x144xf32>
    %105 = arith.maximumf %103, %104 : vector<1x144xf32>
    %106 = vector.extract_strided_slice %105 {offsets = [0, 0], sizes = [1, 138], strides = [1, 1]} : vector<1x144xf32> to vector<1x138xf32>
    %107 = vector.extract_strided_slice %105 {offsets = [0, 6], sizes = [1, 138], strides = [1, 1]} : vector<1x144xf32> to vector<1x138xf32>
    %108 = arith.maximumf %106, %107 : vector<1x138xf32>
    %c10 = arith.constant 10 : index
    %c0_37 = arith.constant 0 : index
    %109 = vector.load %arg11[%c10, %c0_37] : memref<12x138xf32, #tpu.memory_space<vmem>>, vector<1x138xf32>
    tpu.vector_store %arg11[%c10, %c0_37], %108 {strides = array<i32>} : memref<12x138xf32, #tpu.memory_space<vmem>>, vector<1x138xf32>,
    %110 = vector.extract_strided_slice %32 {offsets = [22, 0], sizes = [1, 144], strides = [1, 1]} : vector<24x144xf32> to vector<1x144xf32>
    %111 = vector.extract_strided_slice %32 {offsets = [23, 0], sizes = [1, 144], strides = [1, 1]} : vector<24x144xf32> to vector<1x144xf32>
    %112 = arith.maximumf %110, %111 : vector<1x144xf32>
    %113 = vector.extract_strided_slice %112 {offsets = [0, 0], sizes = [1, 138], strides = [1, 1]} : vector<1x144xf32> to vector<1x138xf32>
    %114 = vector.extract_strided_slice %112 {offsets = [0, 6], sizes = [1, 138], strides = [1, 1]} : vector<1x144xf32> to vector<1x138xf32>
    %115 = arith.maximumf %113, %114 : vector<1x138xf32>
    %c11 = arith.constant 11 : index
    %c0_38 = arith.constant 0 : index
    %116 = vector.load %arg11[%c11, %c0_38] : memref<12x138xf32, #tpu.memory_space<vmem>>, vector<1x138xf32>
    tpu.vector_store %arg11[%c11, %c0_38], %115 {strides = array<i32>} : memref<12x138xf32, #tpu.memory_space<vmem>>, vector<1x138xf32>,
    %cst_39 = arith.constant 0.000000e+00 : f32
    %117 = vector.broadcast %cst_39 : f32 to vector<8x128xf32>
    %c0_40 = arith.constant 0 : index
    %c0_41 = arith.constant 0 : index
    %118 = vector.load %arg11[%c0_40, %c0_41] : memref<12x138xf32, #tpu.memory_space<vmem>>, vector<8x138xf32>
    %c0_42 = arith.constant 0 : index
    %c0_43 = arith.constant 0 : index
    %c0_44 = arith.constant 0 : index
    %119 = vector.load %arg4[%c0_42, %c0_43, %c0_44] : memref<5x138x128xf32, #tpu.memory_space<vmem>>, vector<1x138x128xf32>
    %120 = vector.shape_cast %119 : vector<1x138x128xf32> to vector<138x128xf32>
    %cst_45 = arith.constant dense<0.000000e+00> : vector<8x128xf32>
    %121 = tpu.matmul %118, %120, %cst_45 {dimension_numbers = #tpu.dot_dimension_numbers<[1], [0], [0], [1], [0, 0, 1, 1], [], []>, precision = #tpu.contract_precision<fp32>} : vector<8x138xf32>, vector<138x128xf32>, vector<8x128xf32> -> vector<8x128xf32>
    %122 = arith.addf %117, %121 : vector<8x128xf32>
    %c1_46 = arith.constant 1 : index
    %c0_47 = arith.constant 0 : index
    %123 = vector.load %arg11[%c1_46, %c0_47] : memref<12x138xf32, #tpu.memory_space<vmem>>, vector<8x138xf32>
    %c1_48 = arith.constant 1 : index
    %c0_49 = arith.constant 0 : index
    %c0_50 = arith.constant 0 : index
    %124 = vector.load %arg4[%c1_48, %c0_49, %c0_50] : memref<5x138x128xf32, #tpu.memory_space<vmem>>, vector<1x138x128xf32>
    %125 = vector.shape_cast %124 : vector<1x138x128xf32> to vector<138x128xf32>
    %cst_51 = arith.constant dense<0.000000e+00> : vector<8x128xf32>
    %126 = tpu.matmul %123, %125, %cst_51 {dimension_numbers = #tpu.dot_dimension_numbers<[1], [0], [0], [1], [0, 0, 1, 1], [], []>, precision = #tpu.contract_precision<fp32>} : vector<8x138xf32>, vector<138x128xf32>, vector<8x128xf32> -> vector<8x128xf32>
    %127 = arith.addf %122, %126 : vector<8x128xf32>
    %c2_52 = arith.constant 2 : index
    %c0_53 = arith.constant 0 : index
    %128 = vector.load %arg11[%c2_52, %c0_53] : memref<12x138xf32, #tpu.memory_space<vmem>>, vector<8x138xf32>
    %c2_54 = arith.constant 2 : index
    %c0_55 = arith.constant 0 : index
    %c0_56 = arith.constant 0 : index
    %129 = vector.load %arg4[%c2_54, %c0_55, %c0_56] : memref<5x138x128xf32, #tpu.memory_space<vmem>>, vector<1x138x128xf32>
    %130 = vector.shape_cast %129 : vector<1x138x128xf32> to vector<138x128xf32>
    %cst_57 = arith.constant dense<0.000000e+00> : vector<8x128xf32>
    %131 = tpu.matmul %128, %130, %cst_57 {dimension_numbers = #tpu.dot_dimension_numbers<[1], [0], [0], [1], [0, 0, 1, 1], [], []>, precision = #tpu.contract_precision<fp32>} : vector<8x138xf32>, vector<138x128xf32>, vector<8x128xf32> -> vector<8x128xf32>
    %132 = arith.addf %127, %131 : vector<8x128xf32>
    %c3_58 = arith.constant 3 : index
    %c0_59 = arith.constant 0 : index
    %133 = vector.load %arg11[%c3_58, %c0_59] : memref<12x138xf32, #tpu.memory_space<vmem>>, vector<8x138xf32>
    %c3_60 = arith.constant 3 : index
    %c0_61 = arith.constant 0 : index
    %c0_62 = arith.constant 0 : index
    %134 = vector.load %arg4[%c3_60, %c0_61, %c0_62] : memref<5x138x128xf32, #tpu.memory_space<vmem>>, vector<1x138x128xf32>
    %135 = vector.shape_cast %134 : vector<1x138x128xf32> to vector<138x128xf32>
    %cst_63 = arith.constant dense<0.000000e+00> : vector<8x128xf32>
    %136 = tpu.matmul %133, %135, %cst_63 {dimension_numbers = #tpu.dot_dimension_numbers<[1], [0], [0], [1], [0, 0, 1, 1], [], []>, precision = #tpu.contract_precision<fp32>} : vector<8x138xf32>, vector<138x128xf32>, vector<8x128xf32> -> vector<8x128xf32>
    %137 = arith.addf %132, %136 : vector<8x128xf32>
    %c4_64 = arith.constant 4 : index
    %c0_65 = arith.constant 0 : index
    %138 = vector.load %arg11[%c4_64, %c0_65] : memref<12x138xf32, #tpu.memory_space<vmem>>, vector<8x138xf32>
    %c4_66 = arith.constant 4 : index
    %c0_67 = arith.constant 0 : index
    %c0_68 = arith.constant 0 : index
    %139 = vector.load %arg4[%c4_66, %c0_67, %c0_68] : memref<5x138x128xf32, #tpu.memory_space<vmem>>, vector<1x138x128xf32>
    %140 = vector.shape_cast %139 : vector<1x138x128xf32> to vector<138x128xf32>
    %cst_69 = arith.constant dense<0.000000e+00> : vector<8x128xf32>
    %141 = tpu.matmul %138, %140, %cst_69 {dimension_numbers = #tpu.dot_dimension_numbers<[1], [0], [0], [1], [0, 0, 1, 1], [], []>, precision = #tpu.contract_precision<fp32>} : vector<8x138xf32>, vector<138x128xf32>, vector<8x128xf32> -> vector<8x128xf32>
    %142 = arith.addf %137, %141 : vector<8x128xf32>
    %c0_70 = arith.constant 0 : index
    %c0_71 = arith.constant 0 : index
    %143 = vector.load %arg5[%c0_70, %c0_71] : memref<1x128xf32, #tpu.memory_space<vmem>>, vector<1x128xf32>
    %144 = vector.broadcast %143 : vector<1x128xf32> to vector<8x128xf32>
    %145 = arith.addf %142, %144 : vector<8x128xf32>
    %cst_72 = arith.constant 0.000000e+00 : f32
    %146 = vector.broadcast %cst_72 : f32 to vector<8x128xf32>
    %147 = arith.maximumf %145, %146 : vector<8x128xf32>
    %c0_73 = arith.constant 0 : index
    %c0_74 = arith.constant 0 : index
    %148 = vector.load %arg7[%c0_73, %c0_74] : memref<1x256xf32, #tpu.memory_space<vmem>>, vector<1x256xf32>
    %149 = vector.extract_strided_slice %147 {offsets = [0, 0], sizes = [1, 128], strides = [1, 1]} : vector<8x128xf32> to vector<1x128xf32>
    %150 = vector.extract_strided_slice %147 {offsets = [1, 0], sizes = [1, 128], strides = [1, 1]} : vector<8x128xf32> to vector<1x128xf32>
    %151 = arith.maximumf %149, %150 : vector<1x128xf32>
    %152 = vector.extract_strided_slice %151 {offsets = [0, 0], sizes = [1, 112], strides = [1, 1]} : vector<1x128xf32> to vector<1x112xf32>
    %153 = vector.extract_strided_slice %151 {offsets = [0, 16], sizes = [1, 112], strides = [1, 1]} : vector<1x128xf32> to vector<1x112xf32>
    %154 = arith.maximumf %152, %153 : vector<1x112xf32>
    %c0_75 = arith.constant 0 : index
    %c0_76 = arith.constant 0 : index
    %c0_77 = arith.constant 0 : index
    %155 = vector.load %arg6[%c0_75, %c0_76, %c0_77] : memref<4x112x256xf32, #tpu.memory_space<vmem>>, vector<1x112x256xf32>
    %156 = vector.shape_cast %155 : vector<1x112x256xf32> to vector<112x256xf32>
    %cst_78 = arith.constant dense<0.000000e+00> : vector<1x256xf32>
    %157 = tpu.matmul %154, %156, %cst_78 {dimension_numbers = #tpu.dot_dimension_numbers<[1], [0], [0], [1], [0, 0, 1, 1], [], []>, precision = #tpu.contract_precision<fp32>} : vector<1x112xf32>, vector<112x256xf32>, vector<1x256xf32> -> vector<1x256xf32>
    %158 = arith.addf %148, %157 : vector<1x256xf32>
    %159 = vector.extract_strided_slice %147 {offsets = [2, 0], sizes = [1, 128], strides = [1, 1]} : vector<8x128xf32> to vector<1x128xf32>
    %160 = vector.extract_strided_slice %147 {offsets = [3, 0], sizes = [1, 128], strides = [1, 1]} : vector<8x128xf32> to vector<1x128xf32>
    %161 = arith.maximumf %159, %160 : vector<1x128xf32>
    %162 = vector.extract_strided_slice %161 {offsets = [0, 0], sizes = [1, 112], strides = [1, 1]} : vector<1x128xf32> to vector<1x112xf32>
    %163 = vector.extract_strided_slice %161 {offsets = [0, 16], sizes = [1, 112], strides = [1, 1]} : vector<1x128xf32> to vector<1x112xf32>
    %164 = arith.maximumf %162, %163 : vector<1x112xf32>
    %c1_79 = arith.constant 1 : index
    %c0_80 = arith.constant 0 : index
    %c0_81 = arith.constant 0 : index
    %165 = vector.load %arg6[%c1_79, %c0_80, %c0_81] : memref<4x112x256xf32, #tpu.memory_space<vmem>>, vector<1x112x256xf32>
    %166 = vector.shape_cast %165 : vector<1x112x256xf32> to vector<112x256xf32>
    %cst_82 = arith.constant dense<0.000000e+00> : vector<1x256xf32>
    %167 = tpu.matmul %164, %166, %cst_82 {dimension_numbers = #tpu.dot_dimension_numbers<[1], [0], [0], [1], [0, 0, 1, 1], [], []>, precision = #tpu.contract_precision<fp32>} : vector<1x112xf32>, vector<112x256xf32>, vector<1x256xf32> -> vector<1x256xf32>
    %168 = arith.addf %158, %167 : vector<1x256xf32>
    %169 = vector.extract_strided_slice %147 {offsets = [4, 0], sizes = [1, 128], strides = [1, 1]} : vector<8x128xf32> to vector<1x128xf32>
    %170 = vector.extract_strided_slice %147 {offsets = [5, 0], sizes = [1, 128], strides = [1, 1]} : vector<8x128xf32> to vector<1x128xf32>
    %171 = arith.maximumf %169, %170 : vector<1x128xf32>
    %172 = vector.extract_strided_slice %171 {offsets = [0, 0], sizes = [1, 112], strides = [1, 1]} : vector<1x128xf32> to vector<1x112xf32>
    %173 = vector.extract_strided_slice %171 {offsets = [0, 16], sizes = [1, 112], strides = [1, 1]} : vector<1x128xf32> to vector<1x112xf32>
    %174 = arith.maximumf %172, %173 : vector<1x112xf32>
    %c2_83 = arith.constant 2 : index
    %c0_84 = arith.constant 0 : index
    %c0_85 = arith.constant 0 : index
    %175 = vector.load %arg6[%c2_83, %c0_84, %c0_85] : memref<4x112x256xf32, #tpu.memory_space<vmem>>, vector<1x112x256xf32>
    %176 = vector.shape_cast %175 : vector<1x112x256xf32> to vector<112x256xf32>
    %cst_86 = arith.constant dense<0.000000e+00> : vector<1x256xf32>
    %177 = tpu.matmul %174, %176, %cst_86 {dimension_numbers = #tpu.dot_dimension_numbers<[1], [0], [0], [1], [0, 0, 1, 1], [], []>, precision = #tpu.contract_precision<fp32>} : vector<1x112xf32>, vector<112x256xf32>, vector<1x256xf32> -> vector<1x256xf32>
    %178 = arith.addf %168, %177 : vector<1x256xf32>
    %179 = vector.extract_strided_slice %147 {offsets = [6, 0], sizes = [1, 128], strides = [1, 1]} : vector<8x128xf32> to vector<1x128xf32>
    %180 = vector.extract_strided_slice %147 {offsets = [7, 0], sizes = [1, 128], strides = [1, 1]} : vector<8x128xf32> to vector<1x128xf32>
    %181 = arith.maximumf %179, %180 : vector<1x128xf32>
    %182 = vector.extract_strided_slice %181 {offsets = [0, 0], sizes = [1, 112], strides = [1, 1]} : vector<1x128xf32> to vector<1x112xf32>
    %183 = vector.extract_strided_slice %181 {offsets = [0, 16], sizes = [1, 112], strides = [1, 1]} : vector<1x128xf32> to vector<1x112xf32>
    %184 = arith.maximumf %182, %183 : vector<1x112xf32>
    %c3_87 = arith.constant 3 : index
    %c0_88 = arith.constant 0 : index
    %c0_89 = arith.constant 0 : index
    %185 = vector.load %arg6[%c3_87, %c0_88, %c0_89] : memref<4x112x256xf32, #tpu.memory_space<vmem>>, vector<1x112x256xf32>
    %186 = vector.shape_cast %185 : vector<1x112x256xf32> to vector<112x256xf32>
    %cst_90 = arith.constant dense<0.000000e+00> : vector<1x256xf32>
    %187 = tpu.matmul %184, %186, %cst_90 {dimension_numbers = #tpu.dot_dimension_numbers<[1], [0], [0], [1], [0, 0, 1, 1], [], []>, precision = #tpu.contract_precision<fp32>} : vector<1x112xf32>, vector<112x256xf32>, vector<1x256xf32> -> vector<1x256xf32>
    %188 = arith.addf %178, %187 : vector<1x256xf32>
    %cst_91 = arith.constant 0.000000e+00 : f32
    %189 = vector.broadcast %cst_91 : f32 to vector<1x256xf32>
    %190 = arith.maximumf %188, %189 : vector<1x256xf32>
    %c0_92 = arith.constant 0 : index
    %c0_93 = arith.constant 0 : index
    %191 = vector.load %arg8[%c0_92, %c0_93] : memref<256x10xf32, #tpu.memory_space<vmem>>, vector<256x10xf32>
    %cst_94 = arith.constant dense<0.000000e+00> : vector<1x10xf32>
    %192 = tpu.matmul %190, %191, %cst_94 {dimension_numbers = #tpu.dot_dimension_numbers<[1], [0], [0], [1], [0, 0, 1, 1], [], []>, precision = #tpu.contract_precision<fp32>} : vector<1x256xf32>, vector<256x10xf32>, vector<1x10xf32> -> vector<1x10xf32>
    %c0_95 = arith.constant 0 : index
    %c0_96 = arith.constant 0 : index
    %193 = vector.load %arg9[%c0_95, %c0_96] : memref<1x10xf32, #tpu.memory_space<vmem>>, vector<1x10xf32>
    %194 = arith.addf %192, %193 : vector<1x10xf32>
    %c0_97 = arith.constant 0 : index
    %c0_98 = arith.constant 0 : index
    %c0_99 = arith.constant 0 : index
    %195 = vector.load %arg10[%c0_97, %c0_98, %c0_99] : memref<1x1x10xf32, #tpu.memory_space<vmem>>, vector<1x1x10xf32>
    %196 = vector.shape_cast %195 : vector<1x1x10xf32> to vector<1x10xf32>
    %197 = vector.shape_cast %194 : vector<1x10xf32> to vector<1x1x10xf32>
    tpu.vector_store %arg10[%c0_97, %c0_98, %c0_99], %197 {strides = array<i32>} : memref<1x1x10xf32, #tpu.memory_space<vmem>>, vector<1x1x10xf32>,
    return
  }
  func.func @transform_0(%arg0: i32) -> (i32, i32, i32, i32) {
    %c0_i32 = arith.constant 0 : i32
    %c0_i32_0 = arith.constant 0 : i32
    %c0_i32_1 = arith.constant 0 : i32
    %c0_i32_2 = arith.constant 0 : i32
    return %arg0, %c0_i32, %c0_i32_0, %c0_i32_1 : i32, i32, i32, i32
  }
  func.func @transform_1(%arg0: i32) -> (i32, i32, i32) {
    %c0_i32 = arith.constant 0 : i32
    %c0_i32_0 = arith.constant 0 : i32
    %c0_i32_1 = arith.constant 0 : i32
    %c0_i32_2 = arith.constant 0 : i32
    return %c0_i32, %c0_i32_0, %c0_i32_1 : i32, i32, i32
  }
  func.func @transform_2(%arg0: i32) -> (i32, i32) {
    %c0_i32 = arith.constant 0 : i32
    %c0_i32_0 = arith.constant 0 : i32
    %c0_i32_1 = arith.constant 0 : i32
    return %c0_i32, %c0_i32_0 : i32, i32
  }
  func.func @transform_3(%arg0: i32) -> (i32, i32, i32) {
    %c0_i32 = arith.constant 0 : i32
    %c0_i32_0 = arith.constant 0 : i32
    %c0_i32_1 = arith.constant 0 : i32
    %c0_i32_2 = arith.constant 0 : i32
    return %c0_i32, %c0_i32_0, %c0_i32_1 : i32, i32, i32
  }
  func.func @transform_4(%arg0: i32) -> (i32, i32) {
    %c0_i32 = arith.constant 0 : i32
    %c0_i32_0 = arith.constant 0 : i32
    %c0_i32_1 = arith.constant 0 : i32
    return %c0_i32, %c0_i32_0 : i32, i32
  }
  func.func @transform_5(%arg0: i32) -> (i32, i32, i32) {
    %c0_i32 = arith.constant 0 : i32
    %c0_i32_0 = arith.constant 0 : i32
    %c0_i32_1 = arith.constant 0 : i32
    %c0_i32_2 = arith.constant 0 : i32
    return %c0_i32, %c0_i32_0, %c0_i32_1 : i32, i32, i32
  }
  func.func @transform_6(%arg0: i32) -> (i32, i32) {
    %c0_i32 = arith.constant 0 : i32
    %c0_i32_0 = arith.constant 0 : i32
    %c0_i32_1 = arith.constant 0 : i32
    return %c0_i32, %c0_i32_0 : i32, i32
  }
  func.func @transform_7(%arg0: i32) -> (i32, i32) {
    %c0_i32 = arith.constant 0 : i32
    %c0_i32_0 = arith.constant 0 : i32
    %c0_i32_1 = arith.constant 0 : i32
    return %c0_i32, %c0_i32_0 : i32, i32
  }
  func.func @transform_8(%arg0: i32) -> (i32, i32) {
    %c0_i32 = arith.constant 0 : i32
    %c0_i32_0 = arith.constant 0 : i32
    %c0_i32_1 = arith.constant 0 : i32
    return %c0_i32, %c0_i32_0 : i32, i32
  }
  func.func @transform_9(%arg0: i32) -> (i32, i32, i32) {
    %c0_i32 = arith.constant 0 : i32
    %c0_i32_0 = arith.constant 0 : i32
    %c0_i32_1 = arith.constant 0 : i32
    return %arg0, %c0_i32, %c0_i32_0 : i32, i32, i32
  }
}

</mosaic_0001>

<bundles_post_ra>
// kernel: forward.1
= control target key start
LH: loop header
LB: loop body
LE: loop exit
PB: predicated region body
PF: predicated region fallthrough
CT: control target
= control target key end

     0   :  { %14 = vsyncpa [#allocation4], 0  ;;  %s20399_s0 = inlined_call_operand.vmem [shape: f32[2,1,28,28], index: 0, kind: input, shape index: {}]   ;;  %s20400_s1 = inlined_call_operand.vmem [shape: f32[5,28,144], index: 1, kind: input, shape index: {}]   ;;  %s20401_s2 = inlined_call_operand.vmem [shape: f32[1,144], index: 2, kind: input, shape index: {}]   ;;  %s20402_s3 = inlined_call_operand.hbm [shape: f32[5,138,128], index: 3, kind: input, shape index: {}]   ;;  %s20403_s4 = inlined_call_operand.vmem [shape: f32[1,128], index: 4, kind: input, shape index: {}]   ;;  %s20404_s5 = inlined_call_operand.hbm [shape: f32[4,112,256], index: 5, kind: input, shape index: {}]   ;;  %s20405_s6 = inlined_call_operand.vmem [shape: f32[1,256], index: 6, kind: input, shape index: {}]   ;;  %s20406_s7 = inlined_call_operand.vmem [shape: f32[256,10], index: 7, kind: input, shape index: {}]   ;;  %s20407_s8 = inlined_call_operand.vmem [shape: f32[1,10], index: 8, kind: input, shape index: {}]   ;;  %s20408_s9 = inlined_call_operand.hbm [shape: f32[2,1,10], index: 9, kind: output, shape index: {}]  }
   0x1   :  { %15 = vsyncpa [#allocation7], 0 }
   0x2   :  { %16 = vsyncpa [#allocation5], 0 }
   0x3   :  { %18 = vsyncpa [#allocation5 + $0x1], 0  ;;  %s14633_s30 = smov 0   ;;  %s14635_s10 = smov 0  }
   0x4   :  { %s14637_s11 = smov 0   ;;  %s14639_s12 = smov 0  }
   0x5 LB: > { %21123 = sst [smem:[#allocation12_spill]] %s14565_s11  ;;  %s14654_s13 = sadd.s32 4294967295, %s14569_s12   ;;  %s14569_s12 = sphi %s14639_s12, %s22287_s12   ;;  %s14565_s11 = sphi %s14637_s11, %s22289_s11   ;;  %s14561_s10 = sphi %s14635_s10, %s22291_s10   ;;  %s14557_s30 = sphi %s14633_s30, %s22290_s30  }
   0x6   : > { %s11984_s14 = sadd.s32 4294967294, %s14569_s12   ;;  %s14658_s15 = sadd.s32 1, %s14569_s12  }
   0x7   : > { %21124 = sst [smem:[#allocation13_spill]] %s14658_s15  ;;  %s225_s16 = sadd.s32 1, %s14565_s11 }
   0x8   : > { %s222_s17 = ssub.s32 %s14569_s12, %s14658_s15  ;;  %p235_p0 = scmp.ne.s32.totalorder %s14565_s11, %s14561_s10 }
   0x9   : > { %p223_p1 = scmp.eq.s32.totalorder %s222_s17, 0  ;;  %p236_p2 = scmp.eq.s32.totalorder %s14654_s13, 1 }
   0xa   : > { %p241_p3 = scmp.ne.s32.totalorder %s14561_s10, %s14557_s30  ;;  %p242_p4 = scmp.eq.s32.totalorder %s11984_s14, 1 }
   0xb   : > { %s14669_s18 = scalar_select %p223_p1, %s14565_s11, %s225_s16  }
   0xc   : > { %p14671_p5 = por %p236_p2, %p235_p0  ;;  %p14675_p6 = por %p242_p4, %p241_p3 }
   0xd   : > { %21125 = sst [smem:[#allocation14_spill]] %s14669_s18  ;;  %p11985_p7 = scmp.ge.s32.totalorder %s14569_s12, 1 }
   0xe   : > { %s21126_s19 = scalar_select %p14671_p5, 1, 0 }
   0xf   : > { %s21127_s20 = scalar_select %p14675_p6, 1, 0 }
  0x10   : > { %p249_p8 = scmp.lt.s32.totalorder %s14569_s12, 3  ;;  %p20409_p9 = scmp.eq.s32.totalorder %s14654_s13, 0 }
  0x11   : > { %s14571_s22 = smov [#allocation3]   ;;  %s14572_s25 = smov [#allocation6]  }
  0x12   : > { %p14682_p10 = pnand %p11985_p7, %p249_p8  ;;  %s267_s23 = sshll.u32 %s14571_s22, 4  ;;  %s268_s23 = int_to_ptr.vmem [resolvable:$true] %s267_s23 }
  0x13   : > { %s283_s26 = sshll.u32 %s14572_s25, 4  ;;  %s14443_s29 = scalar_lea.hbm %s20402_s3, 11520  ;;  %s14694_s26 = int_to_ptr.vmem [resolvable:$true] %s283_s26 }
  0x14   : > { %s21128_s21 = scalar_select %p14682_p10, 1, 0 }
  0x15   : > { %p14379_p11 = pneg %p14682_p10  ;;  %p14444_p13 = scmp.ne.s32.totalorder %s20402_s3, %s14443_s29 }
  0x16   : > { %p14450_p3 = scmp.lt.u32.totalorder %s14443_s29, %s20402_s3 }
  0x17   : > { %p14690_p12 = pnand %p20409_p9, %p14379_p11 }
  0x19   : > { %p14445_p0 = pneg %p14690_p12 }
  0x1b   : > { %p14446_p1 = pnand %p14445_p0, %p14444_p13 }
  0x1d   : > { %p14447_p2 = pneg %p14446_p1 }
  0x1f   : > { %p14452_p4 = pnand %p14450_p3, %p14447_p2 }
  0x21   : > { %14455 = shalt.err (!%p14452_p4)
}
  0x22   : > { %s14456_s25 = scalar_lea.vmem %s268_s23, 11520  ;;  %p14464_p9 = scmp.lt.s32.totalorder %s268_s23, %s268_s23 }
  0x23   : > { %p14457_p7 = scmp.ne.s32.totalorder %s268_s23, %s14456_s25  ;;  %p14465_p6 = scmp.lt.s32.totalorder %s14456_s25, %s14456_s25 }
  0x25   : > { %p14459_p8 = pnand %p14457_p7, %p14445_p0  ;;  %p14466_p5 = por %p14465_p6, %p14464_p9 }
  0x27   : > { %p14460_p11 = pneg %p14459_p8 }
  0x29   : > { %p14467_p10 = pnand %p14466_p5, %p14460_p11 }
  0x2b   : > { %14470 = shalt.err (!%p14467_p10)
}
  0x2c   : > { %s14573_s27 = smov 128   ;;  %s14574_s28 = smov 8  }
  0x2d   : > { %14382 = dma.hbm_to_vmem [thread:$0]  (!%p14690_p12), %s20402_s3, 11520, %s268_s23, [#allocation4], %s14573_s27, %s14573_s27, %s14574_s28  }
  0x2e   : > { %s14471_s22 = scalar_lea.hbm %s20404_s5, 14336 }
  0x2f   : > { %p14472_p13 = scmp.ne.s32.totalorder %s20404_s5, %s14471_s22  ;;  %p14478_p9 = scmp.lt.u32.totalorder %s14471_s22, %s20404_s5 }
  0x31   : > { %p14474_p5 = pnand %p14472_p13, %p14445_p0 }
  0x33   : > { %p14475_p6 = pneg %p14474_p5 }
  0x35   : > { %p14480_p10 = pnand %p14478_p9, %p14475_p6 }
  0x37   : > { %14483 = shalt.err (!%p14480_p10)
}
  0x38   : > { %s14484_s23 = scalar_lea.vmem %s14694_s26, 14336  ;;  %p14492_p4 = scmp.lt.s32.totalorder %s14694_s26, %s14694_s26 }
  0x39   : > { %p14485_p1 = scmp.ne.s32.totalorder %s14694_s26, %s14484_s23  ;;  %p14493_p7 = scmp.lt.s32.totalorder %s14484_s23, %s14484_s23 }
  0x3b   : > { %p14487_p2 = pnand %p14485_p1, %p14445_p0  ;;  %p14494_p8 = por %p14493_p7, %p14492_p4 }
  0x3d   : > { %p14488_p3 = pneg %p14487_p2 }
  0x3f   : > { %p14495_p11 = pnand %p14494_p8, %p14488_p3 }
  0x41   : > { %14498 = shalt.err (!%p14495_p11)
}
  0x42   : > { %s14575_s11 = smov 256   ;;  %s14576_s15 = smov 16  }
  0x43   : > { %14385 = dma.hbm_to_vmem [thread:$0]  (!%p14690_p12), %s20404_s5, 14336, %s14694_s26, [#allocation7], %s14575_s11, %s14575_s11, %s14576_s15  }
  0x44   : > { %p21130_p13 = scmp.ne.s32.totalorder %s21128_s21, 0 }
  0x46   : > { %316 = sbr.rel (%p21130_p13) target bundleno = 2723 (0xaa3), region = 56 }
  0x4d   : > { %p21131_p0 = scmp.eq.s32.totalorder %s14654_s13, 0 }
  0x4f   : > { %14544 = dma.done.wait (%p21131_p0), [#allocation4], 11520   ;;  %p21132_p5 = pmov %p21131_p0 }
  0x50   : > { %p21133_p6 = pmov %p21131_p0 }
  0x51   : > { %14546 = vsyncadd (%p21132_p5), [#allocation4], 4294955776 }
  0x52   : > { %14548 = dma.done.wait (%p21133_p6), [#allocation7], 14336   ;;  %p21134_p9 = pmov %p21131_p0 }
  0x53   : > { %p355_p10 = scmp.lt.s32.totalorder %s14654_s13, 1  ;;  %v20417_v0 = vmov 0.0   ;;  %v11995_v1 = vld [vmem:[%s20400_s1 + $0x48] sm:$0xff]  ;;  %v11997_v2 = vld [vmem:[%s20400_s1 + $0x58] sm:$0xff]  ;;  %v11994_v3 = vld [vmem:[%s20400_s1 + $0x40] sm:$0xff]  ;;  %vm400_vm0 = vcmask 1043456  }
  0x54   : > { %14550 = vsyncadd (%p21134_p9), [#allocation7], 4294952960  ;;  %479 = vmatprep.mubr.f32.mxu0 %v20417_v0  ;;  %vm385_vm1 = vcmask 1046528   ;;  %vm393_vm2 = vcmask 228352   ;;  %v407_v4 = vand.u32 4294901760, %v11995_v1  ;;  %v411_v5 = vand.u32 4294901760, %v11997_v2 }
  0x55   : > { %s356_s21 = scalar_select %p355_p10, %s14654_s13, 1  ;;  %v11996_v6 = vld [vmem:[%s20400_s1 + $0x50] sm:$0xff]  ;;  %v409_v7 = vand.u32 4294901760, %v11994_v3  ;;  %v11999_v8 = vld [vmem:[%s20400_s1 + $0x68] sm:$0xff]  ;;  %v11998_v9 = vld [vmem:[%s20400_s1 + $0x60] sm:$0xff]  ;;  %vm1710_vm3 = vcmask 1045504  }
  0x56   : > { %v413_v10 = vand.u32 4294901760, %v11996_v6  ;;  %v12001_v11 = vld [vmem:[%s20400_s1 + $0x78] sm:$0xf]  ;;  %v415_v12 = vand.u32 4294901760, %v11999_v8  ;;  %v12000_v13 = vld [vmem:[%s20400_s1 + $0x70] sm:$0xf]  ;;  %v14785_v14 = vpack.c.bf16 %v411_v5, %v407_v4  ;;  %v14787_v15 = vsub.f32 %v11995_v1, %v407_v4 }
  0x57   : > { %s12030_s24 = sshll.u32 %s356_s21, 5  ;;  %v14789_v16 = vsub.f32 %v11997_v2, %v411_v5  ;;  %v14791_v17 = vsub.f32 %v11994_v3, %v409_v7  ;;  %v405_v22 = vsel %vm400_vm0, %v12001_v11, 0  ;;  %v402_v25 = vsel %vm400_vm0, %v12000_v13, 0  ;;  %s14579_s26 = smov 122  }
  0x58   : > { %s14768_s23 = scalar_lea.vmem %s20399_s0, %s12030_s24  ;;  %v14799_v20 = vpack.c.bf16 %v413_v10, %v409_v7  ;;  %v14801_v21 = vsub.f32 %v11996_v6, %v413_v10  ;;  %v14804_v23 = vsub.f32 %v11999_v8, %v415_v12  ;;  %12242 = vmatprep.subr.bf16.mxu0 %v14785_v14  ;;  %v419_v24 = vand.u32 4294901760, %v405_v22  ;;  %s14581_s29 = smov 112  }
  0x59   : > { %v14794_v18 = vld [vmem:[%s14768_s23] sm:$0xff]  ;;  %v14797_v19 = vld [vmem:[%s14768_s23 + $0x8] sm:$0xff]  ;;  %v417_v26 = vand.u32 4294901760, %v11998_v9  ;;  %v515_v27 = vand.u32 4294901760, %v14787_v15  ;;  %v421_v28 = vand.u32 4294901760, %v402_v25  ;;  %v527_v29 = vand.u32 4294901760, %v14789_v16 }
  0x5a   : > { %12244 = vmatpush1.bf16.msra.mxu0 %v14799_v20  ;;  %v386_v30 = vrot.slane %v14794_v18, 1  ;;  %v387_v31 = vrot.slane %v14797_v19, 1  ;;  %v14813_v32 = vpack.c.bf16 %v419_v24, %v415_v12  ;;  %v14815_v33 = vsub.f32 %v405_v22, %v419_v24  ;;  %v14823_v36 = vld [vmem:[%s14768_s23 + $0x10] sm:$0xff]  ;;  %v14858_v57 = vld [vmem:[%s14768_s23 + $0x18] sm:$0xf]  ;;  %s353_s27 = sand.u32 1, %s14561_s10  }
  0x5b   : > { %v14817_v34 = vsub.f32 %v11998_v9, %v417_v26  ;;  %v516_v35 = vsub.f32 %v14787_v15, %v515_v27  ;;  %v14825_v37 = vpack.c.bf16 %v421_v28, %v417_v26  ;;  %v14827_v38 = vsub.f32 %v402_v25, %v421_v28  ;;  %s354_s21 = scalar_lea.vmem [#allocation8], %s353_s27  ;;  %s11895_s14 = scalar_lea.sflag [#allocation5], %s353_s27 }
  0x5c   : > { %v528_v39 = vsub.f32 %v14789_v16, %v527_v29  ;;  %v388_v40 = vsel %vm385_vm1, %v386_v30, %v387_v31  ;;  %12246 = vmatprep.subr.bf16.mxu0 %v14813_v32  ;;  %v521_v43 = vand.u32 4294901760, %v14791_v17  ;;  %v533_v44 = vand.u32 4294901760, %v14801_v21  ;;  %p22285_p1 = scmp.ne.s32.totalorder %s21126_s19, 0 }
  0x5d   : > { %v517_v41 = vand.u32 4294901760, %v516_v35  ;;  %v394_v42 = vsel %vm393_vm2, %v388_v40, 0  ;;  %v389_v47 = vrot.slane %v14823_v36, 1  ;;  %v539_v48 = vand.u32 4294901760, %v14804_v23 }
  0x5e   : > { %12248 = vmatpush1.bf16.msra.mxu0 %v14825_v37  ;;  %v529_v45 = vand.u32 4294901760, %v528_v39  ;;  %v14838_v46 = vand.u32 4294901760, %v394_v42  ;;  %v522_v49 = vsub.f32 %v14791_v17, %v521_v43  ;;  %v534_v50 = vsub.f32 %v14801_v21, %v533_v44 }
  0x5f   : > { %v551_v51 = vand.u32 4294901760, %v14815_v33  ;;  %v545_v52 = vand.u32 4294901760, %v14817_v34  ;;  %v390_v55 = vsel %vm385_vm1, %v387_v31, %v389_v47  ;;  %v540_v56 = vsub.f32 %v14804_v23, %v539_v48 }
  0x60   : > { %v12249_v53 = vpack.c.bf16 %v529_v45, %v517_v41  ;;  %v14851_v54 = vsub.f32 %v394_v42, %v14838_v46  ;;  %v523_v58 = vand.u32 4294901760, %v522_v49  ;;  %v535_v59 = vand.u32 4294901760, %v534_v50 }
  0x61   : > { %v396_v60 = vsel %vm393_vm2, %v390_v55, 0  ;;  %v552_v61 = vsub.f32 %v14815_v33, %v551_v51  ;;  %v541_v1 = vand.u32 4294901760, %v540_v56  ;;  %v546_v2 = vsub.f32 %v14817_v34, %v545_v52 }
  0x62   : > { %12250 = vmatprep.subr.bf16.mxu0 %v12249_v53  ;;  %v482_v62 = vand.u32 4294901760, %v14851_v54  ;;  %v14865_v63 = vand.u32 4294901760, %v396_v60  ;;  %v557_v4 = vand.u32 4294901760, %v14827_v38  ;;  %v391_v5 = vrot.slane %v14858_v57, 1 }
  0x63   : > { %v553_v3 = vand.u32 4294901760, %v552_v61  ;;  %v12251_v8 = vpack.c.bf16 %v535_v59, %v523_v58  ;;  %v547_v9 = vand.u32 4294901760, %v546_v2  ;;  %v12257_v39 = vpack.c.bf16 %v14789_v16, %v14787_v15 }
  0x64   : > { %v483_v6 = vsub.f32 %v14851_v54, %v482_v62  ;;  %v492_v7 = vsub.f32 %v396_v60, %v14865_v63  ;;  %v558_v10 = vsub.f32 %v14827_v38, %v557_v4  ;;  %v392_v11 = vsel %vm385_vm1, %v389_v47, %v391_v5 }
  0x65   : > { %v12253_v22 = vpack.c.bf16 %v553_v3, %v541_v1  ;;  %v398_v24 = vsel %vm393_vm2, %v392_v11, 0  ;;  %v12259_v45 = vpack.c.bf16 %v14801_v21, %v14791_v17  ;;  %v12261_v47 = vpack.c.bf16 %v14815_v33, %v14804_v23  ;;  %v365_v17 = vld [vmem:[%s20400_s1 + $0x8] sm:$0xff]  ;;  %v367_v21 = vld [vmem:[%s20400_s1 + $0x18] sm:$0xff] }
  0x66   : > { %v484_v12 = vand.u32 4294901760, %v483_v6  ;;  %v493_v13 = vand.u32 4294901760, %v492_v7  ;;  %v559_v25 = vand.u32 4294901760, %v558_v10  ;;  %v14879_v26 = vand.u32 4294901760, %v398_v24 }
  0x67   : > { %v12263_v49 = vpack.c.bf16 %v14827_v38, %v14817_v34  ;;  %v12273_v38 = vpack.c.bf16 %v527_v29, %v515_v27  ;;  %v12275_v50 = vpack.c.bf16 %v533_v44, %v521_v43  ;;  %v12277_v15 = vpack.c.bf16 %v551_v51, %v539_v48  ;;  %v371_v34 = vld [vmem:[%s20400_s1 + $0x38] sm:$0xf]  ;;  %v364_v43 = vld [vmem:[%s20400_s1] sm:$0xff]  ;;  %v369_v44 = vld [vmem:[%s20400_s1 + $0x28] sm:$0xff] }
  0x68   : > { %485 = vmatmul.mubr.f32.vlgmr.msra.gmra.mrb[0].mxu0 %v484_v12  ;;  %v494_v28 = vsub.f32 %v492_v7, %v493_v13  ;;  %v12255_v30 = vpack.c.bf16 %v559_v25, %v547_v9  ;;  %v503_v31 = vsub.f32 %v398_v24, %v14879_v26  ;;  %v12279_v16 = vpack.c.bf16 %v557_v4, %v545_v52  ;;  %v370_v51 = vld [vmem:[%s20400_s1 + $0x30] sm:$0xf] }
  0x69   : > { %12252 = vmatpush1.bf16.msra.mxu0 %v12251_v8  ;;  %490 = vmatprep.mubr.f32.mxu0 %v20417_v0  ;;  %v1060_v23 = vand.u32 4294901760, %v365_v17  ;;  %v1064_v27 = vand.u32 4294901760, %v367_v21  ;;  %v1058_v48 = vsel %vm400_vm0, %v371_v34, 0  ;;  %v1048_v52 = vsel %vm393_vm2, %v14794_v18, 0 }
  0x6a   : > { %v495_v35 = vand.u32 4294901760, %v494_v28  ;;  %12254 = vmatprep.subr.bf16.mxu0 %v12253_v22  ;;  %v504_v40 = vand.u32 4294901760, %v503_v31  ;;  %v1062_v56 = vand.u32 4294901760, %v364_v43  ;;  %v1068_v59 = vand.u32 4294901760, %v369_v44 }
  0x6b   : > { %v14933_v29 = vsub.f32 %v365_v17, %v1060_v23  ;;  %v14935_v33 = vsub.f32 %v367_v21, %v1064_v27  ;;  %v14959_v53 = vpack.c.bf16 %v1064_v27, %v1060_v23  ;;  %v1072_v60 = vand.u32 4294901760, %v1058_v48 }
  0x6c   : > { %496 = vmatmul.mubr.f32.gmra.mrb[2].mxu0 %v495_v35  ;;  %v505_v41 = vsub.f32 %v503_v31, %v504_v40  ;;  %v1055_v61 = vsel %vm400_vm0, %v370_v51, 0  ;;  %v1050_v3 = vsel %vm393_vm2, %v14797_v19, 0  ;;  %v14979_v4 = vsub.f32 %v369_v44, %v1068_v59 }
  0x6d   : > { %12256 = vmatpush1.bf16.msra.mxu0 %v12255_v30  ;;  %501 = vmatprep.mubr.f32.mxu0 %v20417_v0  ;;  %v1180_v55 = vand.u32 4294901760, %v14935_v33  ;;  %v14981_v5 = vsub.f32 %v1058_v48, %v1072_v60  ;;  %v1074_v8 = vand.u32 4294901760, %v1055_v61  ;;  %v14992_v9 = vpack.c.bf16 %v1072_v60, %v1068_v59 }
  0x6e   : > { %12258 = vmatprep.subr.bf16.mxu0 %v12257_v39  ;;  %v506_v42 = vand.u32 4294901760, %v505_v41  ;;  %v14999_v12 = vand.u32 4294901760, %v1050_v3  ;;  %v1052_v25 = vsel %vm393_vm2, %v14823_v36, 0  ;;  %vm2386_vm4 = vcmask 1044480  }
  0x6f   : > { %v1181_v6 = vsub.f32 %v14935_v33, %v1180_v55  ;;  %v1204_v35 = vand.u32 4294901760, %v14981_v5  ;;  %vm4020_vm5 = vcmask 1041408   ;;  %vm3766_vm6 = vcmask 998400  }
  0x70   : > { %507 = vmatmul.mubr.f32.gmra.mrb[4].mxu0 %v506_v42  ;;  %v15015_v41 = vsub.f32 %v1050_v3, %v14999_v12  ;;  %v15017_v42 = vand.u32 4294901760, %v1052_v25  ;;  %vm4017_vm8 = vcmask 80896   ;;  %vm7597_vm9 = vcmask 916480  }
  0x71   : > { %617 = vmatprep.mubr.f32.mxu0 %v20417_v0  ;;  %v1182_v30 = vand.u32 4294901760, %v1181_v6  ;;  %vm11892_vm10 = vcmask 73728  }
  0x72   : > { %v1146_v17 = vand.u32 4294901760, %v15015_v41  ;;  %v15042_v21 = vsub.f32 %v1052_v25, %v15017_v42 }
  0x74   : > { %619 = vmatmul.mubr.f32.vlgmr.msra.gmra.mrb[0].mxu0 %v14838_v46  ;;  %v1147_v48 = vsub.f32 %v15015_v41, %v1146_v17  ;;  %v1157_v51 = vand.u32 4294901760, %v15042_v21 }
  0x75   : > { %12260 = vmatpush1.bf16.msra.mxu0 %v12259_v45  ;;  %624 = vmatprep.mubr.f32.mxu0 %v20417_v0 }
  0x76   : > { %12262 = vmatprep.subr.bf16.mxu0 %v12261_v47  ;;  %v1148_v59 = vand.u32 4294901760, %v1147_v48  ;;  %v1158_v60 = vsub.f32 %v15042_v21, %v1157_v51 }
  0x78   : > { %626 = vmatmul.mubr.f32.gmra.mrb[2].mxu0 %v14865_v63 }
  0x79   : > { %12264 = vmatpush1.bf16.msra.mxu0 %v12263_v49  ;;  %631 = vmatprep.mubr.f32.mxu0 %v20417_v0 }
  0x7a   : > { %12266 = vmatprep.subr.bf16.mxu0 %v14785_v14 }
  0x7c   : > { %633 = vmatmul.mubr.f32.gmra.mrb[4].mxu0 %v14879_v26 }
  0x7d   : > { %719 = vmatprep.mubr.f32.mxu0 %v20417_v0 }
  0x80   : > { %722 = vmatmul.mubr.f32.vlgmr.msra.gmra.mrb[0].mxu0 %v14851_v54  ;;  %v1168_v54 = vand.u32 4294901760, %v14933_v29 }
  0x81   : > { %12268 = vmatpush1.bf16.msra.mxu0 %v14799_v20  ;;  %727 = vmatprep.mubr.f32.mxu0 %v20417_v0 }
  0x82   : > { %12270 = vmatprep.subr.bf16.mxu0 %v14813_v32 }
  0x84   : > { %730 = vmatmul.mubr.f32.gmra.mrb[2].mxu0 %v492_v7 }
  0x85   : > { %12272 = vmatpush1.bf16.msra.mxu0 %v14825_v37  ;;  %735 = vmatprep.mubr.f32.mxu0 %v20417_v0 }
  0x86   : > { %12274 = vmatprep.subr.bf16.mxu0 %v12273_v38 }
  0x88   : > { %738 = vmatmul.mubr.f32.gmra.mrb[4].mxu0 %v503_v31  ;;  %v1192_v31 = vand.u32 4294901760, %v14979_v4 }
  0x89   : > { %816 = vmatprep.mubr.f32.mxu0 %v20417_v0 }
  0x8c   : > { %820 = vmatmul.mubr.f32.vlgmr.msra.gmra.mrb[0].mxu0 %v482_v62  ;;  %v14968_v62 = vand.u32 4294901760, %v1048_v52 }
  0x8d   : > { %12276 = vmatpush1.bf16.msra.mxu0 %v12275_v50  ;;  %825 = vmatprep.mubr.f32.mxu0 %v20417_v0  ;;  %v1193_v50 = vsub.f32 %v14979_v4, %v1192_v31 }
  0x8e   : > { %12278 = vmatprep.subr.bf16.mxu0 %v12277_v15  ;;  %v14997_v11 = vsub.f32 %v1048_v52, %v14968_v62  ;;  %v1205_v15 = vsub.f32 %v14981_v5, %v1204_v35 }
  0x90   : > { %829 = vmatmul.mubr.f32.gmra.mrb[2].mxu0 %v493_v13  ;;  %v15002_v13 = vsub.f32 %v1055_v61, %v1074_v8  ;;  %v12305_v61 = vpack.c.bf16 %v14935_v33, %v14933_v29 }
  0x91   : > { %12280 = vmatpush1.bf16.msra.mxu0 %v12279_v16  ;;  %834 = vmatprep.mubr.f32.mxu0 %v20417_v0 }
  0x92   : > { %12282 = vmatprep.subr.bf16.mxu0 %v14785_v14  ;;  %v366_v14 = vld [vmem:[%s20400_s1 + $0x10] sm:$0xff]  ;;  %v1210_v49 = vand.u32 4294901760, %v15002_v13 }
  0x93   : > { %v1066_v58 = vand.u32 4294901760, %v366_v14 }
  0x94   : > { %838 = vmatmul.mubr.f32.gmra.mrb[4].mxu0 %v504_v40  ;;  %v1135_v40 = vand.u32 4294901760, %v14997_v11 }
  0x95   : > { %932 = vmatprep.mubr.f32.mxu0 %v20417_v0  ;;  %v14974_v1 = vsub.f32 %v366_v14, %v1066_v58  ;;  %v14989_v7 = vpack.c.bf16 %v1066_v58, %v1062_v56  ;;  %v1206_v14 = vand.u32 4294901760, %v1205_v15 }
  0x96   : > { %v1136_v16 = vsub.f32 %v14997_v11, %v1135_v40 }
  0x97   : > { %v1186_v24 = vand.u32 4294901760, %v14974_v1 }
  0x98   : > { %934 = vmatmul.mubr.f32.vlgmr.msra.gmra.mrb[0].mxu0 %v14838_v46  ;;  %v1137_v44 = vand.u32 4294901760, %v1136_v16 }
  0x99   : > { %12284 = vmatpush1.bf16.msra.mxu0 %v14799_v20  ;;  %939 = vmatprep.mubr.f32.mxu0 %v20417_v0  ;;  %v368_v20 = vld [vmem:[%s20400_s1 + $0x20] sm:$0xff] }
  0x9a   : > { %12286 = vmatprep.subr.bf16.mxu0 %v14813_v32  ;;  %v14972_v32 = vsub.f32 %v364_v43, %v1062_v56  ;;  %v1070_v2 = vand.u32 4294901760, %v368_v20  ;;  %v1194_v43 = vand.u32 4294901760, %v1193_v50 }
  0x9c   : > { %941 = vmatmul.mubr.f32.gmra.mrb[2].mxu0 %v14865_v63  ;;  %v14994_v10 = vsub.f32 %v368_v20, %v1070_v2  ;;  %v1174_v22 = vand.u32 4294901760, %v14972_v32  ;;  %v15011_v39 = vpack.c.bf16 %v1074_v8, %v1070_v2  ;;  %v12301_v58 = vpack.c.bf16 %v1206_v14, %v1194_v43 }
  0x9d   : > { %12288 = vmatpush1.bf16.msra.mxu0 %v14825_v37  ;;  %946 = vmatprep.mubr.f32.mxu0 %v20417_v0  ;;  %v1169_v37 = vsub.f32 %v14933_v29, %v1168_v54  ;;  %v1159_v2 = vand.u32 4294901760, %v1158_v60  ;;  %v12307_v3 = vpack.c.bf16 %v14974_v1, %v14972_v32  ;;  %v12321_v8 = vpack.c.bf16 %v1180_v55, %v1168_v54  ;;  %v12003_v54 = vld [vmem:[%s20400_s1 + $0x88] sm:$0xff]  ;;  %v12005_v55 = vld [vmem:[%s20400_s1 + $0x98] sm:$0xff] }
  0x9e   : > { %12290 = vmatprep.subr.bf16.mxu0 %v14959_v53  ;;  %v1175_v45 = vsub.f32 %v14972_v32, %v1174_v22  ;;  %v1198_v47 = vand.u32 4294901760, %v14994_v10  ;;  %v12311_v6 = vpack.c.bf16 %v15002_v13, %v14994_v10  ;;  %v12323_v25 = vpack.c.bf16 %v1186_v24, %v1174_v22 }
  0x9f   : > { %v1170_v28 = vand.u32 4294901760, %v1169_v37  ;;  %v12309_v37 = vpack.c.bf16 %v14981_v5, %v14979_v4  ;;  %v12325_v29 = vpack.c.bf16 %v1204_v35, %v1192_v31  ;;  %v1711_v32 = vrot.slane %v14794_v18, 2 }
  0xa0   : > { %948 = vmatmul.mubr.f32.gmra.mrb[4].mxu0 %v14879_v26  ;;  %v1176_v23 = vand.u32 4294901760, %v1175_v45  ;;  %v1199_v34 = vsub.f32 %v14994_v10, %v1198_v47  ;;  %v12327_v33 = vpack.c.bf16 %v1210_v49, %v1198_v47  ;;  %v1730_v4 = vand.u32 4294901760, %v12003_v54 }
  0xa1   : > { %1026 = vmatprep.mubr.f32.mxu0 %v20417_v0  ;;  %v12297_v38 = vpack.c.bf16 %v1182_v30, %v1170_v28  ;;  %v1734_v5 = vand.u32 4294901760, %v12005_v55  ;;  %v12004_v28 = vld [vmem:[%s20400_s1 + $0x90] sm:$0xff]  ;;  %v12007_v30 = vld [vmem:[%s20400_s1 + $0xa8] sm:$0xff] }
  0xa2   : > { %v1200_v20 = vand.u32 4294901760, %v1199_v34  ;;  %v15118_v10 = vsub.f32 %v12003_v54, %v1730_v4  ;;  %v1736_v50 = vand.u32 4294901760, %v12004_v28  ;;  %v1738_v15 = vand.u32 4294901760, %v12007_v30 }
  0xa3   : > { %v15139_v31 = vpack.c.bf16 %v1734_v5, %v1730_v4 }
  0xa4   : > { %1028 = vmatmul.mubr.f32.vlgmr.msra.gmra.mrb[0].mxu0 %v14838_v46  ;;  %v1187_v46 = vsub.f32 %v14974_v1, %v1186_v24  ;;  %v1712_v1 = vrot.slane %v14797_v19, 2  ;;  %v1714_v24 = vrot.slane %v14823_v36, 2 }
  0xa5   : > { %12292 = vmatpush1.bf16.msra.mxu0 %v14989_v7  ;;  %1033 = vmatprep.mubr.f32.mxu0 %v20417_v0 }
  0xa6   : > { %12294 = vmatprep.subr.bf16.mxu0 %v14992_v9  ;;  %v1188_v27 = vand.u32 4294901760, %v1187_v46  ;;  %v1713_v22 = vsel %vm1710_vm3, %v1711_v32, %v1712_v1  ;;  %v12006_v46 = vld [vmem:[%s20400_s1 + $0xa0] sm:$0xff] }
  0xa7   : > { %v1718_v45 = vsel %vm393_vm2, %v1713_v22, 0  ;;  %v1740_v34 = vand.u32 4294901760, %v12006_v46 }
  0xa8   : > { %1035 = vmatmul.mubr.f32.gmra.mrb[2].mxu0 %v14865_v63  ;;  %v1211_v63 = vsub.f32 %v15002_v13, %v1210_v49  ;;  %v12299_v52 = vpack.c.bf16 %v1188_v27, %v1176_v23  ;;  %v12002_v13 = vld [vmem:[%s20400_s1 + $0x80] sm:$0xff]  ;;  %v1715_v49 = vsel %vm1710_vm3, %v1712_v1, %v1714_v24  ;;  %v15162_v23 = vsub.f32 %v12004_v28, %v1736_v50 }
  0xa9   : > { %12296 = vmatpush1.bf16.msra.mxu0 %v15011_v39  ;;  %1040 = vmatprep.mubr.f32.mxu0 %v20417_v0  ;;  %v1732_v35 = vand.u32 4294901760, %v12002_v13  ;;  %v15164_v27 = vsub.f32 %v12007_v30, %v1738_v15 }
  0xaa   : > { %12298 = vmatprep.subr.bf16.mxu0 %v12297_v38  ;;  %v1212_v56 = vand.u32 4294901760, %v1211_v63  ;;  %v1716_v38 = vrot.slane %v14858_v57, 2  ;;  %v1720_v63 = vsel %vm393_vm2, %v1715_v49, 0 }
  0xab   : > { %v15155_v16 = vsub.f32 %v12002_v13, %v1732_v35  ;;  %v15177_v48 = vpack.c.bf16 %v1736_v50, %v1732_v35 }
  0xac   : > { %1042 = vmatmul.mubr.f32.gmra.mrb[4].mxu0 %v14879_v26  ;;  %v12303_v26 = vpack.c.bf16 %v1212_v56, %v1200_v20  ;;  %v15182_v20 = vsub.f32 %v12006_v46, %v1740_v34 }
  0xad   : > { %1132 = vmatprep.mubr.f32.mxu0 %v20417_v0  ;;  %v1844_v60 = vand.u32 4294901760, %v15155_v16 }
  0xaf   : > { %v1845_v54 = vsub.f32 %v15155_v16, %v1844_v60 }
  0xb0   : > { %1138 = vmatmul.mubr.f32.vlgmr.msra.gmra.mrb[0].mxu0 %v1137_v44  ;;  %v1717_v44 = vsel %vm1710_vm3, %v1714_v24, %v1716_v38 }
  0xb1   : > { %12300 = vmatpush1.bf16.msra.mxu0 %v12299_v52  ;;  %1143 = vmatprep.mubr.f32.mxu0 %v20417_v0  ;;  %v1846_v24 = vand.u32 4294901760, %v1845_v54 }
  0xb2   : > { %12302 = vmatprep.subr.bf16.mxu0 %v12301_v58  ;;  %v15187_v58 = vand.u32 4294901760, %v1720_v63 }
  0xb4   : > { %1149 = vmatmul.mubr.f32.gmra.mrb[2].mxu0 %v1148_v59 }
  0xb5   : > { %12304 = vmatpush1.bf16.msra.mxu0 %v12303_v26  ;;  %1154 = vmatprep.mubr.f32.mxu0 %v20417_v0  ;;  %v1856_v26 = vand.u32 4294901760, %v15162_v23 }
  0xb6   : > { %12306 = vmatprep.subr.bf16.mxu0 %v12305_v61  ;;  %v1722_v61 = vsel %vm393_vm2, %v1717_v44, 0 }
  0xb8   : > { %1160 = vmatmul.mubr.f32.gmra.mrb[4].mxu0 %v1159_v2 }
  0xb9   : > { %1270 = vmatprep.mubr.f32.mxu0 %v20417_v0 }
  0xbc   : > { %1272 = vmatmul.mubr.f32.vlgmr.msra.gmra.mrb[0].mxu0 %v14968_v62 }
  0xbd   : > { %12308 = vmatpush1.bf16.msra.mxu0 %v12307_v3  ;;  %1277 = vmatprep.mubr.f32.mxu0 %v20417_v0 }
  0xbe   : > { %12310 = vmatprep.subr.bf16.mxu0 %v12309_v37  ;;  %v1862_v37 = vand.u32 4294901760, %v15164_v27 }
  0xc0   : > { %1279 = vmatmul.mubr.f32.gmra.mrb[2].mxu0 %v14999_v12  ;;  %v1863_v4 = vsub.f32 %v15164_v27, %v1862_v37 }
  0xc1   : > { %12312 = vmatpush1.bf16.msra.mxu0 %v12311_v6  ;;  %1284 = vmatprep.mubr.f32.mxu0 %v20417_v0 }
  0xc2   : > { %12314 = vmatprep.subr.bf16.mxu0 %v14959_v53  ;;  %v1864_v35 = vand.u32 4294901760, %v1863_v4 }
  0xc4   : > { %1286 = vmatmul.mubr.f32.gmra.mrb[4].mxu0 %v15017_v42 }
  0xc5   : > { %1372 = vmatprep.mubr.f32.mxu0 %v20417_v0 }
  0xc8   : > { %1375 = vmatmul.mubr.f32.vlgmr.msra.gmra.mrb[0].mxu0 %v14997_v11  ;;  %v15120_v11 = vsub.f32 %v12005_v55, %v1734_v5  ;;  %v1868_v55 = vand.u32 4294901760, %v15182_v20 }
  0xc9   : > { %12316 = vmatpush1.bf16.msra.mxu0 %v14989_v7  ;;  %1380 = vmatprep.mubr.f32.mxu0 %v20417_v0 }
  0xca   : > { %12318 = vmatprep.subr.bf16.mxu0 %v14992_v9  ;;  %v1850_v47 = vand.u32 4294901760, %v15120_v11  ;;  %v1869_v30 = vsub.f32 %v15182_v20, %v1868_v55 }
  0xcc   : > { %1383 = vmatmul.mubr.f32.gmra.mrb[2].mxu0 %v15015_v41  ;;  %v12008_v41 = vld [vmem:[%s20400_s1 + $0xb0] sm:$0xf]  ;;  %v1870_v38 = vand.u32 4294901760, %v1869_v30 }
  0xcd   : > { %12320 = vmatpush1.bf16.msra.mxu0 %v15011_v39  ;;  %1388 = vmatprep.mubr.f32.mxu0 %v20417_v0 }
  0xce   : > { %12322 = vmatprep.subr.bf16.mxu0 %v12321_v8 }
  0xd0   : > { %1391 = vmatmul.mubr.f32.gmra.mrb[4].mxu0 %v15042_v21  ;;  %v15158_v21 = vand.u32 4294901760, %v1718_v45 }
  0xd1   : > { %1469 = vmatprep.mubr.f32.mxu0 %v20417_v0 }
  0xd2   : > { %v15185_v56 = vsub.f32 %v1718_v45, %v15158_v21 }
  0xd4   : > { %1473 = vmatmul.mubr.f32.vlgmr.msra.gmra.mrb[0].mxu0 %v1135_v40 }
  0xd5   : > { %12324 = vmatpush1.bf16.msra.mxu0 %v12323_v25  ;;  %1478 = vmatprep.mubr.f32.mxu0 %v20417_v0  ;;  %v1805_v25 = vand.u32 4294901760, %v15185_v56 }
  0xd6   : > { %12326 = vmatprep.subr.bf16.mxu0 %v12325_v29  ;;  %v15202_v29 = vsub.f32 %v1720_v63, %v15187_v58 }
  0xd7   : > { %v1806_v13 = vsub.f32 %v15185_v56, %v1805_v25 }
  0xd8   : > { %1482 = vmatmul.mubr.f32.gmra.mrb[2].mxu0 %v1146_v17 }
  0xd9   : > { %12328 = vmatpush1.bf16.msra.mxu0 %v12327_v33  ;;  %1487 = vmatprep.mubr.f32.mxu0 %v20417_v0  ;;  %v15204_v33 = vand.u32 4294901760, %v1722_v61 }
  0xda   : > { %12330 = vmatprep.subr.bf16.mxu0 %v14959_v53  ;;  %v12009_v53 = vld [vmem:[%s20400_s1 + $0xb8] sm:$0xf] }
  0xdb   : > { %v1728_v40 = vsel %vm400_vm0, %v12009_v53, 0  ;;  %v1816_v53 = vand.u32 4294901760, %v15202_v29  ;;  %v15229_v22 = vsub.f32 %v1722_v61, %v15204_v33  ;;  %v12371_v61 = vpack.c.bf16 %v1856_v26, %v1844_v60  ;;  %v12012_v60 = vld [vmem:[%s20400_s1 + $0xd0] sm:$0xff] }
  0xdc   : > { %1491 = vmatmul.mubr.f32.gmra.mrb[4].mxu0 %v1157_v51  ;;  %v1742_v17 = vand.u32 4294901760, %v1728_v40 }
  0xdd   : > { %1585 = vmatprep.mubr.f32.mxu0 %v20417_v0  ;;  %v1817_v45 = vsub.f32 %v15202_v29, %v1816_v53  ;;  %v1827_v46 = vand.u32 4294901760, %v15229_v22 }
  0xde   : > { %v15168_v43 = vsub.f32 %v1728_v40, %v1742_v17  ;;  %v15180_v52 = vpack.c.bf16 %v1742_v17, %v1738_v15 }
  0xdf   : > { %v1818_v17 = vand.u32 4294901760, %v1817_v45 }
  0xe0   : > { %1587 = vmatmul.mubr.f32.vlgmr.msra.gmra.mrb[0].mxu0 %v14968_v62  ;;  %v1874_v6 = vand.u32 4294901760, %v15168_v43 }
  0xe1   : > { %12332 = vmatpush1.bf16.msra.mxu0 %v14989_v7  ;;  %1592 = vmatprep.mubr.f32.mxu0 %v20417_v0  ;;  %v1838_v7 = vand.u32 4294901760, %v15118_v10 }
  0xe2   : > { %12334 = vmatprep.subr.bf16.mxu0 %v14992_v9  ;;  %v1725_v9 = vsel %vm400_vm0, %v12008_v41, 0  ;;  %v1875_v5 = vsub.f32 %v15168_v43, %v1874_v6  ;;  %v1807_v41 = vand.u32 4294901760, %v1806_v13 }
  0xe3   : > { %v1839_v14 = vsub.f32 %v15118_v10, %v1838_v7  ;;  %v1744_v51 = vand.u32 4294901760, %v1725_v9 }
  0xe4   : > { %1594 = vmatmul.mubr.f32.gmra.mrb[2].mxu0 %v14999_v12  ;;  %v1876_v40 = vand.u32 4294901760, %v1875_v5 }
  0xe5   : > { %12336 = vmatpush1.bf16.msra.mxu0 %v15011_v39  ;;  %1599 = vmatprep.mubr.f32.mxu0 %v20417_v0  ;;  %v1851_v39 = vsub.f32 %v15120_v11, %v1850_v47  ;;  %v15190_v59 = vsub.f32 %v1725_v9, %v1744_v51  ;;  %v1840_v2 = vand.u32 4294901760, %v1839_v14  ;;  %v15198_v8 = vpack.c.bf16 %v1744_v51, %v1740_v34 }
  0xe6   : > { %12338 = vmatprep.subr.bf16.mxu0 %v15139_v31  ;;  %v12349_v15 = vpack.c.bf16 %v1876_v40, %v1864_v35  ;;  %v1828_v9 = vsub.f32 %v15229_v22, %v1827_v46  ;;  %v12353_v34 = vpack.c.bf16 %v15120_v11, %v15118_v10  ;;  %v12355_v14 = vpack.c.bf16 %v15162_v23, %v15155_v16 }
  0xe7   : > { %v1852_v3 = vand.u32 4294901760, %v1851_v39  ;;  %v1880_v32 = vand.u32 4294901760, %v15190_v59  ;;  %v12357_v39 = vpack.c.bf16 %v15168_v43, %v15164_v27  ;;  %v12359_v44 = vpack.c.bf16 %v15190_v59, %v15182_v20 }
  0xe8   : > { %1601 = vmatmul.mubr.f32.gmra.mrb[4].mxu0 %v15017_v42  ;;  %v1829_v63 = vand.u32 4294901760, %v1828_v9  ;;  %v12369_v51 = vpack.c.bf16 %v1850_v47, %v1838_v7  ;;  %v12373_v10 = vpack.c.bf16 %v1874_v6, %v1862_v37  ;;  %v12011_v7 = vld [vmem:[%s20400_s1 + $0xc8] sm:$0xff]  ;;  %v12013_v47 = vld [vmem:[%s20400_s1 + $0xd8] sm:$0xff]  ;;  %v2387_v16 = vrot.slane %v14794_v18, 3 }
  0xe9   : > { %1679 = vmatprep.mubr.f32.mxu0 %v20417_v0  ;;  %v12345_v1 = vpack.c.bf16 %v1852_v3, %v1840_v2  ;;  %v12375_v11 = vpack.c.bf16 %v1880_v32, %v1868_v55  ;;  %v2406_v27 = vand.u32 4294901760, %v12011_v7  ;;  %v2410_v43 = vand.u32 4294901760, %v12013_v47  ;;  %v12017_v18 = vld [vmem:[%s20400_s1 + $0xf8] sm:$0xf] }
  0xea   : > { %v2404_v37 = vsel %vm400_vm0, %v12017_v18, 0  ;;  %v2412_v55 = vand.u32 4294901760, %v12012_v60 }
  0xeb   : > { %v15305_v20 = vsub.f32 %v12011_v7, %v2406_v27  ;;  %v15326_v2 = vpack.c.bf16 %v2410_v43, %v2406_v27  ;;  %v2418_v4 = vand.u32 4294901760, %v2404_v37 }
  0xec   : > { %1681 = vmatmul.mubr.f32.vlgmr.msra.gmra.mrb[0].mxu0 %v14968_v62  ;;  %v1857_v62 = vsub.f32 %v15162_v23, %v1856_v26  ;;  %v2388_v23 = vrot.slane %v14797_v19, 3  ;;  %v12015_v26 = vld [vmem:[%s20400_s1 + $0xe8] sm:$0xff]  ;;  %v15349_v13 = vsub.f32 %v12012_v60, %v2412_v55 }
  0xed   : > { %12340 = vmatpush1.bf16.msra.mxu0 %v15177_v48  ;;  %1686 = vmatprep.mubr.f32.mxu0 %v20417_v0 }
  0xee   : > { %12342 = vmatprep.subr.bf16.mxu0 %v15180_v52  ;;  %v1858_v28 = vand.u32 4294901760, %v1857_v62  ;;  %v2389_v19 = vsel %vm2386_vm4, %v2387_v16, %v2388_v23  ;;  %v2392_v62 = vrot.slane %v14858_v57, 3 }
  0xef   : > { %v2394_v6 = vsel %vm393_vm2, %v2389_v19, 0 }
  0xf0   : > { %1688 = vmatmul.mubr.f32.gmra.mrb[2].mxu0 %v14999_v12  ;;  %v1881_v12 = vsub.f32 %v15190_v59, %v1880_v32  ;;  %v12347_v49 = vpack.c.bf16 %v1858_v28, %v1846_v24  ;;  %v12010_v59 = vld [vmem:[%s20400_s1 + $0xc0] sm:$0xff]  ;;  %v2414_v32 = vand.u32 4294901760, %v12015_v26  ;;  %v15345_v5 = vand.u32 4294901760, %v2394_v6 }
  0xf1   : > { %12344 = vmatpush1.bf16.msra.mxu0 %v15198_v8  ;;  %1693 = vmatprep.mubr.f32.mxu0 %v20417_v0  ;;  %v2408_v3 = vand.u32 4294901760, %v12010_v59  ;;  %v15355_v24 = vsub.f32 %v2404_v37, %v2418_v4 }
  0xf2   : > { %12346 = vmatprep.subr.bf16.mxu0 %v12345_v1  ;;  %v1882_v50 = vand.u32 4294901760, %v1881_v12  ;;  %v15367_v40 = vpack.c.bf16 %v2418_v4, %v2414_v32  ;;  %v15372_v45 = vsub.f32 %v2394_v6, %v15345_v5 }
  0xf3   : > { %v15342_v1 = vsub.f32 %v12010_v59, %v2408_v3  ;;  %v15364_v12 = vpack.c.bf16 %v2412_v55, %v2408_v3 }
  0xf4   : > { %1695 = vmatmul.mubr.f32.gmra.mrb[4].mxu0 %v15017_v42  ;;  %v12351_v42 = vpack.c.bf16 %v1882_v50, %v1870_v38  ;;  %v2532_v50 = vand.u32 4294901760, %v15349_v13 }
  0xf5   : > { %1802 = vmatprep.mubr.f32.mxu0 %v20417_v0  ;;  %v2520_v38 = vand.u32 4294901760, %v15342_v1  ;;  %v12403_v4 = vpack.c.bf16 %v15349_v13, %v15342_v1 }
  0xf8   : > { %1808 = vmatmul.mubr.f32.vlgmr.msra.gmra.mrb[0].mxu0 %v1807_v41 }
  0xf9   : > { %12348 = vmatpush1.bf16.msra.mxu0 %v12347_v49  ;;  %1813 = vmatprep.mubr.f32.mxu0 %v20417_v0 }
  0xfa   : > { %12350 = vmatprep.subr.bf16.mxu0 %v12349_v15 }
  0xfc   : > { %1819 = vmatmul.mubr.f32.gmra.mrb[2].mxu0 %v1818_v17 }
  0xfd   : > { %12352 = vmatpush1.bf16.msra.mxu0 %v12351_v42  ;;  %1824 = vmatprep.mubr.f32.mxu0 %v20417_v0 }
  0xfe   : > { %12354 = vmatprep.subr.bf16.mxu0 %v12353_v34  ;;  %v2550_v34 = vand.u32 4294901760, %v15355_v24 }
 0x100   : > { %1830 = vmatmul.mubr.f32.gmra.mrb[4].mxu0 %v1829_v63 }
 0x101   : > { %1940 = vmatprep.mubr.f32.mxu0 %v20417_v0 }
 0x104   : > { %1942 = vmatmul.mubr.f32.vlgmr.msra.gmra.mrb[0].mxu0 %v15158_v21 }
 0x105   : > { %12356 = vmatpush1.bf16.msra.mxu0 %v12355_v14  ;;  %1947 = vmatprep.mubr.f32.mxu0 %v20417_v0  ;;  %v2481_v14 = vand.u32 4294901760, %v15372_v45 }
 0x106   : > { %12358 = vmatprep.subr.bf16.mxu0 %v12357_v39 }
 0x107   : > { %v2482_v16 = vsub.f32 %v15372_v45, %v2481_v14 }
 0x108   : > { %1949 = vmatmul.mubr.f32.gmra.mrb[2].mxu0 %v15187_v58 }
 0x109   : > { %12360 = vmatpush1.bf16.msra.mxu0 %v12359_v44  ;;  %1954 = vmatprep.mubr.f32.mxu0 %v20417_v0  ;;  %v2483_v60 = vand.u32 4294901760, %v2482_v16 }
 0x10a   : > { %12362 = vmatprep.subr.bf16.mxu0 %v15139_v31 }
 0x10c   : > { %1956 = vmatmul.mubr.f32.gmra.mrb[4].mxu0 %v15204_v33 }
 0x10d   : > { %2042 = vmatprep.mubr.f32.mxu0 %v20417_v0 }
 0x110   : > { %2045 = vmatmul.mubr.f32.vlgmr.msra.gmra.mrb[0].mxu0 %v15185_v56  ;;  %v15307_v56 = vsub.f32 %v12013_v47, %v2410_v43  ;;  %v2551_v47 = vsub.f32 %v15355_v24, %v2550_v34 }
 0x111   : > { %12364 = vmatpush1.bf16.msra.mxu0 %v15177_v48  ;;  %2050 = vmatprep.mubr.f32.mxu0 %v20417_v0 }
 0x112   : > { %12366 = vmatprep.subr.bf16.mxu0 %v15180_v52  ;;  %v12401_v55 = vpack.c.bf16 %v15307_v56, %v15305_v20 }
 0x114   : > { %2053 = vmatmul.mubr.f32.gmra.mrb[2].mxu0 %v15202_v29  ;;  %v2526_v29 = vand.u32 4294901760, %v15307_v56 }
 0x115   : > { %12368 = vmatpush1.bf16.msra.mxu0 %v15198_v8  ;;  %2058 = vmatprep.mubr.f32.mxu0 %v20417_v0 }
 0x116   : > { %12370 = vmatprep.subr.bf16.mxu0 %v12369_v51  ;;  %v2521_v51 = vsub.f32 %v15342_v1, %v2520_v38  ;;  %v12021_v1 = vld [vmem:[%s20400_s1 + $0x118] sm:$0xff] }
 0x118   : > { %2061 = vmatmul.mubr.f32.gmra.mrb[4].mxu0 %v15229_v22  ;;  %v2522_v43 = vand.u32 4294901760, %v2521_v51  ;;  %v12022_v51 = vld [vmem:[%s20400_s1 + $0x120] sm:$0xff] }
 0x119   : > { %2139 = vmatprep.mubr.f32.mxu0 %v20417_v0 }
 0x11c   : > { %2143 = vmatmul.mubr.f32.vlgmr.msra.gmra.mrb[0].mxu0 %v1805_v25  ;;  %v12014_v25 = vld [vmem:[%s20400_s1 + $0xe0] sm:$0xff] }
 0x11d   : > { %12372 = vmatpush1.bf16.msra.mxu0 %v12371_v61  ;;  %2148 = vmatprep.mubr.f32.mxu0 %v20417_v0  ;;  %v2416_v57 = vand.u32 4294901760, %v12014_v25 }
 0x11e   : > { %12374 = vmatprep.subr.bf16.mxu0 %v12373_v10 }
 0x11f   : > { %v15369_v41 = vsub.f32 %v12014_v25, %v2416_v57 }
 0x120   : > { %2152 = vmatmul.mubr.f32.gmra.mrb[2].mxu0 %v1816_v53  ;;  %v15351_v53 = vsub.f32 %v12015_v26, %v2414_v32 }
 0x121   : > { %12376 = vmatpush1.bf16.msra.mxu0 %v12375_v11  ;;  %2157 = vmatprep.mubr.f32.mxu0 %v20417_v0  ;;  %v2544_v61 = vand.u32 4294901760, %v15369_v41 }
 0x122   : > { %12378 = vmatprep.subr.bf16.mxu0 %v15139_v31  ;;  %v2390_v31 = vrot.slane %v14823_v36, 3  ;;  %v12016_v36 = vld [vmem:[%s20400_s1 + $0xf0] sm:$0xf]  ;;  %v2538_v42 = vand.u32 4294901760, %v15351_v53 }
 0x123   : > { %v2545_v18 = vsub.f32 %v15369_v41, %v2544_v61 }
 0x124   : > { %2161 = vmatmul.mubr.f32.gmra.mrb[4].mxu0 %v1827_v46  ;;  %v2391_v54 = vsel %vm2386_vm4, %v2388_v23, %v2390_v31  ;;  %v2393_v30 = vsel %vm2386_vm4, %v2390_v31, %v2392_v62  ;;  %v2539_v7 = vsub.f32 %v15351_v53, %v2538_v42  ;;  %v2552_v31 = vand.u32 4294901760, %v2551_v47 }
 0x125   : > { %2255 = vmatprep.mubr.f32.mxu0 %v20417_v0  ;;  %v2396_v22 = vsel %vm393_vm2, %v2391_v54, 0  ;;  %v2398_v15 = vsel %vm393_vm2, %v2393_v30, 0  ;;  %v3085_v30 = vand.u32 4294901760, %v12021_v1 }
 0x126   : > { %v15374_v46 = vand.u32 4294901760, %v2396_v22  ;;  %v15391_v44 = vand.u32 4294901760, %v2398_v15  ;;  %v2540_v19 = vand.u32 4294901760, %v2539_v7 }
 0x128   : > { %2257 = vmatmul.mubr.f32.vlgmr.msra.gmra.mrb[0].mxu0 %v15158_v21  ;;  %v15389_v39 = vsub.f32 %v2396_v22, %v15374_v46  ;;  %v15416_v27 = vsub.f32 %v2398_v15, %v15391_v44  ;;  %v12397_v25 = vpack.c.bf16 %v2552_v31, %v2540_v19  ;;  %v12020_v15 = vld [vmem:[%s20400_s1 + $0x110] sm:$0xff] }
 0x129   : > { %12380 = vmatpush1.bf16.msra.mxu0 %v15177_v48  ;;  %2262 = vmatprep.mubr.f32.mxu0 %v20417_v0  ;;  %v2514_v48 = vand.u32 4294901760, %v15305_v20  ;;  %v3087_v7 = vand.u32 4294901760, %v12020_v15 }
 0x12a   : > { %12382 = vmatprep.subr.bf16.mxu0 %v15180_v52  ;;  %v2401_v52 = vsel %vm400_vm0, %v12016_v36, 0  ;;  %v2492_v23 = vand.u32 4294901760, %v15389_v39  ;;  %v2503_v3 = vand.u32 4294901760, %v15416_v27  ;;  %v2546_v36 = vand.u32 4294901760, %v2545_v18 }
 0x12b   : > { %v2515_v28 = vsub.f32 %v15305_v20, %v2514_v48  ;;  %v2420_v35 = vand.u32 4294901760, %v2401_v52  ;;  %v12417_v22 = vpack.c.bf16 %v2526_v29, %v2514_v48  ;;  %v12419_v20 = vpack.c.bf16 %v2532_v50, %v2520_v38  ;;  %v14440_v38 = vld [vmem:[%s14768_s23 + $0x10] sm:$0xff] }
 0x12c   : > { %2264 = vmatmul.mubr.f32.gmra.mrb[2].mxu0 %v15187_v58  ;;  %v2493_v26 = vsub.f32 %v15389_v39, %v2492_v23  ;;  %v2504_v62 = vsub.f32 %v15416_v27, %v2503_v3  ;;  %v3091_v18 = vand.u32 4294901760, %v12022_v51 }
 0x12d   : > { %12384 = vmatpush1.bf16.msra.mxu0 %v15198_v8  ;;  %2269 = vmatprep.mubr.f32.mxu0 %v20417_v0  ;;  %v2527_v8 = vsub.f32 %v15307_v56, %v2526_v29  ;;  %v15377_v49 = vsub.f32 %v2401_v52, %v2420_v35  ;;  %v2516_v17 = vand.u32 4294901760, %v2515_v28  ;;  %v15385_v63 = vpack.c.bf16 %v2420_v35, %v2416_v57  ;;  %v12019_v29 = vld [vmem:[%s20400_s1 + $0x108] sm:$0xff] }
 0x12e   : > { %12386 = vmatprep.subr.bf16.mxu0 %v15326_v2  ;;  %v2494_v54 = vand.u32 4294901760, %v2493_v26  ;;  %v2505_v32 = vand.u32 4294901760, %v2504_v62  ;;  %v12405_v52 = vpack.c.bf16 %v15355_v24, %v15351_v53  ;;  %v12421_v56 = vpack.c.bf16 %v2550_v34, %v2538_v42  ;;  %v14439_v24 = vld [vmem:[%s14768_s23 + $0x8] sm:$0xff] }
 0x12f   : > { %v2528_v9 = vand.u32 4294901760, %v2527_v8  ;;  %v2556_v10 = vand.u32 4294901760, %v15377_v49  ;;  %v12407_v57 = vpack.c.bf16 %v15377_v49, %v15369_v41  ;;  %v3063_v28 = vrot.slane %v14439_v24, 4 }
 0x130   : > { %2271 = vmatmul.mubr.f32.gmra.mrb[4].mxu0 %v15204_v33  ;;  %v3081_v8 = vand.u32 4294901760, %v12019_v29  ;;  %v15494_v41 = vsub.f32 %v12021_v1, %v3085_v30 }
 0x131   : > { %2349 = vmatprep.mubr.f32.mxu0 %v20417_v0  ;;  %v12393_v11 = vpack.c.bf16 %v2528_v9, %v2516_v17  ;;  %v12423_v48 = vpack.c.bf16 %v2556_v10, %v2544_v61  ;;  %v12023_v17 = vld [vmem:[%s20400_s1 + $0x128] sm:$0xff] }
 0x132   : > { %v15492_v35 = vsub.f32 %v12019_v29, %v3081_v8  ;;  %v15513_v9 = vpack.c.bf16 %v3085_v30, %v3081_v8  ;;  %v3089_v47 = vand.u32 4294901760, %v12023_v17 }
 0x134   : > { %2351 = vmatmul.mubr.f32.vlgmr.msra.gmra.mrb[0].mxu0 %v15158_v21  ;;  %v2533_v21 = vsub.f32 %v15349_v13, %v2532_v50  ;;  %v14438_v13 = vld [vmem:[%s14768_s23] sm:$0xff]  ;;  %v3065_v50 = vrot.slane %v14440_v38, 4 }
 0x135   : > { %12388 = vmatpush1.bf16.msra.mxu0 %v15364_v12  ;;  %2356 = vmatprep.mubr.f32.mxu0 %v20417_v0  ;;  %v3062_v53 = vrot.slane %v14438_v13, 4 }
 0x136   : > { %12390 = vmatprep.subr.bf16.mxu0 %v15367_v40  ;;  %v2534_v59 = vand.u32 4294901760, %v2533_v21  ;;  %v3201_v21 = vand.u32 4294901760, %v15494_v41  ;;  %v3066_v61 = vsel %vm400_vm0, %v3063_v28, %v3065_v50 }
 0x138   : > { %2358 = vmatmul.mubr.f32.gmra.mrb[2].mxu0 %v15187_v58  ;;  %v2557_v58 = vsub.f32 %v15377_v49, %v2556_v10  ;;  %v12395_v37 = vpack.c.bf16 %v2534_v59, %v2522_v43  ;;  %v3064_v49 = vsel %vm400_vm0, %v3062_v53, %v3063_v28  ;;  %v14441_v10 = vld [vmem:[%s14768_s23 + $0x18] sm:$0xf]  ;;  %v15536_v43 = vsub.f32 %v12020_v15, %v3087_v7  ;;  %s12027_s23 = sshll.u32 %s14654_s13, 4  ;;  %s14582_s13 = smov [#allocation8]  }
 0x139   : > { %12392 = vmatpush1.bf16.msra.mxu0 %v15385_v63  ;;  %2363 = vmatprep.mubr.f32.mxu0 %v20417_v0  ;;  %v15538_v59 = vsub.f32 %v12023_v17, %v3089_v47  ;;  %s14503_s17 = sshll.u32 %s14582_s13, 4  ;;  %s14504_s17 = int_to_ptr.vmem [resolvable:$false] %s14503_s17 }
 0x13a   : > { %12394 = vmatprep.subr.bf16.mxu0 %v12393_v11  ;;  %v2558_v6 = vand.u32 4294901760, %v2557_v58  ;;  %v3067_v11 = vrot.slane %v14441_v10, 4  ;;  %v3071_v58 = vsel %vm393_vm2, %v3066_v61, 0  ;;  %s14505_s22 = scalar_lea.vmem %s14504_s17, 32 }
 0x13c   : > { %2365 = vmatmul.mubr.f32.gmra.mrb[4].mxu0 %v15204_v33  ;;  %v12399_v33 = vpack.c.bf16 %v2558_v6, %v2546_v36  ;;  %v15556_v36 = vsub.f32 %v12022_v51, %v3091_v18 }
 0x13d   : > { %2478 = vmatprep.mubr.f32.mxu0 %v20417_v0 }
 0x13e   : > { %v3219_v1 = vand.u32 4294901760, %v15556_v36 }
 0x140   : > { %2484 = vmatmul.mubr.f32.vlgmr.msra.gmra.mrb[0].mxu0 %v2483_v60  ;;  %v3068_v60 = vsel %vm400_vm0, %v3065_v50, %v3067_v11  ;;  %v3220_v38 = vsub.f32 %v15556_v36, %v3219_v1 }
 0x141   : > { %12396 = vmatpush1.bf16.msra.mxu0 %v12395_v37  ;;  %2489 = vmatprep.mubr.f32.mxu0 %v20417_v0 }
 0x142   : > { %12398 = vmatprep.subr.bf16.mxu0 %v12397_v25  ;;  %v15561_v25 = vand.u32 4294901760, %v3071_v58 }
 0x144   : > { %2495 = vmatmul.mubr.f32.gmra.mrb[2].mxu0 %v2494_v54 }
 0x145   : > { %12400 = vmatpush1.bf16.msra.mxu0 %v12399_v33  ;;  %2500 = vmatprep.mubr.f32.mxu0 %v20417_v0  ;;  %v3207_v33 = vand.u32 4294901760, %v15536_v43 }
 0x146   : > { %12402 = vmatprep.subr.bf16.mxu0 %v12401_v55  ;;  %v3073_v55 = vsel %vm393_vm2, %v3068_v60, 0 }
 0x148   : > { %2506 = vmatmul.mubr.f32.gmra.mrb[4].mxu0 %v2505_v32 }
 0x149   : > { %2616 = vmatprep.mubr.f32.mxu0 %v20417_v0 }
 0x14c   : > { %2618 = vmatmul.mubr.f32.vlgmr.msra.gmra.mrb[0].mxu0 %v15345_v5 }
 0x14d   : > { %12404 = vmatpush1.bf16.msra.mxu0 %v12403_v4  ;;  %2623 = vmatprep.mubr.f32.mxu0 %v20417_v0 }
 0x14e   : > { %12406 = vmatprep.subr.bf16.mxu0 %v12405_v52  ;;  %v3213_v52 = vand.u32 4294901760, %v15538_v59 }
 0x150   : > { %2625 = vmatmul.mubr.f32.gmra.mrb[2].mxu0 %v15374_v46  ;;  %v3214_v24 = vsub.f32 %v15538_v59, %v3213_v52 }
 0x151   : > { %12408 = vmatpush1.bf16.msra.mxu0 %v12407_v57  ;;  %2630 = vmatprep.mubr.f32.mxu0 %v20417_v0 }
 0x152   : > { %12410 = vmatprep.subr.bf16.mxu0 %v15326_v2  ;;  %v3215_v50 = vand.u32 4294901760, %v3214_v24 }
 0x154   : > { %2632 = vmatmul.mubr.f32.gmra.mrb[4].mxu0 %v15391_v44 }
 0x155   : > { %2718 = vmatprep.mubr.f32.mxu0 %v20417_v0 }
 0x158   : > { %2721 = vmatmul.mubr.f32.vlgmr.msra.gmra.mrb[0].mxu0 %v15372_v45  ;;  %v12018_v45 = vld [vmem:[%s20400_s1 + $0x100] sm:$0xff] }
 0x159   : > { %12412 = vmatpush1.bf16.msra.mxu0 %v15364_v12  ;;  %2726 = vmatprep.mubr.f32.mxu0 %v20417_v0  ;;  %v3083_v42 = vand.u32 4294901760, %v12018_v45 }
 0x15a   : > { %12414 = vmatprep.subr.bf16.mxu0 %v15367_v40 }
 0x15b   : > { %v15529_v16 = vsub.f32 %v12018_v45, %v3083_v42  ;;  %v15551_v26 = vpack.c.bf16 %v3087_v7, %v3083_v42  ;;  %v12449_v7 = vpack.c.bf16 %v15494_v41, %v15492_v35 }
 0x15c   : > { %2729 = vmatmul.mubr.f32.gmra.mrb[2].mxu0 %v15389_v39  ;;  %v3069_v39 = vsel %vm393_vm2, %v3064_v49, 0 }
 0x15d   : > { %12416 = vmatpush1.bf16.msra.mxu0 %v15385_v63  ;;  %2734 = vmatprep.mubr.f32.mxu0 %v20417_v0  ;;  %v3195_v62 = vand.u32 4294901760, %v15529_v16 }
 0x15e   : > { %12418 = vmatprep.subr.bf16.mxu0 %v12417_v22 }
 0x15f   : > { %v3196_v29 = vsub.f32 %v15529_v16, %v3195_v62 }
 0x160   : > { %2737 = vmatmul.mubr.f32.gmra.mrb[4].mxu0 %v15416_v27  ;;  %v15532_v27 = vand.u32 4294901760, %v3069_v39 }
 0x161   : > { %2815 = vmatprep.mubr.f32.mxu0 %v20417_v0 }
 0x162   : > { %v15559_v6 = vsub.f32 %v3069_v39, %v15532_v27  ;;  %v3221_v39 = vand.u32 4294901760, %v3220_v38 }
 0x164   : > { %2819 = vmatmul.mubr.f32.vlgmr.msra.gmra.mrb[0].mxu0 %v2481_v14  ;;  %v12024_v14 = vld [vmem:[%s20400_s1 + $0x130] sm:$0xf] }
 0x165   : > { %12420 = vmatpush1.bf16.msra.mxu0 %v12419_v20  ;;  %2824 = vmatprep.mubr.f32.mxu0 %v20417_v0  ;;  %v3156_v20 = vand.u32 4294901760, %v15559_v6 }
 0x166   : > { %12422 = vmatprep.subr.bf16.mxu0 %v12421_v56  ;;  %v15576_v56 = vsub.f32 %v3071_v58, %v15561_v25 }
 0x167   : > { %v3157_v8 = vsub.f32 %v15559_v6, %v3156_v20 }
 0x168   : > { %2828 = vmatmul.mubr.f32.gmra.mrb[2].mxu0 %v2492_v23  ;;  %v3167_v30 = vand.u32 4294901760, %v15576_v56 }
 0x169   : > { %12424 = vmatpush1.bf16.msra.mxu0 %v12423_v48  ;;  %2833 = vmatprep.mubr.f32.mxu0 %v20417_v0  ;;  %v15578_v48 = vand.u32 4294901760, %v3073_v55  ;;  %v3158_v17 = vand.u32 4294901760, %v3157_v8 }
 0x16a   : > { %12426 = vmatprep.subr.bf16.mxu0 %v15326_v2  ;;  %v12025_v2 = vld [vmem:[%s20400_s1 + $0x138] sm:$0xf]  ;;  %v3168_v42 = vsub.f32 %v15576_v56, %v3167_v30 }
 0x16b   : > { %v3079_v34 = vsel %vm400_vm0, %v12025_v2, 0  ;;  %v15603_v45 = vsub.f32 %v3073_v55, %v15578_v48  ;;  %v3197_v2 = vand.u32 4294901760, %v3196_v29  ;;  %v20444_v55 = vlaneseq  ;;  %v3728_v29 = vld [vmem:[%s20401_s2] sm:$0x3] }
 0x16c   : > { %2837 = vmatmul.mubr.f32.gmra.mrb[4].mxu0 %v2503_v3  ;;  %v3093_v23 = vand.u32 4294901760, %v3079_v34  ;;  %v3169_v10 = vand.u32 4294901760, %v3168_v42  ;;  %v15794_v42 = vld [vmem:[#allocation3 + $0x98] sm:$0xff] }
 0x16d   : > { %2931 = vmatprep.mubr.f32.mxu0 %v20417_v0 }
 0x16e   : > { %v15542_v19 = vsub.f32 %v3079_v34, %v3093_v23  ;;  %v15554_v37 = vpack.c.bf16 %v3093_v23, %v3089_v47  ;;  %v3178_v34 = vand.u32 4294901760, %v15603_v45  ;;  %v12451_v23 = vpack.c.bf16 %v15536_v43, %v15529_v16 }
 0x16f   : > { %v20448_v16 = vmov 0.0|0.0  }
 0x170   : > { %2933 = vmatmul.mubr.f32.vlgmr.msra.gmra.mrb[0].mxu0 %v15345_v5  ;;  %v3225_v57 = vand.u32 4294901760, %v15542_v19  ;;  %v3179_v11 = vsub.f32 %v15603_v45, %v3178_v34  ;;  %12481 = vmatprep.subr.bf16.mxu1 %v20448_v16 }
 0x171   : > { %12428 = vmatpush1.bf16.msra.mxu0 %v15364_v12  ;;  %2938 = vmatprep.mubr.f32.mxu0 %v20417_v0  ;;  %v3189_v12 = vand.u32 4294901760, %v15492_v35 }
 0x172   : > { %12430 = vmatprep.subr.bf16.mxu0 %v15367_v40  ;;  %v3076_v40 = vsel %vm400_vm0, %v12024_v14, 0  ;;  %v3226_v28 = vsub.f32 %v15542_v19, %v3225_v57  ;;  %v3180_v47 = vand.u32 4294901760, %v3179_v11 }
 0x173   : > { %v3190_v31 = vsub.f32 %v15492_v35, %v3189_v12  ;;  %v3095_v3 = vand.u32 4294901760, %v3076_v40  ;;  %v12465_v58 = vpack.c.bf16 %v3201_v21, %v3189_v12  ;;  %v12469_v35 = vpack.c.bf16 %v3225_v57, %v3213_v52  ;;  %v15687_v12 = vld [vmem:[#allocation3 + $0x8] sm:$0xff] }
 0x174   : > { %2940 = vmatmul.mubr.f32.gmra.mrb[2].mxu0 %v15374_v46  ;;  %v3227_v15 = vand.u32 4294901760, %v3226_v28  ;;  %21136 = vst [vmem:[#allocation16_spill] sm:$0xff] %v15687_v12  ;;  %v15738_v52 = vld [vmem:[#allocation3 + $0x28] sm:$0xff] }
 0x175   : > { %12432 = vmatpush1.bf16.msra.mxu0 %v15385_v63  ;;  %2945 = vmatprep.mubr.f32.mxu0 %v20417_v0  ;;  %v3202_v63 = vsub.f32 %v15494_v41, %v3201_v21  ;;  %v15564_v54 = vsub.f32 %v3076_v40, %v3095_v3  ;;  %v3191_v32 = vand.u32 4294901760, %v3190_v31  ;;  %v15572_v22 = vpack.c.bf16 %v3095_v3, %v3091_v18  ;;  %v15689_v21 = vld [vmem:[#allocation3 + $0x10] sm:$0xff] }
 0x176   : > { %12434 = vmatprep.subr.bf16.mxu0 %v15513_v9  ;;  %v12445_v61 = vpack.c.bf16 %v3227_v15, %v3215_v50  ;;  %v12453_v40 = vpack.c.bf16 %v15542_v19, %v15538_v59  ;;  %v12467_v31 = vpack.c.bf16 %v3207_v33, %v3195_v62  ;;  %21137 = vst [vmem:[#allocation17_spill] sm:$0xff] %v15689_v21  ;;  %v15694_v59 = vld [vmem:[#allocation3 + $0x18] sm:$0xff]  ;;  %v20438_v19 = vand.u32 4294901760, %v15689_v21  ;;  %v15789_v50 = vld [vmem:[#allocation3 + $0x48] sm:$0xff] }
 0x177   : > { %v3203_v4 = vand.u32 4294901760, %v3202_v63  ;;  %v3231_v13 = vand.u32 4294901760, %v15564_v54  ;;  %v12455_v18 = vpack.c.bf16 %v15564_v54, %v15556_v36  ;;  %21138 = vst [vmem:[#allocation18_spill] sm:$0xff] %v15694_v59  ;;  %v20437_v63 = vand.u32 4294901760, %v15694_v59  ;;  %21145 = vst [vmem:[#allocation25_spill] sm:$0xff] %v15738_v52 }
 0x178   : > { %2947 = vmatmul.mubr.f32.gmra.mrb[4].mxu0 %v15391_v44  ;;  %v15712_v3 = vsub.f32 %v15689_v21, %v20438_v19  ;;  %21153 = vst [vmem:[#allocation33_spill] sm:$0xff] %v15789_v50 }
 0x179   : > { %3025 = vmatprep.mubr.f32.mxu0 %v20417_v0  ;;  %v12441_v53 = vpack.c.bf16 %v3203_v4, %v3191_v32  ;;  %v12471_v41 = vpack.c.bf16 %v3231_v13, %v3219_v1  ;;  %v15734_v32 = vshrl.u32 %v20444_v55, 7  ;;  %v15736_v4 = vld [vmem:[#allocation3 + $0x20] sm:$0xff]  ;;  %v15757_v1 = vld [vmem:[#allocation3 + $0x30] sm:$0xff] }
 0x17a   : > { %21141 = vst [vmem:[#allocation21_spill] sm:$0xff] %v15712_v3  ;;  %21144 = vst [vmem:[#allocation24_spill] sm:$0xff] %v15736_v4  ;;  %v20436_v57 = vand.u32 4294901760, %v15736_v4  ;;  %v20434_v28 = vand.u32 4294901760, %v15757_v1 }
 0x17b   : > { %21143 = vst [vmem:[#allocation23_spill] sm:$0xff] %v15734_v32  ;;  %21148 = vst [vmem:[#allocation28_spill] sm:$0xff] %v15757_v1 }
 0x17c   : > { %3027 = vmatmul.mubr.f32.vlgmr.msra.gmra.mrb[0].mxu0 %v15345_v5  ;;  %v3208_v5 = vsub.f32 %v15536_v43, %v3207_v33 }
 0x17d   : > { %12436 = vmatpush1.bf16.msra.mxu0 %v15551_v26  ;;  %3032 = vmatprep.mubr.f32.mxu0 %v20417_v0 }
 0x17e   : > { %12438 = vmatprep.subr.bf16.mxu0 %v15554_v37  ;;  %v3209_v49 = vand.u32 4294901760, %v3208_v5  ;;  %v20415_v5 = vsub.s32 1, %v15734_v32 }
 0x180   : > { %3034 = vmatmul.mubr.f32.gmra.mrb[2].mxu0 %v15374_v46  ;;  %v3232_v46 = vsub.f32 %v15564_v54, %v3231_v13  ;;  %v12443_v14 = vpack.c.bf16 %v3209_v49, %v3197_v2  ;;  %v15759_v13 = vld [vmem:[#allocation3 + $0x38] sm:$0xff]  ;;  %v15776_v2 = vsub.f32 %v15757_v1, %v20434_v28  ;;  %v15780_v49 = vrot.slane %v3728_v29, %v20415_v5 }
 0x181   : > { %12440 = vmatpush1.bf16.msra.mxu0 %v15572_v22  ;;  %3039 = vmatprep.mubr.f32.mxu0 %v20417_v0  ;;  %21149 = vst [vmem:[#allocation29_spill] sm:$0xff] %v15759_v13  ;;  %v20433_v8 = vand.u32 4294901760, %v15759_v13 }
 0x182   : > { %12442 = vmatprep.subr.bf16.mxu0 %v12441_v53  ;;  %v3233_v51 = vand.u32 4294901760, %v3232_v46  ;;  %21150 = vst [vmem:[#allocation30_spill] sm:$0xff] %v15776_v2  ;;  %v15787_v46 = vld [vmem:[#allocation3 + $0x40] sm:$0xff]  ;;  %v20420_v15 = vand.u32 4294901760, %v15776_v2 }
 0x183   : > { %v15785_v38 = vsub.f32 %v15759_v13, %v20433_v8  ;;  %21152 = vst [vmem:[#allocation32_spill] sm:$0xff] %v15787_v46 }
 0x184   : > { %3041 = vmatmul.mubr.f32.gmra.mrb[4].mxu0 %v15391_v44  ;;  %v12447_v44 = vpack.c.bf16 %v3233_v51, %v3221_v39 }
 0x185   : > { %3153 = vmatprep.mubr.f32.mxu0 %v20417_v0  ;;  %21151 = vst [vmem:[#allocation31_spill] sm:$0xff] %v15785_v38  ;;  %v20419_v51 = vand.u32 4294901760, %v15785_v38 }
 0x188   : > { %3159 = vmatmul.mubr.f32.vlgmr.msra.gmra.mrb[0].mxu0 %v3158_v17  ;;  %v15792_v17 = vld [vmem:[#allocation3 + $0x90] sm:$0xff] }
 0x189   : > { %12444 = vmatpush1.bf16.msra.mxu0 %v12443_v14  ;;  %3164 = vmatprep.mubr.f32.mxu0 %v20417_v0  ;;  %v20431_v14 = vand.u32 4294901760, %v15789_v50 }
 0x18a   : > { %12446 = vmatprep.subr.bf16.mxu0 %v12445_v61  ;;  %v4025_v61 = vand.u32 4294901760, %v15792_v17 }
 0x18c   : > { %3170 = vmatmul.mubr.f32.gmra.mrb[2].mxu0 %v3169_v10  ;;  %v4028_v10 = vand.u32 4294901760, %v15794_v42 }
 0x18d   : > { %12448 = vmatpush1.bf16.msra.mxu0 %v12447_v44  ;;  %3175 = vmatprep.mubr.f32.mxu0 %v20417_v0 }
 0x18e   : > { %12450 = vmatprep.subr.bf16.mxu0 %v12449_v7 }
 0x190   : > { %3181 = vmatmul.mubr.f32.gmra.mrb[4].mxu0 %v3180_v47  ;;  %v15811_v47 = vsub.f32 %v15789_v50, %v20431_v14 }
 0x191   : > { %3291 = vmatprep.mubr.f32.mxu0 %v20417_v0 }
 0x192   : > { %21155 = vst [vmem:[#allocation35_spill] sm:$0xff] %v15811_v47 }
 0x194   : > { %3293 = vmatmul.mubr.f32.vlgmr.msra.gmra.mrb[0].mxu0 %v15532_v27 }
 0x195   : > { %12452 = vmatpush1.bf16.msra.mxu0 %v12451_v23  ;;  %3298 = vmatprep.mubr.f32.mxu0 %v20417_v0 }
 0x196   : > { %12454 = vmatprep.subr.bf16.mxu0 %v12453_v40  ;;  %v12761_v40 = vpack.c.bf16 %v20419_v51, %v20420_v15 }
 0x198   : > { %3300 = vmatmul.mubr.f32.gmra.mrb[2].mxu0 %v15561_v25 }
 0x199   : > { %12456 = vmatpush1.bf16.msra.mxu0 %v12455_v18  ;;  %3305 = vmatprep.mubr.f32.mxu0 %v20417_v0  ;;  %v15822_v18 = vpack.c.bf16 %v4028_v10, %v4025_v61 }
 0x19a   : > { %12458 = vmatprep.subr.bf16.mxu0 %v15513_v9 }
 0x19b   : > { %12483 = vmatpush1.bf16.msra.mxu1 %v15822_v18 }
 0x19c   : > { %3307 = vmatmul.mubr.f32.gmra.mrb[4].mxu0 %v15578_v48  ;;  %12484 = vmatprep.subr.bf16.mxu1 %v20448_v16 }
 0x19d   : > { %3393 = vmatprep.mubr.f32.mxu0 %v20417_v0 }
 0x1a0   : > { %3396 = vmatmul.mubr.f32.vlgmr.msra.gmra.mrb[0].mxu0 %v15559_v6 }
 0x1a1   : > { %12460 = vmatpush1.bf16.msra.mxu0 %v15551_v26  ;;  %3401 = vmatprep.mubr.f32.mxu0 %v20417_v0 }
 0x1a2   : > { %12462 = vmatprep.subr.bf16.mxu0 %v15554_v37 }
 0x1a4   : > { %3404 = vmatmul.mubr.f32.gmra.mrb[2].mxu0 %v15576_v56  ;;  %v15746_v56 = vsub.f32 %v15736_v4, %v20436_v57  ;;  %v21187_v4 = vlaneseq }
 0x1a5   : > { %12464 = vmatpush1.bf16.msra.mxu0 %v15572_v22  ;;  %3409 = vmatprep.mubr.f32.mxu0 %v20417_v0 }
 0x1a6   : > { %12466 = vmatprep.subr.bf16.mxu0 %v12465_v58  ;;  %21146 = vst [vmem:[#allocation26_spill] sm:$0xff] %v15746_v56  ;;  %v20422_v53 = vand.u32 4294901760, %v15746_v56  ;;  %vm16174_vm7 = vcmp.lt.s32.totalorder %v21187_v4, 138 }
 0x1a8   : > { %3412 = vmatmul.mubr.f32.gmra.mrb[4].mxu0 %v15603_v45 }
 0x1a9   : > { %3490 = vmatprep.mubr.f32.mxu0 %v20417_v0 }
 0x1ac   : > { %3494 = vmatmul.mubr.f32.vlgmr.msra.gmra.mrb[0].mxu0 %v3156_v20  ;;  %v20416_v20 = vsub.s32 0, %v15734_v32 }
 0x1ad   : > { %12468 = vmatpush1.bf16.msra.mxu0 %v12467_v31  ;;  %3499 = vmatprep.mubr.f32.mxu0 %v20417_v0 }
 0x1ae   : > { %12470 = vmatprep.subr.bf16.mxu0 %v12469_v35  ;;  %v20425_v35 = vand.u32 4294901760, %v15811_v47 }
 0x1b0   : > { %3503 = vmatmul.mubr.f32.gmra.mrb[2].mxu0 %v3167_v30  ;;  %v15767_v30 = vrot.slane %v3728_v29, %v20416_v20 }
 0x1b1   : > { %12472 = vmatpush1.bf16.msra.mxu0 %v12471_v41  ;;  %3508 = vmatprep.mubr.f32.mxu0 %v20417_v0  ;;  %v15826_v41 = vld [vmem:[#allocation3 + $0x50] sm:$0xff] }
 0x1b2   : > { %12474 = vmatprep.subr.bf16.mxu0 %v15513_v9  ;;  %v15685_v9 = vld [vmem:[#allocation3] sm:$0xff]  ;;  %21156 = vst [vmem:[#allocation36_spill] sm:$0xff] %v15826_v41 }
 0x1b3   : > { %21135 = vst [vmem:[#allocation15_spill] sm:$0xff] %v15685_v9  ;;  %v20440_v43 = vand.u32 4294901760, %v15685_v9 }
 0x1b4   : > { %3512 = vmatmul.mubr.f32.gmra.mrb[4].mxu0 %v3178_v34  ;;  %v20432_v34 = vand.u32 4294901760, %v15787_v46 }
 0x1b5   : > { %3606 = vmatprep.mubr.f32.mxu0 %v20417_v0  ;;  %v15702_v60 = vsub.f32 %v15685_v9, %v20440_v43 }
 0x1b6   : > { %v15806_v7 = vsub.f32 %v15787_v46, %v20432_v34 }
 0x1b7   : > { %21139 = vst [vmem:[#allocation19_spill] sm:$0xff] %v15702_v60  ;;  %v20428_v36 = vand.u32 4294901760, %v15702_v60 }
 0x1b8   : > { %3608 = vmatmul.mubr.f32.vlgmr.msra.gmra.mrb[0].mxu0 %v15532_v27  ;;  %21154 = vst [vmem:[#allocation34_spill] sm:$0xff] %v15806_v7  ;;  %v20426_v31 = vand.u32 4294901760, %v15806_v7 }
 0x1b9   : > { %12476 = vmatpush1.bf16.msra.mxu0 %v15551_v26  ;;  %3613 = vmatprep.mubr.f32.mxu0 %v20417_v0 }
 0x1ba   : > { %12478 = vmatprep.subr.bf16.mxu0 %v15554_v37  ;;  %v15717_v37 = vsub.f32 %v15694_v59, %v20437_v63  ;;  %v15894_v63 = vld [vmem:[#allocation3 + $0x70] sm:$0xff] }
 0x1bb   : > { %21162 = vst [vmem:[#allocation42_spill] sm:$0xff] %v15894_v63 }
 0x1bc   : > { %3615 = vmatmul.mubr.f32.gmra.mrb[2].mxu0 %v15561_v25  ;;  %21142 = vst [vmem:[#allocation22_spill] sm:$0xff] %v15717_v37  ;;  %v20423_v54 = vand.u32 4294901760, %v15717_v37 }
 0x1bd   : > { %12480 = vmatpush1.bf16.msra.mxu0 %v15572_v22  ;;  %3620 = vmatprep.mubr.f32.mxu0 %v20417_v0  ;;  %v20435_v22 = vand.u32 4294901760, %v15738_v52 }
 0x1be   : > { %12751 = vmatprep.subr.bf16.mxu0 %v20448_v16 }
 0x1c0   : > { %3622 = vmatmul.mubr.f32.gmra.mrb[4].mxu0 %v15578_v48 }
 0x1c1   : > { %3700 = vmatprep.mubr.f32.mxu0 %v20417_v0 }
 0x1c4   : > { %3702 = vmatmul.mubr.f32.vlgmr.msra.gmra.mrb[0].mxu0 %v15532_v27  ;;  %v20439_v27 = vand.u32 4294901760, %v15687_v12 }
 0x1c5   : > { %3707 = vmatprep.mubr.f32.mxu0 %v20417_v0 }
 0x1c6   : > { %v15707_v26 = vsub.f32 %v15687_v12, %v20439_v27  ;;  %v16260_v12 = vld [vmem:[#allocation3 + $0x150] sm:$0xff] }
 0x1c8   : > { %3709 = vmatmul.mubr.f32.gmra.mrb[2].mxu0 %v15561_v25  ;;  %21140 = vst [vmem:[#allocation20_spill] sm:$0xff] %v15707_v26  ;;  %v20427_v6 = vand.u32 4294901760, %v15707_v26  ;;  %v20424_v25 = vand.u32 4294901760, %v15712_v3 }
 0x1c9   : > { %3714 = vmatprep.mubr.f32.mxu0 %v20417_v0 }
 0x1ca   : > { %v12752_v62 = vpack.c.bf16 %v20427_v6, %v20428_v36  ;;  %v12755_v33 = vpack.c.bf16 %v20423_v54, %v20424_v25 }
 0x1cc   : > { %3716 = vmatmul.mubr.f32.gmra.mrb[4].mxu0 %v15578_v48  ;;  %v15751_v48 = vsub.f32 %v15738_v52, %v20435_v22 }
 0x1cd   : > { %12753 = vmatpush1.bf16.msra.mxu0 %v12752_v62  ;;  %v15828_v62 = vld [vmem:[#allocation3 + $0x58] sm:$0xff] }
 0x1ce   : > { %12754 = vmatprep.subr.bf16.mxu0 %v20448_v16  ;;  %21147 = vst [vmem:[#allocation27_spill] sm:$0xff] %v15751_v48  ;;  %v20421_v24 = vand.u32 4294901760, %v15751_v48  ;;  %21157 = vst [vmem:[#allocation37_spill] sm:$0xff] %v15828_v62  ;;  %v4003_v48 = vld [vmem:[#allocation3 + $0x108] sm:$0xff] }
 0x1d0   : > { %v12758_v45 = vpack.c.bf16 %v20421_v24, %v20422_v53 }
 0x1d1   : > { %12756 = vmatpush1.bf16.msra.mxu0 %v12755_v33 }
 0x1d2   : > { %12757 = vmatprep.subr.bf16.mxu0 %v20448_v16 }
 0x1d5   : > { %12759 = vmatpush1.bf16.msra.mxu0 %v12758_v45  ;;  %v15831_v45 = vld [vmem:[#allocation3 + $0xa0] sm:$0xff] }
 0x1d6   : > { %12760 = vmatprep.subr.bf16.mxu0 %v20448_v16 }
 0x1d9   : > { %12762 = vmatpush1.bf16.msra.mxu0 %v12761_v40  ;;  %v20446_v40 = vand.u32 4294901760, %v15831_v45 }
 0x1da   : > { %12763 = vmatprep.subr.bf16.mxu0 %v20448_v16 }
 0x297   : > { %v3703_v39 = vpop.f32.mrb[0].mxu0 }
 0x298   : > { %v3740_v11 = vadd.f32 %v15767_v30, %v3703_v39  ;;  %v3705_v44 = vpop.f32.mrb[1].mxu0  ;;  %v15833_v39 = vld [vmem:[#allocation3 + $0xa8] sm:$0xff] }
 0x299   : > { %v3741_v23 = vadd.f32 %v15780_v49, %v3705_v44  ;;  %v20430_v44 = vand.u32 4294901760, %v15826_v41  ;;  %v20445_v24 = vand.u32 4294901760, %v15833_v39  ;;  %v21176_v47 = vand.u32 4294901760, %v15833_v39 }
 0x29a   : > { %v3746_v58 = vmax.f32 %v3740_v11, 0.0  ;;  %v20429_v11 = vand.u32 4294901760, %v15828_v62 }
 0x29b   : > { %v3747_v33 = vmax.f32 %v3741_v23, 0.0  ;;  %v3710_v29 = vpop.f32.mrb[2].mxu0  ;;  %v12764_v23 = vpack.c.bf16 %v20425_v35, %v20426_v31  ;;  %v15859_v35 = vld [vmem:[#allocation3 + $0x60] sm:$0xff]  ;;  %v15867_v36 = vpack.c.bf16 %v20445_v24, %v20446_v40  ;;  %v15925_v40 = vsub.f32 %v15792_v17, %v4025_v61  ;;  %v3996_v61 = vld [vmem:[#allocation3 + $0xd0] sm:$0xff] }
 0x29c   : > { %v3754_v5 = vrot.slane %v3746_v58, 1  ;;  %v3742_v20 = vadd.f32 %v15767_v30, %v3710_v29  ;;  %v3712_v0 = vpop.f32.mrb[3].mxu0  ;;  %v15850_v29 = vsub.f32 %v15826_v41, %v20430_v44  ;;  %v15857_v25 = vsub.f32 %v15828_v62, %v20429_v11  ;;  %21160 = vst [vmem:[#allocation40_spill] sm:$0xff] %v15859_v35  ;;  %v15874_v11 = vld [vmem:[#allocation3 + $0x68] sm:$0xff] }
 0x29d   : > { %v3755_v51 = vrot.slane %v3747_v33, 1  ;;  %v3743_v15 = vadd.f32 %v15780_v49, %v3712_v0  ;;  %12765 = vmatpush1.bf16.msra.mxu0 %v12764_v23  ;;  %21161 = vst [vmem:[#allocation41_spill] sm:$0xff] %v15874_v11  ;;  %12486 = vmatpush1.bf16.msra.mxu1 %v15867_v36  ;;  %v20447_v57 = vand.u32 4294901760, %v15874_v11 }
 0x29e   : > { %21158 = vst [vmem:[#allocation38_spill] sm:$0xff] %v15850_v29  ;;  %v3748_v53 = vmax.f32 %v3742_v20, 0.0  ;;  %v15852_v54 = vmax.f32 %v3746_v58, %v3754_v5  ;;  %21159 = vst [vmem:[#allocation39_spill] sm:$0xff] %v15857_v25  ;;  %v20442_v20 = vand.u32 4294901760, %v15850_v29  ;;  %v15870_v5 = vld [vmem:[#allocation3 + $0xb0] sm:$0xff]  ;;  %v15872_v58 = vld [vmem:[#allocation3 + $0xb8] sm:$0xff]  ;;  %12766 = vmatprep.subr.bf16.mxu0 %v20448_v16  ;;  %12487 = vmatprep.subr.bf16.mxu1 %v20448_v16 }
 0x29f   : > { %v15861_v31 = vmax.f32 %v3747_v33, %v3755_v51  ;;  %v3749_v0 = vmax.f32 %v3743_v15, 0.0  ;;  %v3717_v6 = vpop.f32.mrb[4].mxu0  ;;  %v20441_v33 = vand.u32 4294901760, %v15857_v25  ;;  %v4037_v23 = vand.u32 4294901760, %v15870_v5 }
 0x2a0   : > { %v3827_v44 = vrot.slane %v3748_v53, 1  ;;  %v3744_v51 = vadd.f32 %v15767_v30, %v3717_v6  ;;  %3762 = vrot.lane.b32.xlu0 %v15852_v54, %s14579_s26  ;;  %v3719_v15 = vpop.f32.mrb[5].mxu0  ;;  %v4040_v8 = vand.u32 4294901760, %v15872_v58  ;;  %v20443_v6 = vand.u32 4294901760, %v15859_v35 }
 0x2a1   : > { %v3828_v14 = vrot.slane %v3749_v0, 1  ;;  %v3745_v34 = vadd.f32 %v15780_v49, %v3719_v15  ;;  %v12767_v22 = vpack.c.bf16 %v20441_v33, %v20442_v20  ;;  %v15896_v49 = vld [vmem:[#allocation3 + $0x78] sm:$0xff]  ;;  %v15935_v20 = vld [vmem:[#allocation3 + $0x80] sm:$0xff] }
 0x2a2   : > { %v3750_v30 = vmax.f32 %v3744_v51, 0.0  ;;  %v15886_v28 = vmax.f32 %v3748_v53, %v3827_v44  ;;  %21163 = vst [vmem:[#allocation43_spill] sm:$0xff] %v15896_v49  ;;  %v15900_v27 = vpack.c.bf16 %v4040_v8, %v4037_v23  ;;  %v15905_v53 = vsub.f32 %v15859_v35, %v20443_v6  ;;  %v3994_v44 = vld [vmem:[#allocation3 + $0xc0] sm:$0xff]  ;;  %v3995_v51 = vld [vmem:[#allocation3 + $0xc8] sm:$0xff]  ;;  %21167 = vst [vmem:[#allocation47_spill] sm:$0xff] %v15935_v20 }
 0x2a3   : > { %v15898_v15 = vmax.f32 %v3749_v0, %v3828_v14  ;;  %v3751_v19 = vmax.f32 %v3745_v34, 0.0  ;;  %v15914_v34 = vsub.f32 %v15874_v11, %v20447_v57  ;;  %v4043_v14 = vand.u32 4294901760, %v3994_v44  ;;  %12768 = vmatpush1.bf16.msra.mxu0 %v12767_v22 }
 0x2a4   : > { %21164 = vst [vmem:[#allocation44_spill] sm:$0xff] %v15900_v27  ;;  %21165 = vst [vmem:[#allocation45_spill] sm:$0xff] %v15905_v53  ;;  %v3896_v43 = vrot.slane %v3750_v30, 1  ;;  %3764 = vrot.lane.b32.xlu0 %v15861_v31, %s14579_s26  ;;  %3835 = vrot.lane.b32.xlu1 %v15886_v28, %s14579_s26  ;;  %v4046_v0 = vand.u32 4294901760, %v3995_v51  ;;  %v20452_v6 = vand.u32 4294901760, %v15894_v63  ;;  %v20455_v55 = vand.u32 4294901760, %v15896_v49 }
 0x2a5   : > { %21166 = vst [vmem:[#allocation46_spill] sm:$0xff] %v15914_v34  ;;  %v3897_v33 = vrot.slane %v3751_v19, 1  ;;  %12489 = vmatpush1.bf16.msra.mxu1 %v15900_v27  ;;  %v15930_v57 = vsub.f32 %v15794_v42, %v4028_v10  ;;  %12769 = vmatprep.subr.bf16.mxu0 %v20448_v16  ;;  %v20466_v22 = vand.u32 4294901760, %v15914_v34  ;;  %v3997_v10 = vld [vmem:[#allocation3 + $0xd8] sm:$0xff]  ;;  %v20469_v38 = vand.u32 4294901760, %v15935_v20 }
 0x2a6   : > { %v15920_v24 = vmax.f32 %v3750_v30, %v3896_v43  ;;  %12490 = vmatprep.subr.bf16.mxu1 %v20448_v16  ;;  %v3982_v43 = vld [vmem:[#allocation3 + $0x88] sm:$0x3]  ;;  %v15937_v30 = vpack.c.bf16 %v4046_v0, %v4043_v14  ;;  %v15942_v17 = vsub.f32 %v15894_v63, %v20452_v6  ;;  %v15947_v42 = vsub.f32 %v15896_v49, %v20455_v55 }
 0x2a7   : > { %v21171_v16 = vand.u32 4294901760, %v15905_v53  ;;  %v4049_v6 = vand.u32 4294901760, %v3996_v61  ;;  %v4052_v29 = vand.u32 4294901760, %v3997_v10  ;;  %v15961_v7 = vsel %vm4020_vm5, %v3982_v43, 0 }
 0x2a8   : > { %21168 = vst [vmem:[#allocation48_spill] sm:$0xff] %v15937_v30  ;;  %21169 = vst [vmem:[#allocation49_spill] sm:$0xff] %v15942_v17  ;;  %3837 = vrot.lane.b32.xlu1 %v15898_v15, %s14579_s26  ;;  %3904 = vrot.lane.b32.xlu0 %v15920_v24, %s14579_s26  ;;  %v15964_v2 = vmax.f32 %v3751_v19, %v3897_v33  ;;  %v21173_v53 = vmov 0.0|0.0   ;;  %v21175_v34 = vand.u32 4294901760, %v15831_v45  ;;  %v15978_v43 = vsub.f32 %v15833_v39, %v21176_v47  ;;  %v3998_v33 = vld [vmem:[#allocation3 + $0xe0] sm:$0xff] }
 0x2a9   : > { %21170 = vst [vmem:[#allocation50_spill] sm:$0xff] %v15947_v42  ;;  %v12770_v25 = vpack.c.bf16 %v20466_v22, %v21171_v16  ;;  %12492 = vmatpush1.bf16.msra.mxu1 %v15937_v30  ;;  %21172 = vst [vmem:[#allocation51_spill] sm:$0xff] %v15961_v7  ;;  %v15967_v16 = vpack.c.bf16 %v4052_v29, %v4049_v6  ;;  %v15981_v19 = vsub.f32 %v15870_v5, %v4037_v23  ;;  %v3999_v22 = vld [vmem:[#allocation3 + $0xe8] sm:$0xff] }
 0x2aa   : > { %12493 = vmatprep.subr.bf16.mxu1 %v21173_v53  ;;  %v15973_v55 = vsub.f32 %v15831_v45, %v21175_v34  ;;  %v15989_v45 = vsub.f32 %v3994_v44, %v4043_v14  ;;  %v15991_v34 = vsub.f32 %v3995_v51, %v4046_v0  ;;  %v21177_v47 = vand.u32 4294901760, %v15942_v17  ;;  %v4002_v17 = vld [vmem:[#allocation3 + $0x100] sm:$0xff] }
 0x2ab   : > { %12771 = vmatpush1.bf16.msra.mxu0 %v12770_v25  ;;  %21174 = vst [vmem:[#allocation52_spill] sm:$0xff] %v15967_v16  ;;  %v15984_v25 = vsub.f32 %v15872_v58, %v4040_v8  ;;  %v21178_v39 = vand.u32 4294901760, %v15947_v42  ;;  %v15997_v23 = vsub.f32 %v3996_v61, %v4049_v6  ;;  %v16000_v8 = vsub.f32 %v3997_v10, %v4052_v29  ;;  %v4000_v10 = vld [vmem:[#allocation3 + $0xf0] sm:$0xff] }
 0x2ac   : > { %12772 = vmatprep.subr.bf16.mxu0 %v21173_v53  ;;  %3906 = vrot.lane.b32.xlu1 %v15964_v2, %s14579_s26  ;;  %v16005_v58 = vsub.f32 %v15935_v20, %v20469_v38  ;;  %v21180_v44 = vand.u32 4294901760, %v15961_v7  ;;  %v4055_v14 = vand.u32 4294901760, %v3998_v33  ;;  %v4058_v6 = vand.u32 4294901760, %v3999_v22  ;;  %s11907_s26 = sshll.u32 %s354_s21, 4  ;;  %s20359_s26 = int_to_ptr.vmem [resolvable:$true] %s11907_s26 }
 0x2ad   : > { %v12773_v5 = vpack.c.bf16 %v21178_v39, %v21177_v47  ;;  %12495 = vmatpush1.bf16.msra.mxu1 %v15967_v16  ;;  %v4001_v47 = vld [vmem:[#allocation3 + $0xf8] sm:$0xff]  ;;  %v20502_v49 = vand.u32 4294901760, %v15984_v25  ;;  %s14499_s16 = scalar_lea.vmem %s20359_s26, 16  ;;  %p14506_p4 = scmp.lt.s32.totalorder %s20359_s26, %s14504_s17 }
 0x2ae   : > { %21179 = vst [vmem:[#allocation53_spill] sm:$0xff] %v16005_v58  ;;  %v16010_v51 = vsub.f32 %v15961_v7, %v21180_v44  ;;  %12496 = vmatprep.subr.bf16.mxu1 %v21173_v53  ;;  %v20479_v29 = vand.u32 4294901760, %v16005_v58  ;;  %v16016_v61 = vsub.f32 %v3998_v33, %v4055_v14  ;;  %v16018_v39 = vpack.c.bf16 %v4058_v6, %v4055_v14  ;;  %p14500_p12 = scmp.ne.s32.totalorder %s20359_s26, %s14499_s16  ;;  %p14507_p7 = scmp.lt.s32.totalorder %s14505_s22, %s14499_s16 }
 0x2af   : > { %12774 = vmatpush1.bf16.msra.mxu0 %v12773_v5  ;;  %v16020_v38 = vsub.f32 %v3999_v22, %v4058_v6  ;;  %v4061_v44 = vand.u32 4294901760, %v4000_v10  ;;  %v4064_v42 = vand.u32 4294901760, %v4001_v47  ;;  %v4067_v6 = vand.u32 4294901760, %v4002_v17 }
 0x2b0   : > { %21181 = vst [vmem:[#allocation54_spill] sm:$0xff] %v16010_v51  ;;  %12775 = vmatprep.subr.bf16.mxu0 %v21173_v53  ;;  %v20478_v0 = vand.u32 4294901760, %v16010_v51  ;;  %21182 = vst [vmem:[#allocation55_spill] sm:$0xff] %v16018_v39  ;;  %v4070_v58 = vand.u32 4294901760, %v4003_v48  ;;  %v4004_v51 = vld [vmem:[#allocation3 + $0x110] sm:$0xff]  ;;  %p14501_p2 = pnand %p14500_p12, %p22285_p1  ;;  %p14508_p8 = por %p14507_p7, %p14506_p4 }
 0x2b1   : > { %12498 = vmatpush1.bf16.msra.mxu1 %v16018_v39  ;;  %v16028_v33 = vpack.c.bf16 %v4064_v42, %v4061_v44  ;;  %v16031_v22 = vsub.f32 %v4000_v10, %v4061_v44  ;;  %v16033_v14 = vsub.f32 %v4001_v47, %v4064_v42  ;;  %v4073_v10 = vand.u32 4294901760, %v4004_v51 }
 0x2b2   : > { %v12776_v5 = vpack.c.bf16 %v20478_v0, %v20479_v29  ;;  %12499 = vmatprep.subr.bf16.mxu1 %v21173_v53  ;;  %v4005_v0 = vld [vmem:[#allocation3 + $0x118] sm:$0x3]  ;;  %v16039_v29 = vsub.f32 %v4002_v17, %v4067_v6  ;;  %v16041_v56 = vsub.f32 %v4003_v48, %v4070_v58  ;;  %v20491_v42 = vand.u32 4294901760, %v15925_v40  ;;  %p14502_p3 = pneg %p14501_p2 }
 0x2b3   : > { %21183 = vst [vmem:[#allocation56_spill] sm:$0xff] %v16028_v33  ;;  %v4022_v37 = vsel %vm4020_vm5, %v4005_v0, 0  ;;  %v20490_v47 = vand.u32 4294901760, %v15930_v57  ;;  %v16050_v7 = vsub.f32 %v4004_v51, %v4073_v10  ;;  %v20494_v0 = vand.u32 4294901760, %v15973_v55 }
 0x2b4   : > { %12777 = vmatpush1.bf16.msra.mxu0 %v12776_v5  ;;  %v16037_v5 = vpack.c.bf16 %v4070_v58, %v4067_v6  ;;  %v4076_v44 = vand.u32 4294901760, %v4022_v37  ;;  %v4126_v48 = vsub.f32 %v15925_v40, %v20491_v42  ;;  %v20497_v6 = vand.u32 4294901760, %v15978_v43  ;;  %p14509_p11 = pnand %p14508_p8, %p14502_p3 }
 0x2b5   : > { %12805 = vmatprep.subr.bf16.mxu0 %v21173_v53  ;;  %12501 = vmatpush1.bf16.msra.mxu1 %v16028_v33  ;;  %v4133_v58 = vsub.f32 %v15930_v57, %v20490_v47  ;;  %v20498_v42 = vand.u32 4294901760, %v15981_v19  ;;  %v20518_v62 = vand.u32 4294901760, %v16041_v56 }
 0x2b6   : > { %12502 = vmatprep.subr.bf16.mxu1 %v21173_v53  ;;  %21184 = vst [vmem:[#allocation57_spill] sm:$0xff] %v16037_v5  ;;  %v16048_v3 = vpack.c.bf16 %v4076_v44, %v4073_v10  ;;  %v16052_v17 = vsub.f32 %v4022_v37, %v4076_v44  ;;  %v4127_v20 = vand.u32 4294901760, %v4126_v48  ;;  %v4140_v37 = vsub.f32 %v15973_v55, %v20494_v0 }
 0x2b7   : > { %v4134_v51 = vand.u32 4294901760, %v4133_v58  ;;  %v4147_v10 = vsub.f32 %v15978_v43, %v20497_v6  ;;  %v4154_v48 = vsub.f32 %v15981_v19, %v20498_v42  ;;  %v4161_v58 = vsub.f32 %v15984_v25, %v20502_v49 }
 0x2b8   : > { %21185 = vst [vmem:[#allocation58_spill] sm:$0xff] %v16048_v3  ;;  %v4141_v47 = vand.u32 4294901760, %v4140_v37 }
 0x2b9   : > { %12504 = vmatpush1.bf16.msra.mxu1 %v16037_v5  ;;  %v16070_v44 = vpack.c.bf16 %v4134_v51, %v4127_v20  ;;  %v4148_v63 = vand.u32 4294901760, %v4147_v10  ;;  %v4155_v26 = vand.u32 4294901760, %v4154_v48  ;;  %v4162_v6 = vand.u32 4294901760, %v4161_v58 }
 0x2ba   : > { %12505 = vmatprep.subr.bf16.mxu1 %v21173_v53  ;;  %v20501_v20 = vand.u32 4294901760, %v15989_v45  ;;  %v20503_v51 = vand.u32 4294901760, %v15991_v34 }
 0x2bb   : > { %v16080_v0 = vpack.c.bf16 %v4148_v63, %v4141_v47  ;;  %v16084_v37 = vpack.c.bf16 %v4162_v6, %v4155_v26  ;;  %v20505_v63 = vand.u32 4294901760, %v15997_v23  ;;  %v20506_v47 = vand.u32 4294901760, %v16000_v8 }
 0x2bc   : > { %v4168_v10 = vsub.f32 %v15989_v45, %v20501_v20  ;;  %v4175_v42 = vsub.f32 %v15991_v34, %v20503_v51  ;;  %v20507_v51 = vand.u32 4294901760, %v16016_v61 }
 0x2bd   : > { %12507 = vmatpush1.bf16.msra.mxu1 %v16048_v3  ;;  %v4182_v58 = vsub.f32 %v15997_v23, %v20505_v63  ;;  %v4189_v26 = vsub.f32 %v16000_v8, %v20506_v47  ;;  %v20512_v47 = vand.u32 4294901760, %v16031_v22 }
 0x2be   : > { %12508 = vmatprep.subr.bf16.mxu1 %v21173_v53  ;;  %v4169_v60 = vand.u32 4294901760, %v4168_v10  ;;  %v4176_v48 = vand.u32 4294901760, %v4175_v42  ;;  %v20509_v10 = vand.u32 4294901760, %v16020_v38  ;;  %v4196_v42 = vsub.f32 %v16016_v61, %v20507_v51 }
 0x2bf   : > { %v4183_v20 = vand.u32 4294901760, %v4182_v58  ;;  %v4190_v49 = vand.u32 4294901760, %v4189_v26  ;;  %v4210_v26 = vsub.f32 %v16031_v22, %v20512_v47 }
 0x2c0   : > { %v16100_v6 = vpack.c.bf16 %v4176_v48, %v4169_v60  ;;  %v4203_v63 = vsub.f32 %v16020_v38, %v20509_v10  ;;  %v20513_v60 = vand.u32 4294901760, %v16033_v14  ;;  %v4197_v48 = vand.u32 4294901760, %v4196_v42 }
 0x2c1   : > { %v16104_v11 = vpack.c.bf16 %v4190_v49, %v4183_v20  ;;  %v4211_v51 = vand.u32 4294901760, %v4210_v26  ;;  %v20514_v10 = vand.u32 4294901760, %v16039_v29  ;;  %v4231_v42 = vsub.f32 %v16041_v56, %v20518_v62 }
 0x2c2   : > { %v4204_v58 = vand.u32 4294901760, %v4203_v63  ;;  %v4217_v49 = vsub.f32 %v16033_v14, %v20513_v60 }
 0x2c3   : > { %v4224_v63 = vsub.f32 %v16039_v29, %v20514_v10  ;;  %v4232_v60 = vand.u32 4294901760, %v4231_v42 }
 0x2c4   : > { %v16120_v20 = vpack.c.bf16 %v4204_v58, %v4197_v48  ;;  %v4218_v35 = vand.u32 4294901760, %v4217_v49  ;;  %v20516_v48 = vand.u32 4294901760, %v16050_v7  ;;  %v20517_v58 = vand.u32 4294901760, %v16052_v17 }
 0x2c5   : > { %v4225_v47 = vand.u32 4294901760, %v4224_v63 }
 0x2c6   : > { %v16124_v41 = vpack.c.bf16 %v4218_v35, %v4211_v51  ;;  %v4238_v35 = vsub.f32 %v16050_v7, %v20516_v48  ;;  %v4245_v51 = vsub.f32 %v16052_v17, %v20517_v58  ;;  %v14580_v58 = vmov 1966171168  }
 0x2c7   : > { %v16134_v26 = vpack.c.bf16 %v4232_v60, %v4225_v47  ;;  %v3776_v62 = vunpack.c.l.s4 %v14580_v58 }
 0x2c8   : > { %v4239_v49 = vand.u32 4294901760, %v4238_v35  ;;  %v4246_v10 = vand.u32 4294901760, %v4245_v51 }
 0x2c9   : > { %v3777_v42 = vunpack.c.0.s8 %v3776_v62 }
 0x2ca   : > { %v16142_v50 = vpack.c.bf16 %v4246_v10, %v4239_v49 }
 0x2cb   : > { %v16165_v46 = vsub.s32 %v3777_v42, %v15734_v32 }
 0x2cd   : > { %21186 = vst [vmem:[#allocation59_spill] sm:$0xff] %v16165_v46 }
 0x312   : > { %v3763_v47 = vpop.permute.xlu0 %3762 }
 0x316   : > { %v3765_v60 = vpop.permute.xlu0 %3764  ;;  %v3836_v63 = vpop.permute.xlu1 %3835 }
 0x317   : > { %v3767_v48 = vsel %vm3766_vm6, %v3763_v47, %v3765_v60  ;;  %v3771_v35 = vmax.f32 %v15861_v31, %v3765_v60 }
 0x318   : > { %v3770_v10 = vmax.f32 %v15852_v54, %v3767_v48 }
 0x31a   : > { %v3774_v51 = vcombine.low %v3770_v10, %v3771_v35  ;;  %v3801_v13 = vcombine.high %v3770_v10, %v3771_v35  ;;  %v3838_v1 = vpop.permute.xlu1 %3837 }
 0x31b   : > { %v3839_v49 = vsel %vm3766_vm6, %v3836_v63, %v3838_v1  ;;  %v3843_v58 = vmax.f32 %v15898_v15, %v3838_v1  ;;  %v3905_v63 = vpop.permute.xlu0 %3904 }
 0x31c   : > { %v3781_v62 = vrot.slane %v3774_v51, %v16165_v46  ;;  %v3808_v52 = vrot.slane %v3801_v13, %v16165_v46  ;;  %v3842_v47 = vmax.f32 %v15886_v28, %v3839_v49 }
 0x31e   : > { %v3788_v54 = vrot.slane %v3781_v62, %v16165_v46  ;;  %v3815_v48 = vrot.slane %v3808_v52, %v16165_v46  ;;  %v3846_v42 = vcombine.low %v3842_v47, %v3843_v58  ;;  %v3870_v60 = vcombine.high %v3842_v47, %v3843_v58  ;;  %v3907_v35 = vpop.permute.xlu1 %3906 }
 0x31f   : > { %v3908_v1 = vsel %vm3766_vm6, %v3905_v63, %v3907_v35  ;;  %v3912_v15 = vmax.f32 %v15964_v2, %v3907_v35  ;;  %v16209_v63 = vld [vmem:[#allocation3 + $0x128] sm:$0xff] }
 0x320   : > { %3794 = vst.msk [vmem:[#allocation2] ss:$8 sm:$0x3] %vm16174_vm7, %v3788_v54  ;;  %v3796_v13 = vcombine.high %v3788_v54, %v3788_v54  ;;  %3818 = vst.msk [vmem:[#allocation2 + $0x2] ss:$8 sm:$0x3] %vm16174_vm7, %v3815_v48  ;;  %v3820_v4 = vcombine.high %v3815_v48, %v3815_v48  ;;  %v3853_v28 = vrot.slane %v3846_v42, %v16165_v46 }
 0x321   : > { %v3877_v52 = vrot.slane %v3870_v60, %v16165_v46  ;;  %v3911_v10 = vmax.f32 %v15920_v24, %v3908_v1  ;;  %v16207_v60 = vld [vmem:[#allocation3 + $0x120] sm:$0xff] }
 0x322   : > { %3799 = vst.msk [vmem:[#allocation2 + $0x1] ss:$8 sm:$0x3] %vm16174_vm7, %v3796_v13  ;;  %3823 = vst.msk [vmem:[#allocation2 + $0x3] ss:$8 sm:$0x3] %vm16174_vm7, %v3820_v4  ;;  %v3860_v2 = vrot.slane %v3853_v28, %v16165_v46 }
 0x323   : > { %v3884_v51 = vrot.slane %v3877_v52, %v16165_v46  ;;  %v3915_v49 = vcombine.low %v3911_v10, %v3912_v15  ;;  %v3939_v58 = vcombine.high %v3911_v10, %v3912_v15  ;;  %v16215_v15 = vld [vmem:[#allocation3 + $0x130] sm:$0xff]  ;;  %v20527_v13 = vand.u32 4294901760, %v16207_v60  ;;  %v16223_v28 = vld [vmem:[#allocation3 + $0x138] sm:$0xff] }
 0x324   : > { %3863 = vst.msk [vmem:[#allocation2 + $0x4] ss:$8 sm:$0x3] %vm16174_vm7, %v3860_v2  ;;  %v3865_v62 = vcombine.high %v3860_v2, %v3860_v2  ;;  %v20526_v4 = vand.u32 4294901760, %v16209_v63  ;;  %v21194_v32 = vand.u32 4294901760, %v16215_v15 }
 0x325   : > { %3887 = vst.msk [vmem:[#allocation2 + $0x6] ss:$8 sm:$0x3] %vm16174_vm7, %v3884_v51  ;;  %v3889_v24 = vcombine.high %v3884_v51, %v3884_v51  ;;  %v3922_v47 = vrot.slane %v3915_v49, %v16165_v46  ;;  %v3946_v54 = vrot.slane %v3939_v58, %v16165_v46 }
 0x326   : > { %3868 = vst.msk [vmem:[#allocation2 + $0x5] ss:$8 sm:$0x3] %vm16174_vm7, %v3865_v62 }
 0x327   : > { %3892 = vst.msk [vmem:[#allocation2 + $0x7] ss:$8 sm:$0x3] %vm16174_vm7, %v3889_v24  ;;  %v3929_v48 = vrot.slane %v3922_v47, %v16165_v46  ;;  %v3953_v42 = vrot.slane %v3946_v54, %v16165_v46  ;;  %v16239_v47 = vpack.c.bf16 %v20526_v4, %v20527_v13  ;;  %v16241_v54 = vld [vmem:[#allocation3 + $0x140] sm:$0xff]  ;;  %v21195_v4 = vand.u32 4294901760, %v16223_v28 }
 0x329   : > { %3932 = vst.msk [vmem:[#allocation2 + $0x10] ss:$8 sm:$0x3] %vm16174_vm7, %v3929_v48  ;;  %v3934_v35 = vcombine.high %v3929_v48, %v3929_v48  ;;  %3956 = vst.msk [vmem:[#allocation2 + $0x12] ss:$8 sm:$0x3] %vm16174_vm7, %v3953_v42  ;;  %v3958_v1 = vcombine.high %v3953_v42, %v3953_v42  ;;  %v16251_v13 = vpack.c.bf16 %v21195_v4, %v21194_v32 }
 0x32a   : > { %21193 = vst [vmem:[#allocation63_spill] sm:$0xff] %v16239_v47  ;;  %v16243_v48 = vld [vmem:[#allocation3 + $0x148] sm:$0xff]  ;;  %v16262_v32 = vld [vmem:[#allocation3 + $0x158] sm:$0xff] }
 0x32b   : > { %3937 = vst.msk [vmem:[#allocation2 + $0x11] ss:$8 sm:$0x3] %vm16174_vm7, %v3934_v35  ;;  %3961 = vst.msk [vmem:[#allocation2 + $0x13] ss:$8 sm:$0x3] %vm16174_vm7, %v3958_v1 }
 0x32c   : > { %21196 = vst [vmem:[#allocation64_spill] sm:$0xff] %v16251_v13 }
 0x32e   : > { %v3964_v52 = vld [vmem:[#allocation2 + $0x8] sm:$0xff]  ;;  %v3963_v10 = vld [vmem:[#allocation2] sm:$0xff] }
 0x32f   : > { %v16227_v51 = vsel %vm4017_vm8, %v3964_v52, 0  ;;  %v3984_v58 = vld [vmem:[#allocation2 + $0x8] sm:$0xfe]  ;;  %v3983_v62 = vld [vmem:[#allocation2] sm:$0xfe]  ;;  %v16233_v24 = vand.u32 4294901760, %v3963_v10 }
 0x330   : > { %21190 = vst [vmem:[#allocation60_spill] sm:$0xff] %v16227_v51  ;;  %v16231_v31 = vand.u32 4294901760, %v16227_v51  ;;  %v3986_v42 = vld [vmem:[#allocation2 + $0x18] sm:$0x1]  ;;  %v3985_v35 = vld [vmem:[#allocation2 + $0x10] sm:$0x1] }
 0x331   : > { %21192 = vst [vmem:[#allocation62_spill] sm:$0xff] %v16233_v24  ;;  %v5391_v1 = vld [vmem:[#allocation2 + $0x8] sm:$0xfc]  ;;  %v4013_v52 = vrot.slane %v3984_v58, 1  ;;  %v4014_v49 = vrot.slane %v3986_v42, 1  ;;  %v4010_v2 = vrot.slane %v3983_v62, 1 }
 0x332   : > { %21191 = vst [vmem:[#allocation61_spill] sm:$0xff] %v16231_v31  ;;  %5293 = vmatprep.mubr.f32.mxu0 %v16231_v31  ;;  %v4011_v10 = vrot.slane %v3985_v35, 1  ;;  %v5393_v21 = vld [vmem:[#allocation2 + $0x18] sm:$0x3]  ;;  %v5420_v42 = vrot.slane %v5391_v1, 2  ;;  %v21202_v51 = vand.u32 4294901760, %v16260_v12 }
 0x333   : > { %5295 = vmatmul.mubr.f32.vlgmr.msra.gmra.mrb[6].mxu0 %v16233_v24  ;;  %v4015_v58 = vsel %vm385_vm1, %v4013_v52, %v4014_v49  ;;  %v5421_v35 = vrot.slane %v5393_v21, 2  ;;  %v21197_v49 = vand.u32 4294901760, %v16241_v54 }
 0x334   : > { %12807 = vmatpush1.bf16.msra.mxu0 %v16239_v47  ;;  %v4012_v62 = vsel %vm385_vm1, %v4010_v2, %v4011_v10  ;;  %v4018_v24 = vsel %vm4017_vm8, %v4015_v58, 0  ;;  %v21198_v2 = vand.u32 4294901760, %v16243_v48  ;;  %v16287_v47 = vld [vmem:[#allocation3 + $0x160] sm:$0xff]  ;;  %v16316_v58 = vld [vmem:[#allocation3 + $0x178] sm:$0xff] }
 0x335   : > { %12808 = vmatprep.subr.bf16.mxu0 %v21173_v53  ;;  %v16264_v4 = vand.u32 4294901760, %v4012_v62  ;;  %v16266_v59 = vand.u32 4294901760, %v4018_v24  ;;  %v5422_v46 = vsel %vm1710_vm3, %v5420_v42, %v5421_v35  ;;  %v5390_v42 = vld [vmem:[#allocation2] sm:$0xfc]  ;;  %v21205_v39 = vand.u32 4294901760, %v16287_v47 }
 0x336   : > { %v16273_v1 = vpack.c.bf16 %v21198_v2, %v21197_v49  ;;  %v5424_v52 = vsel %vm4017_vm8, %v5422_v46, 0  ;;  %v16289_v49 = vld [vmem:[#allocation3 + $0x168] sm:$0xff]  ;;  %v5417_v27 = vrot.slane %v5390_v42, 2 }
 0x337   : > { %v16276_v21 = vsub.f32 %v4012_v62, %v16264_v4  ;;  %v16281_v10 = vsub.f32 %v4018_v24, %v16266_v59  ;;  %v16285_v35 = vand.u32 4294901760, %v5424_v52 }
 0x338   : > { %21199 = vst [vmem:[#allocation65_spill] sm:$0xff] %v16273_v1  ;;  %12810 = vmatpush1.bf16.msra.mxu0 %v16251_v13  ;;  %v5392_v13 = vld [vmem:[#allocation2 + $0x10] sm:$0x3] }
 0x339   : > { %21200 = vst [vmem:[#allocation66_spill] sm:$0xff] %v16285_v35  ;;  %12811 = vmatprep.subr.bf16.mxu0 %v21173_v53  ;;  %v20545_v62 = vand.u32 4294901760, %v16276_v21  ;;  %v20548_v46 = vand.u32 4294901760, %v16281_v10  ;;  %v16295_v2 = vsub.f32 %v5424_v52, %v16285_v35  ;;  %v21203_v52 = vand.u32 4294901760, %v16262_v32 }
 0x33a   : > { %v5418_v5 = vrot.slane %v5392_v13, 2  ;;  %v16331_v13 = vld [vmem:[#allocation3 + $0x180] sm:$0xff] }
 0x33b   : > { %21201 = vst [vmem:[#allocation67_spill] sm:$0xff] %v16295_v2  ;;  %v4115_v24 = vsub.f32 %v16276_v21, %v20545_v62  ;;  %v4109_v9 = vsub.f32 %v16281_v10, %v20548_v46  ;;  %v16310_v31 = vpack.c.bf16 %v21203_v52, %v21202_v51  ;;  %v20561_v3 = vand.u32 4294901760, %v16295_v2  ;;  %v16314_v62 = vld [vmem:[#allocation3 + $0x170] sm:$0xff] }
 0x33c   : > { %12813 = vmatpush1.bf16.msra.mxu0 %v16273_v1  ;;  %v21206_v51 = vand.u32 4294901760, %v16289_v49  ;;  %v20563_v30 = vand.u32 4294901760, %v16314_v62 }
 0x33d   : > { %21204 = vst [vmem:[#allocation68_spill] sm:$0xff] %v16310_v31  ;;  %12814 = vmatprep.subr.bf16.mxu0 %v21173_v53  ;;  %v4110_v1 = vand.u32 4294901760, %v4109_v9  ;;  %v5514_v46 = vsub.f32 %v16295_v2, %v20561_v3  ;;  %v4116_v33 = vand.u32 4294901760, %v4115_v24  ;;  %v20562_v9 = vand.u32 4294901760, %v16316_v58  ;;  %v16333_v24 = vld [vmem:[#allocation3 + $0x188] sm:$0xff] }
 0x33e   : > { %v16325_v52 = vpack.c.bf16 %v21206_v51, %v21205_v39  ;;  %v5419_v39 = vsel %vm1710_vm3, %v5417_v27, %v5418_v5  ;;  %v20564_v42 = vand.u32 4294901760, %v16333_v24  ;;  %v16351_v27 = vld [vmem:[#allocation3 + $0x198] sm:$0xff]  ;;  %v5412_v5 = vld [vmem:[#allocation3 + $0x1a8] sm:$0x3] }
 0x33f   : > { %4111 = vmatprep.mubr.f32.mxu1 %v4110_v1  ;;  %v5515_v16 = vand.u32 4294901760, %v5514_v46  ;;  %v20565_v1 = vand.u32 4294901760, %v16331_v13  ;;  %v20568_v3 = vand.u32 4294901760, %v16351_v27 }
 0x340   : > { %21207 = vst [vmem:[#allocation69_spill] sm:$0xff] %v16325_v52  ;;  %12816 = vmatpush1.bf16.msra.mxu0 %v16310_v31  ;;  %4117 = vmatmul.mubr.f32.vlgmr.msra.gmra.mrb[0].mxu1 %v4116_v33  ;;  %v16344_v33 = vpack.c.bf16 %v20562_v9, %v20563_v30  ;;  %v16367_v9 = vld [vmem:[#allocation3 + $0x1a0] sm:$0xff]  ;;  %v16678_v31 = vld [vmem:[#allocation3 + $0x1d8] sm:$0xff] }
 0x341   : > { %12817 = vmatprep.subr.bf16.mxu0 %v21173_v53  ;;  %12510 = vmatpush1.bf16.msra.mxu1 %v16070_v44  ;;  %v16349_v44 = vld [vmem:[#allocation3 + $0x190] sm:$0xff]  ;;  %v16362_v46 = vpack.c.bf16 %v20564_v42, %v20565_v1  ;;  %v20571_v1 = vand.u32 4294901760, %v16367_v9 }
 0x342   : > { %4277 = vmatprep.mubr.f32.mxu1 %v16266_v59  ;;  %5516 = vmatprep.mubr.f32.mxu0 %v5515_v16  ;;  %21208 = vst [vmem:[#allocation70_spill] sm:$0xff] %v16344_v33  ;;  %v16353_v16 = vand.u32 4294901760, %v5419_v39  ;;  %v20569_v51 = vand.u32 4294901760, %v16349_v44 }
 0x343   : > { %12511 = vmatprep.subr.bf16.mxu1 %v21173_v53  ;;  %21210 = vst [vmem:[#allocation72_spill] sm:$0xff] %v16362_v46 }
 0x344   : > { %12819 = vmatpush1.bf16.msra.mxu0 %v16325_v52  ;;  %21209 = vst [vmem:[#allocation71_spill] sm:$0xff] %v16353_v16  ;;  %v16373_v30 = vsub.f32 %v5419_v39, %v16353_v16  ;;  %v16382_v42 = vpack.c.bf16 %v20568_v3, %v20569_v51  ;;  %v21215_v3 = vand.u32 4294901760, %v16209_v63  ;;  %v16676_v52 = vld [vmem:[#allocation3 + $0x1d0] sm:$0xff] }
 0x345   : > { %12820 = vmatprep.subr.bf16.mxu0 %v21173_v53  ;;  %12513 = vmatpush1.bf16.msra.mxu1 %v16080_v0  ;;  %v16370_v0 = vsel %vm4020_vm5, %v5412_v5, 0 }
 0x346   : > { %12514 = vmatprep.subr.bf16.mxu1 %v21173_v53  ;;  %21211 = vst [vmem:[#allocation73_spill] sm:$0xff] %v16373_v30  ;;  %21212 = vst [vmem:[#allocation74_spill] sm:$0xff] %v16382_v42  ;;  %v20570_v5 = vand.u32 4294901760, %v16370_v0  ;;  %v16398_v51 = vsub.f32 %v16209_v63, %v21215_v3  ;;  %v21219_v3 = vand.u32 4294901760, %v16215_v15 }
 0x348   : > { %12822 = vmatpush1.bf16.msra.mxu0 %v16344_v33  ;;  %21216 = vst [vmem:[#allocation76_spill] sm:$0xff] %v16398_v51  ;;  %v16405_v39 = vpack.c.bf16 %v20570_v5, %v20571_v1  ;;  %v16416_v63 = vsub.f32 %v16215_v15, %v21219_v3 }
 0x349   : > { %12823 = vmatprep.subr.bf16.mxu0 %v21173_v53  ;;  %12516 = vmatpush1.bf16.msra.mxu1 %v16084_v37  ;;  %v21213_v37 = vand.u32 4294901760, %v16207_v60 }
 0x34a   : > { %12517 = vmatprep.subr.bf16.mxu1 %v21173_v53  ;;  %21217 = vst [vmem:[#allocation77_spill] sm:$0xff] %v16405_v39  ;;  %21220 = vst [vmem:[#allocation78_spill] sm:$0xff] %v16416_v63 }
 0x34c   : > { %12825 = vmatpush1.bf16.msra.mxu0 %v16362_v46  ;;  %v16393_v46 = vsub.f32 %v16207_v60, %v21213_v37  ;;  %v21221_v37 = vand.u32 4294901760, %v16223_v28 }
 0x34d   : > { %12826 = vmatprep.subr.bf16.mxu0 %v21173_v53  ;;  %12519 = vmatpush1.bf16.msra.mxu1 %v16100_v6  ;;  %v21218_v6 = vand.u32 4294901760, %v16373_v30 }
 0x34e   : > { %12520 = vmatprep.subr.bf16.mxu1 %v21173_v53  ;;  %21214 = vst [vmem:[#allocation75_spill] sm:$0xff] %v16393_v46  ;;  %v16421_v5 = vsub.f32 %v16223_v28, %v21221_v37  ;;  %v12860_v1 = vpack.c.bf16 %v16398_v51, %v16393_v46  ;;  %v21225_v28 = vand.u32 4294901760, %v16243_v48 }
 0x34f   : > { %v5520_v60 = vsub.f32 %v16373_v30, %v21218_v6 }
 0x350   : > { %12828 = vmatpush1.bf16.msra.mxu0 %v16382_v42  ;;  %21222 = vst [vmem:[#allocation79_spill] sm:$0xff] %v16421_v5  ;;  %v16437_v3 = vsub.f32 %v16243_v48, %v21225_v28  ;;  %v21229_v48 = vand.u32 4294901760, %v16262_v32  ;;  %v21237_v28 = vand.u32 4294901760, %v16316_v58  ;;  %v21265_v42 = vld [vmem:[#allocation52_spill] sm:$0xff] }
 0x351   : > { %12829 = vmatprep.subr.bf16.mxu0 %v21173_v53  ;;  %12522 = vmatpush1.bf16.msra.mxu1 %v16104_v11  ;;  %v5521_v6 = vand.u32 4294901760, %v5520_v60  ;;  %v21223_v11 = vand.u32 4294901760, %v16241_v54  ;;  %v12863_v60 = vpack.c.bf16 %v16421_v5, %v16416_v63 }
 0x352   : > { %12523 = vmatprep.subr.bf16.mxu1 %v21173_v53  ;;  %21226 = vst [vmem:[#allocation81_spill] sm:$0xff] %v16437_v3 }
 0x353   : > { %v16432_v15 = vsub.f32 %v16241_v54, %v21223_v11 }
 0x354   : > { %12831 = vmatpush1.bf16.msra.mxu0 %v16405_v39  ;;  %v16660_v39 = vld [vmem:[#allocation3 + $0x1c8] sm:$0xff] }
 0x355   : > { %12859 = vmatprep.subr.bf16.mxu0 %v21173_v53  ;;  %12525 = vmatpush1.bf16.msra.mxu1 %v16120_v20  ;;  %21224 = vst [vmem:[#allocation80_spill] sm:$0xff] %v16432_v15  ;;  %v21227_v20 = vand.u32 4294901760, %v16260_v12  ;;  %v12866_v37 = vpack.c.bf16 %v16437_v3, %v16432_v15  ;;  %v20609_v33 = vand.u32 4294901760, %v16660_v39 }
 0x356   : > { %12526 = vmatprep.subr.bf16.mxu1 %v21173_v53 }
 0x357   : > { %5522 = vmatmul.mubr.f32.vlgmr.msra.gmra.mrb[8].mxu0 %v5521_v6  ;;  %v16448_v54 = vsub.f32 %v16260_v12, %v21227_v20  ;;  %v21233_v6 = vand.u32 4294901760, %v16289_v49  ;;  %v21242_v20 = vand.u32 4294901760, %v16333_v24 }
 0x358   : > { %12861 = vmatpush1.bf16.msra.mxu0 %v12860_v1  ;;  %5791 = vmatprep.mubr.f32.mxu0 %v16295_v2  ;;  %v16453_v1 = vsub.f32 %v16262_v32, %v21229_v48 }
 0x359   : > { %12862 = vmatprep.subr.bf16.mxu0 %v21173_v53  ;;  %12528 = vmatpush1.bf16.msra.mxu1 %v16124_v41  ;;  %21228 = vst [vmem:[#allocation82_spill] sm:$0xff] %v16448_v54  ;;  %v21231_v41 = vand.u32 4294901760, %v16287_v47  ;;  %v16468_v32 = vsub.f32 %v16289_v49, %v21233_v6  ;;  %v16483_v49 = vsub.f32 %v16316_v58, %v21237_v28 }
 0x35a   : > { %12529 = vmatprep.subr.bf16.mxu1 %v21173_v53  ;;  %21230 = vst [vmem:[#allocation83_spill] sm:$0xff] %v16453_v1  ;;  %v12869_v11 = vpack.c.bf16 %v16453_v1, %v16448_v54  ;;  %v16502_v48 = vsub.f32 %v16333_v24, %v21242_v20  ;;  %v21247_v24 = vand.u32 4294901760, %v16351_v27  ;;  %v21249_v28 = vpack.c.bf16 %v15984_v25, %v15981_v19 }
 0x35b   : > { %v16463_v12 = vsub.f32 %v16287_v47, %v21231_v41  ;;  %21234 = vst [vmem:[#allocation85_spill] sm:$0xff] %v16468_v32  ;;  %21238 = vst [vmem:[#allocation87_spill] sm:$0xff] %v16483_v49  ;;  %v21244_v41 = vpack.c.bf16 %v15978_v43, %v15973_v55  ;;  %v21254_v20 = vpack.c.bf16 %v15991_v34, %v15989_v45 }
 0x35c   : > { %12864 = vmatpush1.bf16.msra.mxu0 %v12863_v60  ;;  %21243 = vst [vmem:[#allocation89_spill] sm:$0xff] %v16502_v48 }
 0x35d   : > { %12865 = vmatprep.subr.bf16.mxu0 %v21173_v53  ;;  %12531 = vmatpush1.bf16.msra.mxu1 %v16134_v26  ;;  %21232 = vst [vmem:[#allocation84_spill] sm:$0xff] %v16463_v12  ;;  %v21235_v26 = vand.u32 4294901760, %v16314_v62  ;;  %v12872_v60 = vpack.c.bf16 %v16468_v32, %v16463_v12 }
 0x35e   : > { %12532 = vmatprep.subr.bf16.mxu1 %v21173_v53 }
 0x35f   : > { %v16478_v47 = vsub.f32 %v16314_v62, %v21235_v26  ;;  %v21240_v62 = vand.u32 4294901760, %v16331_v13 }
 0x360   : > { %12867 = vmatpush1.bf16.msra.mxu0 %v12866_v37 }
 0x361   : > { %12868 = vmatprep.subr.bf16.mxu0 %v21173_v53  ;;  %12534 = vmatpush1.bf16.msra.mxu1 %v16142_v50  ;;  %21236 = vst [vmem:[#allocation86_spill] sm:$0xff] %v16478_v47  ;;  %v21239_v50 = vpack.c.bf16 %v15930_v57, %v15925_v40  ;;  %v16497_v58 = vsub.f32 %v16331_v13, %v21240_v62  ;;  %v21245_v13 = vand.u32 4294901760, %v16349_v44 }
 0x362   : > { %12535 = vmatprep.subr.bf16.mxu1 %v21173_v53  ;;  %v12875_v37 = vpack.c.bf16 %v16483_v49, %v16478_v47 }
 0x363   : > { %21241 = vst [vmem:[#allocation88_spill] sm:$0xff] %v16497_v58  ;;  %v16514_v6 = vsub.f32 %v16349_v44, %v21245_v13  ;;  %v12878_v26 = vpack.c.bf16 %v16502_v48, %v16497_v58  ;;  %v21250_v44 = vand.u32 4294901760, %v16367_v9 }
 0x364   : > { %12870 = vmatpush1.bf16.msra.mxu0 %v12869_v11  ;;  %4279 = vmatmul.mubr.f32.vlgmr.msra.gmra.mrb[2].mxu1 %v16264_v4  ;;  %v16519_v11 = vsub.f32 %v16351_v27, %v21247_v24  ;;  %v21252_v27 = vand.u32 4294901760, %v16370_v0  ;;  %v20575_v24 = vand.u32 4294901760, %v16416_v63 }
 0x365   : > { %12871 = vmatprep.subr.bf16.mxu0 %v21173_v53  ;;  %12537 = vmatpush1.bf16.msra.mxu1 %v21239_v50  ;;  %21246 = vst [vmem:[#allocation90_spill] sm:$0xff] %v16514_v6 }
 0x366   : > { %4386 = vmatprep.mubr.f32.mxu1 %v16281_v10  ;;  %12538 = vmatprep.subr.bf16.mxu1 %v21173_v53  ;;  %21248 = vst [vmem:[#allocation91_spill] sm:$0xff] %v16519_v11  ;;  %v16536_v50 = vsub.f32 %v16370_v0, %v21252_v27  ;;  %v12881_v62 = vpack.c.bf16 %v16519_v11, %v16514_v6  ;;  %v20576_v0 = vand.u32 4294901760, %v16398_v51  ;;  %v20574_v27 = vand.u32 4294901760, %v16432_v15  ;;  %v21422_v51 = vld [vmem:[#allocation39_spill] sm:$0xff] }
 0x368   : > { %12873 = vmatpush1.bf16.msra.mxu0 %v12872_v60  ;;  %v16531_v60 = vsub.f32 %v16367_v9, %v21250_v44  ;;  %21253 = vst [vmem:[#allocation93_spill] sm:$0xff] %v16536_v50 }
 0x369   : > { %12874 = vmatprep.subr.bf16.mxu0 %v21173_v53  ;;  %12540 = vmatpush1.bf16.msra.mxu1 %v21244_v41  ;;  %v21255_v41 = vpack.c.bf16 %v16000_v8, %v15997_v23 }
 0x36a   : > { %12541 = vmatprep.subr.bf16.mxu1 %v21173_v53  ;;  %21251 = vst [vmem:[#allocation92_spill] sm:$0xff] %v16531_v60  ;;  %v12884_v9 = vpack.c.bf16 %v16536_v50, %v16531_v60 }
 0x36c   : > { %12876 = vmatpush1.bf16.msra.mxu0 %v12875_v37  ;;  %v20585_v37 = vand.u32 4294901760, %v16393_v46 }
 0x36d   : > { %12877 = vmatprep.subr.bf16.mxu0 %v21173_v53  ;;  %12543 = vmatpush1.bf16.msra.mxu1 %v21249_v28  ;;  %v21256_v28 = vpack.c.bf16 %v16020_v38, %v16016_v61 }
 0x36e   : > { %12544 = vmatprep.subr.bf16.mxu1 %v21173_v53  ;;  %v12914_v13 = vpack.c.bf16 %v20576_v0, %v20585_v37  ;;  %v21259_v0 = vpack.c.bf16 %v16052_v17, %v16050_v7 }
 0x370   : > { %12879 = vmatpush1.bf16.msra.mxu0 %v12878_v26  ;;  %v20572_v26 = vand.u32 4294901760, %v16421_v5 }
 0x371   : > { %12880 = vmatprep.subr.bf16.mxu0 %v21173_v53  ;;  %12546 = vmatpush1.bf16.msra.mxu1 %v21254_v20  ;;  %v21257_v20 = vpack.c.bf16 %v16033_v14, %v16031_v22 }
 0x372   : > { %12547 = vmatprep.subr.bf16.mxu1 %v21173_v53  ;;  %v12917_v44 = vpack.c.bf16 %v20572_v26, %v20575_v24  ;;  %v21258_v26 = vpack.c.bf16 %v16041_v56, %v16039_v29 }
 0x374   : > { %12882 = vmatpush1.bf16.msra.mxu0 %v12881_v62  ;;  %v20573_v62 = vand.u32 4294901760, %v16437_v3  ;;  %v6852_v3 = vld [vmem:[#allocation3 + $0x2c8] sm:$0x3] }
 0x375   : > { %12883 = vmatprep.subr.bf16.mxu0 %v21173_v53  ;;  %12549 = vmatpush1.bf16.msra.mxu1 %v21255_v41  ;;  %v20578_v41 = vand.u32 4294901760, %v16448_v54 }
 0x376   : > { %12550 = vmatprep.subr.bf16.mxu1 %v21173_v53 }
 0x378   : > { %12885 = vmatpush1.bf16.msra.mxu0 %v12884_v9  ;;  %v12920_v9 = vpack.c.bf16 %v20573_v62, %v20574_v27  ;;  %v20584_v62 = vand.u32 4294901760, %v16463_v12  ;;  %v20583_v27 = vand.u32 4294901760, %v16468_v32  ;;  %v21275_v32 = vand.u32 4294901760, %v15930_v57  ;;  %v16747_v57 = vld [vmem:[#allocation3 + $0x210] sm:$0xff] }
 0x379   : > { %12913 = vmatprep.subr.bf16.mxu0 %v21173_v53  ;;  %12552 = vmatpush1.bf16.msra.mxu1 %v21256_v28  ;;  %v6113_v28 = vld [vmem:[#allocation2 + $0x18] sm:$0x7] }
 0x37a   : > { %12553 = vmatprep.subr.bf16.mxu1 %v21173_v53  ;;  %v6141_v24 = vrot.slane %v6113_v28, 3 }
 0x37b   : > { %5794 = vmatmul.mubr.f32.vlgmr.msra.gmra.mrb[10].mxu0 %v16373_v30  ;;  %v16658_v30 = vld [vmem:[#allocation3 + $0x1c0] sm:$0xff] }
 0x37c   : > { %12915 = vmatpush1.bf16.msra.mxu0 %v12914_v13  ;;  %6012 = vmatprep.mubr.f32.mxu0 %v16285_v35  ;;  %v20577_v13 = vand.u32 4294901760, %v16453_v1 }
 0x37d   : > { %12916 = vmatprep.subr.bf16.mxu0 %v21173_v53  ;;  %12555 = vmatpush1.bf16.msra.mxu1 %v21257_v20  ;;  %v6111_v20 = vld [vmem:[#allocation2 + $0x8] sm:$0xf8] }
 0x37e   : > { %12556 = vmatprep.subr.bf16.mxu1 %v21173_v53 }
 0x380   : > { %12918 = vmatpush1.bf16.msra.mxu0 %v12917_v44  ;;  %v12923_v44 = vpack.c.bf16 %v20577_v13, %v20578_v41  ;;  %v20580_v13 = vand.u32 4294901760, %v16478_v47  ;;  %v20579_v41 = vand.u32 4294901760, %v16483_v49  ;;  %v6110_v49 = vld [vmem:[#allocation2] sm:$0xf8]  ;;  %v21273_v47 = vld [vmem:[#allocation58_spill] sm:$0xff] }
 0x381   : > { %12919 = vmatprep.subr.bf16.mxu0 %v21173_v53  ;;  %12558 = vmatpush1.bf16.msra.mxu1 %v21258_v26  ;;  %v6140_v26 = vrot.slane %v6111_v20, 3  ;;  %v6137_v54 = vrot.slane %v6110_v49, 3 }
 0x382   : > { %12559 = vmatprep.subr.bf16.mxu1 %v21173_v53 }
 0x383   : > { %v6142_v28 = vsel %vm2386_vm4, %v6140_v26, %v6141_v24  ;;  %v20582_v24 = vand.u32 4294901760, %v16497_v58  ;;  %v20581_v26 = vand.u32 4294901760, %v16502_v48  ;;  %v16725_v48 = vld [vmem:[#allocation3 + $0x200] sm:$0xff]  ;;  %v16727_v58 = vld [vmem:[#allocation3 + $0x208] sm:$0xff] }
 0x384   : > { %12921 = vmatpush1.bf16.msra.mxu0 %v12920_v9  ;;  %v12926_v9 = vpack.c.bf16 %v20583_v27, %v20584_v62  ;;  %v6144_v20 = vsel %vm4017_vm8, %v6142_v28, 0  ;;  %v20587_v28 = vand.u32 4294901760, %v16514_v6  ;;  %v16644_v27 = vld [vmem:[#allocation3 + $0x1b0] sm:$0xff]  ;;  %v16646_v62 = vld [vmem:[#allocation3 + $0x1b8] sm:$0xff]  ;;  %v20648_v35 = vand.u32 4294901760, %v16725_v48 }
 0x385   : > { %12922 = vmatprep.subr.bf16.mxu0 %v21173_v53  ;;  %12561 = vmatpush1.bf16.msra.mxu1 %v21259_v0  ;;  %v21260_v0 = vand.u32 4294901760, %v16281_v10  ;;  %v16622_v10 = vand.u32 4294901760, %v6144_v20  ;;  %v20647_v1 = vand.u32 4294901760, %v16727_v58 }
 0x386   : > { %12562 = vmatprep.subr.bf16.mxu1 %v21173_v53 }
 0x387   : > { %21261 = vst [vmem:[#allocation94_spill] sm:$0xff] %v16622_v10 }
 0x388   : > { %12924 = vmatpush1.bf16.msra.mxu0 %v12923_v44  ;;  %4389 = vmatmul.mubr.f32.vlgmr.msra.gmra.mrb[4].mxu1 %v16276_v21  ;;  %v12929_v44 = vpack.c.bf16 %v20579_v41, %v20580_v13  ;;  %v21262_v41 = vld [vmem:[#allocation44_spill] sm:$0xff]  ;;  %v16634_v13 = vsub.f32 %v6144_v20, %v16622_v10 }
 0x389   : > { %12925 = vmatprep.subr.bf16.mxu0 %v21173_v53  ;;  %12564 = vmatpush1.bf16.msra.mxu1 %v15822_v18  ;;  %v21264_v20 = vld [vmem:[#allocation48_spill] sm:$0xff] }
 0x38a   : > { %4479 = vmatprep.mubr.f32.mxu1 %v21260_v0  ;;  %12565 = vmatprep.subr.bf16.mxu1 %v21173_v53  ;;  %v20586_v0 = vand.u32 4294901760, %v16519_v11  ;;  %21263 = vst [vmem:[#allocation44_spill] sm:$0xff] %v16634_v13  ;;  %v20601_v37 = vand.u32 4294901760, %v16634_v13  ;;  %v21271_v11 = vld [vmem:[#allocation57_spill] sm:$0xff] }
 0x38c   : > { %12927 = vmatpush1.bf16.msra.mxu0 %v12926_v9  ;;  %v12932_v9 = vpack.c.bf16 %v20581_v26, %v20582_v24  ;;  %v20594_v26 = vand.u32 4294901760, %v16531_v60  ;;  %v20593_v24 = vand.u32 4294901760, %v16536_v50  ;;  %v21269_v50 = vld [vmem:[#allocation56_spill] sm:$0xff] }
 0x38d   : > { %12928 = vmatprep.subr.bf16.mxu0 %v21173_v53  ;;  %12567 = vmatpush1.bf16.msra.mxu1 %v15867_v36  ;;  %v16711_v60 = vld [vmem:[#allocation3 + $0x1f8] sm:$0xff] }
 0x38e   : > { %12568 = vmatprep.subr.bf16.mxu1 %v21173_v53  ;;  %v20645_v6 = vand.u32 4294901760, %v16711_v60 }
 0x390   : > { %12930 = vmatpush1.bf16.msra.mxu0 %v12929_v44  ;;  %v12935_v44 = vpack.c.bf16 %v20586_v0, %v20587_v28  ;;  %v20604_v0 = vand.u32 4294901760, %v16644_v27  ;;  %v20603_v28 = vand.u32 4294901760, %v16646_v62 }
 0x391   : > { %12931 = vmatprep.subr.bf16.mxu0 %v21173_v53  ;;  %12570 = vmatpush1.bf16.msra.mxu1 %v21262_v41 }
 0x392   : > { %12571 = vmatprep.subr.bf16.mxu1 %v21173_v53 }
 0x394   : > { %12933 = vmatpush1.bf16.msra.mxu0 %v12932_v9  ;;  %v12938_v9 = vpack.c.bf16 %v20593_v24, %v20594_v26  ;;  %v16671_v24 = vpack.c.bf16 %v20603_v28, %v20604_v0  ;;  %v20610_v26 = vand.u32 4294901760, %v16658_v30  ;;  %v20620_v28 = vand.u32 4294901760, %v16676_v52 }
 0x395   : > { %12934 = vmatprep.subr.bf16.mxu0 %v21173_v53  ;;  %12573 = vmatpush1.bf16.msra.mxu1 %v21264_v20  ;;  %v20619_v0 = vand.u32 4294901760, %v16678_v31 }
 0x396   : > { %12574 = vmatprep.subr.bf16.mxu1 %v21173_v53  ;;  %21266 = vst [vmem:[#allocation48_spill] sm:$0xff] %v16671_v24 }
 0x398   : > { %12936 = vmatpush1.bf16.msra.mxu0 %v12935_v44  ;;  %v6234_v44 = vsub.f32 %v16634_v13, %v20601_v37  ;;  %v21267_v37 = vld [vmem:[#allocation55_spill] sm:$0xff] }
 0x399   : > { %12937 = vmatprep.subr.bf16.mxu0 %v21173_v53  ;;  %12576 = vmatpush1.bf16.msra.mxu1 %v21265_v42 }
 0x39a   : > { %12577 = vmatprep.subr.bf16.mxu1 %v21173_v53  ;;  %v6235_v2 = vand.u32 4294901760, %v6234_v44  ;;  %v16693_v44 = vld [vmem:[#allocation3 + $0x1e0] sm:$0xff] }
 0x39c   : > { %12939 = vmatpush1.bf16.msra.mxu0 %v12938_v9  ;;  %v16688_v9 = vpack.c.bf16 %v20609_v33, %v20610_v26  ;;  %v20638_v33 = vand.u32 4294901760, %v16693_v44 }
 0x39d   : > { %12967 = vmatprep.subr.bf16.mxu0 %v21173_v53  ;;  %12579 = vmatpush1.bf16.msra.mxu1 %v21267_v37 }
 0x39e   : > { %12580 = vmatprep.subr.bf16.mxu1 %v21173_v53  ;;  %21268 = vst [vmem:[#allocation52_spill] sm:$0xff] %v16688_v9 }
 0x39f   : > { %6014 = vmatmul.mubr.f32.vlgmr.msra.gmra.mrb[12].mxu0 %v16353_v16  ;;  %v16695_v16 = vld [vmem:[#allocation3 + $0x1e8] sm:$0xff] }
 0x3a0   : > { %12969 = vmatpush1.bf16.msra.mxu0 %v16671_v24  ;;  %6236 = vmatprep.mubr.f32.mxu0 %v6235_v2  ;;  %v16704_v2 = vpack.c.bf16 %v20619_v0, %v20620_v28  ;;  %v20637_v26 = vand.u32 4294901760, %v16695_v16  ;;  %v16709_v24 = vld [vmem:[#allocation3 + $0x1f0] sm:$0xff] }
 0x3a1   : > { %12970 = vmatprep.subr.bf16.mxu0 %v21173_v53  ;;  %12582 = vmatpush1.bf16.msra.mxu1 %v21269_v50  ;;  %v20646_v28 = vand.u32 4294901760, %v16709_v24 }
 0x3a2   : > { %12583 = vmatprep.subr.bf16.mxu1 %v21173_v53  ;;  %21270 = vst [vmem:[#allocation55_spill] sm:$0xff] %v16704_v2  ;;  %v16720_v0 = vpack.c.bf16 %v20637_v26, %v20638_v33 }
 0x3a3   : > { %v16740_v33 = vpack.c.bf16 %v20645_v6, %v20646_v28 }
 0x3a4   : > { %12972 = vmatpush1.bf16.msra.mxu0 %v16688_v9  ;;  %v6112_v9 = vld [vmem:[#allocation2 + $0x10] sm:$0x7]  ;;  %21272 = vst [vmem:[#allocation56_spill] sm:$0xff] %v16720_v0 }
 0x3a5   : > { %12973 = vmatprep.subr.bf16.mxu0 %v21173_v53  ;;  %12585 = vmatpush1.bf16.msra.mxu1 %v21271_v11  ;;  %v6138_v26 = vrot.slane %v6112_v9, 3  ;;  %21276 = vst [vmem:[#allocation57_spill] sm:$0xff] %v16740_v33  ;;  %v21278_v9 = vand.u32 4294901760, %v15973_v55  ;;  %v16768_v55 = vld [vmem:[#allocation3 + $0x220] sm:$0xff] }
 0x3a6   : > { %12586 = vmatprep.subr.bf16.mxu1 %v21173_v53 }
 0x3a7   : > { %v6139_v28 = vsel %vm2386_vm4, %v6137_v54, %v6138_v26  ;;  %v21282_v26 = vand.u32 4294901760, %v15981_v19  ;;  %v16789_v19 = vld [vmem:[#allocation3 + $0x230] sm:$0xff] }
 0x3a8   : > { %12975 = vmatpush1.bf16.msra.mxu0 %v16704_v2  ;;  %v21274_v2 = vand.u32 4294901760, %v15925_v40  ;;  %v21277_v40 = vand.u32 4294901760, %v16276_v21  ;;  %v16763_v21 = vpack.c.bf16 %v20647_v1, %v20648_v35  ;;  %v16772_v54 = vand.u32 4294901760, %v6139_v28 }
 0x3a9   : > { %12976 = vmatprep.subr.bf16.mxu0 %v21173_v53  ;;  %12588 = vmatpush1.bf16.msra.mxu1 %v21273_v47  ;;  %v20654_v35 = vand.u32 4294901760, %v16768_v55 }
 0x3aa   : > { %v12590_v12 = vpack.c.bf16 %v21275_v32, %v21274_v2  ;;  %12589 = vmatprep.subr.bf16.mxu1 %v21173_v53  ;;  %v16749_v32 = vld [vmem:[#allocation3 + $0x218] sm:$0xff]  ;;  %v21279_v2 = vand.u32 4294901760, %v15978_v43  ;;  %21280 = vst [vmem:[#allocation58_spill] sm:$0xff] %v16763_v21  ;;  %v16770_v43 = vld [vmem:[#allocation3 + $0x228] sm:$0xff]  ;;  %21281 = vst [vmem:[#allocation95_spill] sm:$0xff] %v16772_v54 }
 0x3ab   : > { %v20649_v49 = vand.u32 4294901760, %v16749_v32 }
 0x3ac   : > { %12978 = vmatpush1.bf16.msra.mxu0 %v16720_v0  ;;  %4483 = vmatmul.mubr.f32.vlgmr.msra.gmra.mrb[6].mxu1 %v21277_v40  ;;  %v12593_v6 = vpack.c.bf16 %v21279_v2, %v21278_v9  ;;  %v21283_v40 = vand.u32 4294901760, %v15984_v25  ;;  %v6132_v2 = vld [vmem:[#allocation3 + $0x238] sm:$0x3] }
 0x3ad   : > { %12979 = vmatprep.subr.bf16.mxu0 %v21173_v53  ;;  %12591 = vmatpush1.bf16.msra.mxu1 %v12590_v12  ;;  %v20650_v12 = vand.u32 4294901760, %v16747_v57  ;;  %v16792_v25 = vsel %vm4020_vm5, %v6132_v2, 0  ;;  %v6198_v2 = vand.u32 4294901760, %v16789_v19 }
 0x3ae   : > { %4607 = vmatprep.mubr.f32.mxu1 %v16266_v59  ;;  %12592 = vmatprep.subr.bf16.mxu1 %v21173_v53  ;;  %v12596_v9 = vpack.c.bf16 %v21283_v40, %v21282_v26  ;;  %v16795_v26 = vsub.f32 %v6139_v28, %v16772_v54  ;;  %v21286_v40 = vand.u32 4294901760, %v15989_v45 }
 0x3af   : > { %v16784_v1 = vpack.c.bf16 %v20649_v49, %v20650_v12  ;;  %v21287_v49 = vand.u32 4294901760, %v15991_v34  ;;  %v21289_v34 = vand.u32 4294901760, %v15997_v23  ;;  %v21295_v23 = vand.u32 4294901760, %v16792_v25 }
 0x3b0   : > { %12981 = vmatpush1.bf16.msra.mxu0 %v16740_v33  ;;  %21285 = vst [vmem:[#allocation97_spill] sm:$0xff] %v16795_v26  ;;  %v20655_v45 = vand.u32 4294901760, %v16795_v26 }
 0x3b1   : > { %12982 = vmatprep.subr.bf16.mxu0 %v21173_v53  ;;  %12594 = vmatpush1.bf16.msra.mxu1 %v12593_v6  ;;  %21284 = vst [vmem:[#allocation96_spill] sm:$0xff] %v16784_v1  ;;  %v20653_v6 = vand.u32 4294901760, %v16770_v43  ;;  %v12599_v12 = vpack.c.bf16 %v21287_v49, %v21286_v40  ;;  %v21290_v49 = vand.u32 4294901760, %v16000_v8  ;;  %v21291_v40 = vand.u32 4294901760, %v16644_v27 }
 0x3b2   : > { %12595 = vmatprep.subr.bf16.mxu1 %v21173_v53  ;;  %v16833_v8 = vpack.c.bf16 %v21295_v23, %v6198_v2 }
 0x3b4   : > { %12984 = vmatpush1.bf16.msra.mxu0 %v16763_v21  ;;  %v16807_v21 = vpack.c.bf16 %v20653_v6, %v20654_v35  ;;  %v16821_v6 = vsub.f32 %v16644_v27, %v21291_v40  ;;  %v21293_v35 = vand.u32 4294901760, %v16646_v62  ;;  %21296 = vst [vmem:[#allocation101_spill] sm:$0xff] %v16833_v8  ;;  %v6240_v27 = vsub.f32 %v16795_v26, %v20655_v45 }
 0x3b5   : > { %12985 = vmatprep.subr.bf16.mxu0 %v21173_v53  ;;  %12597 = vmatpush1.bf16.msra.mxu1 %v12596_v9  ;;  %v12602_v9 = vpack.c.bf16 %v21290_v49, %v21289_v34  ;;  %v21299_v34 = vand.u32 4294901760, %v16658_v30  ;;  %v21301_v40 = vand.u32 4294901760, %v16660_v39 }
 0x3b6   : > { %12598 = vmatprep.subr.bf16.mxu1 %v21173_v53  ;;  %21288 = vst [vmem:[#allocation98_spill] sm:$0xff] %v16807_v21  ;;  %21292 = vst [vmem:[#allocation99_spill] sm:$0xff] %v16821_v6  ;;  %v16826_v28 = vsub.f32 %v16646_v62, %v21293_v35  ;;  %v21298_v35 = vand.u32 4294901760, %v16020_v38  ;;  %v21303_v38 = vand.u32 4294901760, %v16031_v22 }
 0x3b7   : > { %v16847_v49 = vsub.f32 %v16658_v30, %v21299_v34  ;;  %v16852_v23 = vsub.f32 %v16660_v39, %v21301_v40  ;;  %v21305_v39 = vand.u32 4294901760, %v16676_v52  ;;  %v21307_v34 = vand.u32 4294901760, %v16678_v31 }
 0x3b8   : > { %12987 = vmatpush1.bf16.msra.mxu0 %v16784_v1  ;;  %21294 = vst [vmem:[#allocation100_spill] sm:$0xff] %v16826_v28  ;;  %v21311_v40 = vand.u32 4294901760, %v16693_v44  ;;  %v21386_v1 = vld [vmem:[#allocation47_spill] sm:$0xff] }
 0x3b9   : > { %12988 = vmatprep.subr.bf16.mxu0 %v21173_v53  ;;  %12600 = vmatpush1.bf16.msra.mxu1 %v12599_v12  ;;  %v21297_v12 = vand.u32 4294901760, %v16016_v61  ;;  %21300 = vst [vmem:[#allocation102_spill] sm:$0xff] %v16847_v49  ;;  %21302 = vst [vmem:[#allocation103_spill] sm:$0xff] %v16852_v23  ;;  %v13022_v61 = vpack.c.bf16 %v16826_v28, %v16821_v6  ;;  %v13025_v22 = vpack.c.bf16 %v16852_v23, %v16847_v49 }
 0x3ba   : > { %12601 = vmatprep.subr.bf16.mxu1 %v21173_v53 }
 0x3bb   : > { %v12605_v62 = vpack.c.bf16 %v21298_v35, %v21297_v12  ;;  %v21304_v12 = vand.u32 4294901760, %v16033_v14  ;;  %v16866_v35 = vsub.f32 %v16676_v52, %v21305_v39  ;;  %v21309_v14 = vand.u32 4294901760, %v16039_v29 }
 0x3bc   : > { %12990 = vmatpush1.bf16.msra.mxu0 %v16807_v21  ;;  %v21316_v29 = vand.u32 4294901760, %v16052_v17 }
 0x3bd   : > { %12991 = vmatprep.subr.bf16.mxu0 %v21173_v53  ;;  %12603 = vmatpush1.bf16.msra.mxu1 %v12602_v9  ;;  %v6241_v9 = vand.u32 4294901760, %v6240_v27  ;;  %v12608_v30 = vpack.c.bf16 %v21304_v12, %v21303_v38  ;;  %21306 = vst [vmem:[#allocation104_spill] sm:$0xff] %v16866_v35  ;;  %v16871_v27 = vsub.f32 %v16678_v31, %v21307_v34 }
 0x3be   : > { %12604 = vmatprep.subr.bf16.mxu1 %v21173_v53  ;;  %v16885_v31 = vsub.f32 %v16693_v44, %v21311_v40  ;;  %v21317_v44 = vand.u32 4294901760, %v16709_v24 }
 0x3bf   : > { %21308 = vst [vmem:[#allocation105_spill] sm:$0xff] %v16871_v27  ;;  %v13028_v38 = vpack.c.bf16 %v16871_v27, %v16866_v35 }
 0x3c0   : > { %12993 = vmatpush1.bf16.msra.mxu0 %v16833_v8  ;;  %21312 = vst [vmem:[#allocation106_spill] sm:$0xff] %v16885_v31 }
 0x3c1   : > { %13021 = vmatprep.subr.bf16.mxu0 %v21173_v53  ;;  %12606 = vmatpush1.bf16.msra.mxu1 %v12605_v62  ;;  %v21310_v62 = vand.u32 4294901760, %v16041_v56  ;;  %v21315_v56 = vand.u32 4294901760, %v16050_v7  ;;  %v21321_v7 = vand.u32 4294901760, %v16725_v48 }
 0x3c2   : > { %12607 = vmatprep.subr.bf16.mxu1 %v21173_v53 }
 0x3c3   : > { %6242 = vmatmul.mubr.f32.vlgmr.msra.gmra.mrb[14].mxu0 %v6241_v9  ;;  %v12611_v52 = vpack.c.bf16 %v21310_v62, %v21309_v14  ;;  %v12614_v12 = vpack.c.bf16 %v21316_v29, %v21315_v56  ;;  %v16917_v17 = vsub.f32 %v16725_v48, %v21321_v7  ;;  %v21325_v48 = vand.u32 4294901760, %v16747_v57  ;;  %v21337_v56 = vld [vmem:[#allocation60_spill] sm:$0xff] }
 0x3c4   : > { %13023 = vmatpush1.bf16.msra.mxu0 %v13022_v61  ;;  %6511 = vmatprep.mubr.f32.mxu0 %v16634_v13  ;;  %v21313_v61 = vand.u32 4294901760, %v16695_v16  ;;  %v20665_v7 = vand.u32 4294901760, %v16885_v31  ;;  %v17198_v13 = vld [vmem:[#allocation3 + $0x288] sm:$0xff] }
 0x3c5   : > { %13024 = vmatprep.subr.bf16.mxu0 %v21173_v53  ;;  %12609 = vmatpush1.bf16.msra.mxu1 %v12608_v30  ;;  %v16903_v30 = vsub.f32 %v16709_v24, %v21317_v44  ;;  %21322 = vst [vmem:[#allocation110_spill] sm:$0xff] %v16917_v17  ;;  %v21323_v24 = vand.u32 4294901760, %v16727_v58  ;;  %v16934_v14 = vsub.f32 %v16747_v57, %v21325_v48  ;;  %v21331_v57 = vand.u32 4294901760, %v16770_v43  ;;  %v6831_v48 = vld [vmem:[#allocation2 + $0x8] sm:$0xf0] }
 0x3c6   : > { %12610 = vmatprep.subr.bf16.mxu1 %v21173_v53  ;;  %v16890_v9 = vsub.f32 %v16695_v16, %v21313_v61  ;;  %v21319_v16 = vand.u32 4294901760, %v16711_v60  ;;  %v20667_v44 = vand.u32 4294901760, %v16866_v35 }
 0x3c7   : > { %21318 = vst [vmem:[#allocation108_spill] sm:$0xff] %v16903_v30  ;;  %21326 = vst [vmem:[#allocation112_spill] sm:$0xff] %v16934_v14 }
 0x3c8   : > { %21314 = vst [vmem:[#allocation107_spill] sm:$0xff] %v16890_v9  ;;  %13026 = vmatpush1.bf16.msra.mxu0 %v13025_v22  ;;  %v16908_v39 = vsub.f32 %v16711_v60, %v21319_v16  ;;  %v13031_v34 = vpack.c.bf16 %v16890_v9, %v16885_v31  ;;  %v16922_v22 = vsub.f32 %v16727_v58, %v21323_v24  ;;  %v21327_v58 = vand.u32 4294901760, %v16749_v32 }
 0x3c9   : > { %13027 = vmatprep.subr.bf16.mxu0 %v21173_v53  ;;  %12612 = vmatpush1.bf16.msra.mxu1 %v12611_v52  ;;  %v20664_v24 = vand.u32 4294901760, %v16890_v9  ;;  %v21401_v9 = vld [vmem:[#allocation27_spill] sm:$0xff] }
 0x3ca   : > { %12613 = vmatprep.subr.bf16.mxu1 %v21173_v53  ;;  %21320 = vst [vmem:[#allocation109_spill] sm:$0xff] %v16908_v39  ;;  %21324 = vst [vmem:[#allocation111_spill] sm:$0xff] %v16922_v22  ;;  %v13034_v60 = vpack.c.bf16 %v16908_v39, %v16903_v30  ;;  %v16939_v62 = vsub.f32 %v16749_v32, %v21327_v58  ;;  %v13037_v52 = vpack.c.bf16 %v16922_v22, %v16917_v17 }
 0x3cb   : > { %v16954_v32 = vsub.f32 %v16770_v43, %v21331_v57  ;;  %v13085_v58 = vpack.c.bf16 %v20664_v24, %v20665_v7  ;;  %v21363_v7 = vld [vmem:[#allocation37_spill] sm:$0xff] }
 0x3cc   : > { %13029 = vmatpush1.bf16.msra.mxu0 %v13028_v38  ;;  %21328 = vst [vmem:[#allocation113_spill] sm:$0xff] %v16939_v62  ;;  %v13040_v40 = vpack.c.bf16 %v16939_v62, %v16934_v14  ;;  %v20670_v38 = vand.u32 4294901760, %v16852_v23  ;;  %v21408_v23 = vld [vmem:[#allocation31_spill] sm:$0xff] }
 0x3cd   : > { %13030 = vmatprep.subr.bf16.mxu0 %v21173_v53  ;;  %12615 = vmatpush1.bf16.msra.mxu1 %v12614_v12  ;;  %21332 = vst [vmem:[#allocation115_spill] sm:$0xff] %v16954_v32  ;;  %v20661_v45 = vand.u32 4294901760, %v16954_v32 }
 0x3ce   : > { %12616 = vmatprep.subr.bf16.mxu1 %v21173_v53 }
 0x3d0   : > { %13032 = vmatpush1.bf16.msra.mxu0 %v13031_v34  ;;  %4609 = vmatmul.mubr.f32.vlgmr.msra.gmra.mrb[8].mxu1 %v16264_v4 }
 0x3d1   : > { %13033 = vmatprep.subr.bf16.mxu0 %v21173_v53  ;;  %12618 = vmatpush1.bf16.msra.mxu1 %v15822_v18 }
 0x3d2   : > { %4697 = vmatprep.mubr.f32.mxu1 %v16266_v59  ;;  %12619 = vmatprep.subr.bf16.mxu1 %v21173_v53  ;;  %v21329_v59 = vand.u32 4294901760, %v16768_v55 }
 0x3d4   : > { %13035 = vmatpush1.bf16.msra.mxu0 %v13034_v60  ;;  %v16949_v18 = vsub.f32 %v16768_v55, %v21329_v59  ;;  %v21334_v55 = vand.u32 4294901760, %v16792_v25  ;;  %v6833_v60 = vld [vmem:[#allocation2 + $0x18] sm:$0xf]  ;;  %v20660_v59 = vand.u32 4294901760, %v16908_v39  ;;  %v6830_v39 = vld [vmem:[#allocation2] sm:$0xf0] }
 0x3d5   : > { %13036 = vmatprep.subr.bf16.mxu0 %v21173_v53  ;;  %12621 = vmatpush1.bf16.msra.mxu1 %v15867_v36  ;;  %v16964_v36 = vsub.f32 %v16789_v19, %v6198_v2  ;;  %v20674_v19 = vand.u32 4294901760, %v16821_v6  ;;  %v20673_v2 = vand.u32 4294901760, %v16826_v28  ;;  %v6861_v57 = vrot.slane %v6833_v60, 4 }
 0x3d6   : > { %12622 = vmatprep.subr.bf16.mxu1 %v21173_v53  ;;  %21330 = vst [vmem:[#allocation114_spill] sm:$0xff] %v16949_v18  ;;  %v16969_v43 = vsub.f32 %v16792_v25, %v21334_v55  ;;  %v13043_v61 = vpack.c.bf16 %v16954_v32, %v16949_v18  ;;  %v20672_v25 = vand.u32 4294901760, %v16847_v49  ;;  %v21340_v55 = vld [vmem:[#allocation16_spill] sm:$0xff]  ;;  %v21409_v49 = vand.u32 4294901760, %v21408_v23 }
 0x3d7   : > { %21333 = vst [vmem:[#allocation116_spill] sm:$0xff] %v16964_v36 }
 0x3d8   : > { %13038 = vmatpush1.bf16.msra.mxu0 %v13037_v52  ;;  %21335 = vst [vmem:[#allocation117_spill] sm:$0xff] %v16969_v43  ;;  %v13079_v12 = vpack.c.bf16 %v20670_v38, %v20672_v25  ;;  %v20663_v52 = vand.u32 4294901760, %v16903_v30  ;;  %v21369_v25 = vld [vmem:[#allocation41_spill] sm:$0xff] }
 0x3d9   : > { %13039 = vmatprep.subr.bf16.mxu0 %v21173_v53  ;;  %12624 = vmatpush1.bf16.msra.mxu1 %v21262_v41  ;;  %v13046_v41 = vpack.c.bf16 %v16969_v43, %v16964_v36 }
 0x3da   : > { %12625 = vmatprep.subr.bf16.mxu1 %v21173_v53 }
 0x3dc   : > { %13041 = vmatpush1.bf16.msra.mxu0 %v13040_v40 }
 0x3dd   : > { %13042 = vmatprep.subr.bf16.mxu0 %v21173_v53  ;;  %12627 = vmatpush1.bf16.msra.mxu1 %v21264_v20  ;;  %v13076_v20 = vpack.c.bf16 %v20673_v2, %v20674_v19  ;;  %v21370_v2 = vand.u32 4294901760, %v21369_v25  ;;  %v17167_v25 = vld [vmem:[#allocation3 + $0x270] sm:$0xff] }
 0x3de   : > { %12628 = vmatprep.subr.bf16.mxu1 %v21173_v53 }
 0x3e0   : > { %13044 = vmatpush1.bf16.msra.mxu0 %v13043_v61  ;;  %v21341_v61 = vand.u32 4294901760, %v21340_v55 }
 0x3e1   : > { %13045 = vmatprep.subr.bf16.mxu0 %v21173_v53  ;;  %12630 = vmatpush1.bf16.msra.mxu1 %v21265_v42  ;;  %v21336_v42 = vld [vmem:[#allocation61_spill] sm:$0xff] }
 0x3e2   : > { %12631 = vmatprep.subr.bf16.mxu1 %v21173_v53  ;;  %v16995_v29 = vsub.f32 %v21337_v56, %v21336_v42 }
 0x3e4   : > { %13047 = vmatpush1.bf16.msra.mxu0 %v13046_v41  ;;  %v20675_v16 = vand.u32 4294901760, %v16995_v29 }
 0x3e5   : > { %13075 = vmatprep.subr.bf16.mxu0 %v21173_v53  ;;  %12633 = vmatpush1.bf16.msra.mxu1 %v21267_v37  ;;  %v20666_v37 = vand.u32 4294901760, %v16871_v27  ;;  %v21406_v27 = vld [vmem:[#allocation30_spill] sm:$0xff] }
 0x3e6   : > { %12634 = vmatprep.subr.bf16.mxu1 %v21173_v53 }
 0x3e7   : > { %6514 = vmatmul.mubr.f32.vlgmr.msra.gmra.mrb[16].mxu0 %v16795_v26  ;;  %v13082_v34 = vpack.c.bf16 %v20666_v37, %v20667_v44  ;;  %v21364_v37 = vand.u32 4294901760, %v21363_v7 }
 0x3e8   : > { %13077 = vmatpush1.bf16.msra.mxu0 %v13076_v20  ;;  %6732 = vmatprep.mubr.f32.mxu0 %v16622_v10  ;;  %v6860_v20 = vrot.slane %v6831_v48, 4 }
 0x3e9   : > { %13078 = vmatprep.subr.bf16.mxu0 %v21173_v53  ;;  %12636 = vmatpush1.bf16.msra.mxu1 %v21269_v50  ;;  %v4795_v50 = vsub.f32 %v16995_v29, %v20675_v16  ;;  %v14442_v16 = vld [vmem:[#allocation2] sm:$0xff] }
 0x3ea   : > { %12637 = vmatprep.subr.bf16.mxu1 %v21173_v53  ;;  %v6862_v60 = vsel %vm400_vm0, %v6860_v20, %v6861_v57  ;;  %v20658_v57 = vand.u32 4294901760, %v16934_v14  ;;  %v21346_v20 = vld [vmem:[#allocation24_spill] sm:$0xff] }
 0x3eb   : > { %v4796_v56 = vand.u32 4294901760, %v4795_v50  ;;  %v21342_v50 = vld [vmem:[#allocation17_spill] sm:$0xff]  ;;  %v6864_v55 = vsel %vm4017_vm8, %v6862_v60, 0 }
 0x3ec   : > { %13080 = vmatpush1.bf16.msra.mxu0 %v13079_v12  ;;  %v13088_v12 = vpack.c.bf16 %v20660_v59, %v20663_v52  ;;  %v21343_v48 = vand.u32 4294901760, %v21342_v50  ;;  %v21348_v50 = vld [vmem:[#allocation25_spill] sm:$0xff] }
 0x3ed   : > { %13081 = vmatprep.subr.bf16.mxu0 %v21173_v53  ;;  %12639 = vmatpush1.bf16.msra.mxu1 %v21271_v11  ;;  %v21338_v11 = vld [vmem:[#allocation15_spill] sm:$0xff] }
 0x3ee   : > { %12640 = vmatprep.subr.bf16.mxu1 %v21173_v53  ;;  %v21339_v40 = vand.u32 4294901760, %v21338_v11 }
 0x3f0   : > { %13083 = vmatpush1.bf16.msra.mxu0 %v13082_v34  ;;  %v17032_v41 = vpack.c.bf16 %v21341_v61, %v21339_v40  ;;  %v20659_v34 = vand.u32 4294901760, %v16917_v17  ;;  %v20657_v61 = vand.u32 4294901760, %v16939_v62  ;;  %v17229_v17 = vld [vmem:[#allocation3 + $0x290] sm:$0xff] }
 0x3f1   : > { %13084 = vmatprep.subr.bf16.mxu0 %v21173_v53  ;;  %12642 = vmatpush1.bf16.msra.mxu1 %v21273_v47  ;;  %v20656_v47 = vand.u32 4294901760, %v16922_v22 }
 0x3f2   : > { %12643 = vmatprep.subr.bf16.mxu1 %v21173_v53  ;;  %v13094_v60 = vpack.c.bf16 %v20657_v61, %v20658_v57  ;;  %v20669_v57 = vand.u32 4294901760, %v16964_v36  ;;  %v21393_v36 = vld [vmem:[#allocation22_spill] sm:$0xff] }
 0x3f3   : > { %v21394_v32 = vand.u32 4294901760, %v21393_v36 }
 0x3f4   : > { %13086 = vmatpush1.bf16.msra.mxu0 %v13085_v58  ;;  %4699 = vmatmul.mubr.f32.vlgmr.msra.gmra.mrb[10].mxu1 %v16264_v4  ;;  %v21344_v58 = vld [vmem:[#allocation18_spill] sm:$0xff]  ;;  %v13091_v4 = vpack.c.bf16 %v20656_v47, %v20659_v34  ;;  %v20668_v34 = vand.u32 4294901760, %v16969_v43 }
 0x3f5   : > { %13087 = vmatprep.subr.bf16.mxu0 %v21173_v53  ;;  %12645 = vmatpush1.bf16.msra.mxu1 %v17032_v41  ;;  %v21345_v11 = vand.u32 4294901760, %v21344_v58 }
 0x3f6   : > { %4797 = vmatprep.mubr.f32.mxu1 %v4796_v56  ;;  %12646 = vmatprep.subr.bf16.mxu1 %v21173_v53  ;;  %v21347_v56 = vand.u32 4294901760, %v21346_v20  ;;  %v21350_v20 = vld [vmem:[#allocation28_spill] sm:$0xff] }
 0x3f7   : > { %v17049_v40 = vpack.c.bf16 %v21345_v11, %v21343_v48  ;;  %v21349_v48 = vand.u32 4294901760, %v21348_v50  ;;  %v20662_v11 = vand.u32 4294901760, %v16949_v18  ;;  %v21352_v50 = vld [vmem:[#allocation29_spill] sm:$0xff] }
 0x3f8   : > { %13089 = vmatpush1.bf16.msra.mxu0 %v13088_v12  ;;  %v17067_v12 = vand.u32 4294901760, %v6864_v55 }
 0x3f9   : > { %13090 = vmatprep.subr.bf16.mxu0 %v21173_v53  ;;  %12648 = vmatpush1.bf16.msra.mxu1 %v17049_v40  ;;  %v17065_v58 = vpack.c.bf16 %v21349_v48, %v21347_v56  ;;  %v21351_v56 = vand.u32 4294901760, %v21350_v20  ;;  %v21353_v48 = vand.u32 4294901760, %v21352_v50  ;;  %v13097_v61 = vpack.c.bf16 %v20661_v45, %v20662_v11  ;;  %v17095_v20 = vld [vmem:[#allocation3 + $0x240] sm:$0xff] }
 0x3fa   : > { %12649 = vmatprep.subr.bf16.mxu1 %v21173_v53  ;;  %v13100_v11 = vpack.c.bf16 %v20668_v34, %v20669_v57  ;;  %v20677_v52 = vand.u32 4294901760, %v17095_v20 }
 0x3fb   : > { %v17082_v47 = vpack.c.bf16 %v21353_v48, %v21351_v56  ;;  %v17097_v56 = vld [vmem:[#allocation3 + $0x248] sm:$0xff] }
 0x3fc   : > { %13092 = vmatpush1.bf16.msra.mxu0 %v13091_v4  ;;  %v17085_v4 = vsub.f32 %v6864_v55, %v17067_v12  ;;  %v21355_v55 = vld [vmem:[#allocation32_spill] sm:$0xff]  ;;  %v20676_v24 = vand.u32 4294901760, %v17097_v56 }
 0x3fd   : > { %13093 = vmatprep.subr.bf16.mxu0 %v21173_v53  ;;  %12651 = vmatpush1.bf16.msra.mxu1 %v17065_v58  ;;  %21354 = vst [vmem:[#allocation60_spill] sm:$0xff] %v17082_v47  ;;  %v21356_v50 = vand.u32 4294901760, %v21355_v55  ;;  %v17115_v55 = vld [vmem:[#allocation3 + $0x250] sm:$0xff] }
 0x3fe   : > { %12652 = vmatprep.subr.bf16.mxu1 %v21173_v53  ;;  %v20671_v45 = vand.u32 4294901760, %v17085_v4  ;;  %v17136_v38 = vpack.c.bf16 %v20676_v24, %v20677_v52  ;;  %v21372_v24 = vld [vmem:[#allocation62_spill] sm:$0xff] }
 0x3ff   : > { %v17155_v52 = vsub.f32 %v14442_v16, %v21372_v24  ;;  %v21374_v16 = vld [vmem:[#allocation19_spill] sm:$0xff] }
 0x400   : > { %13095 = vmatpush1.bf16.msra.mxu0 %v13094_v60  ;;  %v21357_v60 = vld [vmem:[#allocation33_spill] sm:$0xff]  ;;  %v6954_v34 = vsub.f32 %v17085_v4, %v20671_v45  ;;  %21366 = vst [vmem:[#allocation18_spill] sm:$0xff] %v17136_v38  ;;  %v21375_v26 = vand.u32 4294901760, %v21374_v16 }
 0x401   : > { %13096 = vmatprep.subr.bf16.mxu0 %v21173_v53  ;;  %12654 = vmatpush1.bf16.msra.mxu1 %v17082_v47  ;;  %v21358_v48 = vand.u32 4294901760, %v21357_v60  ;;  %v21395_v18 = vand.u32 4294901760, %v17155_v52 }
 0x402   : > { %12655 = vmatprep.subr.bf16.mxu1 %v21173_v53 }
 0x403   : > { %v17104_v59 = vpack.c.bf16 %v21358_v48, %v21356_v50  ;;  %v17117_v50 = vld [vmem:[#allocation3 + $0x258] sm:$0xff]  ;;  %v4801_v62 = vsub.f32 %v17155_v52, %v21395_v18 }
 0x404   : > { %13098 = vmatpush1.bf16.msra.mxu0 %v13097_v61  ;;  %v21361_v61 = vld [vmem:[#allocation36_spill] sm:$0xff]  ;;  %v20683_v7 = vand.u32 4294901760, %v17117_v50 }
 0x405   : > { %21359 = vst [vmem:[#allocation15_spill] sm:$0xff] %v17104_v59  ;;  %13099 = vmatprep.subr.bf16.mxu0 %v21173_v53  ;;  %12657 = vmatpush1.bf16.msra.mxu1 %v17104_v59  ;;  %v21362_v48 = vand.u32 4294901760, %v21361_v61  ;;  %v20684_v61 = vand.u32 4294901760, %v17115_v55  ;;  %v17231_v18 = vld [vmem:[#allocation3 + $0x298] sm:$0xff]  ;;  %v4802_v31 = vand.u32 4294901760, %v4801_v62  ;;  %v17253_v62 = vld [vmem:[#allocation3 + $0x2a8] sm:$0xff] }
 0x406   : > { %v17120_v60 = vpop.f32.mrb[6].mxu0  ;;  %12658 = vmatprep.subr.bf16.mxu1 %v21173_v53  ;;  %v21441_v59 = vand.u32 4294901760, %v17115_v55 }
 0x407   : > { %21360 = vst [vmem:[#allocation16_spill] sm:$0xff] %v17120_v60  ;;  %v17126_v44 = vpack.c.bf16 %v21364_v37, %v21362_v48  ;;  %v5298_v57 = vpop.f32.mrb[7].mxu0  ;;  %v17141_v37 = vld [vmem:[#allocation3 + $0x260] sm:$0xff]  ;;  %v17143_v48 = vld [vmem:[#allocation3 + $0x268] sm:$0xff] }
 0x408   : > { %13101 = vmatpush1.bf16.msra.mxu0 %v13100_v11  ;;  %v6955_v57 = vand.u32 4294901760, %v6954_v34  ;;  %v21367_v11 = vld [vmem:[#allocation40_spill] sm:$0xff]  ;;  %v17162_v34 = vpack.c.bf16 %v20683_v7, %v20684_v61  ;;  %v21378_v7 = vld [vmem:[#allocation42_spill] sm:$0xff]  ;;  %v21384_v33 = vand.u32 4294901760, %v17143_v48 }
 0x409   : > { %21365 = vst [vmem:[#allocation17_spill] sm:$0xff] %v17126_v44  ;;  %13129 = vmatprep.subr.bf16.mxu0 %v21173_v53  ;;  %12660 = vmatpush1.bf16.msra.mxu1 %v17126_v44  ;;  %v21368_v45 = vand.u32 4294901760, %v21367_v11  ;;  %v17169_v11 = vld [vmem:[#allocation3 + $0x278] sm:$0xff]  ;;  %v21379_v61 = vand.u32 4294901760, %v21378_v7 }
 0x40a   : > { %12661 = vmatprep.subr.bf16.mxu1 %v21173_v53  ;;  %21373 = vst [vmem:[#allocation25_spill] sm:$0xff] %v17162_v34 }
 0x40b   : > { %v17150_v19 = vpack.c.bf16 %v21370_v2, %v21368_v45  ;;  %6734 = vmatmul.mubr.f32.vlgmr.msra.gmra.mrb[18].mxu0 %v16772_v54  ;;  %v21380_v45 = vld [vmem:[#allocation43_spill] sm:$0xff] }
 0x40c   : > { %13131 = vmatpush1.bf16.msra.mxu0 %v17136_v38  ;;  %6956 = vmatprep.mubr.f32.mxu0 %v6955_v57  ;;  %v4812_v57 = vsub.f32 %v21374_v16, %v21375_v26  ;;  %v21376_v38 = vld [vmem:[#allocation20_spill] sm:$0xff]  ;;  %v21381_v2 = vand.u32 4294901760, %v21380_v45  ;;  %v21383_v26 = vand.u32 4294901760, %v17141_v37  ;;  %v21388_v54 = vld [vmem:[#allocation51_spill] sm:$0xff] }
 0x40d   : > { %21371 = vst [vmem:[#allocation24_spill] sm:$0xff] %v17150_v19  ;;  %13132 = vmatprep.subr.bf16.mxu0 %v21173_v53  ;;  %v21377_v60 = vand.u32 4294901760, %v21376_v38  ;;  %12663 = vmatpush1.bf16.msra.mxu1 %v17150_v19  ;;  %v21389_v43 = vand.u32 4294901760, %v21388_v54  ;;  %v21396_v54 = vand.u32 4294901760, %v17167_v25 }
 0x40e   : > { %v17182_v21 = vpack.c.bf16 %v21381_v2, %v21379_v61  ;;  %12664 = vmatprep.subr.bf16.mxu1 %v21173_v53  ;;  %v17191_v0 = vpack.c.bf16 %v21384_v33, %v21383_v26  ;;  %v4813_v61 = vand.u32 4294901760, %v4812_v57  ;;  %v17196_v2 = vld [vmem:[#allocation3 + $0x280] sm:$0xff]  ;;  %v6832_v57 = vld [vmem:[#allocation2 + $0x10] sm:$0xf] }
 0x40f   : > { %v4819_v8 = vsub.f32 %v21376_v38, %v21377_v60  ;;  %v21391_v26 = vld [vmem:[#allocation21_spill] sm:$0xff] }
 0x410   : > { %21382 = vst [vmem:[#allocation28_spill] sm:$0xff] %v17182_v21  ;;  %13134 = vmatpush1.bf16.msra.mxu0 %v17162_v34  ;;  %21385 = vst [vmem:[#allocation29_spill] sm:$0xff] %v17191_v0  ;;  %v21387_v34 = vand.u32 4294901760, %v21386_v1  ;;  %v21392_v60 = vand.u32 4294901760, %v21391_v26 }
 0x411   : > { %13135 = vmatprep.subr.bf16.mxu0 %v21173_v53  ;;  %v4820_v45 = vand.u32 4294901760, %v4819_v8  ;;  %12666 = vmatpush1.bf16.msra.mxu1 %v17182_v21  ;;  %v4833_v8 = vsub.f32 %v21393_v36, %v21394_v32  ;;  %v21402_v32 = vand.u32 4294901760, %v21401_v9 }
 0x412   : > { %v17205_v33 = vpack.c.bf16 %v21389_v43, %v21387_v34  ;;  %v4826_v7 = vsub.f32 %v21391_v26, %v21392_v60  ;;  %12667 = vmatprep.subr.bf16.mxu1 %v21173_v53  ;;  %v21397_v43 = vand.u32 4294901760, %v17169_v11 }
 0x413   : > { %v17217_v1 = vpop.f32.mrb[0].mxu1  ;;  %v12671_v22 = vpack.c.bf16 %v4820_v45, %v4813_v61  ;;  %v4834_v10 = vand.u32 4294901760, %v4833_v8  ;;  %v21403_v61 = vand.u32 4294901760, %v17196_v2  ;;  %v21404_v45 = vand.u32 4294901760, %v17198_v13 }
 0x414   : > { %21390 = vst [vmem:[#allocation32_spill] sm:$0xff] %v17205_v33  ;;  %13137 = vmatpush1.bf16.msra.mxu0 %v17191_v0  ;;  %v17224_v34 = vpack.c.bf16 %v21397_v43, %v21396_v54  ;;  %v4120_v14 = vpop.f32.mrb[1].mxu1  ;;  %v6858_v0 = vrot.slane %v6832_v57, 4  ;;  %v4827_v30 = vand.u32 4294901760, %v4826_v7  ;;  %v21399_v54 = vld [vmem:[#allocation26_spill] sm:$0xff]  ;;  %v20742_v7 = vand.u32 4294901760, %v17229_v17 }
 0x415   : > { %13138 = vmatprep.subr.bf16.mxu0 %v21173_v53  ;;  %12669 = vmatpush1.bf16.msra.mxu1 %v17205_v33  ;;  %v21400_v43 = vand.u32 4294901760, %v21399_v54  ;;  %v4847_v14 = vsub.f32 %v21401_v9, %v21402_v32  ;;  %v17246_v57 = vpack.c.bf16 %v21404_v45, %v21403_v61  ;;  %v17251_v32 = vld [vmem:[#allocation3 + $0x2a0] sm:$0xff]  ;;  %v4861_v61 = vsub.f32 %v21408_v23, %v21409_v49 }
 0x416   : > { %21398 = vst [vmem:[#allocation33_spill] sm:$0xff] %v17224_v34  ;;  %12670 = vmatprep.subr.bf16.mxu1 %v21173_v53  ;;  %v12674_v45 = vpack.c.bf16 %v4834_v10, %v4827_v30 }
 0x417   : > { %v4840_v60 = vsub.f32 %v21399_v54, %v21400_v43  ;;  %21405 = vst [vmem:[#allocation36_spill] sm:$0xff] %v17246_v57  ;;  %v6857_v43 = vrot.slane %v6830_v39, 4  ;;  %v4862_v30 = vand.u32 4294901760, %v4861_v61  ;;  %v21418_v61 = vand.u32 4294901760, %v17253_v62 }
 0x418   : > { %13140 = vmatpush1.bf16.msra.mxu0 %v17224_v34  ;;  %4803 = vmatmul.mubr.f32.vlgmr.msra.gmra.mrb[12].mxu1 %v4802_v31  ;;  %v21407_v34 = vand.u32 4294901760, %v21406_v27  ;;  %v4848_v31 = vand.u32 4294901760, %v4847_v14 }
 0x419   : > { %13141 = vmatprep.subr.bf16.mxu0 %v21173_v53  ;;  %12672 = vmatpush1.bf16.msra.mxu1 %v12671_v22  ;;  %v4841_v39 = vand.u32 4294901760, %v4840_v60  ;;  %v6859_v8 = vsel %vm400_vm0, %v6857_v43, %v6858_v0  ;;  %v17274_v60 = vld [vmem:[#allocation3 + $0x2b0] sm:$0xff]  ;;  %v17276_v0 = vld [vmem:[#allocation3 + $0x2b8] sm:$0xff] }
 0x41a   : > { %v4854_v35 = vsub.f32 %v21406_v27, %v21407_v34  ;;  %4963 = vmatprep.mubr.f32.mxu1 %v21336_v42  ;;  %12673 = vmatprep.subr.bf16.mxu1 %v21173_v53  ;;  %v21410_v34 = vand.u32 4294901760, %v17231_v18  ;;  %v17278_v14 = vand.u32 4294901760, %v6859_v8  ;;  %v21429_v42 = vld [vmem:[#allocation46_spill] sm:$0xff] }
 0x41b   : > { %v12677_v43 = vpack.c.bf16 %v4848_v31, %v4841_v39  ;;  %v17297_v31 = vld [vmem:[#allocation3 + $0x2c0] sm:$0xff]  ;;  %v21423_v39 = vand.u32 4294901760, %v21422_v51 }
 0x41c   : > { %13143 = vmatpush1.bf16.msra.mxu0 %v17246_v57  ;;  %v17269_v28 = vpack.c.bf16 %v21410_v34, %v20742_v7  ;;  %v4855_v10 = vand.u32 4294901760, %v4854_v35  ;;  %21412 = vst [vmem:[#allocation40_spill] sm:$0xff] %v17278_v14  ;;  %v21413_v57 = vld [vmem:[#allocation34_spill] sm:$0xff]  ;;  %v21415_v7 = vld [vmem:[#allocation35_spill] sm:$0xff]  ;;  %v21417_v35 = vand.u32 4294901760, %v17251_v32 }
 0x41d   : > { %13144 = vmatprep.subr.bf16.mxu0 %v21173_v53  ;;  %12675 = vmatpush1.bf16.msra.mxu1 %v12674_v45  ;;  %v21414_v6 = vand.u32 4294901760, %v21413_v57  ;;  %v21416_v49 = vand.u32 4294901760, %v21415_v7  ;;  %v4889_v46 = vsub.f32 %v21422_v51, %v21423_v39 }
 0x41e   : > { %21411 = vst [vmem:[#allocation37_spill] sm:$0xff] %v17269_v28  ;;  %12676 = vmatprep.subr.bf16.mxu1 %v21173_v53  ;;  %v17292_v15 = vpack.c.bf16 %v21418_v61, %v21417_v35  ;;  %v21420_v35 = vld [vmem:[#allocation38_spill] sm:$0xff] }
 0x41f   : > { %v4868_v34 = vsub.f32 %v21413_v57, %v21414_v6  ;;  %v4875_v22 = vsub.f32 %v21415_v7, %v21416_v49  ;;  %v12680_v6 = vpack.c.bf16 %v4862_v30, %v4855_v10  ;;  %v17300_v49 = vsel %vm4020_vm5, %v6852_v3, 0 }
 0x420   : > { %13146 = vmatpush1.bf16.msra.mxu0 %v17269_v28  ;;  %21419 = vst [vmem:[#allocation41_spill] sm:$0xff] %v17292_v15  ;;  %v17303_v28 = vsub.f32 %v6859_v8, %v17278_v14  ;;  %v21421_v61 = vand.u32 4294901760, %v21420_v35  ;;  %v21424_v3 = vand.u32 4294901760, %v17274_v60  ;;  %v21425_v8 = vand.u32 4294901760, %v17276_v0  ;;  %v21439_v14 = vld [vmem:[#allocation50_spill] sm:$0xff] }
 0x421   : > { %13147 = vmatprep.subr.bf16.mxu0 %v21173_v53  ;;  %12678 = vmatpush1.bf16.msra.mxu1 %v12677_v43  ;;  %v4869_v5 = vand.u32 4294901760, %v4868_v34  ;;  %v4876_v63 = vand.u32 4294901760, %v4875_v22  ;;  %v21427_v34 = vld [vmem:[#allocation45_spill] sm:$0xff]  ;;  %v21431_v30 = vand.u32 4294901760, %v17095_v20  ;;  %v21432_v43 = vand.u32 4294901760, %v17097_v56 }
 0x422   : > { %v4882_v45 = vsub.f32 %v21420_v35, %v21421_v61  ;;  %12679 = vmatprep.subr.bf16.mxu1 %v21173_v53  ;;  %v17317_v10 = vpack.c.bf16 %v21425_v8, %v21424_v3  ;;  %v21428_v39 = vand.u32 4294901760, %v21427_v34  ;;  %v4890_v8 = vand.u32 4294901760, %v4889_v46 }
 0x423   : > { %v12683_v21 = vpack.c.bf16 %v4876_v63, %v4869_v5  ;;  %v17333_v22 = vsub.f32 %v17095_v20, %v21431_v30  ;;  %v17338_v19 = vsub.f32 %v17097_v56, %v21432_v43  ;;  %v21434_v5 = vand.u32 4294901760, %v17300_v49  ;;  %v21437_v43 = vld [vmem:[#allocation49_spill] sm:$0xff] }
 0x424   : > { %13149 = vmatpush1.bf16.msra.mxu0 %v17292_v15  ;;  %21426 = vst [vmem:[#allocation62_spill] sm:$0xff] %v17317_v10  ;;  %v4896_v61 = vsub.f32 %v21427_v34, %v21428_v39  ;;  %v21430_v15 = vand.u32 4294901760, %v21429_v42  ;;  %v4883_v3 = vand.u32 4294901760, %v4882_v45  ;;  %v21435_v46 = vand.u32 4294901760, %v17303_v28 }
 0x425   : > { %13150 = vmatprep.subr.bf16.mxu0 %v21173_v53  ;;  %12681 = vmatpush1.bf16.msra.mxu1 %v12680_v6  ;;  %v21438_v39 = vand.u32 4294901760, %v21437_v43  ;;  %v21440_v44 = vand.u32 4294901760, %v21439_v14 }
 0x426   : > { %v4903_v33 = vsub.f32 %v21429_v42, %v21430_v15  ;;  %12682 = vmatprep.subr.bf16.mxu1 %v21173_v53  ;;  %v21433_v15 = vand.u32 4294901760, %v17297_v31  ;;  %v6960_v20 = vsub.f32 %v17303_v28, %v21435_v46  ;;  %v4897_v45 = vand.u32 4294901760, %v4896_v61 }
 0x427   : > { %v12686_v56 = vpack.c.bf16 %v4890_v8, %v4883_v3  ;;  %v17363_v61 = vsub.f32 %v17115_v55, %v21441_v59  ;;  %v13184_v3 = vpack.c.bf16 %v17338_v19, %v17333_v22 }
 0x428   : > { %13152 = vmatpush1.bf16.msra.mxu0 %v17317_v10  ;;  %v17345_v63 = vpack.c.bf16 %v21434_v5, %v21433_v15  ;;  %v4904_v6 = vand.u32 4294901760, %v4903_v33  ;;  %v4910_v10 = vsub.f32 %v21437_v43, %v21438_v39  ;;  %v4917_v15 = vsub.f32 %v21439_v14, %v21440_v44 }
 0x429   : > { %13153 = vmatprep.subr.bf16.mxu0 %v21173_v53  ;;  %12684 = vmatpush1.bf16.msra.mxu1 %v12683_v21  ;;  %v21442_v21 = vand.u32 4294901760, %v17117_v50  ;;  %v6961_v8 = vand.u32 4294901760, %v6960_v20 }
 0x42a   : > { %v17351_v30 = vpop.f32.mrb[8].mxu0  ;;  %12685 = vmatprep.subr.bf16.mxu1 %v21173_v53  ;;  %v12689_v44 = vpack.c.bf16 %v4904_v6, %v4897_v45  ;;  %v4911_v46 = vand.u32 4294901760, %v4910_v10  ;;  %v4918_v39 = vand.u32 4294901760, %v4917_v15  ;;  %v21448_v45 = vand.u32 4294901760, %v17143_v48 }
 0x42b   : > { %21436 = vst [vmem:[#allocation19_spill] sm:$0xff] %v17351_v30  ;;  %v5525_v5 = vpop.f32.mrb[9].mxu0  ;;  %v17368_v33 = vsub.f32 %v17117_v50, %v21442_v21  ;;  %v21445_v30 = vld [vmem:[#allocation54_spill] sm:$0xff]  ;;  %v21447_v21 = vand.u32 4294901760, %v17141_v37 }
 0x42c   : > { %13155 = vmatpush1.bf16.msra.mxu0 %v17345_v63  ;;  %v21443_v5 = vld [vmem:[#allocation53_spill] sm:$0xff]  ;;  %v21446_v47 = vand.u32 4294901760, %v21445_v30  ;;  %v17389_v10 = vsub.f32 %v17143_v48, %v21448_v45  ;;  %v21450_v48 = vand.u32 4294901760, %v17169_v11 }
 0x42d   : > { %13183 = vmatprep.subr.bf16.mxu0 %v21173_v53  ;;  %12687 = vmatpush1.bf16.msra.mxu1 %v12686_v56  ;;  %v21444_v59 = vand.u32 4294901760, %v21443_v5  ;;  %v17384_v20 = vsub.f32 %v17141_v37, %v21447_v21  ;;  %v13187_v6 = vpack.c.bf16 %v17368_v33, %v17363_v61  ;;  %v21449_v37 = vand.u32 4294901760, %v17167_v25 }
 0x42e   : > { %v4931_v50 = vsub.f32 %v21445_v30, %v21446_v47  ;;  %12688 = vmatprep.subr.bf16.mxu1 %v21173_v53  ;;  %v12692_v47 = vpack.c.bf16 %v4918_v39, %v4911_v46  ;;  %v21451_v46 = vand.u32 4294901760, %v17196_v2  ;;  %v21452_v39 = vand.u32 4294901760, %v17198_v13 }
 0x42f   : > { %v4924_v55 = vsub.f32 %v21443_v5, %v21444_v59  ;;  %6962 = vmatmul.mubr.f32.vlgmr.msra.gmra.mrb[20].mxu0 %v6961_v8  ;;  %v17399_v8 = vsub.f32 %v17167_v25, %v21449_v37  ;;  %v13190_v59 = vpack.c.bf16 %v17389_v10, %v17384_v20 }
 0x430   : > { %13185 = vmatpush1.bf16.msra.mxu0 %v13184_v3  ;;  %7231 = vmatprep.mubr.f32.mxu0 %v17085_v4  ;;  %v4932_v15 = vand.u32 4294901760, %v4931_v50  ;;  %v17404_v3 = vsub.f32 %v17169_v11, %v21450_v48  ;;  %v17413_v25 = vsub.f32 %v17196_v2, %v21451_v46  ;;  %v17418_v11 = vsub.f32 %v17198_v13, %v21452_v39 }
 0x431   : > { %13186 = vmatprep.subr.bf16.mxu0 %v21173_v53  ;;  %12690 = vmatpush1.bf16.msra.mxu1 %v12689_v44  ;;  %v4925_v56 = vand.u32 4294901760, %v4924_v55  ;;  %v12698_v2 = vpack.c.bf16 %v21376_v38, %v21374_v16  ;;  %v21453_v13 = vand.u32 4294901760, %v17229_v17  ;;  %v21455_v38 = vand.u32 4294901760, %v17251_v32 }
 0x432   : > { %12691 = vmatprep.subr.bf16.mxu1 %v21173_v53  ;;  %v13193_v50 = vpack.c.bf16 %v17404_v3, %v17399_v8 }
 0x433   : > { %v12695_v44 = vpack.c.bf16 %v4932_v15, %v4925_v56  ;;  %v17450_v16 = vsub.f32 %v17251_v32, %v21455_v38  ;;  %v7026_v38 = vand.u32 4294901760, %v17413_v25 }
 0x434   : > { %13188 = vmatpush1.bf16.msra.mxu0 %v13187_v6  ;;  %v17432_v6 = vsub.f32 %v17229_v17, %v21453_v13  ;;  %v12701_v17 = vpack.c.bf16 %v21393_v36, %v21391_v26  ;;  %v12704_v36 = vpack.c.bf16 %v21401_v9, %v21399_v54  ;;  %v21457_v26 = vand.u32 4294901760, %v17274_v60 }
 0x435   : > { %13189 = vmatprep.subr.bf16.mxu0 %v21173_v53  ;;  %12693 = vmatpush1.bf16.msra.mxu1 %v12692_v47  ;;  %v21454_v47 = vand.u32 4294901760, %v17231_v18  ;;  %v12707_v9 = vpack.c.bf16 %v21408_v23, %v21406_v27  ;;  %v21459_v54 = vand.u32 4294901760, %v17297_v31  ;;  %v12710_v23 = vpack.c.bf16 %v21415_v7, %v21413_v57 }
 0x436   : > { %12694 = vmatprep.subr.bf16.mxu1 %v21173_v53  ;;  %v17466_v32 = vsub.f32 %v17274_v60, %v21457_v26  ;;  %v6984_v7 = vand.u32 4294901760, %v17363_v61  ;;  %v7005_v13 = vand.u32 4294901760, %v17389_v10 }
 0x437   : > { %v4280_v55 = vpop.f32.mrb[2].mxu1  ;;  %v17437_v56 = vsub.f32 %v17231_v18, %v21454_v47  ;;  %v21456_v18 = vand.u32 4294901760, %v17253_v62  ;;  %v17482_v60 = vsub.f32 %v17297_v31, %v21459_v54  ;;  %v6970_v31 = vand.u32 4294901760, %v17333_v22 }
 0x438   : > { %13191 = vmatpush1.bf16.msra.mxu0 %v13190_v59  ;;  %v17423_v21 = vadd.f32 %v4280_v55, %v17217_v1  ;;  %v4282_v45 = vpop.f32.mrb[3].mxu1  ;;  %v13196_v1 = vpack.c.bf16 %v17418_v11, %v17413_v25  ;;  %v12713_v55 = vpack.c.bf16 %v21422_v51, %v21420_v35  ;;  %v6998_v35 = vand.u32 4294901760, %v17384_v20 }
 0x439   : > { %13192 = vmatprep.subr.bf16.mxu0 %v21173_v53  ;;  %12696 = vmatpush1.bf16.msra.mxu1 %v12695_v44  ;;  %v17455_v15 = vsub.f32 %v17253_v62, %v21456_v18  ;;  %v13199_v37 = vpack.c.bf16 %v17437_v56, %v17432_v6  ;;  %v21458_v62 = vand.u32 4294901760, %v17276_v0  ;;  %v6991_v45 = vand.u32 4294901760, %v17368_v33 }
 0x43a   : > { %12697 = vmatprep.subr.bf16.mxu1 %v21173_v53  ;;  %v7012_v47 = vand.u32 4294901760, %v17399_v8  ;;  %v7033_v18 = vand.u32 4294901760, %v17418_v11  ;;  %v20782_v26 = vand.u32 4294901760, %v17437_v56  ;;  %v20779_v54 = vand.u32 4294901760, %v17466_v32 }
 0x43b   : > { %v17471_v48 = vsub.f32 %v17276_v0, %v21458_v62  ;;  %v13202_v59 = vpack.c.bf16 %v17455_v15, %v17450_v16  ;;  %v21460_v0 = vand.u32 4294901760, %v17300_v49  ;;  %v13241_v51 = vpack.c.bf16 %v6991_v45, %v6984_v7 }
 0x43c   : > { %13194 = vmatpush1.bf16.msra.mxu0 %v13193_v50  ;;  %4965 = vmatmul.mubr.f32.vlgmr.msra.gmra.mrb[14].mxu1 %v21372_v24 }
 0x43d   : > { %13195 = vmatprep.subr.bf16.mxu0 %v21173_v53  ;;  %12699 = vmatpush1.bf16.msra.mxu1 %v12698_v2  ;;  %v17487_v44 = vsub.f32 %v17300_v49, %v21460_v0  ;;  %v13205_v46 = vpack.c.bf16 %v17471_v48, %v17466_v32  ;;  %v6977_v49 = vand.u32 4294901760, %v17338_v19  ;;  %v12716_v2 = vpack.c.bf16 %v21429_v42, %v21427_v34 }
 0x43e   : > { %5072 = vmatprep.mubr.f32.mxu1 %v16995_v29  ;;  %12700 = vmatprep.subr.bf16.mxu1 %v21173_v53  ;;  %v12719_v42 = vpack.c.bf16 %v21439_v14, %v21437_v43  ;;  %v13244_v34 = vpack.c.bf16 %v7005_v13, %v6998_v35  ;;  %v20778_v0 = vand.u32 4294901760, %v17471_v48 }
 0x43f   : > { %v13208_v27 = vpack.c.bf16 %v17487_v44, %v17482_v60  ;;  %v13238_v57 = vpack.c.bf16 %v6977_v49, %v6970_v31 }
 0x440   : > { %13197 = vmatpush1.bf16.msra.mxu0 %v13196_v1  ;;  %v7019_v1 = vand.u32 4294901760, %v17404_v3 }
 0x441   : > { %13198 = vmatprep.subr.bf16.mxu0 %v21173_v53  ;;  %12702 = vmatpush1.bf16.msra.mxu1 %v12701_v17  ;;  %v12722_v17 = vpack.c.bf16 %v21445_v30, %v21443_v5  ;;  %v13250_v30 = vpack.c.bf16 %v7033_v18, %v7026_v38  ;;  %v20783_v5 = vand.u32 4294901760, %v17432_v6 }
 0x442   : > { %12703 = vmatprep.subr.bf16.mxu1 %v21173_v53  ;;  %v13247_v43 = vpack.c.bf16 %v7019_v1, %v7012_v47 }
 0x443   : > { %v13253_v62 = vpack.c.bf16 %v20782_v26, %v20783_v5 }
 0x444   : > { %13200 = vmatpush1.bf16.msra.mxu0 %v13199_v37 }
 0x445   : > { %13201 = vmatprep.subr.bf16.mxu0 %v21173_v53  ;;  %12705 = vmatpush1.bf16.msra.mxu1 %v12704_v36 }
 0x446   : > { %12706 = vmatprep.subr.bf16.mxu1 %v21173_v53 }
 0x448   : > { %13203 = vmatpush1.bf16.msra.mxu0 %v13202_v59  ;;  %v20781_v59 = vand.u32 4294901760, %v17450_v16 }
 0x449   : > { %13204 = vmatprep.subr.bf16.mxu0 %v21173_v53  ;;  %12708 = vmatpush1.bf16.msra.mxu1 %v12707_v9  ;;  %v20780_v9 = vand.u32 4294901760, %v17455_v15 }
 0x44a   : > { %12709 = vmatprep.subr.bf16.mxu1 %v21173_v53 }
 0x44c   : > { %13206 = vmatpush1.bf16.msra.mxu0 %v13205_v46  ;;  %v13259_v46 = vpack.c.bf16 %v20778_v0, %v20779_v54 }
 0x44d   : > { %13207 = vmatprep.subr.bf16.mxu0 %v21173_v53  ;;  %12711 = vmatpush1.bf16.msra.mxu1 %v12710_v23  ;;  %v20777_v23 = vand.u32 4294901760, %v17482_v60 }
 0x44e   : > { %v17500_v39 = vpop.f32.mrb[10].mxu0  ;;  %12712 = vmatprep.subr.bf16.mxu1 %v21173_v53 }
 0x44f   : > { %v5797_v50 = vpop.f32.mrb[11].mxu0 }
 0x450   : > { %13209 = vmatpush1.bf16.msra.mxu0 %v13208_v27  ;;  %v20776_v27 = vand.u32 4294901760, %v17487_v44 }
 0x451   : > { %13237 = vmatprep.subr.bf16.mxu0 %v21173_v53  ;;  %12714 = vmatpush1.bf16.msra.mxu1 %v12713_v55  ;;  %v21462_v55 = vld [vmem:[#allocation60_spill] sm:$0xff] }
 0x452   : > { %12715 = vmatprep.subr.bf16.mxu1 %v21173_v53  ;;  %v13262_v50 = vpack.c.bf16 %v20776_v27, %v20777_v23 }
 0x453   : > { %7234 = vmatmul.mubr.f32.vlgmr.msra.gmra.mrb[22].mxu0 %v17303_v28 }
 0x454   : > { %13239 = vmatpush1.bf16.msra.mxu0 %v13238_v57  ;;  %7452 = vmatprep.mubr.f32.mxu0 %v17067_v12  ;;  %v21463_v57 = vld [vmem:[#allocation15_spill] sm:$0xff] }
 0x455   : > { %13240 = vmatprep.subr.bf16.mxu0 %v21173_v53  ;;  %12717 = vmatpush1.bf16.msra.mxu1 %v12716_v2 }
 0x456   : > { %12718 = vmatprep.subr.bf16.mxu1 %v21173_v53 }
 0x458   : > { %13242 = vmatpush1.bf16.msra.mxu0 %v13241_v51 }
 0x459   : > { %13243 = vmatprep.subr.bf16.mxu0 %v21173_v53  ;;  %12720 = vmatpush1.bf16.msra.mxu1 %v12719_v42  ;;  %v21464_v42 = vld [vmem:[#allocation17_spill] sm:$0xff] }
 0x45a   : > { %12721 = vmatprep.subr.bf16.mxu1 %v21173_v53 }
 0x45b   : > { %v4390_v14 = vpop.f32.mrb[4].mxu1 }
 0x45c   : > { %13245 = vmatpush1.bf16.msra.mxu0 %v13244_v34  ;;  %v4391_v37 = vadd.f32 %v4390_v14, %v17423_v21  ;;  %v4392_v36 = vpop.f32.mrb[5].mxu1  ;;  %v21461_v21 = vand.u32 4294901760, %v16995_v29  ;;  %v13256_v29 = vpack.c.bf16 %v20780_v9, %v20781_v59  ;;  %v21465_v34 = vld [vmem:[#allocation40_spill] sm:$0xff] }
 0x45d   : > { %13246 = vmatprep.subr.bf16.mxu0 %v21173_v53  ;;  %12723 = vmatpush1.bf16.msra.mxu1 %v12722_v17  ;;  %v21466_v17 = vmov 0.0   ;;  %v21467_v14 = vld [vmem:[#allocation24_spill] sm:$0xff] }
 0x45e   : > { %12724 = vmatprep.subr.bf16.mxu1 %v21173_v53 }
 0x460   : > { %13248 = vmatpush1.bf16.msra.mxu0 %v13247_v43  ;;  %5075 = vmatmul.mubr.f32.vlgmr.msra.gmra.mrb[16].mxu1 %v17155_v52  ;;  %v21468_v43 = vld [vmem:[#allocation28_spill] sm:$0xff] }
 0x461   : > { %13249 = vmatprep.subr.bf16.mxu0 %v21173_v53  ;;  %12726 = vmatpush1.bf16.msra.mxu1 %v17032_v41 }
 0x462   : > { %5165 = vmatprep.mubr.f32.mxu1 %v21461_v21  ;;  %12727 = vmatprep.subr.bf16.mxu1 %v21173_v53 }
 0x464   : > { %13251 = vmatpush1.bf16.msra.mxu0 %v13250_v30 }
 0x465   : > { %13252 = vmatprep.subr.bf16.mxu0 %v21173_v53  ;;  %12729 = vmatpush1.bf16.msra.mxu1 %v17049_v40 }
 0x466   : > { %12730 = vmatprep.subr.bf16.mxu1 %v21173_v53 }
 0x468   : > { %13254 = vmatpush1.bf16.msra.mxu0 %v13253_v62  ;;  %v21469_v62 = vld [vmem:[#allocation32_spill] sm:$0xff] }
 0x469   : > { %13255 = vmatprep.subr.bf16.mxu0 %v21173_v53  ;;  %12732 = vmatpush1.bf16.msra.mxu1 %v17065_v58 }
 0x46a   : > { %12733 = vmatprep.subr.bf16.mxu1 %v21173_v53 }
 0x46c   : > { %13257 = vmatpush1.bf16.msra.mxu0 %v13256_v29  ;;  %v21470_v29 = vand.u32 4294901760, %v17155_v52 }
 0x46d   : > { %13258 = vmatprep.subr.bf16.mxu0 %v21173_v53  ;;  %12735 = vmatpush1.bf16.msra.mxu1 %v21462_v55 }
 0x46e   : > { %12736 = vmatprep.subr.bf16.mxu1 %v21173_v53 }
 0x470   : > { %13260 = vmatpush1.bf16.msra.mxu0 %v13259_v46  ;;  %v21471_v46 = vld [vmem:[#allocation61_spill] sm:$0xff] }
 0x471   : > { %13261 = vmatprep.subr.bf16.mxu0 %v21173_v53  ;;  %12738 = vmatpush1.bf16.msra.mxu1 %v21463_v57 }
 0x472   : > { %v17591_v2 = vpop.f32.mrb[12].mxu0  ;;  %12739 = vmatprep.subr.bf16.mxu1 %v21173_v53 }
 0x473   : > { %v6017_v51 = vpop.f32.mrb[13].mxu0 }
 0x474   : > { %13263 = vmatpush1.bf16.msra.mxu0 %v13262_v50  ;;  %v21474_v50 = vld [vmem:[#allocation76_spill] sm:$0xff] }
 0x475   : > { %12741 = vmatpush1.bf16.msra.mxu1 %v21464_v42  ;;  %v21475_v51 = vand.u32 4294901760, %v21474_v50 }
 0x476   : > { %12742 = vmatprep.subr.bf16.mxu1 %v21173_v53 }
 0x477   : > { %7454 = vmatmul.mubr.f32.vlgmr.msra.gmra.mrb[24].mxu0 %v21465_v34 }
 0x478   : > { %7693 = vmatprep.mubr.f32.mxu0 %v21466_v17 }
 0x479   : > { %12744 = vmatpush1.bf16.msra.mxu1 %v21467_v14 }
 0x47a   : > { %12745 = vmatprep.subr.bf16.mxu1 %v21173_v53 }
 0x47d   : > { %12747 = vmatpush1.bf16.msra.mxu1 %v21468_v43 }
 0x47e   : > { %12748 = vmatprep.subr.bf16.mxu1 %v21173_v53 }
 0x47f   : > { %v4484_v36 = vpop.f32.mrb[6].mxu1 }
 0x480   : > { %v4485_v30 = vadd.f32 %v4484_v36, %v4391_v37  ;;  %v4486_v21 = vpop.f32.mrb[7].mxu1 }
 0x481   : > { %12750 = vmatpush1.bf16.msra.mxu1 %v21469_v62  ;;  %v21476_v21 = vld [vmem:[#allocation78_spill] sm:$0xff] }
 0x482   : > { %12778 = vmatprep.subr.bf16.mxu1 %v21173_v53 }
 0x484   : > { %5169 = vmatmul.mubr.f32.vlgmr.msra.gmra.mrb[18].mxu1 %v21470_v29 }
 0x485   : > { %12780 = vmatpush1.bf16.msra.mxu1 %v17032_v41  ;;  %5383 = vmatprep.mubr.f32.mxu1 %v21471_v46  ;;  %v21478_v46 = vld [vmem:[#allocation79_spill] sm:$0xff] }
 0x486   : > { %12781 = vmatprep.subr.bf16.mxu1 %v21173_v53 }
 0x489   : > { %12783 = vmatpush1.bf16.msra.mxu1 %v17049_v40  ;;  %v21472_v40 = vld [vmem:[#allocation75_spill] sm:$0xff] }
 0x48a   : > { %12784 = vmatprep.subr.bf16.mxu1 %v21173_v53  ;;  %v21473_v37 = vand.u32 4294901760, %v21472_v40 }
 0x48d   : > { %12786 = vmatpush1.bf16.msra.mxu1 %v17065_v58  ;;  %v5531_v58 = vsub.f32 %v21472_v40, %v21473_v37 }
 0x48e   : > { %12787 = vmatprep.subr.bf16.mxu1 %v21173_v53 }
 0x491   : > { %12789 = vmatpush1.bf16.msra.mxu1 %v21462_v55  ;;  %v5538_v55 = vsub.f32 %v21474_v50, %v21475_v51 }
 0x492   : > { %12790 = vmatprep.subr.bf16.mxu1 %v21173_v53 }
 0x493   : > { %v5539_v36 = vand.u32 4294901760, %v5538_v55 }
 0x495   : > { %12792 = vmatpush1.bf16.msra.mxu1 %v21463_v57  ;;  %v5532_v57 = vand.u32 4294901760, %v5531_v58 }
 0x496   : > { %v17616_v52 = vpop.f32.mrb[14].mxu0  ;;  %12793 = vmatprep.subr.bf16.mxu1 %v21173_v53 }
 0x497   : > { %v6245_v41 = vpop.f32.mrb[15].mxu0  ;;  %v12833_v51 = vpack.c.bf16 %v5539_v36, %v5532_v57  ;;  %v21486_v36 = vld [vmem:[#allocation83_spill] sm:$0xff] }
 0x498   : > { %v21479_v41 = vand.u32 4294901760, %v21478_v46 }
 0x499   : > { %12795 = vmatpush1.bf16.msra.mxu1 %v21464_v42  ;;  %v21477_v42 = vand.u32 4294901760, %v21476_v21 }
 0x49a   : > { %12796 = vmatprep.subr.bf16.mxu1 %v21173_v53  ;;  %v5552_v40 = vsub.f32 %v21478_v46, %v21479_v41  ;;  %v21488_v41 = vld [vmem:[#allocation66_spill] sm:$0xff] }
 0x49b   : > { %v5545_v29 = vsub.f32 %v21476_v21, %v21477_v42  ;;  %v21482_v21 = vld [vmem:[#allocation81_spill] sm:$0xff] }
 0x49c   : > { %v5553_v55 = vand.u32 4294901760, %v5552_v40  ;;  %v21483_v42 = vand.u32 4294901760, %v21482_v21 }
 0x49d   : > { %12798 = vmatpush1.bf16.msra.mxu1 %v21467_v14  ;;  %v5546_v58 = vand.u32 4294901760, %v5545_v29 }
 0x49e   : > { %12799 = vmatprep.subr.bf16.mxu1 %v21173_v53  ;;  %v5566_v0 = vsub.f32 %v21482_v21, %v21483_v42  ;;  %v21489_v21 = vld [vmem:[#allocation84_spill] sm:$0xff] }
 0x49f   : > { %v21490_v42 = vand.u32 4294901760, %v21489_v21 }
 0x4a1   : > { %12801 = vmatpush1.bf16.msra.mxu1 %v21468_v43  ;;  %v21480_v43 = vld [vmem:[#allocation80_spill] sm:$0xff] }
 0x4a2   : > { %12802 = vmatprep.subr.bf16.mxu1 %v21173_v53  ;;  %v21481_v27 = vand.u32 4294901760, %v21480_v43 }
 0x4a3   : > { %v4610_v37 = vpop.f32.mrb[8].mxu1 }
 0x4a4   : > { %v17637_v50 = vadd.f32 %v4610_v37, %v4485_v30  ;;  %v4612_v14 = vpop.f32.mrb[9].mxu1  ;;  %v5559_v23 = vsub.f32 %v21480_v43, %v21481_v27  ;;  %v21484_v30 = vld [vmem:[#allocation82_spill] sm:$0xff]  ;;  %v12836_v27 = vpack.c.bf16 %v5553_v55, %v5546_v58  ;;  %v5567_v37 = vand.u32 4294901760, %v5566_v0 }
 0x4a5   : > { %12804 = vmatpush1.bf16.msra.mxu1 %v21469_v62  ;;  %v21485_v46 = vand.u32 4294901760, %v21484_v30  ;;  %v21487_v62 = vand.u32 4294901760, %v21486_v36  ;;  %v21493_v58 = vld [vmem:[#allocation86_spill] sm:$0xff] }
 0x4a6   : > { %12832 = vmatprep.subr.bf16.mxu1 %v21173_v53  ;;  %v5560_v40 = vand.u32 4294901760, %v5559_v23  ;;  %v21494_v55 = vand.u32 4294901760, %v21493_v58 }
 0x4a7   : > { %v5573_v57 = vsub.f32 %v21484_v30, %v21485_v46  ;;  %v5580_v29 = vsub.f32 %v21486_v36, %v21487_v62  ;;  %v5587_v30 = vsub.f32 %v21489_v21, %v21490_v42  ;;  %v21491_v46 = vld [vmem:[#allocation85_spill] sm:$0xff]  ;;  %v21495_v62 = vld [vmem:[#allocation87_spill] sm:$0xff] }
 0x4a8   : > { %5385 = vmatmul.mubr.f32.vlgmr.msra.gmra.mrb[20].mxu1 %v21372_v24  ;;  %v12839_v24 = vpack.c.bf16 %v5567_v37, %v5560_v40  ;;  %v21492_v54 = vand.u32 4294901760, %v21491_v46  ;;  %v21497_v40 = vld [vmem:[#allocation88_spill] sm:$0xff]  ;;  %v21499_v21 = vld [vmem:[#allocation89_spill] sm:$0xff] }
 0x4a9   : > { %12834 = vmatpush1.bf16.msra.mxu1 %v12833_v51  ;;  %5682 = vmatprep.mubr.f32.mxu1 %v21488_v41  ;;  %v5574_v14 = vand.u32 4294901760, %v5573_v57  ;;  %v5581_v43 = vand.u32 4294901760, %v5580_v29  ;;  %v5588_v23 = vand.u32 4294901760, %v5587_v30  ;;  %v5601_v57 = vsub.f32 %v21493_v58, %v21494_v55 }
 0x4aa   : > { %12835 = vmatprep.subr.bf16.mxu1 %v21173_v53  ;;  %v5594_v36 = vsub.f32 %v21491_v46, %v21492_v54  ;;  %v21496_v29 = vand.u32 4294901760, %v21495_v62  ;;  %v21498_v37 = vand.u32 4294901760, %v21497_v40  ;;  %v21500_v42 = vand.u32 4294901760, %v21499_v21 }
 0x4ab   : > { %v12842_v51 = vpack.c.bf16 %v5581_v43, %v5574_v14 }
 0x4ac   : > { %v5595_v0 = vand.u32 4294901760, %v5594_v36  ;;  %v5615_v54 = vsub.f32 %v21497_v40, %v21498_v37  ;;  %v5622_v14 = vsub.f32 %v21499_v21, %v21500_v42  ;;  %v21503_v37 = vld [vmem:[#allocation91_spill] sm:$0xff] }
 0x4ad   : > { %12837 = vmatpush1.bf16.msra.mxu1 %v12836_v27  ;;  %v5608_v27 = vsub.f32 %v21495_v62, %v21496_v29  ;;  %v21501_v62 = vld [vmem:[#allocation90_spill] sm:$0xff]  ;;  %v21504_v9 = vand.u32 4294901760, %v21503_v37 }
 0x4ae   : > { %12838 = vmatprep.subr.bf16.mxu1 %v21173_v53  ;;  %v12845_v43 = vpack.c.bf16 %v5595_v0, %v5588_v23  ;;  %v5616_v46 = vand.u32 4294901760, %v5615_v54  ;;  %v5623_v36 = vand.u32 4294901760, %v5622_v14  ;;  %v21502_v29 = vand.u32 4294901760, %v21501_v62  ;;  %v21507_v14 = vld [vmem:[#allocation93_spill] sm:$0xff] }
 0x4af   : > { %v5609_v30 = vand.u32 4294901760, %v5608_v27  ;;  %v5636_v21 = vsub.f32 %v21503_v37, %v21504_v9  ;;  %v21505_v27 = vld [vmem:[#allocation92_spill] sm:$0xff]  ;;  %v21510_v37 = vld [vmem:[#allocation63_spill] sm:$0xff] }
 0x4b0   : > { %v5629_v40 = vsub.f32 %v21501_v62, %v21502_v29  ;;  %v12851_v23 = vpack.c.bf16 %v5623_v36, %v5616_v46  ;;  %v21506_v54 = vand.u32 4294901760, %v21505_v27 }
 0x4b1   : > { %12840 = vmatpush1.bf16.msra.mxu1 %v12839_v24  ;;  %v5602_v24 = vand.u32 4294901760, %v5601_v57  ;;  %v5637_v57 = vand.u32 4294901760, %v5636_v21  ;;  %v21511_v21 = vld [vmem:[#allocation67_spill] sm:$0xff] }
 0x4b2   : > { %12841 = vmatprep.subr.bf16.mxu1 %v21173_v53  ;;  %v5630_v0 = vand.u32 4294901760, %v5629_v40  ;;  %v5643_v42 = vsub.f32 %v21505_v27, %v21506_v54  ;;  %v21509_v40 = vld [vmem:[#allocation71_spill] sm:$0xff] }
 0x4b3   : > { %v12848_v55 = vpack.c.bf16 %v5609_v30, %v5602_v24 }
 0x4b4   : > { %v12854_v30 = vpack.c.bf16 %v5637_v57, %v5630_v0  ;;  %v5644_v9 = vand.u32 4294901760, %v5643_v42  ;;  %v21514_v0 = vld [vmem:[#allocation65_spill] sm:$0xff]  ;;  %v21517_v42 = vld [vmem:[#allocation70_spill] sm:$0xff] }
 0x4b5   : > { %12843 = vmatpush1.bf16.msra.mxu1 %v12842_v51  ;;  %v21516_v57 = vld [vmem:[#allocation69_spill] sm:$0xff] }
 0x4b6   : > { %12844 = vmatprep.subr.bf16.mxu1 %v21173_v53 }
 0x4b9   : > { %12846 = vmatpush1.bf16.msra.mxu1 %v12845_v43  ;;  %v21508_v43 = vand.u32 4294901760, %v21507_v14 }
 0x4ba   : > { %v17677_v58 = vpop.f32.mrb[16].mxu0  ;;  %12847 = vmatprep.subr.bf16.mxu1 %v21173_v53 }
 0x4bb   : > { %v6517_v51 = vpop.f32.mrb[17].mxu0  ;;  %v5650_v24 = vsub.f32 %v21507_v14, %v21508_v43  ;;  %v21518_v14 = vld [vmem:[#allocation72_spill] sm:$0xff]  ;;  %v21519_v43 = vld [vmem:[#allocation74_spill] sm:$0xff] }
 0x4bc   : > { %v21512_v51 = vand.u32 4294901760, %v21511_v21 }
 0x4bd   : > { %12849 = vmatpush1.bf16.msra.mxu1 %v12848_v55  ;;  %v5651_v62 = vand.u32 4294901760, %v5650_v24 }
 0x4be   : > { %12850 = vmatprep.subr.bf16.mxu1 %v21173_v53 }
 0x4bf   : > { %v12857_v46 = vpack.c.bf16 %v5651_v62, %v5644_v9  ;;  %v21520_v62 = vld [vmem:[#allocation77_spill] sm:$0xff] }
 0x4c1   : > { %12852 = vmatpush1.bf16.msra.mxu1 %v12851_v23  ;;  %v21513_v23 = vld [vmem:[#allocation64_spill] sm:$0xff] }
 0x4c2   : > { %12853 = vmatprep.subr.bf16.mxu1 %v21173_v53 }
 0x4c5   : > { %12855 = vmatpush1.bf16.msra.mxu1 %v12854_v30 }
 0x4c6   : > { %12856 = vmatprep.subr.bf16.mxu1 %v21173_v53 }
 0x4c7   : > { %v4700_v36 = vpop.f32.mrb[10].mxu1 }
 0x4c8   : > { %v4701_v55 = vadd.f32 %v4700_v36, %v17637_v50  ;;  %v4702_v29 = vpop.f32.mrb[11].mxu1  ;;  %v21515_v50 = vld [vmem:[#allocation68_spill] sm:$0xff] }
 0x4c9   : > { %12858 = vmatpush1.bf16.msra.mxu1 %v12857_v46  ;;  %v21521_v46 = vld [vmem:[#allocation73_spill] sm:$0xff] }
 0x4ca   : > { %12886 = vmatprep.subr.bf16.mxu1 %v21173_v53  ;;  %v21522_v36 = vand.u32 4294901760, %v21521_v46 }
 0x4cc   : > { %5684 = vmatmul.mubr.f32.vlgmr.msra.gmra.mrb[22].mxu1 %v21509_v40 }
 0x4cd   : > { %12888 = vmatpush1.bf16.msra.mxu1 %v21510_v37  ;;  %5884 = vmatprep.mubr.f32.mxu1 %v21512_v51  ;;  %v21525_v51 = vld [vmem:[#allocation100_spill] sm:$0xff] }
 0x4ce   : > { %12889 = vmatprep.subr.bf16.mxu1 %v21173_v53 }
 0x4d1   : > { %12891 = vmatpush1.bf16.msra.mxu1 %v21513_v23 }
 0x4d2   : > { %12892 = vmatprep.subr.bf16.mxu1 %v21173_v53 }
 0x4d5   : > { %12894 = vmatpush1.bf16.msra.mxu1 %v21514_v0 }
 0x4d6   : > { %12895 = vmatprep.subr.bf16.mxu1 %v21173_v53 }
 0x4d9   : > { %12897 = vmatpush1.bf16.msra.mxu1 %v21515_v50 }
 0x4da   : > { %12898 = vmatprep.subr.bf16.mxu1 %v21173_v53 }
 0x4dd   : > { %12900 = vmatpush1.bf16.msra.mxu1 %v21516_v57 }
 0x4de   : > { %v17709_v27 = vpop.f32.mrb[18].mxu0  ;;  %12901 = vmatprep.subr.bf16.mxu1 %v21173_v53 }
 0x4df   : > { %v6737_v54 = vpop.f32.mrb[19].mxu0 }
 0x4e0   : > { %v21527_v54 = vld [vmem:[#allocation102_spill] sm:$0xff] }
 0x4e1   : > { %12903 = vmatpush1.bf16.msra.mxu1 %v21517_v42 }
 0x4e2   : > { %12904 = vmatprep.subr.bf16.mxu1 %v21173_v53 }
 0x4e5   : > { %12906 = vmatpush1.bf16.msra.mxu1 %v21518_v14 }
 0x4e6   : > { %12907 = vmatprep.subr.bf16.mxu1 %v21173_v53 }
 0x4e9   : > { %12909 = vmatpush1.bf16.msra.mxu1 %v21519_v43 }
 0x4ea   : > { %12910 = vmatprep.subr.bf16.mxu1 %v21173_v53 }
 0x4eb   : > { %v4804_v24 = vpop.f32.mrb[12].mxu1 }
 0x4ec   : > { %v4805_v30 = vadd.f32 %v4804_v24, %v4701_v55  ;;  %v4806_v9 = vpop.f32.mrb[13].mxu1 }
 0x4ed   : > { %12912 = vmatpush1.bf16.msra.mxu1 %v21520_v62  ;;  %v21529_v9 = vld [vmem:[#allocation103_spill] sm:$0xff] }
 0x4ee   : > { %12940 = vmatprep.subr.bf16.mxu1 %v21173_v53  ;;  %v21530_v46 = vand.u32 4294901760, %v21529_v9 }
 0x4f0   : > { %5888 = vmatmul.mubr.f32.vlgmr.msra.gmra.mrb[24].mxu1 %v21522_v36  ;;  %v6272_v36 = vsub.f32 %v21529_v9, %v21530_v46  ;;  %v21539_v46 = vld [vmem:[#allocation94_spill] sm:$0xff] }
 0x4f1   : > { %12942 = vmatpush1.bf16.msra.mxu1 %v21510_v37  ;;  %6102 = vmatprep.mubr.f32.mxu1 %v21488_v41  ;;  %v21523_v41 = vld [vmem:[#allocation99_spill] sm:$0xff] }
 0x4f2   : > { %12943 = vmatprep.subr.bf16.mxu1 %v21173_v53  ;;  %v21524_v37 = vand.u32 4294901760, %v21523_v41 }
 0x4f4   : > { %v6251_v21 = vsub.f32 %v21523_v41, %v21524_v37 }
 0x4f5   : > { %12945 = vmatpush1.bf16.msra.mxu1 %v21513_v23  ;;  %v21526_v23 = vand.u32 4294901760, %v21525_v51 }
 0x4f6   : > { %12946 = vmatprep.subr.bf16.mxu1 %v21173_v53 }
 0x4f9   : > { %12948 = vmatpush1.bf16.msra.mxu1 %v21514_v0  ;;  %v6258_v0 = vsub.f32 %v21525_v51, %v21526_v23  ;;  %v6273_v51 = vand.u32 4294901760, %v6272_v36 }
 0x4fa   : > { %12949 = vmatprep.subr.bf16.mxu1 %v21173_v53 }
 0x4fd   : > { %12951 = vmatpush1.bf16.msra.mxu1 %v21515_v50  ;;  %v6252_v50 = vand.u32 4294901760, %v6251_v21 }
 0x4fe   : > { %12952 = vmatprep.subr.bf16.mxu1 %v21173_v53 }
 0x501   : > { %12954 = vmatpush1.bf16.msra.mxu1 %v21516_v57  ;;  %v6259_v57 = vand.u32 4294901760, %v6258_v0 }
 0x502   : > { %v17732_v55 = vpop.f32.mrb[20].mxu0  ;;  %12955 = vmatprep.subr.bf16.mxu1 %v21173_v53 }
 0x503   : > { %v6965_v29 = vpop.f32.mrb[21].mxu0  ;;  %v12995_v37 = vpack.c.bf16 %v6259_v57, %v6252_v50  ;;  %v21537_v57 = vld [vmem:[#allocation107_spill] sm:$0xff] }
 0x505   : > { %12957 = vmatpush1.bf16.msra.mxu1 %v21517_v42  ;;  %v21528_v42 = vand.u32 4294901760, %v21527_v54 }
 0x506   : > { %12958 = vmatprep.subr.bf16.mxu1 %v21173_v53 }
 0x507   : > { %v6265_v24 = vsub.f32 %v21527_v54, %v21528_v42  ;;  %v21533_v54 = vld [vmem:[#allocation105_spill] sm:$0xff] }
 0x508   : > { %v21534_v42 = vand.u32 4294901760, %v21533_v54 }
 0x509   : > { %12960 = vmatpush1.bf16.msra.mxu1 %v21518_v14  ;;  %v6266_v21 = vand.u32 4294901760, %v6265_v24 }
 0x50a   : > { %12961 = vmatprep.subr.bf16.mxu1 %v21173_v53  ;;  %v6286_v59 = vsub.f32 %v21533_v54, %v21534_v42  ;;  %v21540_v54 = vld [vmem:[#allocation108_spill] sm:$0xff] }
 0x50b   : > { %v12998_v36 = vpack.c.bf16 %v6273_v51, %v6266_v21  ;;  %v21541_v42 = vand.u32 4294901760, %v21540_v54  ;;  %v21544_v51 = vld [vmem:[#allocation110_spill] sm:$0xff] }
 0x50d   : > { %12963 = vmatpush1.bf16.msra.mxu1 %v21519_v43  ;;  %v21531_v43 = vld [vmem:[#allocation104_spill] sm:$0xff] }
 0x50e   : > { %12964 = vmatprep.subr.bf16.mxu1 %v21173_v53  ;;  %v21532_v23 = vand.u32 4294901760, %v21531_v43 }
 0x50f   : > { %v4966_v29 = vpop.f32.mrb[14].mxu1 }
 0x510   : > { %v17753_v41 = vadd.f32 %v4966_v29, %v4805_v30  ;;  %v4968_v14 = vpop.f32.mrb[15].mxu1  ;;  %v6279_v0 = vsub.f32 %v21531_v43, %v21532_v23  ;;  %v21535_v30 = vld [vmem:[#allocation106_spill] sm:$0xff] }
 0x511   : > { %12966 = vmatpush1.bf16.msra.mxu1 %v21520_v62  ;;  %v21536_v9 = vand.u32 4294901760, %v21535_v30  ;;  %v21538_v62 = vand.u32 4294901760, %v21537_v57  ;;  %v6287_v14 = vand.u32 4294901760, %v6286_v59 }
 0x512   : > { %12994 = vmatprep.subr.bf16.mxu1 %v21173_v53  ;;  %v6280_v29 = vand.u32 4294901760, %v6279_v0  ;;  %v21545_v0 = vand.u32 4294901760, %v21544_v51 }
 0x513   : > { %v6293_v50 = vsub.f32 %v21535_v30, %v21536_v9  ;;  %v6300_v24 = vsub.f32 %v21537_v57, %v21538_v62  ;;  %v6307_v30 = vsub.f32 %v21540_v54, %v21541_v42  ;;  %v21542_v9 = vld [vmem:[#allocation109_spill] sm:$0xff]  ;;  %v21546_v62 = vld [vmem:[#allocation111_spill] sm:$0xff] }
 0x514   : > { %6104 = vmatmul.mubr.f32.vlgmr.msra.gmra.mrb[26].mxu1 %v21509_v40  ;;  %v13001_v40 = vpack.c.bf16 %v6287_v14, %v6280_v29  ;;  %v21543_v26 = vand.u32 4294901760, %v21542_v9  ;;  %v21548_v29 = vld [vmem:[#allocation112_spill] sm:$0xff]  ;;  %v21550_v54 = vld [vmem:[#allocation113_spill] sm:$0xff] }
 0x515   : > { %12996 = vmatpush1.bf16.msra.mxu1 %v12995_v37  ;;  %6402 = vmatprep.mubr.f32.mxu1 %v21539_v46  ;;  %v6294_v43 = vand.u32 4294901760, %v6293_v50  ;;  %v6301_v23 = vand.u32 4294901760, %v6300_v24  ;;  %v6308_v21 = vand.u32 4294901760, %v6307_v30  ;;  %v6321_v50 = vsub.f32 %v21544_v51, %v21545_v0 }
 0x516   : > { %12997 = vmatprep.subr.bf16.mxu1 %v21173_v53  ;;  %v6314_v57 = vsub.f32 %v21542_v9, %v21543_v26  ;;  %v21547_v24 = vand.u32 4294901760, %v21546_v62  ;;  %v21549_v14 = vand.u32 4294901760, %v21548_v29  ;;  %v21551_v42 = vand.u32 4294901760, %v21550_v54 }
 0x517   : > { %v13004_v37 = vpack.c.bf16 %v6301_v23, %v6294_v43 }
 0x518   : > { %v6315_v59 = vand.u32 4294901760, %v6314_v57  ;;  %v6335_v26 = vsub.f32 %v21548_v29, %v21549_v14  ;;  %v6342_v43 = vsub.f32 %v21550_v54, %v21551_v42  ;;  %v21554_v14 = vld [vmem:[#allocation115_spill] sm:$0xff] }
 0x519   : > { %12999 = vmatpush1.bf16.msra.mxu1 %v12998_v36  ;;  %v6328_v36 = vsub.f32 %v21546_v62, %v21547_v24  ;;  %v21552_v62 = vld [vmem:[#allocation114_spill] sm:$0xff]  ;;  %v21555_v5 = vand.u32 4294901760, %v21554_v14 }
 0x51a   : > { %13000 = vmatprep.subr.bf16.mxu1 %v21173_v53  ;;  %v13007_v23 = vpack.c.bf16 %v6315_v59, %v6308_v21  ;;  %v6336_v9 = vand.u32 4294901760, %v6335_v26  ;;  %v6343_v57 = vand.u32 4294901760, %v6342_v43  ;;  %v21553_v24 = vand.u32 4294901760, %v21552_v62  ;;  %v21558_v43 = vld [vmem:[#allocation117_spill] sm:$0xff] }
 0x51b   : > { %v6329_v30 = vand.u32 4294901760, %v6328_v36  ;;  %v6356_v54 = vsub.f32 %v21554_v14, %v21555_v5  ;;  %v21556_v36 = vld [vmem:[#allocation116_spill] sm:$0xff] }
 0x51c   : > { %v6349_v29 = vsub.f32 %v21552_v62, %v21553_v24  ;;  %v13013_v21 = vpack.c.bf16 %v6343_v57, %v6336_v9  ;;  %v21557_v26 = vand.u32 4294901760, %v21556_v36  ;;  %v21561_v14 = vld [vmem:[#allocation48_spill] sm:$0xff] }
 0x51d   : > { %13002 = vmatpush1.bf16.msra.mxu1 %v13001_v40  ;;  %v6322_v40 = vand.u32 4294901760, %v6321_v50  ;;  %v6357_v50 = vand.u32 4294901760, %v6356_v54  ;;  %v21562_v54 = vld [vmem:[#allocation44_spill] sm:$0xff] }
 0x51e   : > { %13003 = vmatprep.subr.bf16.mxu1 %v21173_v53  ;;  %v6350_v59 = vand.u32 4294901760, %v6349_v29  ;;  %v6363_v42 = vsub.f32 %v21556_v36, %v21557_v26  ;;  %v21560_v29 = vld [vmem:[#allocation95_spill] sm:$0xff] }
 0x51f   : > { %v13010_v0 = vpack.c.bf16 %v6329_v30, %v6322_v40 }
 0x520   : > { %v13016_v30 = vpack.c.bf16 %v6357_v50, %v6350_v59  ;;  %v6364_v5 = vand.u32 4294901760, %v6363_v42  ;;  %v21565_v59 = vld [vmem:[#allocation55_spill] sm:$0xff]  ;;  %v21567_v50 = vld [vmem:[#allocation57_spill] sm:$0xff]  ;;  %v21568_v42 = vld [vmem:[#allocation58_spill] sm:$0xff] }
 0x521   : > { %13005 = vmatpush1.bf16.msra.mxu1 %v13004_v37 }
 0x522   : > { %13006 = vmatprep.subr.bf16.mxu1 %v21173_v53 }
 0x525   : > { %13008 = vmatpush1.bf16.msra.mxu1 %v13007_v23  ;;  %v21559_v23 = vand.u32 4294901760, %v21558_v43 }
 0x526   : > { %v17793_v51 = vpop.f32.mrb[22].mxu0  ;;  %13009 = vmatprep.subr.bf16.mxu1 %v21173_v53 }
 0x527   : > { %v7237_v37 = vpop.f32.mrb[23].mxu0  ;;  %v6370_v40 = vsub.f32 %v21558_v43, %v21559_v23  ;;  %v21569_v43 = vld [vmem:[#allocation96_spill] sm:$0xff]  ;;  %v21570_v23 = vld [vmem:[#allocation98_spill] sm:$0xff] }
 0x528   : > { %v21563_v37 = vand.u32 4294901760, %v21562_v54 }
 0x529   : > { %13011 = vmatpush1.bf16.msra.mxu1 %v13010_v0  ;;  %v6371_v62 = vand.u32 4294901760, %v6370_v40 }
 0x52a   : > { %13012 = vmatprep.subr.bf16.mxu1 %v21173_v53 }
 0x52b   : > { %v13019_v9 = vpack.c.bf16 %v6371_v62, %v6364_v5  ;;  %v21571_v62 = vld [vmem:[#allocation101_spill] sm:$0xff] }
 0x52d   : > { %13014 = vmatpush1.bf16.msra.mxu1 %v13013_v21  ;;  %v21564_v21 = vld [vmem:[#allocation52_spill] sm:$0xff] }
 0x52e   : > { %13015 = vmatprep.subr.bf16.mxu1 %v21173_v53 }
 0x531   : > { %13017 = vmatpush1.bf16.msra.mxu1 %v13016_v30 }
 0x532   : > { %13018 = vmatprep.subr.bf16.mxu1 %v21173_v53 }
 0x533   : > { %v5076_v57 = vpop.f32.mrb[16].mxu1 }
 0x534   : > { %v5077_v0 = vadd.f32 %v5076_v57, %v17753_v41  ;;  %v5078_v24 = vpop.f32.mrb[17].mxu1  ;;  %v21566_v41 = vld [vmem:[#allocation56_spill] sm:$0xff] }
 0x535   : > { %13020 = vmatpush1.bf16.msra.mxu1 %v13019_v9  ;;  %v21572_v9 = vld [vmem:[#allocation16_spill] sm:$0xff]  ;;  %v21573_v24 = vld [vmem:[#allocation97_spill] sm:$0xff] }
 0x536   : > { %13048 = vmatprep.subr.bf16.mxu1 %v21173_v53  ;;  %v21574_v54 = vand.u32 4294901760, %v21573_v24  ;;  %v21579_v24 = vand.u32 4294901760, %v17466_v32 }
 0x538   : > { %6404 = vmatmul.mubr.f32.vlgmr.msra.gmra.mrb[28].mxu1 %v21560_v29 }
 0x539   : > { %13050 = vmatpush1.bf16.msra.mxu1 %v21561_v14  ;;  %6604 = vmatprep.mubr.f32.mxu1 %v21563_v37 }
 0x53a   : > { %13051 = vmatprep.subr.bf16.mxu1 %v21173_v53 }
 0x53d   : > { %13053 = vmatpush1.bf16.msra.mxu1 %v21564_v21 }
 0x53e   : > { %13054 = vmatprep.subr.bf16.mxu1 %v21173_v53 }
 0x541   : > { %13056 = vmatpush1.bf16.msra.mxu1 %v21565_v59 }
 0x542   : > { %13057 = vmatprep.subr.bf16.mxu1 %v21173_v53 }
 0x545   : > { %13059 = vmatpush1.bf16.msra.mxu1 %v21566_v41 }
 0x546   : > { %13060 = vmatprep.subr.bf16.mxu1 %v21173_v53 }
 0x549   : > { %13062 = vmatpush1.bf16.msra.mxu1 %v21567_v50 }
 0x54a   : > { %v17825_v36 = vpop.f32.mrb[24].mxu0  ;;  %13063 = vmatprep.subr.bf16.mxu1 %v21173_v53 }
 0x54b   : > { %v7457_v26 = vpop.f32.mrb[25].mxu0 }
 0x54c   : > { %v6999_v26 = vsub.f32 %v17384_v20, %v6998_v35 }
 0x54d   : > { %13065 = vmatpush1.bf16.msra.mxu1 %v21568_v42 }
 0x54e   : > { %13066 = vmatprep.subr.bf16.mxu1 %v21173_v53 }
 0x551   : > { %13068 = vmatpush1.bf16.msra.mxu1 %v21569_v43 }
 0x552   : > { %13069 = vmatprep.subr.bf16.mxu1 %v21173_v53 }
 0x555   : > { %13071 = vmatpush1.bf16.msra.mxu1 %v21570_v23 }
 0x556   : > { %13072 = vmatprep.subr.bf16.mxu1 %v21173_v53 }
 0x557   : > { %v5170_v40 = vpop.f32.mrb[18].mxu1 }
 0x558   : > { %v5171_v30 = vadd.f32 %v5170_v40, %v5077_v0  ;;  %v5172_v5 = vpop.f32.mrb[19].mxu1  ;;  %v6978_v0 = vsub.f32 %v17338_v19, %v6977_v49  ;;  %v21576_v40 = vand.u32 4294901760, %v17437_v56 }
 0x559   : > { %13074 = vmatpush1.bf16.msra.mxu1 %v21571_v62 }
 0x55a   : > { %13102 = vmatprep.subr.bf16.mxu1 %v21173_v53  ;;  %v5297_v57 = vadd.f32 %v21572_v9, %v5171_v30  ;;  %v6979_v37 = vand.u32 4294901760, %v6978_v0  ;;  %v7048_v30 = vsub.f32 %v17437_v56, %v21576_v40 }
 0x55c   : > { %6608 = vmatmul.mubr.f32.vlgmr.msra.gmra.mrb[30].mxu1 %v21574_v54  ;;  %v7049_v9 = vand.u32 4294901760, %v7048_v30  ;;  %v7069_v54 = vsub.f32 %v17466_v32, %v21579_v24  ;;  %v8424_v24 = vld [vmem:[#allocation6 + $0xe0] sm:$0xff] }
 0x55d   : > { %13104 = vmatpush1.bf16.msra.mxu1 %v21561_v14  ;;  %6822 = vmatprep.mubr.f32.mxu1 %v21539_v46  ;;  %v6971_v46 = vsub.f32 %v17333_v22, %v6970_v31  ;;  %v6992_v22 = vsub.f32 %v17368_v33, %v6991_v45  ;;  %v7013_v33 = vsub.f32 %v17399_v8, %v7012_v47  ;;  %v7000_v45 = vand.u32 4294901760, %v6999_v26 }
 0x55e   : > { %13105 = vmatprep.subr.bf16.mxu1 %v21173_v53  ;;  %v7027_v8 = vsub.f32 %v17413_v25, %v7026_v38  ;;  %v21577_v25 = vand.u32 4294901760, %v17450_v16  ;;  %v21578_v38 = vand.u32 4294901760, %v17455_v15  ;;  %v7070_v0 = vand.u32 4294901760, %v7069_v54  ;;  %v8426_v54 = vld [vmem:[#allocation6 + $0xf0] sm:$0xff] }
 0x55f   : > { %v6972_v14 = vand.u32 4294901760, %v6971_v46 }
 0x561   : > { %13107 = vmatpush1.bf16.msra.mxu1 %v21564_v21  ;;  %v6985_v21 = vsub.f32 %v17363_v61, %v6984_v7  ;;  %v7006_v61 = vsub.f32 %v17389_v10, %v7005_v13  ;;  %v7020_v7 = vsub.f32 %v17404_v3, %v7019_v1  ;;  %v7014_v10 = vand.u32 4294901760, %v7013_v33 }
 0x562   : > { %13108 = vmatprep.subr.bf16.mxu1 %v21173_v53  ;;  %v7034_v3 = vsub.f32 %v17418_v11, %v7033_v18  ;;  %v7028_v1 = vand.u32 4294901760, %v7027_v8  ;;  %v7055_v11 = vsub.f32 %v17450_v16, %v21577_v25  ;;  %v7062_v18 = vsub.f32 %v17455_v15, %v21578_v38  ;;  %v7570_v38 = vld [vmem:[#allocation6 + $0x8] sm:$0xff] }
 0x563   : > { %v7007_v35 = vand.u32 4294901760, %v7006_v61  ;;  %v7021_v13 = vand.u32 4294901760, %v7020_v7  ;;  %v21580_v16 = vand.u32 4294901760, %v17471_v48  ;;  %v21584_v61 = vld [vmem:[#allocation18_spill] sm:$0xff]  ;;  %v21585_v33 = vand.u32 4294901760, %v17085_v4  ;;  %v21586_v7 = vld [vmem:[#allocation25_spill] sm:$0xff] }
 0x564   : > { %v21590_v4 = vld [vmem:[#allocation37_spill] sm:$0xff] }
 0x565   : > { %13110 = vmatpush1.bf16.msra.mxu1 %v21565_v59  ;;  %v13157_v59 = vpack.c.bf16 %v6979_v37, %v6972_v14  ;;  %v13166_v47 = vpack.c.bf16 %v7021_v13, %v7014_v10  ;;  %v7076_v46 = vsub.f32 %v17471_v48, %v21580_v16  ;;  %v21581_v37 = vand.u32 4294901760, %v17482_v60  ;;  %v21592_v10 = vld [vmem:[#allocation62_spill] sm:$0xff] }
 0x566   : > { %13111 = vmatprep.subr.bf16.mxu1 %v21173_v53 }
 0x567   : > { %v7077_v14 = vand.u32 4294901760, %v7076_v46 }
 0x569   : > { %13113 = vmatpush1.bf16.msra.mxu1 %v21566_v41  ;;  %v6986_v41 = vand.u32 4294901760, %v6985_v21  ;;  %v7083_v21 = vsub.f32 %v17482_v60, %v21581_v37  ;;  %v13178_v32 = vpack.c.bf16 %v7077_v14, %v7070_v0  ;;  %v7576_v0 = vld [vmem:[#allocation6 + $0x38] sm:$0xff]  ;;  %v7573_v14 = vld [vmem:[#allocation6 + $0x20] sm:$0xff]  ;;  %v7575_v37 = vld [vmem:[#allocation6 + $0x30] sm:$0xff] }
 0x56a   : > { %13114 = vmatprep.subr.bf16.mxu1 %v21173_v53 }
 0x56d   : > { %13116 = vmatpush1.bf16.msra.mxu1 %v21567_v50  ;;  %v6993_v50 = vand.u32 4294901760, %v6992_v22  ;;  %v21582_v22 = vand.u32 4294901760, %v17487_v44 }
 0x56e   : > { %13117 = vmatprep.subr.bf16.mxu1 %v21173_v53 }
 0x56f   : > { %v13160_v20 = vpack.c.bf16 %v6993_v50, %v6986_v41  ;;  %v21583_v50 = vld [vmem:[#allocation19_spill] sm:$0xff] }
 0x571   : > { %13119 = vmatpush1.bf16.msra.mxu1 %v21568_v42  ;;  %v7035_v42 = vand.u32 4294901760, %v7034_v3 }
 0x572   : > { %13120 = vmatprep.subr.bf16.mxu1 %v21173_v53 }
 0x573   : > { %v13169_v5 = vpack.c.bf16 %v7035_v42, %v7028_v1 }
 0x575   : > { %13122 = vmatpush1.bf16.msra.mxu1 %v21569_v43  ;;  %v21575_v43 = vand.u32 4294901760, %v17432_v6 }
 0x576   : > { %13123 = vmatprep.subr.bf16.mxu1 %v21173_v53 }
 0x579   : > { %13125 = vmatpush1.bf16.msra.mxu1 %v21570_v23  ;;  %v7041_v23 = vsub.f32 %v17432_v6, %v21575_v43  ;;  %v7056_v6 = vand.u32 4294901760, %v7055_v11 }
 0x57a   : > { %13126 = vmatprep.subr.bf16.mxu1 %v21173_v53 }
 0x57b   : > { %v5386_v31 = vpop.f32.mrb[20].mxu1 }
 0x57c   : > { %v17868_v19 = vadd.f32 %v5386_v31, %v5297_v57  ;;  %v5388_v49 = vpop.f32.mrb[21].mxu1  ;;  %v7063_v57 = vand.u32 4294901760, %v7062_v18  ;;  %v7090_v31 = vsub.f32 %v17487_v44, %v21582_v22  ;;  %v7569_v18 = vld [vmem:[#allocation6] sm:$0xff] }
 0x57d   : > { %13128 = vmatpush1.bf16.msra.mxu1 %v21571_v62  ;;  %v7042_v62 = vand.u32 4294901760, %v7041_v23  ;;  %v7084_v49 = vand.u32 4294901760, %v7083_v21 }
 0x57e   : > { %13156 = vmatprep.subr.bf16.mxu1 %v21173_v53  ;;  %v13175_v15 = vpack.c.bf16 %v7063_v57, %v7056_v6  ;;  %v7091_v48 = vand.u32 4294901760, %v7090_v31  ;;  %v8427_v6 = vld [vmem:[#allocation6 + $0xf8] sm:$0xff] }
 0x57f   : > { %v13172_v56 = vpack.c.bf16 %v7049_v9, %v7042_v62  ;;  %v7571_v62 = vld [vmem:[#allocation6 + $0x10] sm:$0xff]  ;;  %v8425_v9 = vld [vmem:[#allocation6 + $0xe8] sm:$0xff] }
 0x580   : > { %6824 = vmatmul.mubr.f32.vlgmr.msra.gmra.mrb[32].mxu1 %v21560_v29  ;;  %v13163_v29 = vpack.c.bf16 %v7007_v35, %v7000_v45  ;;  %v21588_v45 = vld [vmem:[#allocation33_spill] sm:$0xff]  ;;  %v7607_v57 = vand.u32 4294901760, %v7571_v62 }
 0x581   : > { %13158 = vmatpush1.bf16.msra.mxu1 %v13157_v59  ;;  %7122 = vmatprep.mubr.f32.mxu1 %v17067_v12  ;;  %v13181_v59 = vpack.c.bf16 %v7091_v48, %v7084_v49  ;;  %v21591_v35 = vld [vmem:[#allocation41_spill] sm:$0xff]  ;;  %v8429_v49 = vld [vmem:[#allocation6 + $0x108] sm:$0xff] }
 0x582   : > { %13159 = vmatprep.subr.bf16.mxu1 %v21173_v53  ;;  %v17987_v22 = vsub.f32 %v7571_v62, %v7607_v57 }
 0x585   : > { %13161 = vmatpush1.bf16.msra.mxu1 %v13160_v20  ;;  %v21587_v20 = vld [vmem:[#allocation29_spill] sm:$0xff] }
 0x586   : > { %13162 = vmatprep.subr.bf16.mxu1 %v21173_v53 }
 0x589   : > { %13164 = vmatpush1.bf16.msra.mxu1 %v13163_v29 }
 0x58a   : > { %13165 = vmatprep.subr.bf16.mxu1 %v21173_v53 }
 0x58d   : > { %13167 = vmatpush1.bf16.msra.mxu1 %v13166_v47  ;;  %v21593_v47 = vand.u32 4294901760, %v17303_v28 }
 0x58e   : > { %13168 = vmatprep.subr.bf16.mxu1 %v21173_v53 }
 0x591   : > { %13170 = vmatpush1.bf16.msra.mxu1 %v13169_v5 }
 0x592   : > { %13171 = vmatprep.subr.bf16.mxu1 %v21173_v53 }
 0x595   : > { %13173 = vmatpush1.bf16.msra.mxu1 %v13172_v56  ;;  %v8455_v56 = vand.u32 4294901760, %v8425_v9 }
 0x596   : > { %13174 = vmatprep.subr.bf16.mxu1 %v21173_v53 }
 0x599   : > { %13176 = vmatpush1.bf16.msra.mxu1 %v13175_v15 }
 0x59a   : > { %13177 = vmatprep.subr.bf16.mxu1 %v21173_v53 }
 0x59d   : > { %13179 = vmatpush1.bf16.msra.mxu1 %v13178_v32  ;;  %v17991_v32 = vsub.f32 %v8425_v9, %v8455_v56  ;;  %v8432_v9 = vld [vmem:[#allocation6 + $0x120] sm:$0xff] }
 0x59e   : > { %13180 = vmatprep.subr.bf16.mxu1 %v21173_v53 }
 0x59f   : > { %v5685_v41 = vpop.f32.mrb[22].mxu1 }
 0x5a0   : > { %v5686_v26 = vadd.f32 %v5685_v41, %v21583_v50  ;;  %v5687_v60 = vpop.f32.mrb[23].mxu1  ;;  %v8461_v41 = vand.u32 4294901760, %v8426_v54 }
 0x5a1   : > { %13182 = vmatpush1.bf16.msra.mxu1 %v13181_v59  ;;  %v8457_v59 = vand.u32 4294901760, %v8424_v24  ;;  %v7611_v60 = vand.u32 4294901760, %v7573_v14 }
 0x5a2   : > { %13210 = vmatprep.subr.bf16.mxu1 %v21173_v53  ;;  %v5796_v44 = vadd.f32 %v17500_v39, %v5686_v26  ;;  %v21589_v39 = vld [vmem:[#allocation36_spill] sm:$0xff]  ;;  %v7613_v26 = vand.u32 4294901760, %v7576_v0 }
 0x5a4   : > { %7124 = vmatmul.mubr.f32.vlgmr.msra.gmra.mrb[34].mxu1 %v21465_v34 }
 0x5a5   : > { %13212 = vmatpush1.bf16.msra.mxu1 %v21584_v61  ;;  %7324 = vmatprep.mubr.f32.mxu1 %v21585_v33  ;;  %v8463_v33 = vand.u32 4294901760, %v8429_v49 }
 0x5a6   : > { %13213 = vmatprep.subr.bf16.mxu1 %v21173_v53 }
 0x5a9   : > { %13215 = vmatpush1.bf16.msra.mxu1 %v21586_v7 }
 0x5aa   : > { %13216 = vmatprep.subr.bf16.mxu1 %v21173_v53 }
 0x5ad   : > { %13218 = vmatpush1.bf16.msra.mxu1 %v21587_v20 }
 0x5ae   : > { %13219 = vmatprep.subr.bf16.mxu1 %v21173_v53 }
 0x5b1   : > { %13221 = vmatpush1.bf16.msra.mxu1 %v21588_v45 }
 0x5b2   : > { %13222 = vmatprep.subr.bf16.mxu1 %v21173_v53 }
 0x5b5   : > { %13224 = vmatpush1.bf16.msra.mxu1 %v21589_v39 }
 0x5b6   : > { %13225 = vmatprep.subr.bf16.mxu1 %v21173_v53 }
 0x5b9   : > { %13227 = vmatpush1.bf16.msra.mxu1 %v21590_v4 }
 0x5ba   : > { %13228 = vmatprep.subr.bf16.mxu1 %v21173_v53 }
 0x5bd   : > { %13230 = vmatpush1.bf16.msra.mxu1 %v21591_v35 }
 0x5be   : > { %13231 = vmatprep.subr.bf16.mxu1 %v21173_v53 }
 0x5c1   : > { %13233 = vmatpush1.bf16.msra.mxu1 %v21592_v10 }
 0x5c2   : > { %13234 = vmatprep.subr.bf16.mxu1 %v21173_v53 }
 0x5c3   : > { %v5889_v13 = vpop.f32.mrb[24].mxu1 }
 0x5c4   : > { %v5890_v29 = vadd.f32 %v5889_v13, %v5796_v44  ;;  %v5891_v8 = vpop.f32.mrb[25].mxu1  ;;  %v7615_v44 = vand.u32 4294901760, %v7575_v37  ;;  %v7578_v13 = vld [vmem:[#allocation6 + $0x48] sm:$0xff] }
 0x5c5   : > { %13236 = vmatpush1.bf16.msra.mxu1 %v17345_v63 }
 0x5c6   : > { %13264 = vmatprep.subr.bf16.mxu1 %v21173_v53  ;;  %v6016_v3 = vadd.f32 %v17591_v2, %v5890_v29 }
 0x5c8   : > { %7328 = vmatmul.mubr.f32.vlgmr.msra.gmra.mrb[36].mxu1 %v21593_v47  ;;  %v18008_v47 = vsub.f32 %v7576_v0, %v7613_v26 }
 0x5c9   : > { %13266 = vmatpush1.bf16.msra.mxu1 %v21584_v61  ;;  %7542 = vmatprep.mubr.f32.mxu1 %v17067_v12  ;;  %v8431_v61 = vld [vmem:[#allocation6 + $0x118] sm:$0xff] }
 0x5ca   : > { %13267 = vmatprep.subr.bf16.mxu1 %v21173_v53 }
 0x5cd   : > { %13269 = vmatpush1.bf16.msra.mxu1 %v21586_v7 }
 0x5ce   : > { %13270 = vmatprep.subr.bf16.mxu1 %v21173_v53 }
 0x5d1   : > { %13272 = vmatpush1.bf16.msra.mxu1 %v21587_v20  ;;  %v17998_v20 = vpack.c.bf16 %v8461_v41, %v8457_v59 }
 0x5d2   : > { %13273 = vmatprep.subr.bf16.mxu1 %v21173_v53 }
 0x5d3   : > { %21600 = vst [vmem:[#allocation22_spill] sm:$0xff] %v17998_v20 }
 0x5d5   : > { %13275 = vmatpush1.bf16.msra.mxu1 %v21588_v45  ;;  %v18000_v45 = vsub.f32 %v8424_v24, %v8457_v59  ;;  %v7582_v24 = vld [vmem:[#allocation6 + $0x68] sm:$0xff] }
 0x5d6   : > { %13276 = vmatprep.subr.bf16.mxu1 %v21173_v53 }
 0x5d7   : > { %21601 = vst [vmem:[#allocation26_spill] sm:$0xff] %v18000_v45 }
 0x5d9   : > { %13278 = vmatpush1.bf16.msra.mxu1 %v21589_v39  ;;  %v18002_v39 = vsub.f32 %v8426_v54, %v8461_v41  ;;  %v7584_v54 = vld [vmem:[#allocation6 + $0x78] sm:$0xff]  ;;  %v8473_v41 = vand.u32 4294901760, %v8432_v9 }
 0x5da   : > { %13279 = vmatprep.subr.bf16.mxu1 %v21173_v53 }
 0x5dd   : > { %13281 = vmatpush1.bf16.msra.mxu1 %v21590_v4 }
 0x5de   : > { %13282 = vmatprep.subr.bf16.mxu1 %v21173_v53 }
 0x5e1   : > { %13284 = vmatpush1.bf16.msra.mxu1 %v21591_v35  ;;  %v8428_v35 = vld [vmem:[#allocation6 + $0x100] sm:$0xff] }
 0x5e2   : > { %13285 = vmatprep.subr.bf16.mxu1 %v21173_v53 }
 0x5e5   : > { %13287 = vmatpush1.bf16.msra.mxu1 %v21592_v10  ;;  %v8430_v10 = vld [vmem:[#allocation6 + $0x110] sm:$0xff] }
 0x5e6   : > { %13288 = vmatprep.subr.bf16.mxu1 %v21173_v53 }
 0x5e7   : > { %v6105_v28 = vpop.f32.mrb[26].mxu1 }
 0x5e8   : > { %v6106_v12 = vadd.f32 %v6105_v28, %v6016_v3  ;;  %v6107_v2 = vpop.f32.mrb[27].mxu1  ;;  %v18010_v28 = vpack.c.bf16 %v7615_v44, %v7611_v60 }
 0x5e9   : > { %13290 = vmatpush1.bf16.msra.mxu1 %v17345_v63  ;;  %v7572_v63 = vld [vmem:[#allocation6 + $0x18] sm:$0xff]  ;;  %v7577_v2 = vld [vmem:[#allocation6 + $0x40] sm:$0xff] }
 0x5ea   : > { %v17970_v1 = vadd.f32 %v6106_v12, %v17868_v19  ;;  %v7601_v19 = vand.u32 4294901760, %v7570_v38  ;;  %v7605_v5 = vand.u32 4294901760, %v7572_v63  ;;  %21603 = vst [vmem:[#allocation30_spill] sm:$0xff] %v18010_v28  ;;  %v7580_v12 = vld [vmem:[#allocation6 + $0x58] sm:$0xff]  ;;  %v7619_v62 = vand.u32 4294901760, %v7577_v2 }
 0x5ec   : > { %7544 = vmatmul.mubr.f32.vlgmr.msra.gmra.mrb[38].mxu1 %v21465_v34  ;;  %v7603_v34 = vand.u32 4294901760, %v7569_v18  ;;  %v17977_v16 = vpack.c.bf16 %v7605_v5, %v7601_v19  ;;  %v17979_v46 = vsub.f32 %v7570_v38, %v7601_v19  ;;  %v7579_v38 = vld [vmem:[#allocation6 + $0x50] sm:$0xff] }
 0x5ed   : > { %8547 = vmatprep.mubr.f32.mxu1 %v21466_v17 }
 0x5ee   : > { %21594 = vst [vmem:[#allocation20_spill] sm:$0xff] %v17977_v16  ;;  %21595 = vst [vmem:[#allocation42_spill] sm:$0xff] %v17979_v46  ;;  %v17983_v15 = vsub.f32 %v7569_v18, %v7603_v34  ;;  %v17985_v21 = vpack.c.bf16 %v7607_v57, %v7603_v34  ;;  %13292 = vmatprep.subr.bf16.mxu0 %v17977_v16  ;;  %v8435_v34 = vld [vmem:[#allocation6 + $0x138] sm:$0xff] }
 0x5ef   : > { %v8475_v59 = vand.u32 4294901760, %v8435_v34  ;;  %v7596_v16 = vld [vmem:[#allocation6 + $0xd8] sm:$0xff] }
 0x5f0   : > { %21597 = vst [vmem:[#allocation47_spill] sm:$0xff] %v17985_v21  ;;  %13294 = vmatpush1.bf16.msra.mxu0 %v17985_v21  ;;  %v8445_v21 = vld [vmem:[#allocation6 + $0x188] sm:$0xff] }
 0x60b   : > { %v6405_v42 = vpop.f32.mrb[28].mxu1 }
 0x60c   : > { %v6406_v43 = vadd.f32 %v6405_v42, %v17616_v52  ;;  %v6407_v23 = vpop.f32.mrb[29].mxu1  ;;  %v8459_v52 = vand.u32 4294901760, %v8427_v6  ;;  %v18013_v42 = vsub.f32 %v7573_v14, %v7611_v60  ;;  %v7623_v14 = vand.u32 4294901760, %v7579_v38 }
 0x60d   : > { %v8467_v23 = vand.u32 4294901760, %v8431_v61 }
 0x60e   : > { %v6516_v40 = vadd.f32 %v17677_v58, %v6406_v43  ;;  %v7574_v58 = vld [vmem:[#allocation6 + $0x28] sm:$0xff]  ;;  %v17989_v31 = vpack.c.bf16 %v8459_v52, %v8455_v56  ;;  %v17994_v48 = vsub.f32 %v8427_v6, %v8459_v52  ;;  %v18015_v43 = vsub.f32 %v7575_v37, %v7615_v44  ;;  %v8434_v6 = vld [vmem:[#allocation6 + $0x130] sm:$0xff] }
 0x60f   : > { %v7609_v50 = vand.u32 4294901760, %v7574_v58  ;;  %v18024_v18 = vpack.c.bf16 %v8467_v23, %v8463_v33  ;;  %v18026_v19 = vsub.f32 %v8431_v61, %v8467_v23  ;;  %v18041_v37 = vsub.f32 %v7577_v2, %v7619_v62  ;;  %v8436_v2 = vld [vmem:[#allocation6 + $0x140] sm:$0xff]  ;;  %v8438_v23 = vld [vmem:[#allocation6 + $0x150] sm:$0xff] }
 0x610   : > { %21598 = vst [vmem:[#allocation51_spill] sm:$0xff] %v17989_v31  ;;  %21599 = vst [vmem:[#allocation21_spill] sm:$0xff] %v17994_v48  ;;  %13460 = vmatprep.subr.bf16.mxu1 %v17989_v31  ;;  %v18047_v60 = vsub.f32 %v7579_v38, %v7623_v14  ;;  %v7625_v44 = vand.u32 4294901760, %v7582_v24  ;;  %v7629_v61 = vand.u32 4294901760, %v7584_v54  ;;  %v7594_v31 = vld [vmem:[#allocation6 + $0xc8] sm:$0xff] }
 0x611   : > { %v18004_v4 = vsub.f32 %v7574_v58, %v7609_v50  ;;  %v18006_v3 = vpack.c.bf16 %v7613_v26, %v7609_v50  ;;  %13462 = vmatpush1.bf16.msra.mxu1 %v17998_v20  ;;  %21604 = vst [vmem:[#allocation31_spill] sm:$0xff] %v18024_v18  ;;  %21609 = vst [vmem:[#allocation45_spill] sm:$0xff] %v18041_v37  ;;  %v8477_v50 = vand.u32 4294901760, %v8434_v6 }
 0x612   : > { %13464 = vmatprep.subr.bf16.mxu1 %v18024_v18  ;;  %v18045_v26 = vpack.c.bf16 %v7623_v14, %v7619_v62  ;;  %21611 = vst [vmem:[#allocation49_spill] sm:$0xff] %v18047_v60  ;;  %v18064_v38 = vsub.f32 %v7582_v24, %v7625_v44 }
 0x613   : > { %21602 = vst [vmem:[#allocation27_spill] sm:$0xff] %v18006_v3  ;;  %13296 = vmatprep.subr.bf16.mxu0 %v18006_v3  ;;  %v7591_v3 = vld [vmem:[#allocation6 + $0xb0] sm:$0xff] }
 0x614   : > { %13298 = vmatpush1.bf16.msra.mxu0 %v18010_v28  ;;  %21610 = vst [vmem:[#allocation46_spill] sm:$0xff] %v18045_v26  ;;  %21617 = vst [vmem:[#allocation17_spill] sm:$0xff] %v18064_v38 }
 0x62f   : > { %v6609_v30 = vpop.f32.mrb[30].mxu1 }
 0x630   : > { %v6610_v53 = vadd.f32 %v6609_v30, %v6516_v40  ;;  %v6611_v25 = vpop.f32.mrb[31].mxu1  ;;  %v18017_v40 = vsub.f32 %v8429_v49, %v8463_v33  ;;  %v7581_v33 = vld [vmem:[#allocation6 + $0x60] sm:$0xff] }
 0x631   : > { %v8469_v25 = vand.u32 4294901760, %v8430_v10 }
 0x632   : > { %v6736_v11 = vadd.f32 %v17709_v27, %v6610_v53  ;;  %v17981_v27 = vsub.f32 %v7572_v63, %v7605_v5  ;;  %v8465_v53 = vand.u32 4294901760, %v8428_v35  ;;  %v8433_v63 = vld [vmem:[#allocation6 + $0x128] sm:$0xff]  ;;  %v7621_v5 = vand.u32 4294901760, %v7580_v12 }
 0x633   : > { %v18032_v56 = vsub.f32 %v8430_v10, %v8469_v25  ;;  %v8471_v49 = vand.u32 4294901760, %v8433_v63 }
 0x634   : > { %21596 = vst [vmem:[#allocation43_spill] sm:$0xff] %v17981_v27  ;;  %v18030_v57 = vsub.f32 %v8428_v35, %v8465_v53  ;;  %v18039_v0 = vsub.f32 %v7580_v12, %v7621_v5  ;;  %v8437_v35 = vld [vmem:[#allocation6 + $0x148] sm:$0xff]  ;;  %v8439_v12 = vld [vmem:[#allocation6 + $0x158] sm:$0xff] }
 0x635   : > { %21607 = vst [vmem:[#allocation38_spill] sm:$0xff] %v18032_v56  ;;  %v18049_v10 = vpack.c.bf16 %v8475_v59, %v8471_v49  ;;  %v8483_v14 = vand.u32 4294901760, %v8439_v12 }
 0x636   : > { %21606 = vst [vmem:[#allocation35_spill] sm:$0xff] %v18030_v57 }
 0x637   : > { %21612 = vst [vmem:[#allocation50_spill] sm:$0xff] %v18049_v10 }
 0x653   : > { %v6825_v7 = vpop.f32.mrb[32].mxu1 }
 0x654   : > { %v6826_v29 = vadd.f32 %v6825_v7, %v6736_v11  ;;  %v6827_v8 = vpop.f32.mrb[33].mxu1  ;;  %v7617_v11 = vand.u32 4294901760, %v7578_v13  ;;  %v7583_v7 = vld [vmem:[#allocation6 + $0x70] sm:$0xff] }
 0x655   : > { %v18055_v8 = vpack.c.bf16 %v8477_v50, %v8473_v41  ;;  %v7631_v62 = vand.u32 4294901760, %v7583_v7 }
 0x656   : > { %v18020_v30 = vadd.f32 %v6826_v29, %v17970_v1  ;;  %v18028_v1 = vpack.c.bf16 %v8469_v25, %v8465_v53  ;;  %v18034_v52 = vsub.f32 %v7578_v13, %v7617_v11  ;;  %v18037_v58 = vpack.c.bf16 %v7621_v5, %v7617_v11 }
 0x657   : > { %v18051_v13 = vsub.f32 %v8433_v63, %v8471_v49  ;;  %v18053_v29 = vsub.f32 %v8435_v34, %v8475_v59  ;;  %21615 = vst [vmem:[#allocation60_spill] sm:$0xff] %v18055_v8  ;;  %v18058_v53 = vsub.f32 %v8432_v9, %v8473_v41  ;;  %v18060_v25 = vsub.f32 %v8434_v6, %v8477_v50 }
 0x658   : > { %21605 = vst [vmem:[#allocation34_spill] sm:$0xff] %v18028_v1  ;;  %21608 = vst [vmem:[#allocation39_spill] sm:$0xff] %v18037_v58  ;;  %13466 = vmatpush1.bf16.msra.mxu1 %v18028_v1  ;;  %13300 = vmatprep.subr.bf16.mxu0 %v18037_v58  ;;  %v18062_v11 = vpack.c.bf16 %v7629_v61, %v7625_v44  ;;  %v18067_v63 = vsub.f32 %v7584_v54, %v7629_v61  ;;  %v7627_v5 = vand.u32 4294901760, %v7581_v33  ;;  %v7589_v1 = vld [vmem:[#allocation6 + $0xa0] sm:$0xff] }
 0x659   : > { %21613 = vst [vmem:[#allocation53_spill] sm:$0xff] %v18051_v13  ;;  %21614 = vst [vmem:[#allocation54_spill] sm:$0xff] %v18053_v29  ;;  %13302 = vmatpush1.bf16.msra.mxu0 %v18045_v26  ;;  %13468 = vmatprep.subr.bf16.mxu1 %v18049_v10  ;;  %v8479_v34 = vand.u32 4294901760, %v8437_v35  ;;  %v8481_v9 = vand.u32 4294901760, %v8436_v2  ;;  %v8485_v49 = vand.u32 4294901760, %v8438_v23  ;;  %v18075_v24 = vsub.f32 %v7583_v7, %v7631_v62  ;;  %v7592_v10 = vld [vmem:[#allocation6 + $0xb8] sm:$0xff] }
 0x65a   : > { %21616 = vst [vmem:[#allocation15_spill] sm:$0xff] %v18062_v11  ;;  %21618 = vst [vmem:[#allocation40_spill] sm:$0xff] %v18067_v63  ;;  %13304 = vmatprep.subr.bf16.mxu0 %v18062_v11  ;;  %v18071_v6 = vpack.c.bf16 %v7631_v62, %v7627_v5  ;;  %v18073_v59 = vsub.f32 %v7581_v33, %v7627_v5  ;;  %v18081_v50 = vsub.f32 %v8439_v12, %v8483_v14 }
 0x65b   : > { %v18077_v41 = vsub.f32 %v8437_v35, %v8479_v34  ;;  %v18079_v54 = vpack.c.bf16 %v8483_v14, %v8479_v34  ;;  %v18083_v44 = vpack.c.bf16 %v8485_v49, %v8481_v9  ;;  %v18085_v61 = vsub.f32 %v8436_v2, %v8481_v9 }
 0x65c   : > { %13470 = vmatpush1.bf16.msra.mxu1 %v18055_v8  ;;  %21619 = vst [vmem:[#allocation24_spill] sm:$0xff] %v18071_v6  ;;  %v18088_v8 = vsub.f32 %v8438_v23, %v8485_v49  ;;  %v12026_v23 = vld [vmem:[%s20403_s4] ss:$0 sm:$0xff] }
 0x65d   : > { %21620 = vst [vmem:[#allocation28_spill] sm:$0xff] %v18079_v54  ;;  %21621 = vst [vmem:[#allocation32_spill] sm:$0xff] %v18083_v44  ;;  %13306 = vmatpush1.bf16.msra.mxu0 %v18071_v6  ;;  %13472 = vmatprep.subr.bf16.mxu1 %v18079_v54 }
 0x660   : > { %13474 = vmatpush1.bf16.msra.mxu1 %v18083_v44 }
 0x677   : > { %v7125_v33 = vpop.f32.mrb[34].mxu1 }
 0x678   : > { %v7126_v7 = vadd.f32 %v7125_v33, %v17732_v55  ;;  %v7127_v35 = vpop.f32.mrb[35].mxu1  ;;  %v7586_v55 = vld [vmem:[#allocation6 + $0x88] sm:$0xff]  ;;  %v7588_v33 = vld [vmem:[#allocation6 + $0x98] sm:$0xff] }
 0x679   : > { %v7585_v35 = vld [vmem:[#allocation6 + $0x80] sm:$0xff] }
 0x67a   : > { %v7236_v5 = vadd.f32 %v17793_v51, %v7126_v7  ;;  %v7590_v7 = vld [vmem:[#allocation6 + $0xa8] sm:$0xff] }
 0x69b   : > { %v7329_v12 = vpop.f32.mrb[36].mxu1 }
 0x69c   : > { %v7330_v62 = vadd.f32 %v7329_v12, %v7236_v5  ;;  %v7331_v34 = vpop.f32.mrb[37].mxu1  ;;  %v7633_v5 = vand.u32 4294901760, %v7586_v55  ;;  %v7587_v12 = vld [vmem:[#allocation6 + $0x90] sm:$0xff] }
 0x69d   : > { %v8443_v34 = vld [vmem:[#allocation6 + $0x178] sm:$0xff] }
 0x69e   : > { %v7456_v2 = vadd.f32 %v17825_v36, %v7330_v62  ;;  %v7637_v36 = vand.u32 4294901760, %v7588_v33  ;;  %v7635_v62 = vand.u32 4294901760, %v7585_v35  ;;  %v8491_v26 = vand.u32 4294901760, %v8443_v34 }
 0x6a0   : > { %v18107_v51 = vsub.f32 %v7585_v35, %v7635_v62 }
 0x6bf   : > { %v7545_v14 = vpop.f32.mrb[38].mxu1 }
 0x6c0   : > { %v7546_v9 = vadd.f32 %v7545_v14, %v7456_v2  ;;  %v7547_v6 = vpop.f32.mrb[39].mxu1  ;;  %v7639_v14 = vand.u32 4294901760, %v7587_v12 }
 0x6c1   : > { %v8441_v6 = vld [vmem:[#allocation6 + $0x168] sm:$0xff] }
 0x6c2   : > { %v7549_v49 = vadd.f32 %v7546_v9, %v18020_v30  ;;  %v8487_v11 = vand.u32 4294901760, %v8441_v6  ;;  %v8440_v30 = vld [vmem:[#allocation6 + $0x160] sm:$0xff]  ;;  %v8442_v9 = vld [vmem:[#allocation6 + $0x170] sm:$0xff]  ;;  %v18111_v28 = vpack.c.bf16 %v7639_v14, %v7635_v62  ;;  %v18113_v18 = vsub.f32 %v7587_v12, %v7639_v14 }
 0x6c3   : > { %v8489_v35 = vand.u32 4294901760, %v8440_v30  ;;  %v7643_v12 = vand.u32 4294901760, %v7589_v1  ;;  %v7647_v62 = vand.u32 4294901760, %v7591_v3  ;;  %v8444_v14 = vld [vmem:[#allocation6 + $0x180] sm:$0xff] }
 0x6c4   : > { %v7557_v44 = vadd.f32 %v12026_v23, %v7549_v49  ;;  %v18103_v23 = vsub.f32 %v7586_v55, %v7633_v5  ;;  %v18105_v49 = vsub.f32 %v7588_v33, %v7637_v36  ;;  %21624 = vst [vmem:[#allocation76_spill] sm:$0xff] %v18111_v28  ;;  %21625 = vst [vmem:[#allocation78_spill] sm:$0xff] %v18113_v18 }
 0x6c5   : > { %v18115_v20 = vpack.c.bf16 %v8491_v26, %v8487_v11  ;;  %v18118_v55 = vsub.f32 %v8441_v6, %v8487_v11  ;;  %v18120_v33 = vsub.f32 %v8443_v34, %v8491_v26  ;;  %v18127_v11 = vsub.f32 %v8440_v30, %v8489_v35  ;;  %v8446_v34 = vld [vmem:[#allocation6 + $0x190] sm:$0xff] }
 0x6c6   : > { %v7558_v54 = vmax.f32 %v7557_v44, 0.0  ;;  %v18101_v44 = vpack.c.bf16 %v7637_v36, %v7633_v5  ;;  %v8493_v5 = vand.u32 4294901760, %v8442_v9  ;;  %v7645_v36 = vand.u32 4294901760, %v7592_v10 }
 0x6c7   : > { %21626 = vst [vmem:[#allocation79_spill] sm:$0xff] %v18115_v20  ;;  %21627 = vst [vmem:[#allocation80_spill] sm:$0xff] %v18118_v55  ;;  %13476 = vmatprep.subr.bf16.mxu1 %v18115_v20  ;;  %v8495_v6 = vand.u32 4294901760, %v8445_v21  ;;  %v7593_v55 = vld [vmem:[#allocation6 + $0xc0] sm:$0xff]  ;;  %v7595_v20 = vld [vmem:[#allocation6 + $0xd0] sm:$0xff]  ;;  %v18140_v30 = vsub.f32 %v7589_v1, %v7643_v12 }
 0x6c8   : > { %v7561_v2 = vrot.slane %v7558_v54, 1  ;;  %21622 = vst [vmem:[#allocation61_spill] sm:$0xff] %v18101_v44  ;;  %13308 = vmatprep.subr.bf16.mxu0 %v18101_v44  ;;  %21628 = vst [vmem:[#allocation81_spill] sm:$0xff] %v18120_v33  ;;  %v18125_v44 = vpack.c.bf16 %v8493_v5, %v8489_v35  ;;  %v18129_v26 = vsub.f32 %v8442_v9, %v8493_v5  ;;  %v7655_v1 = vand.u32 4294901760, %v7595_v20 }
 0x6c9   : > { %13310 = vmatpush1.bf16.msra.mxu0 %v18111_v28  ;;  %21630 = vst [vmem:[#allocation83_spill] sm:$0xff] %v18127_v11  ;;  %v18137_v33 = vpack.c.bf16 %v7647_v62, %v7643_v12  ;;  %21636 = vst [vmem:[#allocation88_spill] sm:$0xff] %v18140_v30  ;;  %v18142_v9 = vsub.f32 %v7591_v3, %v7647_v62  ;;  %v18144_v5 = vsub.f32 %v8445_v21, %v8495_v6  ;;  %v8449_v12 = vld [vmem:[#allocation6 + $0x1a8] sm:$0xff]  ;;  %v8451_v3 = vld [vmem:[#allocation6 + $0x1b8] sm:$0xff] }
 0x6ca   : > { %v18109_v58 = vmax.f32 %v7558_v54, %v7561_v2  ;;  %v7641_v54 = vand.u32 4294901760, %v7590_v7  ;;  %v8447_v2 = vld [vmem:[#allocation6 + $0x198] sm:$0xff]  ;;  %21629 = vst [vmem:[#allocation82_spill] sm:$0xff] %v18125_v44  ;;  %21631 = vst [vmem:[#allocation66_spill] sm:$0xff] %v18129_v26  ;;  %13478 = vmatpush1.bf16.msra.mxu1 %v18125_v44  ;;  %v8497_v26 = vand.u32 4294901760, %v8444_v14  ;;  %v7651_v44 = vand.u32 4294901760, %v7593_v55 }
 0x6cb   : > { %21635 = vst [vmem:[#allocation87_spill] sm:$0xff] %v18137_v33  ;;  %21637 = vst [vmem:[#allocation89_spill] sm:$0xff] %v18142_v9  ;;  %v8499_v35 = vand.u32 4294901760, %v8447_v2  ;;  %v8448_v62 = vld [vmem:[#allocation6 + $0x1a0] sm:$0xff]  ;;  %v8450_v30 = vld [vmem:[#allocation6 + $0x1b0] sm:$0xff] }
 0x6cc   : > { %21623 = vst [vmem:[#allocation75_spill] sm:$0xff] %v18109_v58  ;;  %7565 = vrot.lane.b32.xlu0 %v18109_v58, %s14581_s29  ;;  %v18131_v17 = vpack.c.bf16 %v7645_v36, %v7641_v54  ;;  %v18133_v28 = vsub.f32 %v7590_v7, %v7641_v54  ;;  %v18135_v58 = vsub.f32 %v7592_v10, %v7645_v36  ;;  %21638 = vst [vmem:[#allocation90_spill] sm:$0xff] %v18144_v5  ;;  %s20357_s29 = scalar_lea.hbm %s20408_s9, %s12027_s23 }
 0x6cd   : > { %v8501_v7 = vand.u32 4294901760, %v8446_v34  ;;  %v7649_v54 = vand.u32 4294901760, %v7594_v31  ;;  %v7653_v10 = vand.u32 4294901760, %v7596_v16  ;;  %v18148_v36 = vpack.c.bf16 %v8499_v35, %v8495_v6 }
 0x6ce   : > { %21632 = vst [vmem:[#allocation84_spill] sm:$0xff] %v18131_v17  ;;  %21633 = vst [vmem:[#allocation85_spill] sm:$0xff] %v18133_v28  ;;  %13312 = vmatprep.subr.bf16.mxu0 %v18131_v17  ;;  %v18154_v21 = vsub.f32 %v8444_v14, %v8497_v26  ;;  %v18171_v14 = vsub.f32 %v7595_v20, %v7655_v1 }
 0x6cf   : > { %21634 = vst [vmem:[#allocation86_spill] sm:$0xff] %v18135_v58  ;;  %13314 = vmatpush1.bf16.msra.mxu0 %v18137_v33  ;;  %21639 = vst [vmem:[#allocation91_spill] sm:$0xff] %v18148_v36  ;;  %v18150_v58 = vsub.f32 %v8447_v2, %v8499_v35  ;;  %v18152_v9 = vpack.c.bf16 %v8501_v7, %v8497_v26  ;;  %v18156_v17 = vsub.f32 %v8446_v34, %v8501_v7 }
 0x6d0   : > { %21641 = vst [vmem:[#allocation93_spill] sm:$0xff] %v18154_v21  ;;  %v18158_v5 = vpack.c.bf16 %v7653_v10, %v7649_v54  ;;  %13480 = vmatprep.subr.bf16.mxu1 %v18148_v36  ;;  %v18161_v6 = vsub.f32 %v7594_v31, %v7649_v54  ;;  %v18163_v2 = vsub.f32 %v7596_v16, %v7653_v10  ;;  %21647 = vst [vmem:[#allocation68_spill] sm:$0xff] %v18171_v14 }
 0x6d1   : > { %21640 = vst [vmem:[#allocation92_spill] sm:$0xff] %v18152_v9  ;;  %21642 = vst [vmem:[#allocation71_spill] sm:$0xff] %v18156_v17  ;;  %v18165_v35 = vpack.c.bf16 %v7655_v1, %v7651_v44  ;;  %v18167_v33 = vsub.f32 %v7593_v55, %v7651_v44  ;;  %13482 = vmatpush1.bf16.msra.mxu1 %v18152_v9  ;;  %v8503_v26 = vand.u32 4294901760, %v8449_v12  ;;  %v8507_v34 = vand.u32 4294901760, %v8451_v3 }
 0x6d2   : > { %21643 = vst [vmem:[#allocation63_spill] sm:$0xff] %v18158_v5  ;;  %21644 = vst [vmem:[#allocation67_spill] sm:$0xff] %v18161_v6  ;;  %13316 = vmatprep.subr.bf16.mxu0 %v18158_v5  ;;  %v8505_v7 = vand.u32 4294901760, %v8448_v62  ;;  %v8509_v36 = vand.u32 4294901760, %v8450_v30  ;;  %v21648_v31 = vand.u32 4294901760, %v17979_v46  ;;  %v21649_v54 = vand.u32 4294901760, %v17981_v27 }
 0x6d3   : > { %21645 = vst [vmem:[#allocation64_spill] sm:$0xff] %v18165_v35  ;;  %21646 = vst [vmem:[#allocation65_spill] sm:$0xff] %v18167_v33  ;;  %13318 = vmatpush1.bf16.msra.mxu0 %v18165_v35  ;;  %v20849_v55 = vand.u32 4294901760, %v17983_v15  ;;  %v18181_v10 = vpack.c.bf16 %v8507_v34, %v8503_v26  ;;  %v18183_v20 = vsub.f32 %v8449_v12, %v8503_v26  ;;  %v20850_v12 = vand.u32 4294901760, %v17991_v32 }
 0x6d4   : > { %v7708_v16 = vsub.f32 %v17979_v46, %v21648_v31  ;;  %v7720_v44 = vsub.f32 %v17981_v27, %v21649_v54  ;;  %v18185_v1 = vsub.f32 %v8451_v3, %v8507_v34  ;;  %v18187_v9 = vsub.f32 %v8448_v62, %v8505_v7 }
 0x6d5   : > { %21650 = vst [vmem:[#allocation69_spill] sm:$0xff] %v18181_v10  ;;  %21651 = vst [vmem:[#allocation70_spill] sm:$0xff] %v18183_v20  ;;  %v18189_v35 = vpack.c.bf16 %v8509_v36, %v8505_v7  ;;  %v18191_v5 = vsub.f32 %v8450_v30, %v8509_v36  ;;  %13484 = vmatprep.subr.bf16.mxu1 %v18181_v10  ;;  %v7714_v54 = vsub.f32 %v17983_v15, %v20849_v55 }
 0x6d6   : > { %21652 = vst [vmem:[#allocation72_spill] sm:$0xff] %v18185_v1  ;;  %21653 = vst [vmem:[#allocation74_spill] sm:$0xff] %v18187_v9  ;;  %v7709_v14 = vand.u32 4294901760, %v7708_v16  ;;  %v7721_v31 = vand.u32 4294901760, %v7720_v44  ;;  %v20848_v27 = vand.u32 4294901760, %v17987_v22  ;;  %v20853_v3 = vand.u32 4294901760, %v17994_v48 }
 0x6d7   : > { %21654 = vst [vmem:[#allocation77_spill] sm:$0xff] %v18189_v35  ;;  %21655 = vst [vmem:[#allocation73_spill] sm:$0xff] %v18191_v5  ;;  %13486 = vmatpush1.bf16.msra.mxu1 %v18189_v35  ;;  %v20858_v30 = vand.u32 4294901760, %v18000_v45  ;;  %v20861_v36 = vand.u32 4294901760, %v18002_v39  ;;  %v20862_v26 = vand.u32 4294901760, %v18004_v4  ;;  %v7715_v34 = vand.u32 4294901760, %v7714_v54 }
 0x6d8   : > { %v13319_v62 = vpack.c.bf16 %v7721_v31, %v7709_v14  ;;  %v7726_v7 = vsub.f32 %v17987_v22, %v20848_v27  ;;  %v8562_v16 = vsub.f32 %v17991_v32, %v20850_v12  ;;  %v8574_v44 = vsub.f32 %v17994_v48, %v20853_v3 }
 0x6d9   : > { %v8568_v14 = vsub.f32 %v18000_v45, %v20858_v30  ;;  %v8580_v31 = vsub.f32 %v18002_v39, %v20861_v36  ;;  %v7732_v54 = vsub.f32 %v18004_v4, %v20862_v26  ;;  %v20867_v27 = vand.u32 4294901760, %v18008_v47 }
 0x6da   : > { %13320 = vmatprep.subr.bf16.mxu0 %v13319_v62  ;;  %v7727_v55 = vand.u32 4294901760, %v7726_v7  ;;  %v8563_v12 = vand.u32 4294901760, %v8562_v16  ;;  %v8575_v35 = vand.u32 4294901760, %v8574_v44  ;;  %v20864_v3 = vand.u32 4294901760, %v18013_v42 }
 0x6db   : > { %v8569_v62 = vand.u32 4294901760, %v8568_v14  ;;  %v8581_v10 = vand.u32 4294901760, %v8580_v31  ;;  %v7733_v48 = vand.u32 4294901760, %v7732_v54  ;;  %v7744_v30 = vsub.f32 %v18008_v47, %v20867_v27 }
 0x6dc   : > { %v18227_v45 = vpack.c.bf16 %v7727_v55, %v7715_v34  ;;  %v13487_v36 = vpack.c.bf16 %v8575_v35, %v8563_v12  ;;  %v7738_v26 = vsub.f32 %v18013_v42, %v20864_v3  ;;  %v20863_v7 = vand.u32 4294901760, %v18015_v43 }
 0x6dd   : > { %v18233_v16 = vpack.c.bf16 %v8581_v10, %v8569_v62  ;;  %v7745_v44 = vand.u32 4294901760, %v7744_v30  ;;  %v20865_v14 = vand.u32 4294901760, %v18017_v40  ;;  %v20866_v31 = vand.u32 4294901760, %v18026_v19 }
 0x6de   : > { %21656 = vst [vmem:[#allocation99_spill] sm:$0xff] %v18227_v45  ;;  %13488 = vmatprep.subr.bf16.mxu1 %v13487_v36  ;;  %v7739_v54 = vand.u32 4294901760, %v7738_v26  ;;  %v7750_v55 = vsub.f32 %v18015_v43, %v20863_v7  ;;  %v20868_v35 = vand.u32 4294901760, %v18030_v57  ;;  %v20869_v12 = vand.u32 4294901760, %v18032_v56 }
 0x6df   : > { %21657 = vst [vmem:[#allocation100_spill] sm:$0xff] %v18233_v16  ;;  %v18242_v34 = vpack.c.bf16 %v7745_v44, %v7733_v48  ;;  %v8586_v10 = vsub.f32 %v18017_v40, %v20865_v14  ;;  %v8598_v30 = vsub.f32 %v18026_v19, %v20866_v31  ;;  %v20870_v36 = vand.u32 4294901760, %v18034_v52 }
 0x6e0   : > { %v7751_v26 = vand.u32 4294901760, %v7750_v55  ;;  %v8592_v62 = vsub.f32 %v18030_v57, %v20868_v35  ;;  %v8604_v48 = vsub.f32 %v18032_v56, %v20869_v12  ;;  %v20873_v44 = vand.u32 4294901760, %v18039_v0 }
 0x6e1   : > { %21658 = vst [vmem:[#allocation102_spill] sm:$0xff] %v18242_v34  ;;  %v8587_v7 = vand.u32 4294901760, %v8586_v10  ;;  %v8599_v3 = vand.u32 4294901760, %v8598_v30  ;;  %v7756_v14 = vsub.f32 %v18034_v52, %v20870_v36  ;;  %v20872_v31 = vand.u32 4294901760, %v18041_v37 }
 0x6e2   : > { %v18262_v27 = vpack.c.bf16 %v7751_v26, %v7739_v54  ;;  %v8593_v55 = vand.u32 4294901760, %v8592_v62  ;;  %v8605_v16 = vand.u32 4294901760, %v8604_v48  ;;  %v7768_v35 = vsub.f32 %v18039_v0, %v20873_v44 }
 0x6e3   : > { %v18267_v34 = vpack.c.bf16 %v8599_v3, %v8587_v7  ;;  %v7757_v12 = vand.u32 4294901760, %v7756_v14  ;;  %v7762_v10 = vsub.f32 %v18041_v37, %v20872_v31  ;;  %v20871_v30 = vand.u32 4294901760, %v18047_v60 }
 0x6e4   : > { %21659 = vst [vmem:[#allocation103_spill] sm:$0xff] %v18262_v27  ;;  %v18273_v36 = vpack.c.bf16 %v8605_v16, %v8593_v55  ;;  %v7769_v45 = vand.u32 4294901760, %v7768_v35  ;;  %v20874_v54 = vand.u32 4294901760, %v18051_v13  ;;  %v20875_v26 = vand.u32 4294901760, %v18053_v29 }
 0x6e5   : > { %21660 = vst [vmem:[#allocation104_spill] sm:$0xff] %v18267_v34  ;;  %v7763_v62 = vand.u32 4294901760, %v7762_v10  ;;  %v7774_v3 = vsub.f32 %v18047_v60, %v20871_v30  ;;  %v20876_v7 = vand.u32 4294901760, %v18058_v53  ;;  %v20877_v14 = vand.u32 4294901760, %v18060_v25 }
 0x6e6   : > { %21661 = vst [vmem:[#allocation105_spill] sm:$0xff] %v18273_v36  ;;  %v18282_v48 = vpack.c.bf16 %v7769_v45, %v7757_v12  ;;  %v8610_v16 = vsub.f32 %v18051_v13, %v20874_v54  ;;  %v8622_v35 = vsub.f32 %v18053_v29, %v20875_v26  ;;  %v20878_v55 = vand.u32 4294901760, %v18064_v38 }
 0x6e7   : > { %v7775_v10 = vand.u32 4294901760, %v7774_v3  ;;  %v8616_v30 = vsub.f32 %v18058_v53, %v20876_v7  ;;  %v8628_v45 = vsub.f32 %v18060_v25, %v20877_v14  ;;  %v20879_v12 = vand.u32 4294901760, %v18067_v63 }
 0x6e8   : > { %21662 = vst [vmem:[#allocation106_spill] sm:$0xff] %v18282_v48  ;;  %v8611_v31 = vand.u32 4294901760, %v8610_v16  ;;  %v8623_v44 = vand.u32 4294901760, %v8622_v35  ;;  %v7780_v54 = vsub.f32 %v18064_v38, %v20878_v55  ;;  %v20881_v26 = vand.u32 4294901760, %v18073_v59 }
 0x6e9   : > { %v18302_v36 = vpack.c.bf16 %v7775_v10, %v7763_v62  ;;  %v8617_v3 = vand.u32 4294901760, %v8616_v30  ;;  %v8629_v48 = vand.u32 4294901760, %v8628_v45  ;;  %v7792_v7 = vsub.f32 %v18067_v63, %v20879_v12  ;;  %v21697_v63 = vld [vmem:[#allocation67_spill] sm:$0xff] }
 0x6ea   : > { %v18307_v27 = vpack.c.bf16 %v8623_v44, %v8611_v31  ;;  %v7781_v14 = vand.u32 4294901760, %v7780_v54  ;;  %v7786_v16 = vsub.f32 %v18073_v59, %v20881_v26  ;;  %v20880_v35 = vand.u32 4294901760, %v18075_v24 }
 0x6eb   : > { %21663 = vst [vmem:[#allocation107_spill] sm:$0xff] %v18302_v36  ;;  %v18313_v55 = vpack.c.bf16 %v8629_v48, %v8617_v3  ;;  %v7793_v34 = vand.u32 4294901760, %v7792_v7  ;;  %v20882_v62 = vand.u32 4294901760, %v18077_v41  ;;  %v20883_v30 = vand.u32 4294901760, %v18081_v50 }
 0x6ec   : > { %21664 = vst [vmem:[#allocation94_spill] sm:$0xff] %v18307_v27  ;;  %v7787_v10 = vand.u32 4294901760, %v7786_v16  ;;  %v7798_v31 = vsub.f32 %v18075_v24, %v20880_v35  ;;  %v20884_v44 = vand.u32 4294901760, %v18085_v61  ;;  %v20885_v54 = vand.u32 4294901760, %v18088_v8 }
 0x6ed   : > { %21665 = vst [vmem:[#allocation108_spill] sm:$0xff] %v18313_v55  ;;  %v18322_v45 = vpack.c.bf16 %v7793_v34, %v7781_v14  ;;  %v8634_v48 = vsub.f32 %v18077_v41, %v20882_v62  ;;  %v8646_v7 = vsub.f32 %v18081_v50, %v20883_v30  ;;  %v20886_v3 = vand.u32 4294901760, %v18103_v23 }
 0x6ee   : > { %v7799_v16 = vand.u32 4294901760, %v7798_v31  ;;  %v8640_v12 = vsub.f32 %v18085_v61, %v20884_v44  ;;  %v8652_v34 = vsub.f32 %v18088_v8, %v20885_v54  ;;  %v20887_v14 = vand.u32 4294901760, %v18105_v49 }
 0x6ef   : > { %21666 = vst [vmem:[#allocation109_spill] sm:$0xff] %v18322_v45  ;;  %v8635_v35 = vand.u32 4294901760, %v8634_v48  ;;  %v8647_v26 = vand.u32 4294901760, %v8646_v7  ;;  %v7804_v62 = vsub.f32 %v18103_v23, %v20886_v3  ;;  %v20889_v30 = vand.u32 4294901760, %v18107_v51 }
 0x6f0   : > { %v18342_v55 = vpack.c.bf16 %v7799_v16, %v7787_v10  ;;  %v8641_v31 = vand.u32 4294901760, %v8640_v12  ;;  %v8653_v45 = vand.u32 4294901760, %v8652_v34  ;;  %v7816_v44 = vsub.f32 %v18105_v49, %v20887_v14  ;;  %v21670_v10 = vld [vmem:[#allocation80_spill] sm:$0xff]  ;;  %v21671_v12 = vld [vmem:[#allocation81_spill] sm:$0xff] }
 0x6f1   : > { %v18347_v36 = vpack.c.bf16 %v8647_v26, %v8635_v35  ;;  %v7805_v54 = vand.u32 4294901760, %v7804_v62  ;;  %v7810_v48 = vsub.f32 %v18107_v51, %v20889_v30  ;;  %v20888_v7 = vand.u32 4294901760, %v18113_v18  ;;  %v21672_v62 = vld [vmem:[#allocation66_spill] sm:$0xff] }
 0x6f2   : > { %21667 = vst [vmem:[#allocation110_spill] sm:$0xff] %v18342_v55  ;;  %v18353_v3 = vpack.c.bf16 %v8653_v45, %v8641_v31  ;;  %v7817_v27 = vand.u32 4294901760, %v7816_v44  ;;  %v20890_v16 = vand.u32 4294901760, %v21670_v10  ;;  %v20891_v34 = vand.u32 4294901760, %v21671_v12 }
 0x6f3   : > { %21668 = vst [vmem:[#allocation111_spill] sm:$0xff] %v18347_v36  ;;  %v7811_v55 = vand.u32 4294901760, %v7810_v48  ;;  %v7822_v26 = vsub.f32 %v18113_v18, %v20888_v7  ;;  %v20896_v35 = vand.u32 4294901760, %v18127_v11  ;;  %v20899_v14 = vand.u32 4294901760, %v21672_v62 }
 0x6f4   : > { %21669 = vst [vmem:[#allocation112_spill] sm:$0xff] %v18353_v3  ;;  %v18362_v36 = vpack.c.bf16 %v7817_v27, %v7805_v54  ;;  %v8658_v45 = vsub.f32 %v21670_v10, %v20890_v16  ;;  %v8670_v44 = vsub.f32 %v21671_v12, %v20891_v34  ;;  %v20901_v31 = vand.u32 4294901760, %v18133_v28  ;;  %v21674_v54 = vld [vmem:[#allocation86_spill] sm:$0xff]  ;;  %v21675_v34 = vld [vmem:[#allocation88_spill] sm:$0xff] }
 0x6f5   : > { %v7823_v48 = vand.u32 4294901760, %v7822_v26  ;;  %v8664_v7 = vsub.f32 %v18127_v11, %v20896_v35  ;;  %v8676_v27 = vsub.f32 %v21672_v62, %v20899_v14  ;;  %v20904_v30 = vand.u32 4294901760, %v21674_v54 }
 0x6f6   : > { %21673 = vst [vmem:[#allocation113_spill] sm:$0xff] %v18362_v36  ;;  %v8659_v3 = vand.u32 4294901760, %v8658_v45  ;;  %v8671_v36 = vand.u32 4294901760, %v8670_v44  ;;  %v7828_v16 = vsub.f32 %v18133_v28, %v20901_v31  ;;  %v20906_v12 = vand.u32 4294901760, %v21675_v34  ;;  %v21678_v44 = vld [vmem:[#allocation89_spill] sm:$0xff] }
 0x6f7   : > { %v18382_v10 = vpack.c.bf16 %v7823_v48, %v7811_v55  ;;  %v8665_v26 = vand.u32 4294901760, %v8664_v7  ;;  %v8677_v18 = vand.u32 4294901760, %v8676_v27  ;;  %v7840_v35 = vsub.f32 %v21674_v54, %v20904_v30  ;;  %v21680_v55 = vld [vmem:[#allocation90_spill] sm:$0xff] }
 0x6f8   : > { %v18387_v11 = vpack.c.bf16 %v8671_v36, %v8659_v3  ;;  %v7829_v14 = vand.u32 4294901760, %v7828_v16  ;;  %v7834_v45 = vsub.f32 %v21675_v34, %v20906_v12  ;;  %v20905_v62 = vand.u32 4294901760, %v21678_v44 }
 0x6f9   : > { %21676 = vst [vmem:[#allocation114_spill] sm:$0xff] %v18382_v10  ;;  %v18393_v31 = vpack.c.bf16 %v8677_v18, %v8665_v26  ;;  %v7841_v28 = vand.u32 4294901760, %v7840_v35  ;;  %v20907_v48 = vand.u32 4294901760, %v21680_v55  ;;  %v20908_v7 = vand.u32 4294901760, %v18150_v58 }
 0x6fa   : > { %21677 = vst [vmem:[#allocation115_spill] sm:$0xff] %v18387_v11  ;;  %v7835_v27 = vand.u32 4294901760, %v7834_v45  ;;  %v7846_v36 = vsub.f32 %v21678_v44, %v20905_v62  ;;  %v20909_v3 = vand.u32 4294901760, %v18154_v21  ;;  %v20910_v16 = vand.u32 4294901760, %v18156_v17 }
 0x6fb   : > { %21679 = vst [vmem:[#allocation116_spill] sm:$0xff] %v18393_v31  ;;  %v18402_v30 = vpack.c.bf16 %v7841_v28, %v7829_v14  ;;  %v8682_v18 = vsub.f32 %v21680_v55, %v20907_v48  ;;  %v8694_v35 = vsub.f32 %v18150_v58, %v20908_v7  ;;  %v20913_v26 = vand.u32 4294901760, %v18161_v6 }
 0x6fc   : > { %v7847_v45 = vand.u32 4294901760, %v7846_v36  ;;  %v8688_v62 = vsub.f32 %v18154_v21, %v20909_v3  ;;  %v8700_v28 = vsub.f32 %v18156_v17, %v20910_v16  ;;  %v20917_v14 = vand.u32 4294901760, %v18163_v2 }
 0x6fd   : > { %21681 = vst [vmem:[#allocation117_spill] sm:$0xff] %v18402_v30  ;;  %v8683_v12 = vand.u32 4294901760, %v8682_v18  ;;  %v8695_v31 = vand.u32 4294901760, %v8694_v35  ;;  %v7852_v48 = vsub.f32 %v18161_v6, %v20913_v26  ;;  %v20916_v7 = vand.u32 4294901760, %v18167_v33  ;;  %v21684_v35 = vld [vmem:[#allocation68_spill] sm:$0xff] }
 0x6fe   : > { %v18422_v30 = vpack.c.bf16 %v7847_v45, %v7835_v27  ;;  %v8689_v36 = vand.u32 4294901760, %v8688_v62  ;;  %v8701_v10 = vand.u32 4294901760, %v8700_v28  ;;  %v7864_v3 = vsub.f32 %v18163_v2, %v20917_v14 }
 0x6ff   : > { %v18427_v11 = vpack.c.bf16 %v8695_v31, %v8683_v12  ;;  %v7853_v16 = vand.u32 4294901760, %v7852_v48  ;;  %v7858_v18 = vsub.f32 %v18167_v33, %v20916_v7  ;;  %v20918_v17 = vand.u32 4294901760, %v21684_v35 }
 0x700   : > { %21682 = vst [vmem:[#allocation95_spill] sm:$0xff] %v18422_v30  ;;  %v18433_v26 = vpack.c.bf16 %v8701_v10, %v8689_v36  ;;  %v7865_v6 = vand.u32 4294901760, %v7864_v3  ;;  %v8705_v27 = vand.u32 4294901760, %v18183_v20  ;;  %v8717_v62 = vand.u32 4294901760, %v18185_v1  ;;  %v21687_v3 = vld [vmem:[#allocation43_spill] sm:$0xff] }
 0x701   : > { %21683 = vst [vmem:[#allocation48_spill] sm:$0xff] %v18427_v11  ;;  %v7859_v45 = vand.u32 4294901760, %v7858_v18  ;;  %v7870_v12 = vsub.f32 %v21684_v35, %v20918_v17  ;;  %v8711_v31 = vand.u32 4294901760, %v18187_v9  ;;  %v8723_v48 = vand.u32 4294901760, %v18191_v5  ;;  %v21698_v17 = vld [vmem:[#allocation68_spill] sm:$0xff] }
 0x702   : > { %21685 = vst [vmem:[#allocation44_spill] sm:$0xff] %v18433_v26  ;;  %v18442_v28 = vpack.c.bf16 %v7865_v6, %v7853_v16  ;;  %v8706_v7 = vsub.f32 %v18183_v20, %v8705_v27  ;;  %v8718_v10 = vsub.f32 %v18185_v1, %v8717_v62  ;;  %v21688_v6 = vld [vmem:[#allocation21_spill] sm:$0xff]  ;;  %v21702_v29 = vand.u32 4294901760, %v18060_v25 }
 0x703   : > { %v7871_v14 = vand.u32 4294901760, %v7870_v12  ;;  %v8712_v18 = vsub.f32 %v18187_v9, %v8711_v31  ;;  %v8724_v26 = vsub.f32 %v18191_v5, %v8723_v48  ;;  %v21695_v12 = vld [vmem:[#allocation85_spill] sm:$0xff]  ;;  %v21704_v38 = vand.u32 4294901760, %v18073_v59 }
 0x704   : > { %21686 = vst [vmem:[#allocation52_spill] sm:$0xff] %v18442_v28  ;;  %v8707_v30 = vand.u32 4294901760, %v8706_v7  ;;  %v8719_v11 = vand.u32 4294901760, %v8718_v10  ;;  %v21689_v28 = vld [vmem:[#allocation26_spill] sm:$0xff]  ;;  %v21693_v7 = vld [vmem:[#allocation83_spill] sm:$0xff]  ;;  %v21705_v57 = vand.u32 4294901760, %v18075_v24 }
 0x705   : > { %v18456_v1 = vpack.c.bf16 %v7871_v14, %v7859_v45  ;;  %v8713_v35 = vand.u32 4294901760, %v8712_v18  ;;  %v8725_v36 = vand.u32 4294901760, %v8724_v26  ;;  %v21691_v14 = vld [vmem:[#allocation80_spill] sm:$0xff]  ;;  %v21694_v45 = vld [vmem:[#allocation66_spill] sm:$0xff]  ;;  %v21696_v26 = vld [vmem:[#allocation71_spill] sm:$0xff]  ;;  %v21707_v37 = vand.u32 4294901760, %v18077_v41 }
 0x706   : > { %v18460_v46 = vpack.c.bf16 %v8719_v11, %v8707_v30  ;;  %v21690_v11 = vld [vmem:[#allocation78_spill] sm:$0xff]  ;;  %v21692_v30 = vld [vmem:[#allocation81_spill] sm:$0xff]  ;;  %v18520_v10 = vpack.c.bf16 %v21705_v57, %v21704_v38  ;;  %v21708_v56 = vand.u32 4294901760, %v18081_v50  ;;  %v21710_v18 = vand.u32 4294901760, %v18085_v61 }
 0x707   : > { %v18468_v16 = vpack.c.bf16 %v8725_v36, %v8713_v35  ;;  %v21701_v35 = vand.u32 4294901760, %v18058_v53  ;;  %v21711_v9 = vand.u32 4294901760, %v18088_v8  ;;  %v21716_v57 = vand.u32 4294901760, %v18107_v51 }
 0x708   : > { %21706 = vst [vmem:[#allocation56_spill] sm:$0xff] %v18520_v10  ;;  %v18526_v13 = vpack.c.bf16 %v21708_v56, %v21707_v37  ;;  %v21717_v38 = vand.u32 4294901760, %v21690_v11  ;;  %v21719_v56 = vand.u32 4294901760, %v21691_v14  ;;  %v21720_v37 = vand.u32 4294901760, %v21692_v30 }
 0x709   : > { %v18514_v36 = vpack.c.bf16 %v21702_v29, %v21701_v35  ;;  %v18532_v5 = vpack.c.bf16 %v21711_v9, %v21710_v18  ;;  %v21713_v29 = vand.u32 4294901760, %v18103_v23  ;;  %v21714_v35 = vand.u32 4294901760, %v18105_v49 }
 0x70a   : > { %21709 = vst [vmem:[#allocation57_spill] sm:$0xff] %v18526_v13  ;;  %v18544_v10 = vpack.c.bf16 %v21717_v38, %v21716_v57  ;;  %v18550_v13 = vpack.c.bf16 %v21720_v37, %v21719_v56  ;;  %v21722_v9 = vand.u32 4294901760, %v21693_v7  ;;  %v21723_v18 = vand.u32 4294901760, %v21694_v45 }
 0x70b   : > { %21703 = vst [vmem:[#allocation55_spill] sm:$0xff] %v18514_v36  ;;  %21712 = vst [vmem:[#allocation58_spill] sm:$0xff] %v18532_v5  ;;  %v18538_v36 = vpack.c.bf16 %v21714_v35, %v21713_v29  ;;  %v21725_v29 = vand.u32 4294901760, %v21695_v12  ;;  %v21726_v35 = vand.u32 4294901760, %v21674_v54  ;;  %v21728_v57 = vand.u32 4294901760, %v21675_v34 }
 0x70c   : > { %21718 = vst [vmem:[#allocation98_spill] sm:$0xff] %v18544_v10  ;;  %21721 = vst [vmem:[#allocation101_spill] sm:$0xff] %v18550_v13  ;;  %v18556_v5 = vpack.c.bf16 %v21723_v18, %v21722_v9  ;;  %v21729_v38 = vand.u32 4294901760, %v21678_v44  ;;  %v21731_v56 = vand.u32 4294901760, %v21680_v55  ;;  %v21732_v37 = vand.u32 4294901760, %v18150_v58 }
 0x70d   : > { %21715 = vst [vmem:[#allocation96_spill] sm:$0xff] %v18538_v36  ;;  %v18562_v36 = vpack.c.bf16 %v21726_v35, %v21725_v29  ;;  %v21734_v9 = vand.u32 4294901760, %v18154_v21  ;;  %v21735_v18 = vand.u32 4294901760, %v21696_v26  ;;  %v21737_v29 = vand.u32 4294901760, %v21697_v63 }
 0x70e   : > { %21724 = vst [vmem:[#allocation16_spill] sm:$0xff] %v18556_v5  ;;  %v18568_v10 = vpack.c.bf16 %v21729_v38, %v21728_v57  ;;  %v18574_v13 = vpack.c.bf16 %v21732_v37, %v21731_v56  ;;  %v21738_v35 = vand.u32 4294901760, %v18163_v2  ;;  %v21740_v57 = vand.u32 4294901760, %v18167_v33 }
 0x70f   : > { %21727 = vst [vmem:[#allocation97_spill] sm:$0xff] %v18562_v36  ;;  %v18580_v5 = vpack.c.bf16 %v21735_v18, %v21734_v9  ;;  %v21741_v38 = vand.u32 4294901760, %v21698_v17  ;;  %v18594_v56 = vpack.c.bf16 %v8717_v62, %v8705_v27  ;;  %v18596_v37 = vpack.c.bf16 %v8723_v48, %v8711_v31  ;;  %v21743_v9 = vld [vmem:[#allocation75_spill] sm:$0xff] }
 0x710   : > { %21730 = vst [vmem:[#allocation19_spill] sm:$0xff] %v18568_v10  ;;  %21733 = vst [vmem:[#allocation18_spill] sm:$0xff] %v18574_v13  ;;  %v18586_v36 = vpack.c.bf16 %v21738_v35, %v21737_v29 }
 0x711   : > { %21736 = vst [vmem:[#allocation25_spill] sm:$0xff] %v18580_v5  ;;  %v18592_v10 = vpack.c.bf16 %v21741_v38, %v21740_v57  ;;  %21742 = vst [vmem:[#allocation33_spill] sm:$0xff] %v18596_v37  ;;  %v21745_v57 = vld [vmem:[#allocation99_spill] sm:$0xff]  ;;  %v21746_v38 = vmov 0.0   ;;  %v21759_v37 = vld [vmem:[#allocation113_spill] sm:$0xff] }
 0x712   : > { %21739 = vst [vmem:[#allocation29_spill] sm:$0xff] %v18586_v36 }
 0x73e   : > { %v7566_v13 = vpop.permute.xlu0 %7565 }
 0x73f   : > { %v7568_v18 = vmax.f32 %v21743_v9, %v7566_v13  ;;  %v21747_v9 = vld [vmem:[#allocation102_spill] sm:$0xff] }
 0x741   : > { %v7599_v5 = vsel %vm7597_vm9, %v7568_v18, 0  ;;  %v8452_v60 = vrot.slane %v7568_v18, 2  ;;  %v9306_v20 = vrot.slane %v7568_v18, 4  ;;  %v10160_v21 = vrot.slane %v7568_v18, 6  ;;  %v21748_v18 = vld [vmem:[#allocation100_spill] sm:$0xff] }
 0x742   : > { %v18599_v29 = vand.u32 4294901760, %v7599_v5 }
 0x743   : > { %v8453_v35 = vsel %vm7597_vm9, %v8452_v60, 0  ;;  %v18601_v36 = vsel %vm7597_vm9, %v9306_v20, 0  ;;  %v18603_v33 = vsel %vm7597_vm9, %v10160_v21, 0 }
 0x744   : > { %v18606_v27 = vsub.f32 %v7599_v5, %v18599_v29  ;;  %v18608_v62 = vand.u32 4294901760, %v8453_v35 }
 0x746   : > { %21744 = vst [vmem:[#allocation36_spill] sm:$0xff] %v18608_v62  ;;  %v18611_v31 = vsub.f32 %v8453_v35, %v18608_v62  ;;  %v20946_v13 = vand.u32 4294901760, %v18606_v27  ;;  %v21749_v35 = vld [vmem:[#allocation104_spill] sm:$0xff] }
 0x748   : > { %v7697_v48 = vsub.f32 %v18606_v27, %v20946_v13  ;;  %v20947_v60 = vand.u32 4294901760, %v18611_v31  ;;  %v21751_v13 = vld [vmem:[#allocation106_spill] sm:$0xff] }
 0x74a   : > { %v7698_v20 = vand.u32 4294901760, %v7697_v48  ;;  %v8551_v21 = vsub.f32 %v18611_v31, %v20947_v60  ;;  %v21750_v48 = vld [vmem:[#allocation103_spill] sm:$0xff]  ;;  %v21752_v60 = vld [vmem:[#allocation105_spill] sm:$0xff] }
 0x74c   : > { %7699 = vmatmul.mubr.f32.vlgmr.msra.gmra.mrb[26].mxu0 %v7698_v20  ;;  %v8552_v5 = vand.u32 4294901760, %v8551_v21  ;;  %v21753_v20 = vld [vmem:[#allocation94_spill] sm:$0xff]  ;;  %v21754_v21 = vld [vmem:[#allocation107_spill] sm:$0xff] }
 0x74d   : > { %13322 = vmatpush1.bf16.msra.mxu0 %v21745_v57  ;;  %7909 = vmatprep.mubr.f32.mxu0 %v21746_v38  ;;  %v21755_v57 = vld [vmem:[#allocation109_spill] sm:$0xff] }
 0x74e   : > { %8553 = vmatmul.mubr.f32.vlgmr.msra.gmra.mrb[40].mxu1 %v8552_v5  ;;  %13324 = vmatprep.subr.bf16.mxu0 %v21747_v9  ;;  %v21756_v5 = vld [vmem:[#allocation108_spill] sm:$0xff]  ;;  %v21757_v9 = vld [vmem:[#allocation111_spill] sm:$0xff] }
 0x74f   : > { %13490 = vmatpush1.bf16.msra.mxu1 %v21748_v18  ;;  %8763 = vmatprep.mubr.f32.mxu1 %v21746_v38  ;;  %v21758_v18 = vld [vmem:[#allocation110_spill] sm:$0xff] }
 0x750   : > { %13492 = vmatprep.subr.bf16.mxu1 %v21749_v35  ;;  %v21760_v35 = vld [vmem:[#allocation112_spill] sm:$0xff] }
 0x751   : > { %13326 = vmatpush1.bf16.msra.mxu0 %v21750_v48  ;;  %v21761_v48 = vld [vmem:[#allocation115_spill] sm:$0xff] }
 0x752   : > { %13328 = vmatprep.subr.bf16.mxu0 %v21751_v13  ;;  %v21762_v13 = vld [vmem:[#allocation114_spill] sm:$0xff] }
 0x753   : > { %13494 = vmatpush1.bf16.msra.mxu1 %v21752_v60  ;;  %v21763_v60 = vld [vmem:[#allocation117_spill] sm:$0xff] }
 0x754   : > { %13496 = vmatprep.subr.bf16.mxu1 %v21753_v20  ;;  %v21764_v20 = vld [vmem:[#allocation116_spill] sm:$0xff] }
 0x755   : > { %13330 = vmatpush1.bf16.msra.mxu0 %v21754_v21  ;;  %v21765_v21 = vld [vmem:[#allocation48_spill] sm:$0xff] }
 0x756   : > { %13332 = vmatprep.subr.bf16.mxu0 %v21755_v57  ;;  %v21766_v57 = vld [vmem:[#allocation95_spill] sm:$0xff] }
 0x757   : > { %13498 = vmatpush1.bf16.msra.mxu1 %v21756_v5  ;;  %v21767_v5 = vld [vmem:[#allocation52_spill] sm:$0xff] }
 0x758   : > { %13500 = vmatprep.subr.bf16.mxu1 %v21757_v9  ;;  %v21768_v9 = vld [vmem:[#allocation44_spill] sm:$0xff] }
 0x759   : > { %13334 = vmatpush1.bf16.msra.mxu0 %v21758_v18 }
 0x75a   : > { %13336 = vmatprep.subr.bf16.mxu0 %v21759_v37  ;;  %v21769_v37 = vld [vmem:[#allocation42_spill] sm:$0xff] }
 0x75b   : > { %13502 = vmatpush1.bf16.msra.mxu1 %v21760_v35  ;;  %v21770_v18 = vpack.c.bf16 %v21687_v3, %v21769_v37  ;;  %v21771_v35 = vpack.c.bf16 %v21688_v6, %v17991_v32 }
 0x75c   : > { %13504 = vmatprep.subr.bf16.mxu1 %v21761_v48  ;;  %v21772_v48 = vpack.c.bf16 %v17987_v22, %v17983_v15 }
 0x75d   : > { %13338 = vmatpush1.bf16.msra.mxu0 %v21762_v13  ;;  %v21776_v13 = vpack.c.bf16 %v18015_v43, %v18013_v42 }
 0x75e   : > { %13340 = vmatprep.subr.bf16.mxu0 %v21763_v60  ;;  %v21777_v60 = vpack.c.bf16 %v18039_v0, %v18034_v52 }
 0x75f   : > { %13506 = vmatpush1.bf16.msra.mxu1 %v21764_v20  ;;  %v21778_v20 = vld [vmem:[#allocation38_spill] sm:$0xff] }
 0x760   : > { %13508 = vmatprep.subr.bf16.mxu1 %v21765_v21  ;;  %v21779_v21 = vld [vmem:[#allocation35_spill] sm:$0xff] }
 0x761   : > { %13342 = vmatpush1.bf16.msra.mxu0 %v21766_v57  ;;  %v21780_v57 = vpack.c.bf16 %v21778_v20, %v21779_v21 }
 0x762   : > { %13344 = vmatprep.subr.bf16.mxu0 %v21767_v5  ;;  %v21781_v5 = vld [vmem:[#allocation54_spill] sm:$0xff] }
 0x763   : > { %13510 = vmatpush1.bf16.msra.mxu1 %v21768_v9  ;;  %v21782_v9 = vld [vmem:[#allocation53_spill] sm:$0xff] }
 0x764   : > { %13512 = vmatprep.subr.bf16.mxu1 %v18460_v46  ;;  %v21773_v46 = vpack.c.bf16 %v18008_v47, %v18004_v4 }
 0x765   : > { %13346 = vmatpush1.bf16.msra.mxu0 %v18456_v1  ;;  %v21774_v1 = vpack.c.bf16 %v18002_v39, %v21689_v28 }
 0x766   : > { %13348 = vmatprep.subr.bf16.mxu0 %v21770_v18  ;;  %v21783_v18 = vpack.c.bf16 %v21781_v5, %v21782_v9 }
 0x767   : > { %13514 = vmatpush1.bf16.msra.mxu1 %v18468_v16  ;;  %v21775_v16 = vpack.c.bf16 %v18026_v19, %v18017_v40 }
 0x768   : > { %7911 = vmatmul.mubr.f32.vlgmr.msra.gmra.mrb[26].mxu0 %v18599_v29  ;;  %13516 = vmatprep.subr.bf16.mxu1 %v21771_v35  ;;  %v21784_v35 = vld [vmem:[#allocation49_spill] sm:$0xff] }
 0x769   : > { %13350 = vmatpush1.bf16.msra.mxu0 %v21772_v48  ;;  %8037 = vmatprep.mubr.f32.mxu0 %v21746_v38  ;;  %v21785_v48 = vld [vmem:[#allocation45_spill] sm:$0xff] }
 0x76a   : > { %8765 = vmatmul.mubr.f32.vlgmr.msra.gmra.mrb[40].mxu1 %v18608_v62  ;;  %13352 = vmatprep.subr.bf16.mxu0 %v21773_v46  ;;  %v21786_v46 = vpack.c.bf16 %v21784_v35, %v21785_v48 }
 0x76b   : > { %13518 = vmatpush1.bf16.msra.mxu1 %v21774_v1  ;;  %8891 = vmatprep.mubr.f32.mxu1 %v21746_v38  ;;  %v21787_v1 = vld [vmem:[#allocation40_spill] sm:$0xff] }
 0x76c   : > { %13520 = vmatprep.subr.bf16.mxu1 %v21775_v16  ;;  %v21788_v16 = vld [vmem:[#allocation17_spill] sm:$0xff] }
 0x76d   : > { %13354 = vmatpush1.bf16.msra.mxu0 %v21776_v13  ;;  %v21789_v62 = vpack.c.bf16 %v21787_v1, %v21788_v16  ;;  %v21790_v13 = vpack.c.bf16 %v18060_v25, %v18058_v53  ;;  %v21795_v53 = vpack.c.bf16 %v21692_v30, %v21691_v14  ;;  %v21796_v25 = vpack.c.bf16 %v21690_v11, %v18107_v51  ;;  %v21815_v14 = vld [vmem:[#allocation27_spill] sm:$0xff]  ;;  %v21818_v11 = vld [vmem:[#allocation30_spill] sm:$0xff] }
 0x76e   : > { %13356 = vmatprep.subr.bf16.mxu0 %v21777_v60  ;;  %v21791_v60 = vpack.c.bf16 %v18081_v50, %v18077_v41  ;;  %v21800_v41 = vpack.c.bf16 %v21678_v44, %v21675_v34  ;;  %v21801_v50 = vpack.c.bf16 %v18163_v2, %v21697_v63  ;;  %v21810_v34 = vld [vmem:[#allocation73_spill] sm:$0xff]  ;;  %v21811_v44 = vld [vmem:[#allocation74_spill] sm:$0xff]  ;;  %v21813_v63 = vld [vmem:[#allocation51_spill] sm:$0xff] }
 0x76f   : > { %13522 = vmatpush1.bf16.msra.mxu1 %v21780_v57  ;;  %v21792_v57 = vpack.c.bf16 %v18075_v24, %v18073_v59  ;;  %v21797_v59 = vpack.c.bf16 %v21674_v54, %v21695_v12  ;;  %v21798_v24 = vpack.c.bf16 %v21694_v45, %v21693_v7  ;;  %v21807_v12 = vld [vmem:[#allocation65_spill] sm:$0xff]  ;;  %v21812_v7 = vpack.c.bf16 %v21810_v34, %v21811_v44  ;;  %v21814_v2 = vld [vmem:[#allocation47_spill] sm:$0xff]  ;;  %v21820_v45 = vld [vmem:[#allocation34_spill] sm:$0xff] }
 0x770   : > { %13524 = vmatprep.subr.bf16.mxu1 %v21783_v18  ;;  %v21793_v18 = vpack.c.bf16 %v18105_v49, %v18103_v23  ;;  %v21804_v23 = vld [vmem:[#allocation72_spill] sm:$0xff]  ;;  %v21805_v49 = vld [vmem:[#allocation70_spill] sm:$0xff]  ;;  %v21819_v30 = vld [vmem:[#allocation39_spill] sm:$0xff]  ;;  %v21840_v34 = vand.u32 4294901760, %v17991_v32  ;;  %v21841_v44 = vand.u32 4294901760, %v21688_v6  ;;  %v21848_v32 = vand.u32 4294901760, %v21689_v28 }
 0x771   : > { %13358 = vmatpush1.bf16.msra.mxu0 %v21786_v46  ;;  %v21794_v46 = vpack.c.bf16 %v18088_v8, %v18085_v61  ;;  %v21799_v8 = vpack.c.bf16 %v18150_v58, %v21680_v55  ;;  %v21802_v61 = vld [vmem:[#allocation93_spill] sm:$0xff]  ;;  %v21806_v54 = vpack.c.bf16 %v21804_v23, %v21805_v49  ;;  %v21808_v58 = vpack.c.bf16 %v21698_v17, %v21807_v12  ;;  %v21809_v55 = vld [vmem:[#allocation20_spill] sm:$0xff]  ;;  %v21816_v17 = vld [vmem:[#allocation22_spill] sm:$0xff] }
 0x772   : > { %13360 = vmatprep.subr.bf16.mxu0 %v21789_v62  ;;  %v21803_v51 = vpack.c.bf16 %v21696_v26, %v21802_v61  ;;  %v21817_v26 = vld [vmem:[#allocation31_spill] sm:$0xff]  ;;  %v21821_v62 = vld [vmem:[#allocation50_spill] sm:$0xff]  ;;  %v21836_v23 = vand.u32 4294901760, %v21769_v37  ;;  %v21837_v49 = vand.u32 4294901760, %v21687_v3  ;;  %v21838_v12 = vld [vmem:[#allocation92_spill] sm:$0xff]  ;;  %v21845_v3 = vand.u32 4294901760, %v18004_v4 }
 0x773   : > { %13526 = vmatpush1.bf16.msra.mxu1 %v21790_v13  ;;  %v21822_v13 = vld [vmem:[#allocation46_spill] sm:$0xff]  ;;  %v21834_v61 = vld [vmem:[#allocation87_spill] sm:$0xff]  ;;  %v21846_v37 = vand.u32 4294901760, %v18008_v47  ;;  %v21849_v6 = vand.u32 4294901760, %v18002_v39  ;;  %v21853_v4 = vand.u32 4294901760, %v18026_v19  ;;  %v21855_v28 = vand.u32 4294901760, %v18015_v43 }
 0x774   : > { %13528 = vmatprep.subr.bf16.mxu1 %v21791_v60  ;;  %v21823_v60 = vld [vmem:[#allocation15_spill] sm:$0xff]  ;;  %v21856_v39 = vand.u32 4294901760, %v18611_v31  ;;  %v21859_v19 = vand.u32 4294901760, %v21779_v21  ;;  %v21865_v21 = vand.u32 4294901760, %v21785_v48  ;;  %v9281_v48 = vld [vmem:[#allocation6 + $0x1d8] sm:$0xff] }
 0x775   : > { %13362 = vmatpush1.bf16.msra.mxu0 %v21792_v57  ;;  %v21824_v57 = vld [vmem:[#allocation60_spill] sm:$0xff] }
 0x776   : > { %13364 = vmatprep.subr.bf16.mxu0 %v21793_v18  ;;  %v21825_v18 = vld [vmem:[#allocation28_spill] sm:$0xff] }
 0x777   : > { %13530 = vmatpush1.bf16.msra.mxu1 %v21794_v46  ;;  %v21826_v46 = vld [vmem:[#allocation24_spill] sm:$0xff] }
 0x778   : > { %13532 = vmatprep.subr.bf16.mxu1 %v21795_v53  ;;  %v21827_v53 = vld [vmem:[#allocation61_spill] sm:$0xff] }
 0x779   : > { %13366 = vmatpush1.bf16.msra.mxu0 %v21796_v25  ;;  %v21828_v25 = vld [vmem:[#allocation32_spill] sm:$0xff] }
 0x77a   : > { %13368 = vmatprep.subr.bf16.mxu0 %v21797_v59  ;;  %v21829_v59 = vld [vmem:[#allocation79_spill] sm:$0xff] }
 0x77b   : > { %13534 = vmatpush1.bf16.msra.mxu1 %v21798_v24  ;;  %v21830_v24 = vld [vmem:[#allocation76_spill] sm:$0xff] }
 0x77c   : > { %13536 = vmatprep.subr.bf16.mxu1 %v21799_v8  ;;  %v21831_v8 = vld [vmem:[#allocation84_spill] sm:$0xff] }
 0x77d   : > { %13370 = vmatpush1.bf16.msra.mxu0 %v21800_v41  ;;  %v21832_v41 = vld [vmem:[#allocation82_spill] sm:$0xff] }
 0x77e   : > { %13372 = vmatprep.subr.bf16.mxu0 %v21801_v50  ;;  %v21833_v50 = vld [vmem:[#allocation91_spill] sm:$0xff] }
 0x77f   : > { %13538 = vmatpush1.bf16.msra.mxu1 %v21803_v51  ;;  %v21835_v51 = vld [vmem:[#allocation63_spill] sm:$0xff] }
 0x780   : > { %13540 = vmatprep.subr.bf16.mxu1 %v21806_v54  ;;  %v13403_v54 = vpack.c.bf16 %v21837_v49, %v21836_v23  ;;  %v13407_v23 = vpack.c.bf16 %v21846_v37, %v21845_v3  ;;  %v21847_v49 = vld [vmem:[#allocation77_spill] sm:$0xff]  ;;  %v21867_v37 = vand.u32 4294901760, %v21788_v16 }
 0x781   : > { %13374 = vmatpush1.bf16.msra.mxu0 %v21808_v58  ;;  %v21839_v58 = vld [vmem:[#allocation69_spill] sm:$0xff] }
 0x782   : > { %13376 = vmatprep.subr.bf16.mxu0 %v21809_v55  ;;  %v21871_v16 = vld [vmem:[#allocation57_spill] sm:$0xff] }
 0x783   : > { %13542 = vmatpush1.bf16.msra.mxu1 %v21812_v7  ;;  %v13571_v7 = vpack.c.bf16 %v21841_v44, %v21840_v34  ;;  %v13573_v34 = vpack.c.bf16 %v21849_v6, %v21848_v32  ;;  %v18790_v44 = vand.u32 4294901760, %v18601_v36  ;;  %v9278_v6 = vld [vmem:[#allocation6 + $0x1c0] sm:$0xff] }
 0x784   : > { %8040 = vmatmul.mubr.f32.vlgmr.msra.gmra.mrb[26].mxu0 %v18606_v27  ;;  %13544 = vmatprep.subr.bf16.mxu1 %v21813_v63 }
 0x785   : > { %13378 = vmatpush1.bf16.msra.mxu0 %v21814_v2  ;;  %8138 = vmatprep.mubr.f32.mxu0 %v21746_v38  ;;  %21850 = vst [vmem:[#allocation37_spill] sm:$0xff] %v18790_v44  ;;  %v18816_v43 = vsub.f32 %v18601_v36, %v18790_v44  ;;  %v21868_v36 = vand.u32 4294901760, %v21787_v1  ;;  %v10133_v1 = vld [vmem:[#allocation6 + $0x2a8] sm:$0xff] }
 0x786   : > { %8894 = vmatmul.mubr.f32.vlgmr.msra.gmra.mrb[40].mxu1 %v18611_v31  ;;  %13380 = vmatprep.subr.bf16.mxu0 %v21815_v14  ;;  %v18819_v31 = vand.u32 4294901760, %v18603_v33  ;;  %v21886_v44 = vld [vmem:[#allocation16_spill] sm:$0xff] }
 0x787   : > { %13546 = vmatpush1.bf16.msra.mxu1 %v21816_v17  ;;  %8992 = vmatprep.mubr.f32.mxu1 %v21746_v38  ;;  %21861 = vst [vmem:[#allocation41_spill] sm:$0xff] %v18816_v43 }
 0x788   : > { %13548 = vmatprep.subr.bf16.mxu1 %v21817_v26  ;;  %21862 = vst [vmem:[#allocation62_spill] sm:$0xff] %v18819_v31  ;;  %v18835_v32 = vsub.f32 %v18603_v33, %v18819_v31  ;;  %v10136_v31 = vld [vmem:[#allocation6 + $0x2c0] sm:$0xff] }
 0x789   : > { %13382 = vmatpush1.bf16.msra.mxu0 %v21818_v11 }
 0x78a   : > { %13384 = vmatprep.subr.bf16.mxu0 %v21819_v30  ;;  %21869 = vst [vmem:[#allocation86_spill] sm:$0xff] %v18835_v32 }
 0x78b   : > { %13550 = vmatpush1.bf16.msra.mxu1 %v21820_v45 }
 0x78c   : > { %13552 = vmatprep.subr.bf16.mxu1 %v21821_v62 }
 0x78d   : > { %13386 = vmatpush1.bf16.msra.mxu0 %v21822_v13 }
 0x78e   : > { %13388 = vmatprep.subr.bf16.mxu0 %v21823_v60 }
 0x78f   : > { %13554 = vmatpush1.bf16.msra.mxu1 %v21824_v57 }
 0x790   : > { %13556 = vmatprep.subr.bf16.mxu1 %v21825_v18 }
 0x791   : > { %13390 = vmatpush1.bf16.msra.mxu0 %v21826_v46 }
 0x792   : > { %13392 = vmatprep.subr.bf16.mxu0 %v21827_v53 }
 0x793   : > { %13558 = vmatpush1.bf16.msra.mxu1 %v21828_v25 }
 0x794   : > { %13560 = vmatprep.subr.bf16.mxu1 %v21829_v59 }
 0x795   : > { %13394 = vmatpush1.bf16.msra.mxu0 %v21830_v24 }
 0x796   : > { %13396 = vmatprep.subr.bf16.mxu0 %v21831_v8 }
 0x797   : > { %13562 = vmatpush1.bf16.msra.mxu1 %v21832_v41  ;;  %v21842_v41 = vld [vmem:[#allocation64_spill] sm:$0xff] }
 0x798   : > { %13564 = vmatprep.subr.bf16.mxu1 %v21833_v50 }
 0x799   : > { %13398 = vmatpush1.bf16.msra.mxu0 %v21834_v61  ;;  %v21843_v61 = vand.u32 4294901760, %v17983_v15  ;;  %v21851_v15 = vand.u32 4294901760, %v18606_v27  ;;  %v21857_v27 = vand.u32 4294901760, %v18034_v52  ;;  %v21863_v52 = vand.u32 4294901760, %v21782_v9  ;;  %v9279_v9 = vld [vmem:[#allocation6 + $0x1c8] sm:$0xff] }
 0x79a   : > { %13400 = vmatprep.subr.bf16.mxu0 %v21835_v51  ;;  %v21844_v51 = vand.u32 4294901760, %v17987_v22  ;;  %v21852_v22 = vand.u32 4294901760, %v18017_v40 }
 0x79b   : > { %13566 = vmatpush1.bf16.msra.mxu1 %v21838_v12 }
 0x79c   : > { %13568 = vmatprep.subr.bf16.mxu1 %v21839_v58  ;;  %v13405_v50 = vpack.c.bf16 %v21844_v51, %v21843_v61  ;;  %v13575_v47 = vpack.c.bf16 %v21853_v4, %v21852_v22  ;;  %v21854_v61 = vand.u32 4294901760, %v18013_v42  ;;  %v20953_v22 = vand.u32 4294901760, %v18835_v32  ;;  %v21873_v4 = vld [vmem:[#allocation56_spill] sm:$0xff] }
 0x79d   : > { %13402 = vmatpush1.bf16.msra.mxu0 %v21842_v41  ;;  %v9288_v41 = vld [vmem:[#allocation6 + $0x210] sm:$0xff] }
 0x79e   : > { %13404 = vmatprep.subr.bf16.mxu0 %v13403_v54  ;;  %v13409_v51 = vpack.c.bf16 %v21855_v28, %v21854_v61  ;;  %v21858_v54 = vand.u32 4294901760, %v18039_v0  ;;  %v21864_v0 = vand.u32 4294901760, %v21781_v5  ;;  %v20950_v5 = vand.u32 4294901760, %v18816_v43  ;;  %v10132_v28 = vld [vmem:[#allocation6 + $0x2a0] sm:$0xff] }
 0x79f   : > { %13570 = vmatpush1.bf16.msra.mxu1 %v21847_v49  ;;  %v9313_v61 = vand.u32 4294901760, %v9281_v48  ;;  %v21892_v49 = vld [vmem:[#allocation19_spill] sm:$0xff] }
 0x7a0   : > { %8142 = vmatmul.mubr.f32.vlgmr.msra.gmra.mrb[26].mxu0 %v21851_v15  ;;  %13572 = vmatprep.subr.bf16.mxu1 %v13571_v7  ;;  %v13411_v40 = vpack.c.bf16 %v21858_v54, %v21857_v27  ;;  %v13579_v7 = vpack.c.bf16 %v21864_v0, %v21863_v52  ;;  %v10135_v15 = vld [vmem:[#allocation6 + $0x2b8] sm:$0xff]  ;;  %v18843_v33 = vsub.f32 %v18816_v43, %v20950_v5  ;;  %v9311_v27 = vand.u32 4294901760, %v9278_v6 }
 0x7a1   : > { %13406 = vmatpush1.bf16.msra.mxu0 %v13405_v50  ;;  %8296 = vmatprep.mubr.f32.mxu0 %v21746_v38  ;;  %v21860_v50 = vand.u32 4294901760, %v21778_v20  ;;  %v21866_v20 = vand.u32 4294901760, %v21784_v35  ;;  %v21870_v35 = vld [vmem:[#allocation55_spill] sm:$0xff]  ;;  %v9285_v52 = vld [vmem:[#allocation6 + $0x1f8] sm:$0xff] }
 0x7a2   : > { %8996 = vmatmul.mubr.f32.vlgmr.msra.gmra.mrb[40].mxu1 %v21856_v39  ;;  %13408 = vmatprep.subr.bf16.mxu0 %v13407_v23  ;;  %v13415_v23 = vpack.c.bf16 %v21868_v36, %v21867_v37  ;;  %21872 = vst [vmem:[#allocation88_spill] sm:$0xff] %v18843_v33  ;;  %v21874_v39 = vld [vmem:[#allocation96_spill] sm:$0xff]  ;;  %v21876_v0 = vld [vmem:[#allocation101_spill] sm:$0xff]  ;;  %v18854_v36 = vsub.f32 %v18835_v32, %v20953_v22  ;;  %v9321_v32 = vand.u32 4294901760, %v9285_v52 }
 0x7a3   : > { %13574 = vmatpush1.bf16.msra.mxu1 %v13573_v34  ;;  %v13577_v42 = vpack.c.bf16 %v21860_v50, %v21859_v19  ;;  %9150 = vmatprep.mubr.f32.mxu1 %v21746_v38  ;;  %v13413_v3 = vpack.c.bf16 %v21866_v20, %v21865_v21  ;;  %v9280_v34 = vld [vmem:[#allocation6 + $0x1d0] sm:$0xff]  ;;  %v10163_v19 = vand.u32 4294901760, %v10133_v1  ;;  %v10167_v50 = vand.u32 4294901760, %v10135_v15  ;;  %v9282_v20 = vld [vmem:[#allocation6 + $0x1e0] sm:$0xff] }
 0x7a4   : > { %13576 = vmatprep.subr.bf16.mxu1 %v13575_v47  ;;  %v9309_v47 = vand.u32 4294901760, %v9279_v9  ;;  %v9315_v54 = vand.u32 4294901760, %v9280_v34  ;;  %21877 = vst [vmem:[#allocation89_spill] sm:$0xff] %v18854_v36  ;;  %v21883_v5 = vld [vmem:[#allocation97_spill] sm:$0xff]  ;;  %v10149_v36 = vld [vmem:[#allocation6 + $0x328] sm:$0xff] }
 0x7a5   : > { %13410 = vmatpush1.bf16.msra.mxu0 %v13409_v51  ;;  %v10134_v51 = vld [vmem:[#allocation6 + $0x2b0] sm:$0xff]  ;;  %v18876_v33 = vsub.f32 %v10135_v15, %v10167_v50 }
 0x7a6   : > { %13412 = vmatprep.subr.bf16.mxu0 %v13411_v40  ;;  %v21875_v40 = vld [vmem:[#allocation58_spill] sm:$0xff]  ;;  %v10169_v21 = vand.u32 4294901760, %v10134_v51  ;;  %v18866_v37 = vpack.c.bf16 %v9315_v54, %v9311_v27  ;;  %v18868_v43 = vsub.f32 %v9280_v34, %v9315_v54  ;;  %v9287_v54 = vld [vmem:[#allocation6 + $0x208] sm:$0xff] }
 0x7a7   : > { %13578 = vmatpush1.bf16.msra.mxu1 %v13577_v42  ;;  %v9283_v42 = vld [vmem:[#allocation6 + $0x1e8] sm:$0xff]  ;;  %21890 = vst [vmem:[#allocation66_spill] sm:$0xff] %v18876_v33 }
 0x7a8   : > { %13580 = vmatprep.subr.bf16.mxu1 %v13579_v7  ;;  %v10165_v7 = vand.u32 4294901760, %v10132_v28  ;;  %21884 = vst [vmem:[#allocation78_spill] sm:$0xff] %v18866_v37  ;;  %21885 = vst [vmem:[#allocation80_spill] sm:$0xff] %v18868_v43  ;;  %v9317_v22 = vand.u32 4294901760, %v9283_v42  ;;  %v9289_v37 = vld [vmem:[#allocation6 + $0x218] sm:$0xff]  ;;  %v10141_v33 = vld [vmem:[#allocation6 + $0x2e8] sm:$0xff] }
 0x7a9   : > { %13414 = vmatpush1.bf16.msra.mxu0 %v13413_v3  ;;  %v9284_v3 = vld [vmem:[#allocation6 + $0x1f0] sm:$0xff] }
 0x7aa   : > { %13416 = vmatprep.subr.bf16.mxu0 %v13415_v23  ;;  %v21878_v23 = vld [vmem:[#allocation98_spill] sm:$0xff]  ;;  %v18886_v15 = vpack.c.bf16 %v9321_v32, %v9317_v22 }
 0x7ab   : > { %13582 = vmatpush1.bf16.msra.mxu1 %v21870_v35  ;;  %v18857_v35 = vpack.c.bf16 %v9313_v61, %v9309_v47 }
 0x7ac   : > { %13584 = vmatprep.subr.bf16.mxu1 %v21871_v16  ;;  %v18859_v16 = vsub.f32 %v9279_v9, %v9309_v47  ;;  %v18871_v9 = vpack.c.bf16 %v10167_v50, %v10163_v19  ;;  %v9323_v47 = vand.u32 4294901760, %v9284_v3  ;;  %21896 = vst [vmem:[#allocation68_spill] sm:$0xff] %v18886_v15  ;;  %v18888_v50 = vsub.f32 %v9283_v42, %v9317_v22 }
 0x7ad   : > { %13418 = vmatpush1.bf16.msra.mxu0 %v21873_v4  ;;  %21879 = vst [vmem:[#allocation90_spill] sm:$0xff] %v18857_v35  ;;  %v18861_v4 = vsub.f32 %v9281_v48, %v9313_v61  ;;  %v18873_v48 = vsub.f32 %v10133_v1, %v10163_v19  ;;  %v21889_v61 = vld [vmem:[#allocation18_spill] sm:$0xff]  ;;  %v18881_v35 = vsub.f32 %v10132_v28, %v10165_v7  ;;  %v10173_v1 = vand.u32 4294901760, %v10136_v31  ;;  %v21900_v28 = vld [vmem:[#allocation25_spill] sm:$0xff] }
 0x7ae   : > { %13420 = vmatprep.subr.bf16.mxu0 %v21874_v39  ;;  %21880 = vst [vmem:[#allocation43_spill] sm:$0xff] %v18859_v16  ;;  %v18863_v39 = vsub.f32 %v9278_v6, %v9311_v27  ;;  %21887 = vst [vmem:[#allocation81_spill] sm:$0xff] %v18871_v9  ;;  %v9319_v6 = vand.u32 4294901760, %v9282_v20  ;;  %v9286_v9 = vld [vmem:[#allocation6 + $0x200] sm:$0xff] }
 0x7af   : > { %13586 = vmatpush1.bf16.msra.mxu1 %v21875_v40  ;;  %21881 = vst [vmem:[#allocation21_spill] sm:$0xff] %v18861_v4  ;;  %v10137_v40 = vld [vmem:[#allocation6 + $0x2c8] sm:$0xff]  ;;  %21888 = vst [vmem:[#allocation83_spill] sm:$0xff] %v18873_v48  ;;  %v21895_v48 = vld [vmem:[#allocation29_spill] sm:$0xff]  ;;  %v9327_v42 = vand.u32 4294901760, %v9286_v9 }
 0x7b0   : > { %13588 = vmatprep.subr.bf16.mxu1 %v21876_v0  ;;  %21882 = vst [vmem:[#allocation26_spill] sm:$0xff] %v18863_v39  ;;  %v10139_v0 = vld [vmem:[#allocation6 + $0x2d8] sm:$0xff]  ;;  %v10171_v34 = vand.u32 4294901760, %v10137_v40  ;;  %21893 = vst [vmem:[#allocation71_spill] sm:$0xff] %v18881_v35  ;;  %v10140_v35 = vld [vmem:[#allocation6 + $0x2e0] sm:$0xff] }
 0x7b1   : > { %13422 = vmatpush1.bf16.msra.mxu0 %v21878_v23  ;;  %v10138_v23 = vld [vmem:[#allocation6 + $0x2d0] sm:$0xff]  ;;  %v10175_v27 = vand.u32 4294901760, %v10139_v0  ;;  %21897 = vst [vmem:[#allocation75_spill] sm:$0xff] %v18888_v50 }
 0x7b2   : > { %13424 = vmatprep.subr.bf16.mxu0 %v21883_v5  ;;  %v18878_v5 = vpack.c.bf16 %v10169_v21, %v10165_v7  ;;  %v10177_v19 = vand.u32 4294901760, %v10138_v23  ;;  %v18897_v7 = vsub.f32 %v9284_v3, %v9323_v47  ;;  %v10179_v3 = vand.u32 4294901760, %v10141_v33  ;;  %v21909_v50 = vld [vmem:[#allocation33_spill] sm:$0xff] }
 0x7b3   : > { %13590 = vmatpush1.bf16.msra.mxu1 %v21886_v44  ;;  %v18883_v44 = vsub.f32 %v10134_v51, %v10169_v21  ;;  %v18895_v51 = vpack.c.bf16 %v9323_v47, %v9319_v6  ;;  %v9325_v21 = vand.u32 4294901760, %v9287_v54  ;;  %v18900_v22 = vpack.c.bf16 %v10175_v27, %v10171_v34 }
 0x7b4   : > { %13592 = vmatprep.subr.bf16.mxu1 %v21889_v61  ;;  %21891 = vst [vmem:[#allocation85_spill] sm:$0xff] %v18878_v5  ;;  %v18890_v61 = vsub.f32 %v9285_v52, %v9321_v32  ;;  %v18892_v5 = vsub.f32 %v9282_v20, %v9319_v6  ;;  %21902 = vst [vmem:[#allocation104_spill] sm:$0xff] %v18897_v7  ;;  %v18902_v32 = vsub.f32 %v10137_v40, %v10171_v34  ;;  %v9291_v20 = vld [vmem:[#allocation6 + $0x228] sm:$0xff]  ;;  %v9293_v7 = vld [vmem:[#allocation6 + $0x238] sm:$0xff] }
 0x7b5   : > { %13426 = vmatpush1.bf16.msra.mxu0 %v21892_v49  ;;  %21894 = vst [vmem:[#allocation67_spill] sm:$0xff] %v18883_v44  ;;  %v10143_v49 = vld [vmem:[#allocation6 + $0x2f8] sm:$0xff]  ;;  %21901 = vst [vmem:[#allocation100_spill] sm:$0xff] %v18895_v51  ;;  %v9329_v44 = vand.u32 4294901760, %v9289_v37  ;;  %v9331_v52 = vand.u32 4294901760, %v9288_v41  ;;  %v18907_v6 = vpack.c.bf16 %v10177_v19, %v10173_v1  ;;  %v10181_v40 = vand.u32 4294901760, %v10140_v35 }
 0x7b6   : > { %13428 = vmatprep.subr.bf16.mxu0 %v21895_v48  ;;  %21898 = vst [vmem:[#allocation99_spill] sm:$0xff] %v18890_v61  ;;  %21899 = vst [vmem:[#allocation102_spill] sm:$0xff] %v18892_v5  ;;  %v10142_v48 = vld [vmem:[#allocation6 + $0x2f0] sm:$0xff]  ;;  %v10183_v47 = vand.u32 4294901760, %v10143_v49  ;;  %v18910_v5 = vsub.f32 %v10136_v31, %v10173_v1  ;;  %v18925_v31 = vsub.f32 %v9286_v9, %v9327_v42  ;;  %v9337_v1 = vand.u32 4294901760, %v9293_v7 }
 0x7b7   : > { %13594 = vmatpush1.bf16.msra.mxu1 %v21900_v28  ;;  %21903 = vst [vmem:[#allocation103_spill] sm:$0xff] %v18900_v22  ;;  %21904 = vst [vmem:[#allocation106_spill] sm:$0xff] %v18902_v32  ;;  %v18905_v28 = vsub.f32 %v10139_v0, %v10175_v27  ;;  %v10185_v34 = vand.u32 4294901760, %v10142_v48  ;;  %v9290_v32 = vld [vmem:[#allocation6 + $0x220] sm:$0xff]  ;;  %v9292_v61 = vld [vmem:[#allocation6 + $0x230] sm:$0xff]  ;;  %v18917_v0 = vsub.f32 %v9287_v54, %v9325_v21 }
 0x7b8   : > { %13596 = vmatprep.subr.bf16.mxu1 %v18594_v56  ;;  %21906 = vst [vmem:[#allocation94_spill] sm:$0xff] %v18907_v6  ;;  %21907 = vst [vmem:[#allocation107_spill] sm:$0xff] %v18910_v5  ;;  %v18912_v56 = vsub.f32 %v10138_v23, %v10177_v19  ;;  %v18919_v27 = vsub.f32 %v9289_v37, %v9329_v44  ;;  %v18927_v23 = vsub.f32 %v9288_v41, %v9331_v52  ;;  %v10145_v19 = vld [vmem:[#allocation6 + $0x308] sm:$0xff]  ;;  %v9298_v5 = vld [vmem:[#allocation6 + $0x260] sm:$0xff] }
 0x7b9   : > { %13430 = vmatpush1.bf16.msra.mxu0 %v18592_v10  ;;  %21905 = vst [vmem:[#allocation105_spill] sm:$0xff] %v18905_v28  ;;  %v18915_v10 = vpack.c.bf16 %v9329_v44, %v9325_v21  ;;  %21911 = vst [vmem:[#allocation111_spill] sm:$0xff] %v18917_v0  ;;  %v9333_v28 = vand.u32 4294901760, %v9291_v20  ;;  %v18931_v37 = vpack.c.bf16 %v10183_v47, %v10179_v3  ;;  %v9335_v44 = vand.u32 4294901760, %v9290_v32  ;;  %v21918_v0 = vld [vmem:[#allocation36_spill] sm:$0xff] }
 0x7ba   : > { %13432 = vmatprep.subr.bf16.mxu0 %v21809_v55  ;;  %21908 = vst [vmem:[#allocation109_spill] sm:$0xff] %v18912_v56  ;;  %21912 = vst [vmem:[#allocation110_spill] sm:$0xff] %v18919_v27  ;;  %v18923_v55 = vpack.c.bf16 %v9331_v52, %v9327_v42  ;;  %v18933_v54 = vsub.f32 %v10141_v33, %v10179_v3  ;;  %v9339_v21 = vand.u32 4294901760, %v9292_v61  ;;  %v10146_v27 = vld [vmem:[#allocation6 + $0x310] sm:$0xff]  ;;  %v9297_v52 = vld [vmem:[#allocation6 + $0x258] sm:$0xff] }
 0x7bb   : > { %13598 = vmatpush1.bf16.msra.mxu1 %v21909_v50  ;;  %21910 = vst [vmem:[#allocation108_spill] sm:$0xff] %v18915_v10  ;;  %21914 = vst [vmem:[#allocation112_spill] sm:$0xff] %v18925_v31  ;;  %v10147_v50 = vld [vmem:[#allocation6 + $0x318] sm:$0xff]  ;;  %v18937_v41 = vsub.f32 %v10143_v49, %v10183_v47  ;;  %v18939_v9 = vpack.c.bf16 %v10185_v34, %v10181_v40  ;;  %v18941_v42 = vsub.f32 %v10140_v35, %v10181_v40  ;;  %v9294_v49 = vld [vmem:[#allocation6 + $0x240] sm:$0xff] }
 0x7bc   : > { %8298 = vmatmul.mubr.f32.vlgmr.msra.gmra.mrb[26].mxu0 %v18599_v29  ;;  %13600 = vmatprep.subr.bf16.mxu1 %v21813_v63  ;;  %21913 = vst [vmem:[#allocation113_spill] sm:$0xff] %v18923_v55  ;;  %21915 = vst [vmem:[#allocation115_spill] sm:$0xff] %v18927_v23  ;;  %v10144_v63 = vld [vmem:[#allocation6 + $0x300] sm:$0xff]  ;;  %v18946_v33 = vsub.f32 %v10142_v48, %v10185_v34  ;;  %v18948_v3 = vsub.f32 %v9291_v20, %v9333_v28  ;;  %v9296_v47 = vld [vmem:[#allocation6 + $0x250] sm:$0xff]  ;;  %v10193_v23 = vand.u32 4294901760, %v10146_v27 }
 0x7bd   : > { %13434 = vmatpush1.bf16.msra.mxu0 %v21814_v2  ;;  %8396 = vmatprep.mubr.f32.mxu0 %v21746_v38  ;;  %21916 = vst [vmem:[#allocation114_spill] sm:$0xff] %v18931_v37  ;;  %21917 = vst [vmem:[#allocation117_spill] sm:$0xff] %v18933_v54  ;;  %v9295_v2 = vld [vmem:[#allocation6 + $0x248] sm:$0xff]  ;;  %v10187_v54 = vand.u32 4294901760, %v10145_v19  ;;  %v18951_v35 = vpack.c.bf16 %v9337_v1, %v9333_v28  ;;  %v18953_v40 = vsub.f32 %v9293_v7, %v9337_v1  ;;  %v10148_v1 = vld [vmem:[#allocation6 + $0x320] sm:$0xff] }
 0x7be   : > { %9152 = vmatmul.mubr.f32.vlgmr.msra.gmra.mrb[40].mxu1 %v21918_v0  ;;  %13436 = vmatprep.subr.bf16.mxu0 %v21815_v14  ;;  %21919 = vst [vmem:[#allocation116_spill] sm:$0xff] %v18937_v41  ;;  %21920 = vst [vmem:[#allocation48_spill] sm:$0xff] %v18939_v9  ;;  %v10191_v14 = vand.u32 4294901760, %v10147_v50  ;;  %v18956_v48 = vpack.c.bf16 %v9339_v21, %v9335_v44  ;;  %v18958_v20 = vsub.f32 %v9290_v32, %v9335_v44  ;;  %v9299_v31 = vld [vmem:[#allocation6 + $0x268] sm:$0xff]  ;;  %v9301_v56 = vld [vmem:[#allocation6 + $0x278] sm:$0xff] }
 0x7bf   : > { %21921 = vst [vmem:[#allocation95_spill] sm:$0xff] %v18941_v42  ;;  %13602 = vmatpush1.bf16.msra.mxu1 %v21816_v17  ;;  %9250 = vmatprep.mubr.f32.mxu1 %v21746_v38  ;;  %21922 = vst [vmem:[#allocation52_spill] sm:$0xff] %v18946_v33  ;;  %v10189_v42 = vand.u32 4294901760, %v10144_v63  ;;  %v10151_v17 = vld [vmem:[#allocation6 + $0x338] sm:$0xff]  ;;  %v9341_v34 = vand.u32 4294901760, %v9295_v2  ;;  %v18961_v33 = vsub.f32 %v9292_v61, %v9339_v21  ;;  %v9343_v7 = vand.u32 4294901760, %v9294_v49 }
 0x7c0   : > { %21923 = vst [vmem:[#allocation44_spill] sm:$0xff] %v18948_v3  ;;  %13604 = vmatprep.subr.bf16.mxu1 %v21817_v26  ;;  %21924 = vst [vmem:[#allocation42_spill] sm:$0xff] %v18951_v35  ;;  %v9345_v3 = vand.u32 4294901760, %v9297_v52  ;;  %v18963_v26 = vsub.f32 %v10145_v19, %v10187_v54  ;;  %v9347_v28 = vand.u32 4294901760, %v9296_v47  ;;  %v18966_v41 = vpack.c.bf16 %v10191_v14, %v10187_v54  ;;  %v9305_v9 = vld [vmem:[#allocation6 + $0x298] sm:$0xff] }
 0x7c1   : > { %21925 = vst [vmem:[#allocation38_spill] sm:$0xff] %v18953_v40  ;;  %13438 = vmatpush1.bf16.msra.mxu0 %v21818_v11  ;;  %21926 = vst [vmem:[#allocation35_spill] sm:$0xff] %v18956_v48  ;;  %v10150_v40 = vld [vmem:[#allocation6 + $0x330] sm:$0xff]  ;;  %v18968_v11 = vsub.f32 %v10147_v50, %v10191_v14  ;;  %v10195_v32 = vand.u32 4294901760, %v10149_v36  ;;  %v10199_v44 = vand.u32 4294901760, %v10151_v17  ;;  %v18973_v61 = vsub.f32 %v10144_v63, %v10189_v42 }
 0x7c2   : > { %21927 = vst [vmem:[#allocation54_spill] sm:$0xff] %v18958_v20  ;;  %13440 = vmatprep.subr.bf16.mxu0 %v21819_v30  ;;  %21928 = vst [vmem:[#allocation53_spill] sm:$0xff] %v18961_v33  ;;  %v18971_v30 = vpack.c.bf16 %v10193_v23, %v10189_v42  ;;  %v18975_v19 = vsub.f32 %v10146_v27, %v10193_v23  ;;  %v18977_v21 = vsub.f32 %v9295_v2, %v9341_v34  ;;  %v10152_v2 = vld [vmem:[#allocation6 + $0x340] sm:$0xff] }
 0x7c3   : > { %21929 = vst [vmem:[#allocation49_spill] sm:$0xff] %v18963_v26  ;;  %13606 = vmatpush1.bf16.msra.mxu1 %v21820_v45  ;;  %21930 = vst [vmem:[#allocation45_spill] sm:$0xff] %v18966_v41  ;;  %v9300_v45 = vld [vmem:[#allocation6 + $0x270] sm:$0xff]  ;;  %v18980_v50 = vpack.c.bf16 %v9345_v3, %v9341_v34  ;;  %v18982_v54 = vsub.f32 %v9297_v52, %v9345_v3  ;;  %v10197_v14 = vand.u32 4294901760, %v10148_v1  ;;  %v10201_v48 = vand.u32 4294901760, %v10150_v40  ;;  %v10153_v41 = vld [vmem:[#allocation6 + $0x348] sm:$0xff] }
 0x7c4   : > { %13608 = vmatprep.subr.bf16.mxu1 %v21821_v62  ;;  %21931 = vst [vmem:[#allocation40_spill] sm:$0xff] %v18971_v30  ;;  %v10155_v62 = vld [vmem:[#allocation6 + $0x358] sm:$0xff]  ;;  %v18985_v63 = vpack.c.bf16 %v9347_v28, %v9343_v7  ;;  %v18987_v27 = vsub.f32 %v9294_v49, %v9343_v7  ;;  %v9349_v23 = vand.u32 4294901760, %v9299_v31  ;;  %v9353_v42 = vand.u32 4294901760, %v9301_v56  ;;  %v10154_v30 = vld [vmem:[#allocation6 + $0x350] sm:$0xff] }
 0x7c5   : > { %13442 = vmatpush1.bf16.msra.mxu0 %v21822_v13  ;;  %21932 = vst [vmem:[#allocation17_spill] sm:$0xff] %v18980_v50  ;;  %v18990_v13 = vsub.f32 %v9296_v47, %v9347_v28  ;;  %v18992_v52 = vpack.c.bf16 %v10199_v44, %v10195_v32  ;;  %v9351_v3 = vand.u32 4294901760, %v9298_v5  ;;  %v9355_v34 = vand.u32 4294901760, %v9300_v45 }
 0x7c6   : > { %13444 = vmatprep.subr.bf16.mxu0 %v21823_v60  ;;  %21933 = vst [vmem:[#allocation93_spill] sm:$0xff] %v18985_v63  ;;  %v18995_v50 = vsub.f32 %v10149_v36, %v10195_v32  ;;  %v18997_v60 = vsub.f32 %v10151_v17, %v10199_v44  ;;  %v10203_v49 = vand.u32 4294901760, %v10153_v41  ;;  %v10207_v7 = vand.u32 4294901760, %v10155_v62  ;;  %v9303_v63 = vld [vmem:[#allocation6 + $0x288] sm:$0xff]  ;;  %v19013_v32 = vld [vmem:[#allocation6 + $0x280] sm:$0xff]  ;;  %v19015_v44 = vld [vmem:[#allocation6 + $0x290] sm:$0xff] }
 0x7c7   : > { %13610 = vmatpush1.bf16.msra.mxu1 %v21824_v57  ;;  %21934 = vst [vmem:[#allocation72_spill] sm:$0xff] %v18992_v52  ;;  %v19000_v35 = vpack.c.bf16 %v10201_v48, %v10197_v14  ;;  %v19002_v57 = vsub.f32 %v10148_v1, %v10197_v14  ;;  %v10205_v47 = vand.u32 4294901760, %v10152_v2  ;;  %v10209_v28 = vand.u32 4294901760, %v10154_v30 }
 0x7c8   : > { %13612 = vmatprep.subr.bf16.mxu1 %v21825_v18  ;;  %v19005_v52 = vsub.f32 %v10150_v40, %v10201_v48  ;;  %v19007_v18 = vpack.c.bf16 %v9353_v42, %v9349_v23  ;;  %v19009_v36 = vsub.f32 %v9299_v31, %v9349_v23  ;;  %v19011_v17 = vsub.f32 %v9301_v56, %v9353_v42  ;;  %v19022_v40 = vld [vmem:[#allocation6 + $0x368] sm:$0xff]  ;;  %v19024_v48 = vld [vmem:[#allocation6 + $0x378] sm:$0xff]  ;;  %v19026_v31 = vld [vmem:[#allocation6 + $0x360] sm:$0xff] }
 0x7c9   : > { %13446 = vmatpush1.bf16.msra.mxu0 %v21826_v46  ;;  %21935 = vst [vmem:[#allocation70_spill] sm:$0xff] %v19000_v35  ;;  %v19018_v46 = vpack.c.bf16 %v9355_v34, %v9351_v3  ;;  %v19020_v1 = vsub.f32 %v9298_v5, %v9351_v3  ;;  %v9357_v14 = vand.u32 4294901760, %v9303_v63  ;;  %v19029_v56 = vsub.f32 %v9300_v45, %v9355_v34  ;;  %v19037_v5 = vld [vmem:[#allocation6 + $0x370] sm:$0xff] }
 0x7ca   : > { %13448 = vmatprep.subr.bf16.mxu0 %v21827_v53  ;;  %21936 = vst [vmem:[#allocation65_spill] sm:$0xff] %v19007_v18  ;;  %v9361_v53 = vand.u32 4294901760, %v9305_v9  ;;  %v19031_v23 = vpack.c.bf16 %v10207_v7, %v10203_v49  ;;  %v19033_v42 = vsub.f32 %v10153_v41, %v10203_v49  ;;  %v19040_v3 = vpack.c.bf16 %v10209_v28, %v10205_v47  ;;  %v21941_v49 = vld [vmem:[#allocation82_spill] sm:$0xff] }
 0x7cb   : > { %13614 = vmatpush1.bf16.msra.mxu1 %v21828_v25  ;;  %21937 = vst [vmem:[#allocation20_spill] sm:$0xff] %v19018_v46  ;;  %v19035_v25 = vsub.f32 %v10155_v62, %v10207_v7  ;;  %v19042_v46 = vsub.f32 %v10152_v2, %v10205_v47  ;;  %v19044_v35 = vsub.f32 %v10154_v30, %v10209_v28  ;;  %v20999_v45 = vand.u32 4294901760, %v19015_v44  ;;  %v21943_v47 = vld [vmem:[#allocation91_spill] sm:$0xff] }
 0x7cc   : > { %13616 = vmatprep.subr.bf16.mxu1 %v21829_v59  ;;  %21938 = vst [vmem:[#allocation73_spill] sm:$0xff] %v19031_v23  ;;  %21939 = vst [vmem:[#allocation74_spill] sm:$0xff] %v19040_v3  ;;  %v21001_v59 = vand.u32 4294901760, %v19013_v32  ;;  %v20998_v41 = vand.u32 4294901760, %v19022_v40  ;;  %v21000_v62 = vand.u32 4294901760, %v19024_v48  ;;  %v21002_v34 = vand.u32 4294901760, %v19026_v31 }
 0x7cd   : > { %13450 = vmatpush1.bf16.msra.mxu0 %v21830_v24  ;;  %21940 = vst [vmem:[#allocation51_spill] sm:$0xff] %v19044_v35  ;;  %v19053_v24 = vpack.c.bf16 %v9361_v53, %v9357_v14  ;;  %v19055_v2 = vsub.f32 %v9303_v63, %v9357_v14  ;;  %v19057_v30 = vsub.f32 %v9305_v9, %v9361_v53  ;;  %v21004_v7 = vand.u32 4294901760, %v19037_v5  ;;  %v21948_v14 = vld [vmem:[#allocation87_spill] sm:$0xff]  ;;  %v21964_v3 = vld [vmem:[#allocation66_spill] sm:$0xff] }
 0x7ce   : > { %13452 = vmatprep.subr.bf16.mxu0 %v21831_v8  ;;  %v19064_v8 = vsub.f32 %v19013_v32, %v21001_v59  ;;  %v19069_v28 = vsub.f32 %v19015_v44, %v20999_v45  ;;  %v19074_v63 = vsub.f32 %v19022_v40, %v20998_v41  ;;  %v19079_v9 = vsub.f32 %v19024_v48, %v21000_v62  ;;  %v21951_v45 = vld [vmem:[#allocation63_spill] sm:$0xff] }
 0x7cf   : > { %13618 = vmatpush1.bf16.msra.mxu1 %v21941_v49  ;;  %21942 = vst [vmem:[#allocation47_spill] sm:$0xff] %v19053_v24  ;;  %v19085_v53 = vsub.f32 %v19026_v31, %v21002_v34  ;;  %v19090_v49 = vsub.f32 %v19037_v5, %v21004_v7  ;;  %v21952_v41 = vand.u32 4294901760, %v18958_v20  ;;  %v21956_v34 = vld [vmem:[#allocation64_spill] sm:$0xff]  ;;  %v21961_v62 = vand.u32 4294901760, %v18975_v19  ;;  %v21966_v20 = vld [vmem:[#allocation77_spill] sm:$0xff] }
 0x7d0   : > { %13620 = vmatprep.subr.bf16.mxu1 %v21943_v47  ;;  %21944 = vst [vmem:[#allocation27_spill] sm:$0xff] %v19064_v8  ;;  %21945 = vst [vmem:[#allocation22_spill] sm:$0xff] %v19069_v28  ;;  %v21971_v47 = vand.u32 4294901760, %v18990_v13  ;;  %v21980_v7 = vand.u32 4294901760, %v19002_v57 }
 0x7d1   : > { %21946 = vst [vmem:[#allocation31_spill] sm:$0xff] %v19074_v63  ;;  %21947 = vst [vmem:[#allocation30_spill] sm:$0xff] %v19079_v9  ;;  %13454 = vmatpush1.bf16.msra.mxu0 %v21948_v14  ;;  %v21955_v14 = vld [vmem:[#allocation83_spill] sm:$0xff] }
 0x7d2   : > { %21949 = vst [vmem:[#allocation39_spill] sm:$0xff] %v19085_v53  ;;  %21950 = vst [vmem:[#allocation34_spill] sm:$0xff] %v19090_v49  ;;  %13456 = vmatprep.subr.bf16.mxu0 %v21951_v45  ;;  %v21953_v45 = vand.u32 4294901760, %v18961_v33  ;;  %v21957_v33 = vand.u32 4294901760, %v18963_v26  ;;  %v21973_v26 = vld [vmem:[#allocation81_spill] sm:$0xff] }
 0x7d3   : > { %13622 = vmatpush1.bf16.msra.mxu1 %v21838_v12  ;;  %v21963_v12 = vld [vmem:[#allocation90_spill] sm:$0xff] }
 0x7d4   : > { %v19107_v24 = vpack.c.bf16 %v21953_v45, %v21952_v41  ;;  %13624 = vmatprep.subr.bf16.mxu1 %v21839_v58  ;;  %v21958_v41 = vand.u32 4294901760, %v18968_v11  ;;  %v21960_v58 = vand.u32 4294901760, %v18973_v61 }
 0x7d5   : > { %13458 = vmatpush1.bf16.msra.mxu0 %v21956_v34  ;;  %v21970_v34 = vand.u32 4294901760, %v18987_v27 }
 0x7d6   : > { %21954 = vst [vmem:[#allocation50_spill] sm:$0xff] %v19107_v24  ;;  %v19121_v45 = vpack.c.bf16 %v21958_v41, %v21957_v33  ;;  %v19127_v59 = vpack.c.bf16 %v21961_v62, %v21960_v58  ;;  %13628 = vmatprep.subr.bf16.mxu0 %v21963_v12  ;;  %v21965_v24 = vld [vmem:[#allocation71_spill] sm:$0xff]  ;;  %v21968_v62 = vand.u32 4294901760, %v18982_v54 }
 0x7d7   : > { %13626 = vmatpush1.bf16.msra.mxu1 %v21966_v20  ;;  %v21974_v20 = vand.u32 4294901760, %v18859_v16  ;;  %v21975_v33 = vld [vmem:[#allocation67_spill] sm:$0xff] }
 0x7d8   : > { %21959 = vst [vmem:[#allocation46_spill] sm:$0xff] %v19121_v45  ;;  %21962 = vst [vmem:[#allocation15_spill] sm:$0xff] %v19127_v59  ;;  %v21967_v45 = vand.u32 4294901760, %v18977_v21  ;;  %v19147_v59 = vpack.c.bf16 %v21971_v47, %v21970_v34  ;;  %8398 = vmatmul.mubr.f32.vlgmr.msra.gmra.mrb[26].mxu0 %v18599_v29  ;;  %13796 = vmatprep.subr.bf16.mxu1 %v21973_v26  ;;  %v21977_v34 = vand.u32 4294901760, %v18995_v50  ;;  %v21983_v47 = vand.u32 4294901760, %v18861_v4 }
 0x7d9   : > { %v19154_v41 = vsub.f32 %v18859_v16, %v21974_v20  ;;  %9401 = vmatprep.mubr.f32.mxu0 %v21746_v38 }
 0x7da   : > { %v19141_v58 = vpack.c.bf16 %v21968_v62, %v21967_v45  ;;  %21972 = vst [vmem:[#allocation28_spill] sm:$0xff] %v19147_v59  ;;  %v21978_v59 = vand.u32 4294901760, %v18997_v60  ;;  %v21981_v45 = vand.u32 4294901760, %v19005_v52  ;;  %9252 = vmatmul.mubr.f32.vlgmr.msra.gmra.mrb[40].mxu1 %v21918_v0  ;;  %v9428_v29 = vsub.f32 %v18861_v4, %v21983_v47  ;;  %v22044_v4 = vld [vmem:[#allocation115_spill] sm:$0xff] }
 0x7db   : > { %v21984_v62 = vand.u32 4294901760, %v18863_v39  ;;  %10255 = vmatprep.mubr.f32.mxu1 %v21746_v38  ;;  %v21987_v47 = vand.u32 4294901760, %v19011_v17 }
 0x7dc   : > { %21969 = vst [vmem:[#allocation60_spill] sm:$0xff] %v19141_v58  ;;  %v21976_v58 = vld [vmem:[#allocation78_spill] sm:$0xff]  ;;  %v19167_v20 = vpack.c.bf16 %v21978_v59, %v21977_v34  ;;  %v19173_v26 = vpack.c.bf16 %v21981_v45, %v21980_v7  ;;  %v21986_v45 = vand.u32 4294901760, %v19009_v36  ;;  %v21990_v59 = vand.u32 4294901760, %v19029_v56 }
 0x7dd   : > { %13630 = vmatpush1.bf16.msra.mxu0 %v21976_v58  ;;  %v19183_v58 = vsub.f32 %v18863_v39, %v21984_v62  ;;  %v21989_v62 = vand.u32 4294901760, %v19020_v1  ;;  %v21992_v34 = vand.u32 4294901760, %v18868_v43  ;;  %v21993_v7 = vand.u32 4294901760, %v21955_v14  ;;  %v22041_v39 = vld [vmem:[#allocation110_spill] sm:$0xff] }
 0x7de   : > { %21979 = vst [vmem:[#allocation24_spill] sm:$0xff] %v19167_v20  ;;  %21982 = vst [vmem:[#allocation61_spill] sm:$0xff] %v19173_v26  ;;  %13632 = vmatprep.subr.bf16.mxu0 %v18886_v15  ;;  %v21985_v20 = vld [vmem:[#allocation85_spill] sm:$0xff]  ;;  %v19195_v26 = vpack.c.bf16 %v21987_v47, %v21986_v45  ;;  %v22000_v47 = vand.u32 4294901760, %v21964_v3 }
 0x7df   : > { %13798 = vmatpush1.bf16.msra.mxu1 %v21985_v20  ;;  %v19201_v15 = vpack.c.bf16 %v21990_v59, %v21989_v62  ;;  %v9434_v0 = vsub.f32 %v18868_v43, %v21992_v34  ;;  %v19210_v20 = vsub.f32 %v21955_v14, %v21993_v7  ;;  %v21998_v7 = vand.u32 4294901760, %v19044_v35  ;;  %v22042_v14 = vld [vmem:[#allocation40_spill] sm:$0xff] }
 0x7e0   : > { %21988 = vst [vmem:[#allocation32_spill] sm:$0xff] %v19195_v26  ;;  %13800 = vmatprep.subr.bf16.mxu1 %v18900_v22  ;;  %v21995_v26 = vand.u32 4294901760, %v19035_v25  ;;  %v21997_v22 = vand.u32 4294901760, %v19042_v46  ;;  %v10282_v59 = vsub.f32 %v21964_v3, %v22000_v47  ;;  %v22001_v62 = vand.u32 4294901760, %v21965_v24 }
 0x7e1   : > { %21991 = vst [vmem:[#allocation79_spill] sm:$0xff] %v19201_v15  ;;  %13634 = vmatpush1.bf16.msra.mxu0 %v18895_v51  ;;  %v21994_v15 = vand.u32 4294901760, %v19033_v42  ;;  %v22022_v43 = vand.u32 4294901760, %v19022_v40 }
 0x7e2   : > { %v19227_v12 = vpack.c.bf16 %v21998_v7, %v21997_v22  ;;  %13636 = vmatprep.subr.bf16.mxu0 %v18915_v10  ;;  %v19236_v45 = vsub.f32 %v21965_v24, %v22001_v62  ;;  %v22005_v10 = vand.u32 4294901760, %v19064_v8  ;;  %v22006_v62 = vand.u32 4294901760, %v19069_v28  ;;  %v22065_v28 = vld [vmem:[#allocation38_spill] sm:$0xff] }
 0x7e3   : > { %v19221_v34 = vpack.c.bf16 %v21995_v26, %v21994_v15  ;;  %13802 = vmatpush1.bf16.msra.mxu1 %v18907_v6  ;;  %v9417_v26 = vand.u32 4294901760, %v19154_v41  ;;  %v9429_v15 = vand.u32 4294901760, %v9428_v29  ;;  %v22008_v22 = vand.u32 4294901760, %v21975_v33  ;;  %v22009_v6 = vld [vmem:[#allocation75_spill] sm:$0xff] }
 0x7e4   : > { %21999 = vst [vmem:[#allocation84_spill] sm:$0xff] %v19227_v12  ;;  %v22002_v12 = vand.u32 4294901760, %v19055_v2  ;;  %v19253_v51 = vpack.c.bf16 %v22006_v62, %v22005_v10  ;;  %13804 = vmatprep.subr.bf16.mxu1 %v18931_v37  ;;  %v22012_v10 = vand.u32 4294901760, %v19074_v63  ;;  %v22013_v62 = vand.u32 4294901760, %v19079_v9  ;;  %v22018_v37 = vld [vmem:[#allocation42_spill] sm:$0xff] }
 0x7e5   : > { %21996 = vst [vmem:[#allocation76_spill] sm:$0xff] %v19221_v34  ;;  %v22003_v34 = vand.u32 4294901760, %v19057_v30  ;;  %v19260_v7 = vsub.f32 %v21975_v33, %v22008_v22  ;;  %13638 = vmatpush1.bf16.msra.mxu0 %v18923_v55  ;;  %v22015_v41 = vand.u32 4294901760, %v19085_v53  ;;  %v22016_v29 = vand.u32 4294901760, %v19090_v49  ;;  %v22046_v49 = vld [vmem:[#allocation116_spill] sm:$0xff] }
 0x7e6   : > { %22007 = vst [vmem:[#allocation69_spill] sm:$0xff] %v19253_v51  ;;  %v19270_v51 = vpack.c.bf16 %v22013_v62, %v22012_v10  ;;  %13640 = vmatprep.subr.bf16.mxu0 %v22018_v37  ;;  %v22019_v24 = vand.u32 4294901760, %v19013_v32  ;;  %v22023_v33 = vand.u32 4294901760, %v19024_v48  ;;  %v22025_v62 = vand.u32 4294901760, %v19026_v31  ;;  %v22030_v48 = vld [vmem:[#allocation104_spill] sm:$0xff]  ;;  %v22033_v37 = vld [vmem:[#allocation35_spill] sm:$0xff] }
 0x7e7   : > { %v19247_v47 = vpack.c.bf16 %v22003_v34, %v22002_v12  ;;  %v22010_v12 = vld [vmem:[#allocation99_spill] sm:$0xff]  ;;  %v19276_v22 = vpack.c.bf16 %v22016_v29, %v22015_v41  ;;  %v22020_v34 = vand.u32 4294901760, %v19015_v44  ;;  %v9423_v29 = vand.u32 4294901760, %v19183_v58 }
 0x7e8   : > { %22014 = vst [vmem:[#allocation55_spill] sm:$0xff] %v19270_v51  ;;  %v19289_v10 = vpack.c.bf16 %v22023_v33, %v22022_v43  ;;  %v22026_v51 = vand.u32 4294901760, %v19037_v5  ;;  %v9435_v32 = vand.u32 4294901760, %v9434_v0  ;;  %v10271_v44 = vand.u32 4294901760, %v19210_v20  ;;  %v22031_v33 = vld [vmem:[#allocation106_spill] sm:$0xff]  ;;  %v22038_v5 = vld [vmem:[#allocation107_spill] sm:$0xff] }
 0x7e9   : > { %22004 = vst [vmem:[#allocation92_spill] sm:$0xff] %v19247_v47  ;;  %v22011_v47 = vld [vmem:[#allocation102_spill] sm:$0xff]  ;;  %22017 = vst [vmem:[#allocation57_spill] sm:$0xff] %v19276_v22  ;;  %v19283_v55 = vpack.c.bf16 %v22020_v34, %v22019_v24  ;;  %v22028_v22 = vld [vmem:[#allocation48_spill] sm:$0xff]  ;;  %v10283_v24 = vand.u32 4294901760, %v10282_v59  ;;  %v10277_v40 = vand.u32 4294901760, %v19236_v45  ;;  %13642 = vmatpush1.bf16.msra.mxu0 %v22033_v37  ;;  %v19307_v58 = vpack.c.bf16 %v9429_v15, %v9417_v26 }
 0x7ea   : > { %22024 = vst [vmem:[#allocation96_spill] sm:$0xff] %v19289_v10  ;;  %v19295_v41 = vpack.c.bf16 %v22026_v51, %v22025_v62  ;;  %13806 = vmatpush1.bf16.msra.mxu1 %v22028_v22  ;;  %v22029_v34 = vld [vmem:[#allocation45_spill] sm:$0xff]  ;;  %v10289_v43 = vand.u32 4294901760, %v19260_v7  ;;  %v22034_v0 = vand.u32 4294901760, %v22009_v6  ;;  %v22035_v45 = vand.u32 4294901760, %v22010_v12  ;;  %v22040_v15 = vld [vmem:[#allocation111_spill] sm:$0xff] }
 0x7eb   : > { %22021 = vst [vmem:[#allocation56_spill] sm:$0xff] %v19283_v55  ;;  %13808 = vmatprep.subr.bf16.mxu1 %v22029_v34  ;;  %v22032_v51 = vld [vmem:[#allocation105_spill] sm:$0xff]  ;;  %v22036_v7 = vand.u32 4294901760, %v22011_v47  ;;  %v22048_v37 = vand.u32 4294901760, %v22030_v48  ;;  %v22049_v3 = vand.u32 4294901760, %v22031_v33  ;;  %v13823_v16 = vpack.c.bf16 %v10283_v24, %v10271_v44  ;;  %v22056_v24 = vld [vmem:[#allocation70_spill] sm:$0xff] }
 0x7ec   : > { %22027 = vst [vmem:[#allocation58_spill] sm:$0xff] %v19295_v41  ;;  %v9440_v20 = vsub.f32 %v22009_v6, %v22034_v0  ;;  %v9452_v59 = vsub.f32 %v22010_v12, %v22035_v45  ;;  %v22037_v34 = vld [vmem:[#allocation17_spill] sm:$0xff]  ;;  %v22043_v0 = vld [vmem:[#allocation112_spill] sm:$0xff]  ;;  %v22050_v6 = vand.u32 4294901760, %v22032_v51 }
 0x7ed   : > { %v9446_v31 = vsub.f32 %v22011_v47, %v22036_v7  ;;  %13644 = vmatprep.subr.bf16.mxu0 %v22037_v34  ;;  %v22039_v22 = vld [vmem:[#allocation109_spill] sm:$0xff]  ;;  %v22047_v47 = vld [vmem:[#allocation72_spill] sm:$0xff]  ;;  %v19329_v34 = vpack.c.bf16 %v9435_v32, %v9423_v29  ;;  %v9458_v26 = vsub.f32 %v22030_v48, %v22048_v37  ;;  %v10294_v62 = vsub.f32 %v22031_v33, %v22049_v3 }
 0x7ee   : > { %13810 = vmatpush1.bf16.msra.mxu1 %v22042_v14  ;;  %v22045_v12 = vld [vmem:[#allocation117_spill] sm:$0xff]  ;;  %v10306_v45 = vsub.f32 %v22032_v51, %v22050_v6  ;;  %v9441_v7 = vand.u32 4294901760, %v9440_v20  ;;  %v9453_v53 = vand.u32 4294901760, %v9452_v59  ;;  %v22052_v29 = vand.u32 4294901760, %v22038_v5  ;;  %v22063_v51 = vld [vmem:[#allocation52_spill] sm:$0xff] }
 0x7ef   : > { %13812 = vmatprep.subr.bf16.mxu1 %v22047_v47  ;;  %v22051_v14 = vld [vmem:[#allocation93_spill] sm:$0xff]  ;;  %v9447_v47 = vand.u32 4294901760, %v9446_v31  ;;  %v22053_v32 = vand.u32 4294901760, %v22039_v22  ;;  %v22054_v48 = vand.u32 4294901760, %v22040_v15  ;;  %v22057_v31 = vand.u32 4294901760, %v22043_v0 }
 0x7f0   : > { %13646 = vmatpush1.bf16.msra.mxu0 %v22051_v14  ;;  %v10300_v37 = vsub.f32 %v22038_v5, %v22052_v29  ;;  %v22055_v14 = vand.u32 4294901760, %v22041_v39  ;;  %v22058_v59 = vand.u32 4294901760, %v22044_v4  ;;  %v10307_v5 = vand.u32 4294901760, %v10306_v45 }
 0x7f1   : > { %13648 = vmatprep.subr.bf16.mxu0 %v19007_v18  ;;  %v10312_v3 = vsub.f32 %v22039_v22, %v22053_v32  ;;  %v9464_v6 = vsub.f32 %v22040_v15, %v22054_v48  ;;  %v9470_v20 = vsub.f32 %v22043_v0, %v22057_v31  ;;  %v22059_v32 = vand.u32 4294901760, %v22045_v12  ;;  %v22062_v31 = vld [vmem:[#allocation20_spill] sm:$0xff] }
 0x7f2   : > { %v9476_v44 = vsub.f32 %v22041_v39, %v22055_v14  ;;  %13814 = vmatpush1.bf16.msra.mxu1 %v22056_v24  ;;  %v9482_v29 = vsub.f32 %v22044_v4, %v22058_v59  ;;  %v22060_v48 = vand.u32 4294901760, %v22046_v49  ;;  %v9459_v14 = vand.u32 4294901760, %v9458_v26  ;;  %v22061_v39 = vld [vmem:[#allocation95_spill] sm:$0xff]  ;;  %v22064_v4 = vld [vmem:[#allocation44_spill] sm:$0xff]  ;;  %v22067_v26 = vld [vmem:[#allocation74_spill] sm:$0xff] }
 0x7f3   : > { %v10318_v18 = vsub.f32 %v22045_v12, %v22059_v32  ;;  %13816 = vmatprep.subr.bf16.mxu1 %v19031_v23  ;;  %v10295_v24 = vand.u32 4294901760, %v10294_v62  ;;  %v13825_v0 = vpack.c.bf16 %v10289_v43, %v10277_v40  ;;  %v22066_v12 = vld [vmem:[#allocation47_spill] sm:$0xff]  ;;  %v10301_v8 = vand.u32 4294901760, %v10300_v37 }
 0x7f4   : > { %v10330_v22 = vsub.f32 %v22046_v49, %v22060_v48  ;;  %13650 = vmatpush1.bf16.msra.mxu0 %v22062_v31  ;;  %v10313_v48 = vand.u32 4294901760, %v10312_v3  ;;  %v9465_v49 = vand.u32 4294901760, %v9464_v6  ;;  %v9477_v23 = vand.u32 4294901760, %v9476_v44  ;;  %v22074_v44 = vld [vmem:[#allocation53_spill] sm:$0xff] }
 0x7f5   : > { %13652 = vmatprep.subr.bf16.mxu0 %v22066_v12  ;;  %v9471_v62 = vand.u32 4294901760, %v9470_v20  ;;  %v9483_v45 = vand.u32 4294901760, %v9482_v29  ;;  %v10319_v15 = vand.u32 4294901760, %v10318_v18  ;;  %v13659_v40 = vpack.c.bf16 %v9453_v53, %v9441_v7  ;;  %v22076_v29 = vld [vmem:[#allocation49_spill] sm:$0xff] }
 0x7f6   : > { %13818 = vmatpush1.bf16.msra.mxu1 %v22067_v26  ;;  %v10331_v9 = vand.u32 4294901760, %v10330_v22  ;;  %v13661_v43 = vpack.c.bf16 %v9459_v14, %v9447_v47  ;;  %v13827_v59 = vpack.c.bf16 %v10307_v5, %v10295_v24  ;;  %v22068_v33 = vand.u32 4294901760, %v22061_v39  ;;  %v22072_v47 = vld [vmem:[#allocation54_spill] sm:$0xff] }
 0x7f7   : > { %13820 = vmatprep.subr.bf16.mxu1 %v19289_v10  ;;  %v22069_v37 = vand.u32 4294901760, %v22063_v51  ;;  %v22070_v6 = vand.u32 4294901760, %v22064_v4  ;;  %v22071_v22 = vand.u32 4294901760, %v22065_v28  ;;  %v22073_v5 = vand.u32 4294901760, %v22072_v47 }
 0x7f8   : > { %v10324_v32 = vsub.f32 %v22061_v39, %v22068_v33  ;;  %13654 = vmatpush1.bf16.msra.mxu0 %v19283_v55  ;;  %v13829_v33 = vpack.c.bf16 %v10313_v48, %v10301_v8  ;;  %v22075_v24 = vand.u32 4294901760, %v22074_v44  ;;  %v22077_v14 = vand.u32 4294901760, %v22076_v29  ;;  %v22080_v48 = vld [vmem:[#allocation88_spill] sm:$0xff] }
 0x7f9   : > { %v10336_v3 = vsub.f32 %v22063_v51, %v22069_v37  ;;  %v9488_v18 = vsub.f32 %v22064_v4, %v22070_v6  ;;  %v9500_v53 = vsub.f32 %v22065_v28, %v22071_v22  ;;  %v9494_v7 = vsub.f32 %v22072_v47, %v22073_v5  ;;  %13656 = vmatprep.subr.bf16.mxu0 %v19307_v58 }
 0x7fa   : > { %v9506_v20 = vsub.f32 %v22074_v44, %v22075_v24  ;;  %v10342_v37 = vsub.f32 %v22076_v29, %v22077_v14  ;;  %v22078_v6 = vand.u32 4294901760, %v18968_v11  ;;  %13822 = vmatpush1.bf16.msra.mxu1 %v19295_v41  ;;  %v13663_v22 = vpack.c.bf16 %v9477_v23, %v9465_v49 }
 0x7fb   : > { %v13665_v10 = vpack.c.bf16 %v9483_v45, %v9471_v62  ;;  %v13831_v5 = vpack.c.bf16 %v10331_v9, %v10319_v15  ;;  %v22079_v58 = vand.u32 4294901760, %v18973_v61  ;;  %v22081_v26 = vand.u32 4294901760, %v22080_v48  ;;  %13824 = vmatprep.subr.bf16.mxu1 %v13823_v16  ;;  %v22085_v16 = vld [vmem:[#allocation89_spill] sm:$0xff] }
 0x7fc   : > { %v10354_v55 = vsub.f32 %v18968_v11, %v22078_v6  ;;  %v10325_v24 = vand.u32 4294901760, %v10324_v32  ;;  %v22082_v14 = vand.u32 4294901760, %v18975_v19  ;;  %v22083_v6 = vand.u32 4294901760, %v18977_v21 }
 0x7fd   : > { %v10348_v8 = vsub.f32 %v18973_v61, %v22079_v58  ;;  %9407 = vmatmul.mubr.f32.vlgmr.msra.gmra.mrb[28].mxu0 %v22081_v26  ;;  %v22084_v23 = vand.u32 4294901760, %v18982_v54  ;;  %v10337_v49 = vand.u32 4294901760, %v10336_v3  ;;  %v9489_v15 = vand.u32 4294901760, %v9488_v18 }
 0x7fe   : > { %v10360_v12 = vsub.f32 %v18975_v19, %v22082_v14  ;;  %v9512_v41 = vsub.f32 %v18977_v21, %v22083_v6  ;;  %13658 = vmatpush1.bf16.msra.mxu0 %v19329_v34  ;;  %v9501_v62 = vand.u32 4294901760, %v9500_v53  ;;  %v9495_v26 = vand.u32 4294901760, %v9494_v7  ;;  %9617 = vmatprep.mubr.f32.mxu0 %v21746_v38 }
 0x7ff   : > { %v9524_v9 = vsub.f32 %v18982_v54, %v22084_v23  ;;  %v22086_v32 = vand.u32 4294901760, %v22085_v16  ;;  %13660 = vmatprep.subr.bf16.mxu0 %v13659_v40  ;;  %v9507_v45 = vand.u32 4294901760, %v9506_v20  ;;  %v10343_v58 = vand.u32 4294901760, %v10342_v37 }
 0x800   : > { %v10355_v48 = vand.u32 4294901760, %v10354_v55  ;;  %v22087_v14 = vand.u32 4294901760, %v18987_v27  ;;  %v22088_v34 = vand.u32 4294901760, %v18990_v13  ;;  %v22089_v18 = vand.u32 4294901760, %v18995_v50 }
 0x801   : > { %10261 = vmatmul.mubr.f32.vlgmr.msra.gmra.mrb[42].mxu1 %v22086_v32  ;;  %v22090_v7 = vand.u32 4294901760, %v18997_v60  ;;  %v10349_v55 = vand.u32 4294901760, %v10348_v8  ;;  %v10361_v20 = vand.u32 4294901760, %v10360_v12  ;;  %v9513_v37 = vand.u32 4294901760, %v9512_v41 }
 0x802   : > { %v9518_v6 = vsub.f32 %v18987_v27, %v22087_v14  ;;  %13826 = vmatpush1.bf16.msra.mxu1 %v13825_v0  ;;  %v9530_v3 = vsub.f32 %v18990_v13, %v22088_v34  ;;  %v10366_v53 = vsub.f32 %v18995_v50, %v22089_v18  ;;  %10471 = vmatprep.mubr.f32.mxu1 %v21746_v38  ;;  %v9525_v23 = vand.u32 4294901760, %v9524_v9 }
 0x803   : > { %v10378_v40 = vsub.f32 %v18997_v60, %v22090_v7  ;;  %13828 = vmatprep.subr.bf16.mxu1 %v13827_v59  ;;  %13662 = vmatpush1.bf16.msra.mxu0 %v13661_v43  ;;  %v13833_v0 = vpack.c.bf16 %v10337_v49, %v10325_v24  ;;  %v13667_v16 = vpack.c.bf16 %v9501_v62, %v9489_v15  ;;  %v22091_v32 = vand.u32 4294901760, %v19002_v57 }
 0x804   : > { %v22092_v34 = vand.u32 4294901760, %v19005_v52  ;;  %13664 = vmatprep.subr.bf16.mxu0 %v13663_v22  ;;  %v13669_v7 = vpack.c.bf16 %v9507_v45, %v9495_v26  ;;  %v13835_v31 = vpack.c.bf16 %v10355_v48, %v10343_v58  ;;  %v22093_v59 = vand.u32 4294901760, %v19009_v36 }
 0x805   : > { %v10372_v14 = vsub.f32 %v19002_v57, %v22091_v32  ;;  %v22094_v41 = vand.u32 4294901760, %v19011_v17  ;;  %v9519_v8 = vand.u32 4294901760, %v9518_v6  ;;  %v9531_v24 = vand.u32 4294901760, %v9530_v3 }
 0x806   : > { %v10384_v18 = vsub.f32 %v19005_v52, %v22092_v34  ;;  %v9536_v12 = vsub.f32 %v19009_v36, %v22093_v59  ;;  %13830 = vmatpush1.bf16.msra.mxu1 %v13829_v33  ;;  %v10367_v9 = vand.u32 4294901760, %v10366_v53  ;;  %v10379_v49 = vand.u32 4294901760, %v10378_v40 }
 0x807   : > { %v9548_v43 = vsub.f32 %v19011_v17, %v22094_v41  ;;  %13832 = vmatprep.subr.bf16.mxu1 %v13831_v5  ;;  %v13837_v15 = vpack.c.bf16 %v10361_v20, %v10349_v55  ;;  %v13671_v62 = vpack.c.bf16 %v9525_v23, %v9513_v37  ;;  %v22095_v22 = vand.u32 4294901760, %v19033_v42  ;;  %13666 = vmatpush1.bf16.msra.mxu0 %v13665_v10 }
 0x808   : > { %v22096_v45 = vand.u32 4294901760, %v19035_v25  ;;  %v10373_v48 = vand.u32 4294901760, %v10372_v14  ;;  %v10385_v32 = vand.u32 4294901760, %v10384_v18  ;;  %v22097_v33 = vand.u32 4294901760, %v19020_v1  ;;  %13668 = vmatprep.subr.bf16.mxu0 %v13667_v16 }
 0x809   : > { %v10390_v26 = vsub.f32 %v19033_v42, %v22095_v22  ;;  %v22098_v3 = vand.u32 4294901760, %v19029_v56  ;;  %v9537_v53 = vand.u32 4294901760, %v9536_v12  ;;  %v9549_v40 = vand.u32 4294901760, %v9548_v43 }
 0x80a   : > { %v10402_v58 = vsub.f32 %v19035_v25, %v22096_v45  ;;  %v9542_v6 = vsub.f32 %v19020_v1, %v22097_v33  ;;  %v22099_v55 = vand.u32 4294901760, %v19055_v2  ;;  %v22100_v37 = vand.u32 4294901760, %v19057_v30  ;;  %13834 = vmatpush1.bf16.msra.mxu1 %v13833_v0  ;;  %v22104_v45 = vld [vmem:[#allocation30_spill] sm:$0xff] }
 0x80b   : > { %v9554_v5 = vsub.f32 %v19029_v56, %v22098_v3  ;;  %v13673_v23 = vpack.c.bf16 %v9531_v24, %v9519_v8  ;;  %v13839_v14 = vpack.c.bf16 %v10379_v49, %v10367_v9  ;;  %v22101_v34 = vand.u32 4294901760, %v19042_v46  ;;  %13836 = vmatprep.subr.bf16.mxu1 %v13835_v31  ;;  %13670 = vmatpush1.bf16.msra.mxu0 %v13669_v7  ;;  %v22106_v9 = vld [vmem:[#allocation27_spill] sm:$0xff] }
 0x80c   : > { %v9560_v20 = vsub.f32 %v19055_v2, %v22099_v55  ;;  %v9572_v10 = vsub.f32 %v19057_v30, %v22100_v37  ;;  %v22102_v59 = vand.u32 4294901760, %v19044_v35  ;;  %v10391_v12 = vand.u32 4294901760, %v10390_v26  ;;  %v22108_v55 = vld [vmem:[#allocation22_spill] sm:$0xff]  ;;  %13672 = vmatprep.subr.bf16.mxu0 %v13671_v62 }
 0x80d   : > { %v10396_v18 = vsub.f32 %v19042_v46, %v22101_v34  ;;  %v10403_v41 = vand.u32 4294901760, %v10402_v58  ;;  %v22103_v43 = vand.u32 4294901760, %v19074_v63  ;;  %v22105_v33 = vand.u32 4294901760, %v22104_v45 }
 0x80e   : > { %v10408_v16 = vsub.f32 %v19044_v35, %v22102_v59  ;;  %v9543_v8 = vand.u32 4294901760, %v9542_v6  ;;  %v9555_v24 = vand.u32 4294901760, %v9554_v5  ;;  %v22107_v49 = vand.u32 4294901760, %v22106_v9  ;;  %13838 = vmatpush1.bf16.msra.mxu1 %v13837_v15  ;;  %v22112_v5 = vld [vmem:[#allocation34_spill] sm:$0xff] }
 0x80f   : > { %v10414_v22 = vsub.f32 %v19074_v63, %v22103_v43  ;;  %v10426_v0 = vsub.f32 %v22104_v45, %v22105_v33  ;;  %v22109_v37 = vand.u32 4294901760, %v22108_v55  ;;  %v13841_v26 = vpack.c.bf16 %v10385_v32, %v10373_v48  ;;  %v22110_v33 = vld [vmem:[#allocation39_spill] sm:$0xff]  ;;  %13840 = vmatprep.subr.bf16.mxu1 %v13839_v14  ;;  %13674 = vmatpush1.bf16.msra.mxu0 %v13673_v23  ;;  %v22115_v14 = vld [vmem:[#allocation21_spill] sm:$0xff] }
 0x810   : > { %v9566_v3 = vsub.f32 %v22106_v9, %v22107_v49  ;;  %v13675_v58 = vpack.c.bf16 %v9549_v40, %v9537_v53  ;;  %v9561_v34 = vand.u32 4294901760, %v9560_v20  ;;  %v9573_v59 = vand.u32 4294901760, %v9572_v10  ;;  %v22116_v23 = vld [vmem:[#allocation83_spill] sm:$0xff] }
 0x811   : > { %v9578_v31 = vsub.f32 %v22108_v55, %v22109_v37  ;;  %v10397_v43 = vand.u32 4294901760, %v10396_v18  ;;  %v10409_v63 = vand.u32 4294901760, %v10408_v16  ;;  %v22111_v7 = vand.u32 4294901760, %v22110_v33  ;;  %v22114_v16 = vld [vmem:[#allocation43_spill] sm:$0xff] }
 0x812   : > { %v22113_v45 = vand.u32 4294901760, %v22112_v5  ;;  %v13843_v9 = vpack.c.bf16 %v10403_v41, %v10391_v12  ;;  %v10415_v35 = vand.u32 4294901760, %v10414_v22  ;;  %v10427_v37 = vand.u32 4294901760, %v10426_v0  ;;  %13676 = vmatprep.subr.bf16.mxu0 %v13675_v58  ;;  %13842 = vmatpush1.bf16.msra.mxu1 %v13841_v26  ;;  %v22117_v22 = vld [vmem:[#allocation66_spill] sm:$0xff]  ;;  %v22124_v58 = vld [vmem:[#allocation37_spill] sm:$0xff] }
 0x813   : > { %v10420_v6 = vsub.f32 %v22110_v33, %v22111_v7  ;;  %v13677_v62 = vpack.c.bf16 %v9555_v24, %v9543_v8  ;;  %v9567_v48 = vand.u32 4294901760, %v9566_v3  ;;  %v9579_v32 = vand.u32 4294901760, %v9578_v31  ;;  %v22118_v0 = vld [vmem:[#allocation26_spill] sm:$0xff]  ;;  %v22119_v8 = vld [vmem:[#allocation80_spill] sm:$0xff]  ;;  %v22120_v24 = vld [vmem:[#allocation75_spill] sm:$0xff] }
 0x814   : > { %v10432_v49 = vsub.f32 %v22112_v5, %v22113_v45  ;;  %v13679_v15 = vpack.c.bf16 %v9573_v59, %v9561_v34  ;;  %v13845_v53 = vpack.c.bf16 %v10409_v63, %v10397_v43  ;;  %13844 = vmatprep.subr.bf16.mxu1 %v13843_v9  ;;  %v13847_v10 = vpack.c.bf16 %v10427_v37, %v10415_v35  ;;  %v22121_v9 = vld [vmem:[#allocation99_spill] sm:$0xff]  ;;  %v22125_v34 = vld [vmem:[#allocation106_spill] sm:$0xff]  ;;  %v22126_v59 = vld [vmem:[#allocation105_spill] sm:$0xff] }
 0x815   : > { %v10421_v40 = vand.u32 4294901760, %v10420_v6  ;;  %13678 = vmatpush1.bf16.msra.mxu0 %v13677_v62  ;;  %v13681_v18 = vpack.c.bf16 %v9579_v32, %v9567_v48  ;;  %v13683_v12 = vpack.c.bf16 %v22115_v14, %v22114_v16  ;;  %v13851_v45 = vpack.c.bf16 %v22117_v22, %v22116_v23  ;;  %v22122_v3 = vld [vmem:[#allocation71_spill] sm:$0xff]  ;;  %v22127_v7 = vld [vmem:[#allocation102_spill] sm:$0xff]  ;;  %v22128_v6 = vld [vmem:[#allocation104_spill] sm:$0xff] }
 0x816   : > { %v10433_v20 = vand.u32 4294901760, %v10432_v49  ;;  %13680 = vmatprep.subr.bf16.mxu0 %v13679_v15  ;;  %13846 = vmatpush1.bf16.msra.mxu1 %v13845_v53  ;;  %v13685_v63 = vpack.c.bf16 %v22119_v8, %v22118_v0  ;;  %v13687_v35 = vpack.c.bf16 %v22121_v9, %v22120_v24  ;;  %v22123_v31 = vld [vmem:[#allocation67_spill] sm:$0xff]  ;;  %v13855_v43 = vpack.c.bf16 %v22126_v59, %v22125_v34  ;;  %v22129_v37 = vld [vmem:[#allocation62_spill] sm:$0xff]  ;;  %v22133_v53 = vld [vmem:[#allocation109_spill] sm:$0xff] }
 0x817   : > { %13848 = vmatprep.subr.bf16.mxu1 %v13847_v10  ;;  %v13853_v26 = vpack.c.bf16 %v22123_v31, %v22122_v3  ;;  %v13689_v49 = vpack.c.bf16 %v22128_v6, %v22127_v7  ;;  %v22130_v62 = vld [vmem:[#allocation111_spill] sm:$0xff]  ;;  %v22131_v48 = vld [vmem:[#allocation110_spill] sm:$0xff]  ;;  %v22135_v10 = vld [vmem:[#allocation116_spill] sm:$0xff] }
 0x818   : > { %v13849_v41 = vpack.c.bf16 %v10433_v20, %v10421_v40  ;;  %v13691_v32 = vpack.c.bf16 %v22131_v48, %v22130_v62  ;;  %v22132_v15 = vld [vmem:[#allocation107_spill] sm:$0xff]  ;;  %v22134_v20 = vld [vmem:[#allocation117_spill] sm:$0xff] }
 0x819   : > { %13682 = vmatpush1.bf16.msra.mxu0 %v13681_v18  ;;  %v13857_v40 = vpack.c.bf16 %v22133_v53, %v22132_v15  ;;  %v13859_v18 = vpack.c.bf16 %v22135_v10, %v22134_v20 }
 0x81a   : > { %13684 = vmatprep.subr.bf16.mxu0 %v13683_v12  ;;  %13850 = vmatpush1.bf16.msra.mxu1 %v13849_v41  ;;  %v22136_v12 = vld [vmem:[#allocation112_spill] sm:$0xff]  ;;  %v22137_v41 = vld [vmem:[#allocation115_spill] sm:$0xff] }
 0x81b   : > { %13852 = vmatprep.subr.bf16.mxu1 %v13851_v45  ;;  %v13693_v45 = vpack.c.bf16 %v22137_v41, %v22136_v12 }
 0x81c   : > { %9619 = vmatmul.mubr.f32.vlgmr.msra.gmra.mrb[28].mxu0 %v22124_v58 }
 0x81d   : > { %13686 = vmatpush1.bf16.msra.mxu0 %v13685_v63  ;;  %9745 = vmatprep.mubr.f32.mxu0 %v21746_v38  ;;  %v13695_v63 = vpack.c.bf16 %v22065_v28, %v22064_v4 }
 0x81e   : > { %10473 = vmatmul.mubr.f32.vlgmr.msra.gmra.mrb[42].mxu1 %v22129_v37  ;;  %13688 = vmatprep.subr.bf16.mxu0 %v13687_v35  ;;  %v13861_v35 = vpack.c.bf16 %v22063_v51, %v22061_v39 }
 0x81f   : > { %13854 = vmatpush1.bf16.msra.mxu1 %v13853_v26  ;;  %10599 = vmatprep.mubr.f32.mxu1 %v21746_v38  ;;  %v13863_v26 = vpack.c.bf16 %v18968_v11, %v22076_v29  ;;  %v13701_v11 = vpack.c.bf16 %v18990_v13, %v18987_v27  ;;  %v22139_v13 = vld [vmem:[#allocation31_spill] sm:$0xff]  ;;  %v22150_v29 = vld [vmem:[#allocation100_spill] sm:$0xff] }
 0x820   : > { %13856 = vmatprep.subr.bf16.mxu1 %v13855_v43  ;;  %v13697_v43 = vpack.c.bf16 %v22074_v44, %v22072_v47  ;;  %v13703_v47 = vpack.c.bf16 %v19011_v17, %v19009_v36  ;;  %v13877_v17 = vpack.c.bf16 %v22112_v5, %v22110_v33  ;;  %v22149_v44 = vld [vmem:[#allocation103_spill] sm:$0xff]  ;;  %v22152_v33 = vld [vmem:[#allocation94_spill] sm:$0xff] }
 0x821   : > { %13690 = vmatpush1.bf16.msra.mxu0 %v13689_v49  ;;  %v13699_v49 = vpack.c.bf16 %v18982_v54, %v18977_v21  ;;  %v13869_v21 = vpack.c.bf16 %v19005_v52, %v19002_v57  ;;  %v22138_v54 = vld [vmem:[#allocation51_spill] sm:$0xff]  ;;  %v22153_v5 = vld [vmem:[#allocation114_spill] sm:$0xff] }
 0x822   : > { %13692 = vmatprep.subr.bf16.mxu0 %v13691_v32  ;;  %v13865_v32 = vpack.c.bf16 %v18975_v19, %v18973_v61  ;;  %v13871_v61 = vpack.c.bf16 %v19035_v25, %v19033_v42  ;;  %v13705_v19 = vpack.c.bf16 %v19029_v56, %v19020_v1  ;;  %v13873_v27 = vpack.c.bf16 %v22138_v54, %v19042_v46  ;;  %v22141_v57 = vld [vmem:[#allocation27_spill] sm:$0xff]  ;;  %v22142_v1 = vld [vmem:[#allocation90_spill] sm:$0xff]  ;;  %v22143_v56 = vld [vmem:[#allocation41_spill] sm:$0xff] }
 0x823   : > { %13858 = vmatpush1.bf16.msra.mxu1 %v13857_v40  ;;  %v13867_v40 = vpack.c.bf16 %v18997_v60, %v18995_v50  ;;  %v13707_v50 = vpack.c.bf16 %v19057_v30, %v19055_v2  ;;  %v22140_v60 = vld [vmem:[#allocation30_spill] sm:$0xff]  ;;  %v13709_v36 = vpack.c.bf16 %v22108_v55, %v22141_v57  ;;  %v22144_v46 = vld [vmem:[#allocation81_spill] sm:$0xff]  ;;  %v22147_v2 = vld [vmem:[#allocation68_spill] sm:$0xff]  ;;  %v22169_v54 = vand.u32 4294901760, %v22115_v14 }
 0x824   : > { %13860 = vmatprep.subr.bf16.mxu1 %v13859_v18  ;;  %v13875_v52 = vpack.c.bf16 %v22140_v60, %v22139_v13  ;;  %v22145_v42 = vld [vmem:[#allocation78_spill] sm:$0xff]  ;;  %v22148_v30 = vld [vmem:[#allocation85_spill] sm:$0xff]  ;;  %v22151_v55 = vld [vmem:[#allocation108_spill] sm:$0xff]  ;;  %v22173_v57 = vand.u32 4294901760, %v22117_v22  ;;  %v22178_v14 = vand.u32 4294901760, %v22121_v9  ;;  %v22181_v22 = vand.u32 4294901760, %v22123_v31 }
 0x825   : > { %13694 = vmatpush1.bf16.msra.mxu0 %v13693_v45  ;;  %v22146_v25 = vld [vmem:[#allocation86_spill] sm:$0xff]  ;;  %v22154_v18 = vld [vmem:[#allocation113_spill] sm:$0xff]  ;;  %v22171_v60 = vld [vmem:[#allocation96_spill] sm:$0xff]  ;;  %v22186_v9 = vand.u32 4294901760, %v22128_v6  ;;  %v22188_v31 = vand.u32 4294901760, %v22130_v62  ;;  %v22192_v6 = vand.u32 4294901760, %v22134_v20 }
 0x826   : > { %13696 = vmatprep.subr.bf16.mxu0 %v13695_v63  ;;  %v22155_v45 = vld [vmem:[#allocation42_spill] sm:$0xff]  ;;  %v22156_v63 = vld [vmem:[#allocation48_spill] sm:$0xff]  ;;  %v22194_v62 = vand.u32 4294901760, %v22136_v12  ;;  %v22199_v20 = vand.u32 4294901760, %v22063_v51  ;;  %v22207_v51 = vld [vmem:[#allocation61_spill] sm:$0xff] }
 0x827   : > { %13862 = vmatpush1.bf16.msra.mxu1 %v13861_v35  ;;  %v22157_v35 = vld [vmem:[#allocation45_spill] sm:$0xff]  ;;  %v22170_v13 = vld [vmem:[#allocation74_spill] sm:$0xff] }
 0x828   : > { %13864 = vmatprep.subr.bf16.mxu1 %v13863_v26  ;;  %v22158_v26 = vld [vmem:[#allocation35_spill] sm:$0xff]  ;;  %v22201_v12 = vld [vmem:[#allocation50_spill] sm:$0xff] }
 0x829   : > { %13698 = vmatpush1.bf16.msra.mxu0 %v13697_v43  ;;  %v22159_v43 = vld [vmem:[#allocation17_spill] sm:$0xff] }
 0x82a   : > { %13700 = vmatprep.subr.bf16.mxu0 %v13699_v49  ;;  %v22160_v49 = vld [vmem:[#allocation40_spill] sm:$0xff] }
 0x82b   : > { %13866 = vmatpush1.bf16.msra.mxu1 %v13865_v32  ;;  %v22161_v32 = vld [vmem:[#allocation72_spill] sm:$0xff] }
 0x82c   : > { %13868 = vmatprep.subr.bf16.mxu1 %v13867_v40  ;;  %v22162_v40 = vld [vmem:[#allocation93_spill] sm:$0xff] }
 0x82d   : > { %13702 = vmatpush1.bf16.msra.mxu0 %v13701_v11  ;;  %v22163_v11 = vld [vmem:[#allocation65_spill] sm:$0xff] }
 0x82e   : > { %13704 = vmatprep.subr.bf16.mxu0 %v13703_v47  ;;  %v22164_v47 = vld [vmem:[#allocation70_spill] sm:$0xff] }
 0x82f   : > { %13870 = vmatpush1.bf16.msra.mxu1 %v13869_v21  ;;  %v22165_v21 = vld [vmem:[#allocation73_spill] sm:$0xff] }
 0x830   : > { %13872 = vmatprep.subr.bf16.mxu1 %v13871_v61  ;;  %v22166_v61 = vld [vmem:[#allocation20_spill] sm:$0xff] }
 0x831   : > { %13706 = vmatpush1.bf16.msra.mxu0 %v13705_v19  ;;  %v22167_v19 = vld [vmem:[#allocation47_spill] sm:$0xff] }
 0x832   : > { %13708 = vmatprep.subr.bf16.mxu0 %v13707_v50  ;;  %v22168_v50 = vand.u32 4294901760, %v22114_v16  ;;  %v22177_v16 = vand.u32 4294901760, %v22120_v24  ;;  %v22185_v24 = vand.u32 4294901760, %v22127_v7 }
 0x833   : > { %13874 = vmatpush1.bf16.msra.mxu1 %v13873_v27 }
 0x834   : > { %13876 = vmatprep.subr.bf16.mxu1 %v13875_v52  ;;  %v13739_v27 = vpack.c.bf16 %v22169_v54, %v22168_v50  ;;  %v22172_v52 = vand.u32 4294901760, %v22116_v23  ;;  %v13743_v50 = vpack.c.bf16 %v22178_v14, %v22177_v16  ;;  %v22179_v54 = vld [vmem:[#allocation58_spill] sm:$0xff]  ;;  %v22180_v23 = vand.u32 4294901760, %v22122_v3 }
 0x835   : > { %13710 = vmatpush1.bf16.msra.mxu0 %v13709_v36  ;;  %v22187_v3 = vand.u32 4294901760, %v22146_v25  ;;  %v22198_v14 = vand.u32 4294901760, %v22061_v39  ;;  %v22206_v39 = vld [vmem:[#allocation32_spill] sm:$0xff] }
 0x836   : > { %13712 = vmatprep.subr.bf16.mxu0 %v22142_v1  ;;  %v13907_v36 = vpack.c.bf16 %v22173_v57, %v22172_v52  ;;  %v13909_v52 = vpack.c.bf16 %v22181_v22, %v22180_v23  ;;  %v22182_v57 = vand.u32 4294901760, %v22143_v56  ;;  %v22205_v23 = vld [vmem:[#allocation28_spill] sm:$0xff] }
 0x837   : > { %13878 = vmatpush1.bf16.msra.mxu1 %v13877_v17  ;;  %v22174_v17 = vld [vmem:[#allocation56_spill] sm:$0xff] }
 0x838   : > { %9748 = vmatmul.mubr.f32.vlgmr.msra.gmra.mrb[28].mxu0 %v22143_v56  ;;  %13880 = vmatprep.subr.bf16.mxu1 %v22144_v46  ;;  %v22189_v56 = vand.u32 4294901760, %v22131_v48  ;;  %v22195_v48 = vand.u32 4294901760, %v22137_v41  ;;  %v22202_v41 = vld [vmem:[#allocation60_spill] sm:$0xff] }
 0x839   : > { %13714 = vmatpush1.bf16.msra.mxu0 %v22145_v42  ;;  %9846 = vmatprep.mubr.f32.mxu0 %v21746_v38  ;;  %v22208_v22 = vld [vmem:[#allocation76_spill] sm:$0xff] }
 0x83a   : > { %10602 = vmatmul.mubr.f32.vlgmr.msra.gmra.mrb[42].mxu1 %v22146_v25  ;;  %13716 = vmatprep.subr.bf16.mxu0 %v22147_v2  ;;  %v22193_v25 = vand.u32 4294901760, %v22135_v10  ;;  %v22200_v10 = vld [vmem:[#allocation46_spill] sm:$0xff] }
 0x83b   : > { %13882 = vmatpush1.bf16.msra.mxu1 %v22148_v30  ;;  %10700 = vmatprep.mubr.f32.mxu1 %v21746_v38 }
 0x83c   : > { %13884 = vmatprep.subr.bf16.mxu1 %v22149_v44 }
 0x83d   : > { %13718 = vmatpush1.bf16.msra.mxu0 %v22150_v29 }
 0x83e   : > { %13720 = vmatprep.subr.bf16.mxu0 %v22151_v55 }
 0x83f   : > { %13886 = vmatpush1.bf16.msra.mxu1 %v22152_v33 }
 0x840   : > { %13888 = vmatprep.subr.bf16.mxu1 %v22153_v5 }
 0x841   : > { %13722 = vmatpush1.bf16.msra.mxu0 %v22154_v18 }
 0x842   : > { %13724 = vmatprep.subr.bf16.mxu0 %v22155_v45 }
 0x843   : > { %13890 = vmatpush1.bf16.msra.mxu1 %v22156_v63 }
 0x844   : > { %13892 = vmatprep.subr.bf16.mxu1 %v22157_v35 }
 0x845   : > { %13726 = vmatpush1.bf16.msra.mxu0 %v22158_v26 }
 0x846   : > { %13728 = vmatprep.subr.bf16.mxu0 %v22159_v43 }
 0x847   : > { %13894 = vmatpush1.bf16.msra.mxu1 %v22160_v49 }
 0x848   : > { %13896 = vmatprep.subr.bf16.mxu1 %v22161_v32 }
 0x849   : > { %13730 = vmatpush1.bf16.msra.mxu0 %v22162_v40 }
 0x84a   : > { %13732 = vmatprep.subr.bf16.mxu0 %v22163_v11 }
 0x84b   : > { %13898 = vmatpush1.bf16.msra.mxu1 %v22164_v47 }
 0x84c   : > { %13900 = vmatprep.subr.bf16.mxu1 %v22165_v21 }
 0x84d   : > { %13734 = vmatpush1.bf16.msra.mxu0 %v22166_v61  ;;  %v22175_v61 = vand.u32 4294901760, %v22118_v0  ;;  %v22183_v0 = vand.u32 4294901760, %v22125_v34  ;;  %v13747_v34 = vpack.c.bf16 %v22189_v56, %v22188_v31  ;;  %v19675_v31 = vld [vmem:[%s20406_s7] sm:$0xff] }
 0x84e   : > { %13736 = vmatprep.subr.bf16.mxu0 %v22167_v19  ;;  %v22176_v19 = vand.u32 4294901760, %v22119_v8  ;;  %v22184_v8 = vand.u32 4294901760, %v22126_v59  ;;  %v22190_v59 = vand.u32 4294901760, %v22132_v15  ;;  %v22196_v15 = vand.u32 4294901760, %v22064_v4  ;;  %v22203_v4 = vld [vmem:[#allocation15_spill] sm:$0xff] }
 0x84f   : > { %13902 = vmatpush1.bf16.msra.mxu1 %v22170_v13  ;;  %v11031_v56 = vand.u32 4294901760, %v19675_v31 }
 0x850   : > { %13904 = vmatprep.subr.bf16.mxu1 %v22171_v60  ;;  %v13741_v21 = vpack.c.bf16 %v22176_v19, %v22175_v61  ;;  %v13911_v61 = vpack.c.bf16 %v22184_v8, %v22183_v0  ;;  %v13745_v19 = vpack.c.bf16 %v22186_v9, %v22185_v24  ;;  %v22211_v0 = vld [vmem:[#allocation84_spill] sm:$0xff]  ;;  %v22212_v8 = vld [vmem:[#allocation55_spill] sm:$0xff]  ;;  %v22214_v24 = vld [vmem:[#allocation57_spill] sm:$0xff] }
 0x851   : > { %13738 = vmatpush1.bf16.msra.mxu0 %v22174_v17  ;;  %v19657_v9 = vld [vmem:[%s20406_s7 + $0x80] sm:$0xff] }
 0x852   : > { %13740 = vmatprep.subr.bf16.mxu0 %v13739_v27  ;;  %v13915_v27 = vpack.c.bf16 %v22193_v25, %v22192_v6 }
 0x853   : > { %13906 = vmatpush1.bf16.msra.mxu1 %v22179_v54 }
 0x854   : > { %9850 = vmatmul.mubr.f32.vlgmr.msra.gmra.mrb[28].mxu0 %v22182_v57  ;;  %13908 = vmatprep.subr.bf16.mxu1 %v13907_v36  ;;  %v13749_v36 = vpack.c.bf16 %v22195_v48, %v22194_v62  ;;  %v22210_v57 = vld [vmem:[#allocation92_spill] sm:$0xff] }
 0x855   : > { %13742 = vmatpush1.bf16.msra.mxu0 %v13741_v21  ;;  %10004 = vmatprep.mubr.f32.mxu0 %v21746_v38  ;;  %v22191_v21 = vand.u32 4294901760, %v22133_v53  ;;  %v22197_v53 = vand.u32 4294901760, %v22065_v28  ;;  %v22204_v28 = vld [vmem:[#allocation24_spill] sm:$0xff] }
 0x856   : > { %10704 = vmatmul.mubr.f32.vlgmr.msra.gmra.mrb[42].mxu1 %v22187_v3  ;;  %13744 = vmatprep.subr.bf16.mxu0 %v13743_v50  ;;  %v13917_v50 = vpack.c.bf16 %v22199_v20, %v22198_v14  ;;  %v19785_v20 = vld [vmem:[%s20406_s7 + $0xb0] sm:$0xff] }
 0x857   : > { %13910 = vmatpush1.bf16.msra.mxu1 %v13909_v52  ;;  %v13913_v7 = vpack.c.bf16 %v22191_v21, %v22190_v59  ;;  %10858 = vmatprep.mubr.f32.mxu1 %v21746_v38  ;;  %v13751_v16 = vpack.c.bf16 %v22197_v53, %v22196_v15  ;;  %v22209_v52 = vld [vmem:[#allocation79_spill] sm:$0xff]  ;;  %v19727_v21 = vsub.f32 %v19675_v31, %v11031_v56  ;;  %v19771_v53 = vld [vmem:[%s20406_s7 + $0x28] sm:$0xff] }
 0x858   : > { %13912 = vmatprep.subr.bf16.mxu1 %v13911_v61  ;;  %v22213_v61 = vld [vmem:[#allocation69_spill] sm:$0xff] }
 0x859   : > { %13746 = vmatpush1.bf16.msra.mxu0 %v13745_v19  ;;  %v19662_v19 = vld [vmem:[%s20406_s7 + $0x88] sm:$0xff] }
 0x85a   : > { %13748 = vmatprep.subr.bf16.mxu0 %v13747_v34  ;;  %v11082_v3 = vand.u32 4294901760, %v19662_v19 }
 0x85b   : > { %13914 = vmatpush1.bf16.msra.mxu1 %v13913_v7 }
 0x85c   : > { %13916 = vmatprep.subr.bf16.mxu1 %v13915_v27 }
 0x85d   : > { %13750 = vmatpush1.bf16.msra.mxu0 %v13749_v36 }
 0x85e   : > { %13752 = vmatprep.subr.bf16.mxu0 %v13751_v16 }
 0x85f   : > { %13918 = vmatpush1.bf16.msra.mxu1 %v13917_v50 }
 0x860   : > { %13920 = vmatprep.subr.bf16.mxu1 %v22200_v10 }
 0x861   : > { %13754 = vmatpush1.bf16.msra.mxu0 %v22201_v12 }
 0x862   : > { %13756 = vmatprep.subr.bf16.mxu0 %v22202_v41 }
 0x863   : > { %13922 = vmatpush1.bf16.msra.mxu1 %v22203_v4 }
 0x864   : > { %13924 = vmatprep.subr.bf16.mxu1 %v22204_v28 }
 0x865   : > { %13758 = vmatpush1.bf16.msra.mxu0 %v22205_v23 }
 0x866   : > { %13760 = vmatprep.subr.bf16.mxu0 %v22206_v39  ;;  %v21088_v39 = vand.u32 4294901760, %v19785_v20 }
 0x867   : > { %13926 = vmatpush1.bf16.msra.mxu1 %v22207_v51  ;;  %v19824_v51 = vld [vmem:[%s20406_s7 + $0x30] sm:$0xff] }
 0x868   : > { %13928 = vmatprep.subr.bf16.mxu1 %v22208_v22 }
 0x869   : > { %13762 = vmatpush1.bf16.msra.mxu0 %v22209_v52 }
 0x86a   : > { %13764 = vmatprep.subr.bf16.mxu0 %v22210_v57 }
 0x86b   : > { %13930 = vmatpush1.bf16.msra.mxu1 %v22211_v0 }
 0x86c   : > { %13932 = vmatprep.subr.bf16.mxu1 %v22212_v8 }
 0x86d   : > { %13766 = vmatpush1.bf16.msra.mxu0 %v22213_v61 }
 0x86e   : > { %13768 = vmatprep.subr.bf16.mxu0 %v22142_v1  ;;  %v11079_v1 = vand.u32 4294901760, %v19657_v9 }
 0x86f   : > { %13934 = vmatpush1.bf16.msra.mxu1 %v22214_v24 }
 0x870   : > { %10006 = vmatmul.mubr.f32.vlgmr.msra.gmra.mrb[28].mxu0 %v22124_v58  ;;  %13936 = vmatprep.subr.bf16.mxu1 %v22144_v46  ;;  %v19680_v46 = vld [vmem:[%s20406_s7 + $0x8] sm:$0xff] }
 0x871   : > { %13770 = vmatpush1.bf16.msra.mxu0 %v22145_v42  ;;  %10104 = vmatprep.mubr.f32.mxu0 %v21746_v38  ;;  %v19685_v42 = vld [vmem:[%s20406_s7 + $0x90] sm:$0xff]  ;;  %v11034_v34 = vand.u32 4294901760, %v19680_v46 }
 0x872   : > { %10860 = vmatmul.mubr.f32.vlgmr.msra.gmra.mrb[42].mxu1 %v22129_v37  ;;  %13772 = vmatprep.subr.bf16.mxu0 %v22147_v2  ;;  %v19692_v2 = vld [vmem:[%s20406_s7 + $0x98] sm:$0xff]  ;;  %v11085_v59 = vand.u32 4294901760, %v19685_v42 }
 0x873   : > { %13938 = vmatpush1.bf16.msra.mxu1 %v22148_v30  ;;  %10958 = vmatprep.mubr.f32.mxu1 %v21746_v38  ;;  %v19703_v38 = vsub.f32 %v19657_v9, %v11079_v1  ;;  %v19708_v30 = vsub.f32 %v19662_v19, %v11082_v3  ;;  %v19732_v7 = vsub.f32 %v19680_v46, %v11034_v34 }
 0x874   : > { %13940 = vmatprep.subr.bf16.mxu1 %v22149_v44  ;;  %v11088_v44 = vand.u32 4294901760, %v19692_v2 }
 0x875   : > { %13774 = vmatpush1.bf16.msra.mxu0 %v22150_v29  ;;  %v19714_v29 = vld [vmem:[%s20406_s7 + $0x10] sm:$0xff]  ;;  %v21081_v25 = vand.u32 4294901760, %v19703_v38  ;;  %v21080_v27 = vand.u32 4294901760, %v19708_v30 }
 0x876   : > { %13776 = vmatprep.subr.bf16.mxu0 %v22151_v55  ;;  %v19720_v55 = vld [vmem:[%s20406_s7 + $0x18] sm:$0xff]  ;;  %v21087_v6 = vand.u32 4294901760, %v19714_v29  ;;  %v19756_v62 = vsub.f32 %v19692_v2, %v11088_v44 }
 0x877   : > { %13942 = vmatpush1.bf16.msra.mxu1 %v22152_v33  ;;  %v19737_v33 = vsub.f32 %v19685_v42, %v11085_v59  ;;  %v21086_v48 = vand.u32 4294901760, %v19720_v55  ;;  %v11258_v50 = vsub.f32 %v19703_v38, %v21081_v25  ;;  %v11265_v10 = vsub.f32 %v19708_v30, %v21080_v27  ;;  %v22218_v25 = vld [vmem:[#allocation20_spill] sm:$0xff] }
 0x878   : > { %13944 = vmatprep.subr.bf16.mxu1 %v22153_v5  ;;  %v19743_v5 = vld [vmem:[%s20406_s7 + $0xa0] sm:$0xff]  ;;  %v19780_v14 = vsub.f32 %v19714_v29, %v21087_v6  ;;  %v21078_v12 = vand.u32 4294901760, %v19756_v62 }
 0x879   : > { %13778 = vmatpush1.bf16.msra.mxu0 %v22154_v18  ;;  %v19748_v18 = vld [vmem:[%s20406_s7 + $0xa8] sm:$0xff]  ;;  %v21085_v36 = vand.u32 4294901760, %v19743_v5  ;;  %v21077_v16 = vand.u32 4294901760, %v19737_v33  ;;  %v19803_v41 = vsub.f32 %v19720_v55, %v21086_v48  ;;  %v11259_v8 = vand.u32 4294901760, %v11258_v50 }
 0x87a   : > { %13780 = vmatprep.subr.bf16.mxu0 %v22155_v45  ;;  %v21084_v15 = vand.u32 4294901760, %v19748_v18  ;;  %v19766_v45 = vld [vmem:[%s20406_s7 + $0x20] sm:$0xff]  ;;  %v21098_v0 = vand.u32 4294901760, %v19780_v14  ;;  %v11266_v61 = vand.u32 4294901760, %v11265_v10 }
 0x87b   : > { %13946 = vmatpush1.bf16.msra.mxu1 %v22156_v63  ;;  %v21079_v63 = vand.u32 4294901760, %v19727_v21  ;;  %v21083_v4 = vand.u32 4294901760, %v19766_v45  ;;  %v19812_v28 = vsub.f32 %v19743_v5, %v21085_v36  ;;  %v11272_v57 = vsub.f32 %v19737_v33, %v21077_v16  ;;  %v22215_v10 = vld [vmem:[#allocation73_spill] sm:$0xff]  ;;  %v22219_v36 = vld [vmem:[#allocation47_spill] sm:$0xff] }
 0x87c   : > { %13948 = vmatprep.subr.bf16.mxu1 %v22157_v35  ;;  %v21076_v35 = vand.u32 4294901760, %v19732_v7  ;;  %v19817_v23 = vsub.f32 %v19748_v18, %v21084_v15  ;;  %v21097_v24 = vand.u32 4294901760, %v19803_v41  ;;  %v13995_v48 = vpack.c.bf16 %v11266_v61, %v11259_v8 }
 0x87d   : > { %13782 = vmatpush1.bf16.msra.mxu0 %v22158_v26  ;;  %v19790_v26 = vld [vmem:[%s20406_s7 + $0xb8] sm:$0xff]  ;;  %v11146_v22 = vsub.f32 %v19727_v21, %v21079_v63  ;;  %v19866_v63 = vsub.f32 %v19785_v20, %v21088_v39  ;;  %v11273_v15 = vand.u32 4294901760, %v11272_v57 }
 0x87e   : > { %13784 = vmatprep.subr.bf16.mxu0 %v22159_v43  ;;  %v21082_v43 = vand.u32 4294901760, %v19771_v53  ;;  %v11153_v52 = vsub.f32 %v19732_v7, %v21076_v35  ;;  %v19851_v35 = vsub.f32 %v19766_v45, %v21083_v4  ;;  %v11167_v39 = vsub.f32 %v19803_v41, %v21097_v24 }
 0x87f   : > { %13950 = vmatpush1.bf16.msra.mxu1 %v22160_v49  ;;  %v11100_v49 = vand.u32 4294901760, %v19790_v26  ;;  %22216 = vst [vmem:[#allocation101_spill] sm:$0xff] %v19866_v63  ;;  %v21093_v19 = vand.u32 4294901760, %v19866_v63 }
 0x880   : > { %13952 = vmatprep.subr.bf16.mxu1 %v22161_v32  ;;  %v19829_v32 = vld [vmem:[%s20406_s7 + $0x38] sm:$0xff]  ;;  %v19856_v16 = vsub.f32 %v19771_v53, %v21082_v43  ;;  %v11147_v43 = vand.u32 4294901760, %v11146_v22  ;;  %v11154_v4 = vand.u32 4294901760, %v11153_v52  ;;  %v21095_v22 = vand.u32 4294901760, %v19851_v35 }
 0x881   : > { %13786 = vmatpush1.bf16.msra.mxu0 %v22162_v40  ;;  %v11279_v40 = vsub.f32 %v19756_v62, %v21078_v12  ;;  %v11052_v50 = vand.u32 4294901760, %v19829_v32  ;;  %v21096_v12 = vand.u32 4294901760, %v19812_v28  ;;  %v19871_v27 = vsub.f32 %v19790_v26, %v11100_v49 }
 0x882   : > { %13788 = vmatprep.subr.bf16.mxu0 %v22163_v11  ;;  %v11049_v11 = vand.u32 4294901760, %v19824_v51  ;;  %v21094_v52 = vand.u32 4294901760, %v19856_v16  ;;  %v13997_v8 = vpack.c.bf16 %v11154_v4, %v11147_v43 }
 0x883   : > { %13954 = vmatpush1.bf16.msra.mxu1 %v22164_v47  ;;  %v21089_v47 = vand.u32 4294901760, %v19817_v23  ;;  %22217 = vst [vmem:[#allocation98_spill] sm:$0xff] %v19871_v27  ;;  %v11280_v6 = vand.u32 4294901760, %v11279_v40  ;;  %v19898_v57 = vsub.f32 %v19829_v32, %v11052_v50  ;;  %v11168_v40 = vand.u32 4294901760, %v11167_v39 }
 0x884   : > { %13956 = vmatprep.subr.bf16.mxu1 %v22215_v10  ;;  %v11160_v10 = vsub.f32 %v19780_v14, %v21098_v0  ;;  %v11181_v31 = vsub.f32 %v19856_v16, %v21094_v52 }
 0x885   : > { %13790 = vmatpush1.bf16.msra.mxu0 %v22218_v25  ;;  %v19885_v25 = vpack.c.bf16 %v11082_v3, %v11079_v1  ;;  %22221 = vst [vmem:[#allocation16_spill] sm:$0xff] %v19898_v57  ;;  %v11293_v9 = vsub.f32 %v19817_v23, %v21089_v47  ;;  %v21092_v1 = vand.u32 4294901760, %v19871_v27  ;;  %v13999_v61 = vpack.c.bf16 %v11280_v6, %v11273_v15 }
 0x886   : > { %13792 = vmatprep.subr.bf16.mxu0 %v22219_v36  ;;  %v19893_v36 = vsub.f32 %v19824_v51, %v11049_v11  ;;  %v11161_v3 = vand.u32 4294901760, %v11160_v10  ;;  %v19921_v47 = vpack.c.bf16 %v11088_v44, %v11085_v59  ;;  %v22222_v59 = vand.u32 4294901760, %v19714_v29 }
 0x887   : > { %13958 = vmatpush1.bf16.msra.mxu1 %v22170_v13  ;;  %v11286_v13 = vsub.f32 %v19812_v28, %v21096_v12  ;;  %v11294_v2 = vand.u32 4294901760, %v11293_v9  ;;  %v22223_v44 = vand.u32 4294901760, %v19720_v55  ;;  %v11182_v15 = vand.u32 4294901760, %v11181_v31 }
 0x888   : > { %22220 = vst [vmem:[#allocation97_spill] sm:$0xff] %v19893_v36  ;;  %13960 = vmatprep.subr.bf16.mxu1 %v22171_v60  ;;  %v19914_v60 = vpack.c.bf16 %v11034_v34, %v11031_v56  ;;  %v21091_v46 = vand.u32 4294901760, %v19893_v36  ;;  %v21090_v56 = vand.u32 4294901760, %v19898_v57  ;;  %v11307_v34 = vsub.f32 %v19871_v27, %v21092_v1 }
 0x889   : > { %13794 = vmatpush1.bf16.msra.mxu0 %v22174_v17  ;;  %v11174_v17 = vsub.f32 %v19851_v35, %v21095_v22  ;;  %v11287_v42 = vand.u32 4294901760, %v11286_v13  ;;  %v19944_v6 = vpack.c.bf16 %v22223_v44, %v22222_v59 }
 0x88a   : > { %13964 = vmatprep.subr.bf16.mxu0 %v19885_v25  ;;  %v11188_v4 = vsub.f32 %v19893_v36, %v21091_v46  ;;  %v11195_v29 = vsub.f32 %v19898_v57, %v21090_v56  ;;  %v11308_v39 = vand.u32 4294901760, %v11307_v34  ;;  %v7559_v34 = vld [vmem:[%s20405_s6] sm:$0x3] }
 0x88b   : > { %13962 = vmatpush1.bf16.msra.mxu1 %v22179_v54  ;;  %v11300_v54 = vsub.f32 %v19866_v63, %v21093_v19  ;;  %v14003_v55 = vpack.c.bf16 %v11294_v2, %v11287_v42  ;;  %v22224_v42 = vld [vmem:[#allocation59_spill] sm:$0xff] }
 0x88c   : > { %10106 = vmatmul.mubr.f32.vlgmr.msra.gmra.mrb[28].mxu0 %v22124_v58  ;;  %13996 = vmatprep.subr.bf16.mxu1 %v13995_v48  ;;  %v14001_v58 = vpack.c.bf16 %v11168_v40, %v11161_v3  ;;  %v11175_v48 = vand.u32 4294901760, %v11174_v17  ;;  %v11189_v10 = vand.u32 4294901760, %v11188_v4  ;;  %v11196_v13 = vand.u32 4294901760, %v11195_v29 }
 0x88d   : > { %13966 = vmatpush3.bf16.msra.mxu0 %v19914_v60  ;;  %v11301_v43 = vand.u32 4294901760, %v11300_v54  ;;  %v22225_v4 = vand.u32 4294901760, %v19743_v5  ;;  %v22226_v29 = vand.u32 4294901760, %v19748_v18  ;;  %v10994_v5 = vld [vmem:[%s20406_s7 + $0x40] sm:$0xff]  ;;  %v10995_v18 = vld [vmem:[%s20406_s7 + $0x48] sm:$0xff] }
 0x88e   : > { %10960 = vmatmul.mubr.f32.vlgmr.msra.gmra.mrb[42].mxu1 %v22129_v37  ;;  %13968 = vmatprep.subr.bf16.mxu0 %v19921_v47  ;;  %v14005_v37 = vpack.c.bf16 %v11182_v15, %v11175_v48  ;;  %v14009_v3 = vpack.c.bf16 %v11196_v13, %v11189_v10 }
 0x88f   : > { %13998 = vmatpush3.bf16.msra.mxu1 %v13997_v8  ;;  %v14007_v9 = vpack.c.bf16 %v11308_v39, %v11301_v43  ;;  %v11010_v43 = vld [vmem:[%s20406_s7 + $0xc0] sm:$0xff]  ;;  %v11011_v39 = vld [vmem:[%s20406_s7 + $0xc8] sm:$0xff] }
 0x890   : > { %14000 = vmatprep.subr.bf16.mxu1 %v13999_v61  ;;  %v11106_v10 = vand.u32 4294901760, %v11011_v39 }
 0x891   : > { %13970 = vmatpush3.bf16.msra.mxu0 %v19944_v6 }
 0x893   : > { %14002 = vmatpush3.bf16.msra.mxu1 %v14001_v58 }
 0x894   : > { %14004 = vmatprep.subr.bf16.mxu1 %v14003_v55  ;;  %v19968_v55 = vpack.c.bf16 %v22226_v29, %v22225_v4  ;;  %v20025_v4 = vld [vmem:[%s20406_s7 + $0x58] sm:$0xff] }
 0x895   : > { %v11064_v32 = vand.u32 4294901760, %v20025_v4 }
 0x896   : > { %13972 = vmatprep.subr.bf16.mxu0 %v19968_v55 }
 0x897   : > { %14006 = vmatpush3.bf16.msra.mxu1 %v14005_v37  ;;  %v11103_v37 = vand.u32 4294901760, %v11010_v43  ;;  %v20069_v52 = vsub.f32 %v20025_v4, %v11064_v32  ;;  %v10999_v4 = vld [vmem:[%s20406_s7 + $0x68] sm:$0xff] }
 0x898   : > { %14008 = vmatprep.subr.bf16.mxu1 %v14007_v9  ;;  %v19979_v9 = vsub.f32 %v11011_v39, %v11106_v10  ;;  %v20034_v39 = vpack.c.bf16 %v11052_v50, %v11049_v11  ;;  %v20055_v50 = vld [vmem:[%s20406_s7 + $0xe0] sm:$0xff] }
 0x899   : > { %v19977_v13 = vsub.f32 %v11010_v43, %v11103_v37  ;;  %v20064_v46 = vpack.c.bf16 %v11106_v10, %v11103_v37  ;;  %v10998_v10 = vld [vmem:[%s20406_s7 + $0x60] sm:$0xff]  ;;  %v21104_v22 = vand.u32 4294901760, %v20069_v52 }
 0x89b   : > { %14010 = vmatpush3.bf16.msra.mxu1 %v14009_v3  ;;  %v11055_v3 = vand.u32 4294901760, %v10994_v5 }
 0x8ab   : > { %v8399_v8 = vpop.f32.mrb[26].mxu0 }
 0x8ac   : > { %v8401_v40 = vpop.f32.mrb[27].mxu0 }
 0x8ad   : > { %v8406_v17 = vcombine.low %v8399_v8, %v8401_v40  ;;  %v9253_v31 = vpop.f32.mrb[40].mxu1  ;;  %v11058_v8 = vand.u32 4294901760, %v10995_v18  ;;  %v21106_v40 = vand.u32 4294901760, %v19977_v13 }
 0x8ae   : > { %v9255_v61 = vpop.f32.mrb[41].mxu1 }
 0x8af   : > { %v8413_v2 = vrot.slane %v8406_v17, %v22224_v42  ;;  %v9260_v54 = vcombine.low %v9253_v31, %v9255_v61  ;;  %v21105_v17 = vand.u32 4294901760, %v19979_v9  ;;  %v22227_v31 = vand.u32 4294901760, %v19766_v45  ;;  %v11013_v45 = vld [vmem:[%s20406_s7 + $0xd8] sm:$0xff] }
 0x8b0   : > { %v22228_v61 = vand.u32 4294901760, %v19771_v53  ;;  %v20014_v53 = vld [vmem:[%s20406_s7 + $0x50] sm:$0xff]  ;;  %v20090_v12 = vpack.c.bf16 %v11058_v8, %v11055_v3 }
 0x8b1   : > { %v8420_v59 = vrot.slane %v8413_v2, %v22224_v42  ;;  %v9267_v44 = vrot.slane %v9260_v54, %v22224_v42  ;;  %v19995_v54 = vsub.f32 %v10994_v5, %v11055_v3  ;;  %v11321_v26 = vsub.f32 %v19979_v9, %v21105_v17  ;;  %v11000_v17 = vld [vmem:[%s20406_s7 + $0x70] sm:$0xff] }
 0x8b2   : > { %v19993_v2 = vpack.c.bf16 %v22228_v61, %v22227_v31  ;;  %v11061_v5 = vand.u32 4294901760, %v20014_v53  ;;  %22230 = vst [vmem:[#allocation18_spill] sm:$0xff] %v20090_v12  ;;  %v11067_v3 = vand.u32 4294901760, %v10998_v10 }
 0x8b3   : > { %v8422_v58 = vadd.f32 %v8420_v59, %v7559_v34  ;;  %v9274_v48 = vrot.slane %v9267_v44, %v22224_v42  ;;  %v19997_v34 = vsub.f32 %v10995_v18, %v11058_v8  ;;  %v22229_v59 = vand.u32 4294901760, %v19785_v20 }
 0x8b4   : > { %v11314_v20 = vsub.f32 %v19977_v13, %v21106_v40  ;;  %13974 = vmatpush3.bf16.msra.mxu0 %v19993_v2  ;;  %v21103_v29 = vand.u32 4294901760, %v19995_v54  ;;  %v11322_v31 = vand.u32 4294901760, %v11321_v26  ;;  %v20050_v11 = vsub.f32 %v20014_v53, %v11061_v5 }
 0x8b5   : > { %v19962_v15 = vadd.f32 %v9274_v48, %v8422_v58  ;;  %v20003_v44 = vpack.c.bf16 %v11100_v49, %v22229_v59  ;;  %v11012_v58 = vld [vmem:[%s20406_s7 + $0xd0] sm:$0xff]  ;;  %v11112_v48 = vand.u32 4294901760, %v11013_v45  ;;  %v21102_v43 = vand.u32 4294901760, %v19997_v34 }
 0x8b6   : > { %v11109_v49 = vand.u32 4294901760, %v11012_v58  ;;  %v11315_v18 = vand.u32 4294901760, %v11314_v20  ;;  %v11202_v56 = vsub.f32 %v19995_v54, %v21103_v29  ;;  %v21101_v19 = vand.u32 4294901760, %v20050_v11 }
 0x8b7   : > { %13976 = vmatprep.subr.bf16.mxu0 %v20003_v44  ;;  %v20040_v59 = vsub.f32 %v11013_v45, %v11112_v48  ;;  %v11209_v51 = vsub.f32 %v19997_v34, %v21102_v43  ;;  %v11070_v8 = vand.u32 4294901760, %v10999_v4 }
 0x8b8   : > { %v20038_v61 = vsub.f32 %v11012_v58, %v11109_v49  ;;  %v20060_v58 = vld [vmem:[%s20406_s7 + $0xe8] sm:$0xff]  ;;  %v14011_v45 = vpack.c.bf16 %v11322_v31, %v11315_v18  ;;  %v11203_v1 = vand.u32 4294901760, %v11202_v56  ;;  %13978 = vmatpush3.bf16.msra.mxu0 %v20034_v39  ;;  %v11115_v56 = vand.u32 4294901760, %v20055_v50 }
 0x8b9   : > { %v21099_v26 = vand.u32 4294901760, %v20040_v59  ;;  %v11210_v53 = vand.u32 4294901760, %v11209_v51  ;;  %13980 = vmatprep.subr.bf16.mxu0 %v20064_v46  ;;  %v11118_v37 = vand.u32 4294901760, %v20060_v58  ;;  %v20110_v43 = vpack.c.bf16 %v11112_v48, %v11109_v49  ;;  %v11001_v48 = vld [vmem:[%s20406_s7 + $0x78] sm:$0xff] }
 0x8ba   : > { %v21100_v20 = vand.u32 4294901760, %v20038_v61  ;;  %14012 = vmatprep.subr.bf16.mxu1 %v14011_v45  ;;  %v11216_v45 = vsub.f32 %v20050_v11, %v21101_v19  ;;  %v11223_v19 = vsub.f32 %v20069_v52, %v21104_v22  ;;  %v20114_v29 = vsub.f32 %v10999_v4, %v11070_v8 }
 0x8bb   : > { %v11335_v31 = vsub.f32 %v20040_v59, %v21099_v26  ;;  %v14013_v51 = vpack.c.bf16 %v11210_v53, %v11203_v1  ;;  %v20093_v26 = vsub.f32 %v20055_v50, %v11115_v56  ;;  %v11016_v1 = vld [vmem:[%s20406_s7 + $0xf0] sm:$0xff]  ;;  %v11017_v50 = vld [vmem:[%s20406_s7 + $0xf8] sm:$0xff]  ;;  %22231 = vst [vmem:[#allocation19_spill] sm:$0xff] %v20110_v43  ;;  %v20126_v49 = vpack.c.bf16 %v11064_v32, %v11061_v5 }
 0x8bc   : > { %v11328_v18 = vsub.f32 %v20038_v61, %v21100_v20  ;;  %v20096_v20 = vsub.f32 %v20060_v58, %v11118_v37  ;;  %v11217_v53 = vand.u32 4294901760, %v11216_v45  ;;  %13982 = vmatpush3.bf16.msra.mxu0 %v20090_v12  ;;  %v20112_v45 = vsub.f32 %v10998_v10, %v11067_v3 }
 0x8bd   : > { %v11336_v0 = vand.u32 4294901760, %v11335_v31  ;;  %14014 = vmatpush3.bf16.msra.mxu1 %v14013_v51  ;;  %v11224_v51 = vand.u32 4294901760, %v11223_v19  ;;  %v11121_v22 = vand.u32 4294901760, %v11016_v1  ;;  %13984 = vmatprep.subr.bf16.mxu0 %v20110_v43  ;;  %v11124_v19 = vand.u32 4294901760, %v11017_v50  ;;  %22232 = vst [vmem:[#allocation29_spill] sm:$0xff] %v20126_v49 }
 0x8be   : > { %v11329_v24 = vand.u32 4294901760, %v11328_v18  ;;  %v21107_v18 = vand.u32 4294901760, %v20093_v26  ;;  %v21112_v31 = vand.u32 4294901760, %v20096_v20  ;;  %v11229_v4 = vand.u32 4294901760, %v20112_v45 }
 0x8bf   : > { %v14017_v10 = vpack.c.bf16 %v11224_v51, %v11217_v53  ;;  %v20133_v40 = vsub.f32 %v11016_v1, %v11121_v22  ;;  %v20135_v36 = vsub.f32 %v11017_v50, %v11124_v19  ;;  %v11076_v51 = vand.u32 4294901760, %v11001_v48 }
 0x8c0   : > { %v14015_v58 = vpack.c.bf16 %v11336_v0, %v11329_v24  ;;  %v11342_v0 = vsub.f32 %v20093_v26, %v21107_v18  ;;  %v11349_v24 = vsub.f32 %v20096_v20, %v21112_v31  ;;  %13986 = vmatpush3.bf16.msra.mxu0 %v20126_v49  ;;  %v11073_v31 = vand.u32 4294901760, %v11000_v17 }
 0x8c1   : > { %v11230_v5 = vsub.f32 %v20112_v45, %v11229_v4  ;;  %v11355_v53 = vand.u32 4294901760, %v20133_v40  ;;  %v11362_v12 = vand.u32 4294901760, %v20135_v36  ;;  %v20147_v27 = vsub.f32 %v11001_v48, %v11076_v51 }
 0x8c2   : > { %14016 = vmatprep.subr.bf16.mxu1 %v14015_v58  ;;  %v11236_v58 = vand.u32 4294901760, %v20114_v29  ;;  %v11343_v18 = vand.u32 4294901760, %v11342_v0  ;;  %v11350_v57 = vand.u32 4294901760, %v11349_v24  ;;  %v20142_v1 = vsub.f32 %v11000_v17, %v11073_v31 }
 0x8c3   : > { %14018 = vmatpush3.bf16.msra.mxu1 %v14017_v10  ;;  %v20144_v0 = vpack.c.bf16 %v11118_v37, %v11115_v56  ;;  %v11231_v50 = vand.u32 4294901760, %v11230_v5  ;;  %v11356_v49 = vsub.f32 %v20133_v40, %v11355_v53  ;;  %v11363_v10 = vsub.f32 %v20135_v36, %v11362_v12 }
 0x8c4   : > { %v11237_v32 = vsub.f32 %v20114_v29, %v11236_v58  ;;  %v14019_v43 = vpack.c.bf16 %v11350_v57, %v11343_v18  ;;  %v11243_v63 = vand.u32 4294901760, %v20142_v1  ;;  %v20152_v57 = vpack.c.bf16 %v11070_v8, %v11067_v3 }
 0x8c5   : > { %13988 = vmatprep.subr.bf16.mxu0 %v20144_v0  ;;  %v20154_v18 = vpack.c.bf16 %v11124_v19, %v11121_v22  ;;  %v11357_v56 = vand.u32 4294901760, %v11356_v49  ;;  %v11250_v37 = vand.u32 4294901760, %v20147_v27  ;;  %v11364_v5 = vand.u32 4294901760, %v11363_v10 }
 0x8c6   : > { %v11238_v24 = vand.u32 4294901760, %v11237_v32  ;;  %14020 = vmatprep.subr.bf16.mxu1 %v14019_v43  ;;  %v11244_v32 = vsub.f32 %v20142_v1, %v11243_v63  ;;  %13990 = vmatpush3.bf16.msra.mxu0 %v20152_v57  ;;  %v20159_v43 = vpack.c.bf16 %v11076_v51, %v11073_v31  ;;  %v14027_v22 = vpack.c.bf16 %v19708_v30, %v19703_v38 }
 0x8c7   : > { %v11251_v48 = vsub.f32 %v20147_v27, %v11250_v37  ;;  %13992 = vmatprep.subr.bf16.mxu0 %v20154_v18  ;;  %v14023_v3 = vpack.c.bf16 %v11364_v5, %v11357_v56  ;;  %v22242_v5 = vand.u32 4294901760, %v20050_v11  ;;  %v22243_v10 = vand.u32 4294901760, %v20069_v52 }
 0x8c8   : > { %v14021_v17 = vpack.c.bf16 %v11238_v24, %v11231_v50  ;;  %v11245_v8 = vand.u32 4294901760, %v11244_v32  ;;  %v22233_v32 = vand.u32 4294901760, %v19977_v13  ;;  %v20217_v51 = vpack.c.bf16 %v11250_v37, %v11243_v63  ;;  %v22247_v63 = vld [vmem:[#allocation23_spill] sm:$0xff] }
 0x8c9   : > { %v11252_v19 = vand.u32 4294901760, %v11251_v48  ;;  %v22234_v48 = vand.u32 4294901760, %v19979_v9  ;;  %v20205_v24 = vpack.c.bf16 %v22243_v10, %v22242_v5 }
 0x8ca   : > { %14022 = vmatpush3.bf16.msra.mxu1 %v14021_v17  ;;  %13994 = vmatpush3.bf16.msra.mxu0 %v20159_v43  ;;  %v22240_v17 = vand.u32 4294901760, %v20040_v59 }
 0x8cb   : > { %14024 = vmatprep.subr.bf16.mxu1 %v14023_v3  ;;  %v14025_v49 = vpack.c.bf16 %v11252_v19, %v11245_v8  ;;  %14028 = vmatprep.subr.bf16.mxu0 %v14027_v22  ;;  %v20187_v22 = vpack.c.bf16 %v22234_v48, %v22233_v32  ;;  %v22236_v3 = vand.u32 4294901760, %v19995_v54  ;;  %v22237_v8 = vand.u32 4294901760, %v19997_v34  ;;  %22244 = vst [vmem:[#allocation82_spill] sm:$0xff] %v20205_v24 }
 0x8cc   : > { %v22245_v32 = vand.u32 4294901760, %v20093_v26  ;;  %v22246_v48 = vand.u32 4294901760, %v20096_v20 }
 0x8cd   : > { %22235 = vst [vmem:[#allocation25_spill] sm:$0xff] %v20187_v22  ;;  %v20193_v19 = vpack.c.bf16 %v22237_v8, %v22236_v3  ;;  %v20213_v3 = vpack.c.bf16 %v11236_v58, %v11229_v4  ;;  %v20215_v8 = vpack.c.bf16 %v11362_v12, %v11355_v53  ;;  %v22248_v53 = vsub.s32 0, %v22247_v63 }
 0x8ce   : > { %14026 = vmatpush3.bf16.msra.mxu1 %v14025_v49  ;;  %v22239_v49 = vand.u32 4294901760, %v20038_v61  ;;  %v20211_v50 = vpack.c.bf16 %v22246_v48, %v22245_v32  ;;  %v22249_v48 = vsub.s32 1, %v22247_v63  ;;  %v14037_v63 = vpack.c.bf16 %v19856_v16, %v19851_v35 }
 0x8cf   : > { %14060 = vmatprep.subr.bf16.mxu1 %v19885_v25  ;;  %22238 = vst [vmem:[#allocation33_spill] sm:$0xff] %v20193_v19 }
 0x8d0   : > { %v20199_v56 = vpack.c.bf16 %v22240_v17, %v22239_v49 }
 0x8d2   : > { %22241 = vst [vmem:[#allocation36_spill] sm:$0xff] %v20199_v56 }
 0x95f   : > { %v10107_v17 = vpop.f32.mrb[28].mxu0 }
 0x960   : > { %v10109_v49 = vpop.f32.mrb[29].mxu0 }
 0x961   : > { %v10114_v31 = vcombine.low %v10107_v17, %v10109_v49  ;;  %v10961_v56 = vpop.f32.mrb[42].mxu1 }
 0x962   : > { %v10963_v19 = vpop.f32.mrb[43].mxu1 }
 0x963   : > { %v10121_v10 = vrot.slane %v10114_v31, %v22224_v42  ;;  %v10968_v5 = vcombine.low %v10961_v56, %v10963_v19 }
 0x965   : > { %v10128_v24 = vrot.slane %v10121_v10, %v22224_v42  ;;  %v10975_v22 = vrot.slane %v10968_v5, %v22224_v42 }
 0x967   : > { %v10130_v32 = vadd.f32 %v10128_v24, %v19962_v15  ;;  %v10982_v4 = vrot.slane %v10975_v22, %v22224_v42 }
 0x969   : > { %v10984_v12 = vadd.f32 %v10982_v4, %v10130_v32  ;;  %v14029_v32 = vpack.c.bf16 %v19732_v7, %v19727_v21  ;;  %v14031_v4 = vpack.c.bf16 %v19756_v62, %v19737_v33 }
 0x96b   : > { %v10985_v58 = vmax.f32 %v10984_v12, 0.0  ;;  %v14033_v12 = vpack.c.bf16 %v19803_v41, %v19780_v14 }
 0x96d   : > { %v11023_v37 = vrot.slane %v10985_v58, %v22248_v53  ;;  %v11027_v17 = vrot.slane %v10985_v58, %v22249_v48  ;;  %v14035_v58 = vpack.c.bf16 %v19817_v23, %v19812_v28  ;;  %v22250_v53 = vld [vmem:[#allocation101_spill] sm:$0xff] }
 0x96f   : > { %v20228_v49 = vand.u32 4294901760, %v11027_v17  ;;  %v20230_v31 = vand.u32 4294901760, %v11023_v37 }
 0x971   : > { %11367 = vmatprep.mubr.f32.mxu1 %v20228_v49  ;;  %v11127_v56 = vsub.f32 %v11027_v17, %v20228_v49  ;;  %v11133_v15 = vsub.f32 %v11023_v37, %v20230_v31  ;;  %v22251_v37 = vld [vmem:[#allocation98_spill] sm:$0xff] }
 0x972   : > { %11369 = vmatmul.mubr.f32.vlgmr.msra.gmra.mrb[44].mxu1 %v20230_v31  ;;  %v14039_v48 = vpack.c.bf16 %v22251_v37, %v22250_v53  ;;  %v22252_v17 = vld [vmem:[#allocation18_spill] sm:$0xff] }
 0x973   : > { %14062 = vmatpush3.bf16.msra.mxu1 %v19914_v60  ;;  %v11128_v42 = vand.u32 4294901760, %v11127_v56  ;;  %v11134_v24 = vand.u32 4294901760, %v11133_v15 }
 0x974   : > { %14064 = vmatprep.subr.bf16.mxu1 %v19921_v47 }
 0x975   : > { %11611 = vmatprep.mubr.f32.mxu1 %v11128_v42  ;;  %v11129_v22 = vsub.f32 %v11127_v56, %v11128_v42  ;;  %v11135_v19 = vsub.f32 %v11133_v15, %v11134_v24  ;;  %v22254_v42 = vld [vmem:[#allocation16_spill] sm:$0xff] }
 0x977   : > { %14066 = vmatpush3.bf16.msra.mxu1 %v19944_v6  ;;  %v11130_v10 = vand.u32 4294901760, %v11129_v22  ;;  %v11136_v5 = vand.u32 4294901760, %v11135_v19  ;;  %v22255_v19 = vld [vmem:[#allocation19_spill] sm:$0xff] }
 0x978   : > { %14068 = vmatprep.subr.bf16.mxu1 %v19968_v55 }
 0x979   : > { %11131 = vmatprep.mubr.f32.mxu0 %v11130_v10  ;;  %v22256_v10 = vld [vmem:[#allocation29_spill] sm:$0xff] }
 0x97a   : > { %11137 = vmatmul.mubr.f32.vlgmr.msra.gmra.mrb[30].mxu0 %v11136_v5  ;;  %v22257_v5 = vpack.c.bf16 %v19979_v9, %v19977_v13  ;;  %v22261_v13 = vpack.c.bf16 %v20096_v20, %v20093_v26  ;;  %v22262_v9 = vpack.c.bf16 %v20114_v29, %v20112_v45  ;;  %v22268_v29 = vand.u32 4294901760, %v19732_v7 }
 0x97b   : > { %14030 = vmatpush3.bf16.msra.mxu0 %v14029_v32  ;;  %14070 = vmatpush3.bf16.msra.mxu1 %v19993_v2  ;;  %v22258_v32 = vpack.c.bf16 %v19997_v34, %v19995_v54  ;;  %v22264_v54 = vand.u32 4294901760, %v19703_v38  ;;  %v22265_v34 = vand.u32 4294901760, %v19708_v30  ;;  %v22269_v38 = vand.u32 4294901760, %v19737_v33 }
 0x97c   : > { %11504 = vmatprep.mubr.f32.mxu0 %v11127_v56  ;;  %14032 = vmatprep.subr.bf16.mxu0 %v14031_v4  ;;  %v22253_v56 = vld [vmem:[#allocation97_spill] sm:$0xff]  ;;  %v22259_v4 = vpack.c.bf16 %v20040_v59, %v20038_v61  ;;  %v22270_v30 = vand.u32 4294901760, %v19756_v62  ;;  %v22273_v7 = vand.u32 4294901760, %v19812_v28  ;;  %v22275_v62 = vand.u32 4294901760, %v19851_v35 }
 0x97d   : > { %14072 = vmatprep.subr.bf16.mxu1 %v20003_v44  ;;  %v14041_v22 = vpack.c.bf16 %v22254_v42, %v22253_v56  ;;  %v14091_v61 = vpack.c.bf16 %v22265_v34, %v22264_v54  ;;  %v22279_v28 = vand.u32 4294901760, %v22253_v56  ;;  %v22281_v35 = vld [vmem:[#allocation25_spill] sm:$0xff] }
 0x97f   : > { %14034 = vmatpush3.bf16.msra.mxu0 %v14033_v12  ;;  %14074 = vmatpush3.bf16.msra.mxu1 %v20034_v39  ;;  %v22260_v12 = vpack.c.bf16 %v20069_v52, %v20050_v11  ;;  %v22263_v52 = vpack.c.bf16 %v20135_v36, %v20133_v40  ;;  %v14095_v36 = vpack.c.bf16 %v22270_v30, %v22269_v38 }
 0x980   : > { %14036 = vmatprep.subr.bf16.mxu0 %v14035_v58  ;;  %14076 = vmatprep.subr.bf16.mxu1 %v20064_v46 }
 0x983   : > { %14038 = vmatpush3.bf16.msra.mxu0 %v14037_v63  ;;  %14078 = vmatpush3.bf16.msra.mxu1 %v22252_v17 }
 0x984   : > { %14040 = vmatprep.subr.bf16.mxu0 %v14039_v48  ;;  %14080 = vmatprep.subr.bf16.mxu1 %v22255_v19 }
 0x987   : > { %14042 = vmatpush3.bf16.msra.mxu0 %v14041_v22  ;;  %14082 = vmatpush3.bf16.msra.mxu1 %v22256_v10 }
 0x988   : > { %14044 = vmatprep.subr.bf16.mxu0 %v22257_v5  ;;  %14084 = vmatprep.subr.bf16.mxu1 %v20144_v0 }
 0x98b   : > { %14046 = vmatpush3.bf16.msra.mxu0 %v22258_v32  ;;  %14086 = vmatpush3.bf16.msra.mxu1 %v20152_v57 }
 0x98c   : > { %14048 = vmatprep.subr.bf16.mxu0 %v22259_v4  ;;  %14088 = vmatprep.subr.bf16.mxu1 %v20154_v18 }
 0x98f   : > { %14050 = vmatpush3.bf16.msra.mxu0 %v22260_v12  ;;  %14090 = vmatpush3.bf16.msra.mxu1 %v20159_v43 }
 0x990   : > { %14052 = vmatprep.subr.bf16.mxu0 %v22261_v13  ;;  %14124 = vmatprep.subr.bf16.mxu1 %v19885_v25  ;;  %v22266_v25 = vpack.c.bf16 %v20147_v27, %v20142_v1  ;;  %v22271_v27 = vand.u32 4294901760, %v19780_v14  ;;  %v22277_v14 = vand.u32 4294901760, %v22250_v53  ;;  %v11018_v1 = vld [vmem:[%s20407_s8] sm:$0x1] }
 0x992   : > { %11615 = vmatmul.mubr.f32.vlgmr.msra.gmra.mrb[46].mxu1 %v11134_v24 }
 0x993   : > { %14054 = vmatpush3.bf16.msra.mxu0 %v22262_v9  ;;  %14126 = vmatpush3.bf16.msra.mxu1 %v19914_v60  ;;  %v22267_v60 = vand.u32 4294901760, %v19727_v21 }
 0x994   : > { %11885 = vmatprep.mubr.f32.mxu1 %v20228_v49  ;;  %14056 = vmatprep.subr.bf16.mxu0 %v22263_v52 }
 0x995   : > { %14128 = vmatprep.subr.bf16.mxu1 %v19921_v47  ;;  %v14093_v59 = vpack.c.bf16 %v22268_v29, %v22267_v60  ;;  %v22272_v47 = vand.u32 4294901760, %v19803_v41  ;;  %v22278_v41 = vand.u32 4294901760, %v22251_v37 }
 0x997   : > { %14058 = vmatpush3.bf16.msra.mxu0 %v22266_v25  ;;  %14130 = vmatpush3.bf16.msra.mxu1 %v19944_v6  ;;  %v14097_v21 = vpack.c.bf16 %v22272_v47, %v22271_v27  ;;  %v22274_v6 = vand.u32 4294901760, %v19817_v23  ;;  %v22280_v23 = vand.u32 4294901760, %v22254_v42 }
 0x998   : > { %14092 = vmatprep.subr.bf16.mxu0 %v14091_v61  ;;  %14132 = vmatprep.subr.bf16.mxu1 %v19968_v55  ;;  %v22276_v55 = vand.u32 4294901760, %v19856_v16  ;;  %v22282_v16 = vld [vmem:[#allocation33_spill] sm:$0xff] }
 0x999   : > { %v14099_v33 = vpack.c.bf16 %v22274_v6, %v22273_v7 }
 0x99a   : > { %11507 = vmatmul.mubr.f32.vlgmr.msra.gmra.mrb[32].mxu0 %v11133_v15  ;;  %v14101_v40 = vpack.c.bf16 %v22276_v55, %v22275_v62 }
 0x99b   : > { %14094 = vmatpush3.bf16.msra.mxu0 %v14093_v59  ;;  %11781 = vmatprep.mubr.f32.mxu0 %v20228_v49 }
 0x99c   : > { %14134 = vmatpush3.bf16.msra.mxu1 %v19993_v2  ;;  %14096 = vmatprep.subr.bf16.mxu0 %v14095_v36  ;;  %v14103_v2 = vpack.c.bf16 %v22278_v41, %v22277_v14 }
 0x99d   : > { %14136 = vmatprep.subr.bf16.mxu1 %v20003_v44  ;;  %v14105_v44 = vpack.c.bf16 %v22280_v23, %v22279_v28 }
 0x99f   : > { %14098 = vmatpush3.bf16.msra.mxu0 %v14097_v21 }
 0x9a0   : > { %14138 = vmatpush3.bf16.msra.mxu1 %v20034_v39  ;;  %14100 = vmatprep.subr.bf16.mxu0 %v14099_v33  ;;  %v22284_v39 = vld [vmem:[#allocation82_spill] sm:$0xff] }
 0x9a1   : > { %14140 = vmatprep.subr.bf16.mxu1 %v20064_v46  ;;  %v22283_v46 = vld [vmem:[#allocation36_spill] sm:$0xff] }
 0x9a3   : > { %14102 = vmatpush3.bf16.msra.mxu0 %v14101_v40 }
 0x9a4   : > { %14142 = vmatpush3.bf16.msra.mxu1 %v22252_v17  ;;  %14104 = vmatprep.subr.bf16.mxu0 %v14103_v2 }
 0x9a5   : > { %14144 = vmatprep.subr.bf16.mxu1 %v22255_v19 }
 0x9a7   : > { %14106 = vmatpush3.bf16.msra.mxu0 %v14105_v44 }
 0x9a8   : > { %14146 = vmatpush3.bf16.msra.mxu1 %v22256_v10  ;;  %14108 = vmatprep.subr.bf16.mxu0 %v22281_v35 }
 0x9a9   : > { %14148 = vmatprep.subr.bf16.mxu1 %v20144_v0 }
 0x9ab   : > { %14110 = vmatpush3.bf16.msra.mxu0 %v22282_v16 }
 0x9ac   : > { %14150 = vmatpush3.bf16.msra.mxu1 %v20152_v57  ;;  %14112 = vmatprep.subr.bf16.mxu0 %v22283_v46 }
 0x9ad   : > { %14152 = vmatprep.subr.bf16.mxu1 %v20154_v18 }
 0x9af   : > { %14114 = vmatpush3.bf16.msra.mxu0 %v22284_v39 }
 0x9b0   : > { %14154 = vmatpush3.bf16.msra.mxu1 %v20159_v43  ;;  %14116 = vmatprep.subr.bf16.mxu0 %v20211_v50 }
 0x9b3   : > { %11887 = vmatmul.mubr.f32.vlgmr.msra.gmra.mrb[48].mxu1 %v20230_v31  ;;  %14118 = vmatpush3.bf16.msra.mxu0 %v20213_v3 }
 0x9b4   : > { %14120 = vmatprep.subr.bf16.mxu0 %v20215_v8 }
 0x9b7   : > { %14122 = vmatpush3.bf16.msra.mxu0 %v20217_v51 }
 0x9ba   : > { %11783 = vmatmul.mubr.f32.vlgmr.msra.gmra.mrb[34].mxu0 %v20230_v31 }
 0xa45   : > { %v12098_v11 = vpop.f32.mrb[44].mxu1 }
 0xa46   : > { %v12099_v20 = vpop.f32.mrb[45].mxu1 }
 0xa47   : > { %v12100_v26 = vadd.f32 %v12099_v20, %v12098_v11 }
 0xa4d   : > { %v12063_v45 = vpop.f32.mrb[30].mxu0 }
 0xa4e   : > { %v12064_v0 = vpop.f32.mrb[31].mxu0 }
 0xa4f   : > { %v12065_v57 = vadd.f32 %v12064_v0, %v12063_v45 }
 0xa51   : > { %v11139_v18 = vadd.f32 %v12065_v57, %v11018_v1 }
 0xa53   : > { %v11371_v43 = vadd.f32 %v12100_v26, %v11139_v18 }
 0xa65   : > { %v12168_v50 = vpop.f32.mrb[46].mxu1 }
 0xa66   : > { %v12169_v3 = vpop.f32.mrb[47].mxu1 }
 0xa67   : > { %v12170_v8 = vadd.f32 %v12169_v3, %v12168_v50 }
 0xa6d   : > { %v12133_v51 = vpop.f32.mrb[32].mxu0 }
 0xa6e   : > { %v12134_v49 = vpop.f32.mrb[33].mxu0 }
 0xa6f   : > { %v12135_v31 = vadd.f32 %v12134_v49, %v12133_v51 }
 0xa71   : > { %v11509_v15 = vadd.f32 %v12135_v31, %v11371_v43 }
 0xa73   : > { %v11617_v24 = vadd.f32 %v12170_v8, %v11509_v15 }
 0xa86   : > { %v12238_v58 = vpop.f32.mrb[48].mxu1 }
 0xa87   : > { %v12239_v63 = vpop.f32.mrb[49].mxu1 }
 0xa88   : > { %v12240_v53 = vadd.f32 %v12239_v63, %v12238_v58 }
 0xa8d   : > { %v12203_v37 = vpop.f32.mrb[34].mxu0 }
 0xa8e   : > { %v12204_v48 = vpop.f32.mrb[35].mxu0 }
 0xa8f   : > { %v12205_v17 = vadd.f32 %v12204_v48, %v12203_v37 }
 0xa91   : > { %v11785_v56 = vadd.f32 %v12205_v17, %v11617_v24 }
 0xa93   : > { %v11889_v42 = vadd.f32 %v12240_v53, %v11785_v56 }
 0xa95   : > { %11893 = vst.msk [vmem:[%s354_s21] sm:$0x1] %vm11892_vm10, %v11889_v42 }
 0xa96   : > { %14512 = shalt.err (!%p14509_p11)
}
 0xa97   : > { %s14513_s25 = scalar_lea.hbm %s20357_s29, 16  ;;  %s14517_s18 = scalar_lea.hbm %s20408_s9, 32 }
 0xa98   : > { %p14514_p13 = scmp.ne.s32.totalorder %s20357_s29, %s14513_s25  ;;  %p14518_p6 = scmp.lt.u32.totalorder %s20357_s29, %s20408_s9 }
 0xa99   : > { %p14519_p9 = scmp.lt.u32.totalorder %s14517_s18, %s14513_s25  ;;  %p14521_p12 = scmp.lt.u32.totalorder %s14513_s25, %s20357_s29 }
 0xa9a   : > { %p14515_p0 = pnand %p14514_p13, %p22285_p1 }
 0xa9b   : > { %p14520_p10 = por %p14519_p9, %p14518_p6 }
 0xa9c   : > { %p14516_p5 = pneg %p14515_p0 }
 0xa9d   : > { %p14522_p2 = por %p14521_p12, %p14520_p10 }
 0xa9f   : > { %p14523_p3 = pnand %p14522_p2, %p14516_p5 }
 0xaa1   : > { %14526 = shalt.err (!%p14523_p3)
}
 0xaa2   : > { %14377 = dma.vmem_to_hbm [thread:$0]  (%p22285_p1), %s20359_s26, 16, %s20357_s29, %s11895_s14  }
 0xaa3 PF: > { %p14394_p4 = scmp.ge.s32.totalorder %s14569_s12, 2  ;;  %s11919_s21 = sand.u32 1, %s14557_s30  }
 0xaa4   : > { %p22286_p7 = scmp.ne.s32.totalorder %s21127_s20, 0  ;;  %s11920_s24 = scalar_lea.sflag [#allocation5], %s11919_s21 }
 0xaa6   : > { %p14387_p8 = pnand %p14394_p4, %p22286_p7 }
 0xaa8   : > { %14552 = dma.done.wait (!%p14387_p8), %s11920_s24, 16  }
 0xaa9   : > { %14554 = vsyncadd (!%p14387_p8), %s11920_s24, 4294967280  ;;  %s22287_s12 = sld [smem:[#allocation13_spill]]  ;;  %s22288_s28 = sld [smem:[#allocation12_spill]] }
 0xaaa   : > { %s22289_s11 = sld [smem:[#allocation14_spill]]  ;;  %s22290_s30 = smov %s14561_s10 }
 0xaaf   : > { %p21_p11 = scmp.ge.s32.totalorder %s22287_s12, 4   ;;  %s22291_s10 = smov %s22288_s28 }
 0xab1   :  { %23 = sbr.rel (!%p21_p11) target bundleno = 5 (0x5), region = 122 }
 0xab8   :  { %11924 = vsyncpa [#allocation4], 1 }
 0xab9   :  { %11926 = vsyncpa [#allocation4 + $0x1], 1 }
 0xaba   :  { %11927 = vsyncpa [#allocation7], 1 }
 0xabb   :  { %11928 = vsyncpa [#allocation5], 1 }
 0xabc   :  { %11930 = vsyncpa [#allocation5 + $0x1], 1 }

</bundles_post_ra>
